<compile_context>
chip_gen: v5e
topology: v5e:2x2
jax: 0.10.0
libtpu: 0.0.40
codegen_flags: <defaults>
</compile_context>

<pallas_src>
import math

import numpy as np
import jax
import jax.numpy as jnp
from jax.experimental import pallas as pl
from jax.experimental.pallas import tpu as pltpu

# ----------------------------- hyper-parameters -----------------------------
HIDDEN = 128
NUM_BLOCKS = 6
NUM_BILINEAR = 8
NUM_SPHERICAL = 7
NUM_RADIAL = 6
NUM_TARGETS = 1
CUTOFF = 5.0
ENVELOPE_EXPONENT = 5
NUM_BEFORE_SKIP = 1
NUM_AFTER_SKIP = 2
NUM_OUTPUT_LAYERS = 3

MXU_DTYPE = jnp.bfloat16          # MXU fast path on v5e/v6e/v7x, f32 accumulate
_VMEM_SPEC = pl.BlockSpec(memory_space=pltpu.MemorySpace.VMEM)


# ------------------------------ kernel helpers -------------------------------
def _swish(x):
    return x * jax.nn.sigmoid(x)


def _mm(a, b):
    """bf16-in / f32-accumulate MXU matmul (casts are no-ops for bf16 args)."""
    return jnp.dot(a.astype(MXU_DTYPE), b.astype(MXU_DTYPE),
                   preferred_element_type=jnp.float32)


def _residual(x, w1, b1, w2, b2):
    h = _swish(_mm(x, w1) + b1)
    h = _swish(_mm(h, w2) + b2)
    return x + h


def _output_tail(rbf, x, node_oh, wr, w0, b0, w1, b1, w2, b2):
    """DimeNet output block minus the final HIDDEN->1 projection (readout)."""
    g = _mm(rbf, wr) * x                          # (E, H) f32
    h = _mm(node_oh, g)                           # (N, H) edge->node scatter (bf16 one-hot)
    h = _swish(_mm(h, w0) + b0)
    h = _swish(_mm(h, w1) + b1)
    h = _swish(_mm(h, w2) + b2)
    return h


def _fused_call(kernel, out_shapes, args, flops, transcendentals):
    """Grid-less fused pallas_call with sized VMEM limit and a cost estimate."""
    in_bytes = sum(int(np.prod(a.shape)) * np.dtype(a.dtype).itemsize for a in args)
    out_bytes = sum(int(np.prod(s.shape)) * np.dtype(s.dtype).itemsize
                    for s in out_shapes)
    vmem_limit = int(min(48 * 1024 * 1024,
                         max(32 * 1024 * 1024, 6 * (in_bytes + out_bytes))))
    multi = len(out_shapes) > 1
    return pl.pallas_call(
        kernel,
        out_shape=tuple(out_shapes) if multi else out_shapes[0],
        in_specs=[_VMEM_SPEC] * len(args),
        out_specs=tuple([_VMEM_SPEC] * len(out_shapes)) if multi else _VMEM_SPEC,
        compiler_params=pltpu.CompilerParams(vmem_limit_bytes=vmem_limit),
        cost_estimate=pl.CostEstimate(flops=int(flops),
                                      transcendentals=int(transcendentals),
                                      bytes_accessed=int(in_bytes + out_bytes)),
    )(*args)


# ------------------------------ Pallas kernels ------------------------------
def _embedding_out0_kernel(hzi_ref, hzj_ref, rbf_ref, node_oh_ref,
                           wr_ref, br_ref, we_ref, be_ref,
                           owr_ref, ow0_ref, ob0_ref, ow1_ref, ob1_ref,
                           ow2_ref, ob2_ref, x_ref, h0_ref):
    """Fused DimeNet embedding block + output block 0."""
    rbf = rbf_ref[...]
    rbf_h = _swish(_mm(rbf, wr_ref[...]) + br_ref[...])
    w1 = we_ref[pl.ds(0, HIDDEN), :]
    w2 = we_ref[pl.ds(HIDDEN, HIDDEN), :]
    w3 = we_ref[pl.ds(2 * HIDDEN, HIDDEN), :]
    x = _swish(_mm(hzi_ref[...], w1) + _mm(hzj_ref[...], w2)
               + _mm(rbf_h, w3) + be_ref[...])
    x_ref[...] = x
    h0_ref[...] = _output_tail(rbf, x, node_oh_ref[...],
                               owr_ref[...], ow0_ref[...], ob0_ref[...],
                               ow1_ref[...], ob1_ref[...],
                               ow2_ref[...], ob2_ref[...])


def pallas_embedding_out0(hz_i, hz_j, rbf, node_oh, params):
    E, N, H, NR = hz_i.shape[0], node_oh.shape[0], HIDDEN, NUM_RADIAL
    pr, pe, po = params["emb_lin_rbf"], params["emb_lin"], params["out"][0]
    args = [hz_i, hz_j, rbf, node_oh,
            pr["w"], pr["b"], pe["w"], pe["b"],
            po["lin_rbf"]["w"],
            po["lins"][0]["w"], po["lins"][0]["b"],
            po["lins"][1]["w"], po["lins"][1]["b"],
            po["lins"][2]["w"], po["lins"][2]["b"]]
    flops = 2 * (2 * E * NR * H + 3 * E * H * H + N * E * H + 3 * N * H * H)
    trans = 2 * E * H + 3 * N * H
    out_shapes = [jax.ShapeDtypeStruct((E, H), jnp.float32),
                  jax.ShapeDtypeStruct((N, H), jnp.float32)]
    return _fused_call(_embedding_out0_kernel, out_shapes, args, flops, trans)


def _interaction_out_kernel(*refs):
    """Fully fused interaction block + its output block (lin_rbf, lin_sbf,
    packed lin_ji|lin_kj, bf16 one-hot gather, K=1024 bilinear, bf16 one-hot
    scatter, residuals, skip, edge->node output head)."""
    (x_ref, rbf_ref, sbf_ref, gather_oh_ref, scatter_oh_ref, node_oh_ref,
     wr_ref, ws_ref, wjikj_ref, bjikj_ref, wbil_ref,
     rb_w1, rb_b1, rb_w2, rb_b2,
     wl_ref, bl_ref,
     ra0_w1, ra0_b1, ra0_w2, ra0_b2,
     ra1_w1, ra1_b1, ra1_w2, ra1_b2,
     owr_ref, ow0_ref, ob0_ref, ow1_ref, ob1_ref, ow2_ref, ob2_ref,
     x_out_ref, h_out_ref) = refs

    x = x_ref[...]                                     # (E, H) f32
    rbf = rbf_ref[...]                                 # (E, NR)

    rbf_p = _mm(rbf, wr_ref[...])                      # (E, H) f32
    sbf_p = _mm(sbf_ref[...], ws_ref[...])             # (T, 8) f32, stays in vregs

    # packed lin_ji | lin_kj : one (H, 2H) matmul (fills 256-wide MXU), then
    # lane-split at the 128 boundary.
    h2 = _mm(x, wjikj_ref[...]) + bjikj_ref[...]       # (E, 2H)
    x_ji = _swish(h2[:, :HIDDEN])
    x_kj = _swish(h2[:, HIDDEN:]) * rbf_p              # (E, H)

    # gather (triplet t pulls edge idx_kj[t]) as a precomputed bf16 one-hot
    # MXU matmul with f32 accumulation (exact row copies up to 1 bf16 round).
    x_kj_t = _mm(gather_oh_ref[...], x_kj)             # (T, H) f32

    # bilinear: single K = NUM_BILINEAR*HIDDEN matmul; operand built directly
    # in bf16 (no f32 (T,1024) intermediate, no second full-array cast).
    big = jnp.concatenate(
        [(x_kj_t * sbf_p[:, jb:jb + 1]).astype(MXU_DTYPE)
         for jb in range(NUM_BILINEAR)], axis=1)       # (T, 1024) bf16
    m = _mm(big, wbil_ref[...])                        # (T, H) f32
    # TODO(synk): on v5e (128-wide MXU) an 8-step K=128 accumulate avoids the
    # (T, 1024) operand at zero MXU cost; keep the big-K form for v6e/v7x.

    # scatter (triplets -> edges at idx_ji) as a precomputed bf16 one-hot matmul
    agg = _mm(scatter_oh_ref[...], m)                  # (E, H) f32

    h = x_ji + agg
    h = _residual(h, rb_w1[...], rb_b1[...], rb_w2[...], rb_b2[...])
    h = _swish(_mm(h, wl_ref[...]) + bl_ref[...]) + x
    h = _residual(h, ra0_w1[...], ra0_b1[...], ra0_w2[...], ra0_b2[...])
    h = _residual(h, ra1_w1[...], ra1_b1[...], ra1_w2[...], ra1_b2[...])
    x_out_ref[...] = h

    # fused output block for this interaction block (operates on the new x)
    h_out_ref[...] = _output_tail(rbf, h, node_oh_ref[...],
                                  owr_ref[...], ow0_ref[...], ob0_ref[...],
                                  ow1_ref[...], ob1_ref[...],
                                  ow2_ref[...], ob2_ref[...])


def pallas_interaction_out(x, rbf, sbf, gather_oh, scatter_oh, node_oh, p, po):
    E, T, N = x.shape[0], sbf.shape[0], node_oh.shape[0]
    H, NR, NSR, NB = HIDDEN, NUM_RADIAL, NUM_SPHERICAL * NUM_RADIAL, NUM_BILINEAR
    rb = p["res_before"][0]
    ra0, ra1 = p["res_after"][0], p["res_after"][1]
    args = [x, rbf, sbf, gather_oh, scatter_oh, node_oh,
            p["lin_rbf"]["w"], p["lin_sbf"]["w"],
            p["lin_jikj"]["w"], p["lin_jikj"]["b"],
            p["W"].reshape(NB * H, H),
            rb["l1"]["w"], rb["l1"]["b"], rb["l2"]["w"], rb["l2"]["b"],
            p["lin"]["w"], p["lin"]["b"],
            ra0["l1"]["w"], ra0["l1"]["b"], ra0["l2"]["w"], ra0["l2"]["b"],
            ra1["l1"]["w"], ra1["l1"]["b"], ra1["l2"]["w"], ra1["l2"]["b"],
            po["lin_rbf"]["w"],
            po["lins"][0]["w"], po["lins"][0]["b"],
            po["lins"][1]["w"], po["lins"][1]["b"],
            po["lins"][2]["w"], po["lins"][2]["b"]]
    flops = 2 * (E * NR * H + T * NSR * NB + E * H * 2 * H
                 + T * E * H + T * NB * H * H + E * T * H
                 + 7 * E * H * H
                 + E * NR * H + N * E * H + 3 * N * H * H)
    trans = 9 * E * H + 3 * N * H
    out_shapes = [jax.ShapeDtypeStruct((E, H), jnp.float32),
                  jax.ShapeDtypeStruct((N, H), jnp.float32)]
    return _fused_call(_interaction_out_kernel, out_shapes, args, flops, trans)


def _readout_kernel(h_ref, w_ref, graph_oh_ref, o_ref):
    """Per-block HIDDEN->1 projections (one K=7*128 matmul) + block sum +
    node->graph scatter; only the final (G, 1) output is lane-sparse."""
    p = _mm(h_ref[...], w_ref[...])                    # (N, 1) f32
    o_ref[...] = _mm(graph_oh_ref[...], p)             # (G, 1) f32


def pallas_readout(h_cat, w_cat, graph_oh):
    N, K = h_cat.shape
    G = graph_oh.shape[0]
    flops = 2 * (N * K * NUM_TARGETS + G * N * NUM_TARGETS)
    out_shapes = [jax.ShapeDtypeStruct((G, NUM_TARGETS), jnp.float32)]
    return _fused_call(_readout_kernel, out_shapes, [h_cat, w_cat, graph_oh],
                       flops, 0)


# --------------------- basis functions (plain-JAX glue) ---------------------
def envelope(x):
    p = ENVELOPE_EXPONENT + 1
    a = -(p + 1) * (p + 2) / 2.0
    b = p * (p + 2)
    c = -p * (p + 1) / 2.0
    xp0 = x ** (p - 1)
    xp1 = xp0 * x
    xp2 = xp1 * x
    return (1.0 / x + a * xp0 + b * xp1 + c * xp2) * (x < 1.0).astype(x.dtype)


def bessel_rbf(dist, freq):
    d = dist[:, None] / CUTOFF
    return envelope(d) * jnp.sin(freq * d)


def sph_jn_jax(l, x):
    jp = jnp.sin(x) / x
    if l == 0:
        return jp
    jc = jnp.sin(x) / x ** 2 - jnp.cos(x) / x
    for m in range(1, l):
        jp, jc = jc, (2 * m + 1) / x * jc - jp
    return jc


def spherical_sbf(dist, angle, idx_kj, zeros, norms):
    d = dist / CUTOFF
    feats = [norms[l, n] * sph_jn_jax(l, zeros[l, n] * d)
             for l in range(NUM_SPHERICAL) for n in range(NUM_RADIAL)]
    rbf = jnp.stack(feats, axis=1)                         # (E, 42)
    rbf = envelope(d)[:, None] * rbf
    # real spherical harmonics Y_l0(theta) = sqrt((2l+1)/4pi) * P_l(cos theta)
    c = jnp.cos(angle)
    P = [jnp.ones_like(c), c]
    for l in range(1, NUM_SPHERICAL - 1):
        P.append(((2 * l + 1) * c * P[l] - l * P[l - 1]) / (l + 1))
    cbf = jnp.stack([math.sqrt((2 * l + 1) / (4 * math.pi)) * P[l]
                     for l in range(NUM_SPHERICAL)], axis=1)   # (T, 7)
    out = rbf[idx_kj].reshape(-1, NUM_SPHERICAL, NUM_RADIAL) * cbf[:, :, None]
    return out.reshape(-1, NUM_SPHERICAL * NUM_RADIAL)


# --------- numpy precompute: spherical Bessel zeros / normalizers ---------
def _sph_jn_np(n, x):
    x = np.asarray(x, dtype=np.float64)
    jp = np.sin(x) / x
    if n == 0:
        return jp
    jc = np.sin(x) / x ** 2 - np.cos(x) / x
    for m in range(1, n):
        jp, jc = jc, (2 * m + 1) / x * jc - jp
    return jc


def _bisect(f, lo, hi, iters=100):
    flo = f(lo)
    for _ in range(iters):
        mid = 0.5 * (lo + hi)
        fm = f(mid)
        if flo * fm <= 0:
            hi = mid
        else:
            lo, flo = mid, fm
    return 0.5 * (lo + hi)


def jn_zeros(n, k):
    zeros = np.zeros((n, k))
    zeros[0] = np.arange(1, k + 1) * np.pi
    points = np.arange(1, k + n) * np.pi
    racines = np.zeros(k + n - 1)
    for order in range(1, n):
        for m in range(k + n - 1 - order):
            racines[m] = _bisect(lambda r: float(_sph_jn_np(order, r)),
                                 points[m], points[m + 1])
        points = racines.copy()
        zeros[order, :] = racines[:k]
    return zeros


def bessel_normalizers(zeros):
    norms = np.zeros_like(zeros)
    for l in range(zeros.shape[0]):
        for n in range(zeros.shape[1]):
            norms[l, n] = 1.0 / math.sqrt(0.5 * float(_sph_jn_np(l + 1, zeros[l, n])) ** 2)
    return norms


# --------------------------- parameter initialization -----------------------
def init_params(key):
    keys = iter(jax.random.split(key, 1024))

    def nrm(shape, scale):
        # weights live in bf16 (MXU operand dtype); biases stay f32.
        return (jax.random.normal(next(keys), shape, jnp.float32) * scale
                ).astype(MXU_DTYPE)

    def lin(din, dout, bias=True):
        p = {"w": nrm((din, dout), math.sqrt(2.0 / (din + dout)))}
        if bias:
            p["b"] = jnp.zeros((1, dout), jnp.float32)
        return p

    params = {
        "emb_table": nrm((95, HIDDEN), 1.0),
        "emb_lin_rbf": lin(NUM_RADIAL, HIDDEN),
        "emb_lin": lin(3 * HIDDEN, HIDDEN),
        "out": [],
        "int": [],
    }
    for _ in range(NUM_BLOCKS + 1):
        params["out"].append({
            "lin_rbf": lin(NUM_RADIAL, HIDDEN, bias=False),
            "lins": [lin(HIDDEN, HIDDEN) for _ in range(NUM_OUTPUT_LAYERS)],
            "lin": lin(HIDDEN, NUM_TARGETS, bias=False),
        })
    for _ in range(NUM_BLOCKS):
        lin_ji = lin(HIDDEN, HIDDEN)
        lin_kj = lin(HIDDEN, HIDDEN)
        params["int"].append({
            "lin_rbf": lin(NUM_RADIAL, HIDDEN, bias=False),
            "lin_sbf": lin(NUM_SPHERICAL * NUM_RADIAL, NUM_BILINEAR, bias=False),
            # lin_ji | lin_kj packed into one (H, 2H) weight: single N=256
            # matmul fills the 256-wide MXU on v6e/v7x.
            "lin_jikj": {
                "w": jnp.concatenate([lin_ji["w"], lin_kj["w"]], axis=1),
                "b": jnp.concatenate([lin_ji["b"], lin_kj["b"]], axis=1),
            },
            "W": nrm((NUM_BILINEAR, HIDDEN, HIDDEN), 2.0 / HIDDEN),
            "res_before": [{"l1": lin(HIDDEN, HIDDEN), "l2": lin(HIDDEN, HIDDEN)}
                           for _ in range(NUM_BEFORE_SKIP)],
            "lin": lin(HIDDEN, HIDDEN),
            "res_after": [{"l1": lin(HIDDEN, HIDDEN), "l2": lin(HIDDEN, HIDDEN)}
                          for _ in range(NUM_AFTER_SKIP)],
        })
    return params


# ------------------------- graph construction (host) ------------------------
# TODO(synk): radius_graph + triplet construction are data-dependent /
# dynamically shaped; positions are generated so that every intra-molecule pair
# is within the cutoff, so the fully-connected intra-molecule graph equals
# radius_graph(pos, r=5.0, batch).  Indices are built statically on the host.
def build_graph(batch_np):
    N = len(batch_np)
    edges = [(jj, ii) for ii in range(N) for jj in range(N)
             if ii != jj and batch_np[ii] == batch_np[jj]]   # (j -> i)
    edge_id = {e: k for k, e in enumerate(edges)}
    j_idx = np.array([e[0] for e in edges], np.int32)
    i_idx = np.array([e[1] for e in edges], np.int32)
    t_i, t_j, t_k, t_kj, t_ji = [], [], [], [], []
    for e, (jj, ii) in enumerate(edges):
        for kk in range(N):
            if kk != jj and kk != ii and batch_np[kk] == batch_np[jj]:
                t_i.append(ii); t_j.append(jj); t_k.append(kk)
                t_kj.append(edge_id[(kk, jj)]); t_ji.append(e)
    to = lambda a: jnp.asarray(np.array(a, np.int32))
    return {"i": to(i_idx), "j": to(j_idx),
            "idx_i": to(t_i), "idx_j": to(t_j), "idx_k": to(t_k),
            "idx_kj": to(t_kj), "idx_ji": to(t_ji)}


# ------------------------------ forward pass --------------------------------
def cross3(u, v):
    return jnp.stack([u[:, 1] * v[:, 2] - u[:, 2] * v[:, 1],
                      u[:, 2] * v[:, 0] - u[:, 0] * v[:, 2],
                      u[:, 0] * v[:, 1] - u[:, 1] * v[:, 0]], axis=-1)


def dimenet_forward(params, z, pos, batch, idx, consts, num_graphs):
    i, j = idx["i"], idx["j"]
    N, E = pos.shape[0], i.shape[0]

    # geometry (glue)
    dist = jnp.sqrt(jnp.sum((pos[i] - pos[j]) ** 2, axis=-1))
    pos_i = pos[idx["idx_i"]]
    pos_ji = pos[idx["idx_j"]] - pos_i
    pos_ki = pos[idx["idx_k"]] - pos_i
    a = jnp.sum(pos_ji * pos_ki, axis=-1)
    b = jnp.sqrt(jnp.sum(cross3(pos_ji, pos_ki) ** 2, axis=-1))
    angle = jnp.arctan2(b, a)

    rbf = bessel_rbf(dist, consts["freq"])                                  # (E, 6)
    sbf = spherical_sbf(dist, angle, idx["idx_kj"],
                        consts["zeros"], consts["norms"])                   # (T, 42)

    # bf16 one-hot gather/scatter matrices built ONCE outside the kernels and
    # reused by all 7 fused blocks (0/1 entries are exact in bf16).
    gather_oh = (idx["idx_kj"][:, None] == jnp.arange(E)[None, :]).astype(MXU_DTYPE)   # (T, E)
    scatter_oh = (jnp.arange(E)[:, None] == idx["idx_ji"][None, :]).astype(MXU_DTYPE)  # (E, T)
    node_oh = (jnp.arange(N)[:, None] == i[None, :]).astype(MXU_DTYPE)                 # (N, E)
    graph_oh = (jnp.arange(num_graphs)[:, None] == batch[None, :]).astype(MXU_DTYPE)   # (G, N)

    # embedding + output block 0 (one fused kernel, two outputs)
    hz = params["emb_table"][z]                                             # bf16 gather (glue)
    x, h0 = pallas_embedding_out0(hz[i], hz[j], rbf, node_oh, params)       # (E,128), (N,128)

    # interaction block + its output block (one fused kernel each)
    h_nodes = [h0]
    for blk in range(NUM_BLOCKS):
        x, hb = pallas_interaction_out(x, rbf, sbf, gather_oh, scatter_oh,
                                       node_oh, params["int"][blk],
                                       params["out"][blk + 1])
        h_nodes.append(hb)

    # final readout: per-block HIDDEN->1 projections + block sum + graph scatter
    h_cat = jnp.concatenate(h_nodes, axis=1)                                # (N, 7*128)
    w_cat = jnp.concatenate([params["out"][b]["lin"]["w"]
                             for b in range(NUM_BLOCKS + 1)], axis=0)       # (7*128, 1) bf16
    return pallas_readout(h_cat, w_cat, graph_oh)                           # (G, 1)


# ----------------------------------- main ------------------------------------
if __name__ == "__main__":
    key = jax.random.PRNGKey(0)
    k_pos, k_param = jax.random.split(key)

    NUM_GRAPHS, N_PER = 2, 4
    N = NUM_GRAPHS * N_PER
    batch_np = np.repeat(np.arange(NUM_GRAPHS), N_PER).astype(np.int32)

    # positions: jittered tetrahedra, all intra-molecule distances << cutoff=5.0
    base = np.array([[0, 0, 0], [1, 0, 0], [0, 1, 0], [0, 0, 1]], np.float32)
    jitter = 0.1 * np.array(jax.random.normal(k_pos, (N, 3), jnp.float32))
    pos = jnp.asarray(np.concatenate([base, base], 0) + jitter, jnp.float32)
    z = jnp.array([1, 6, 7, 8, 1, 6, 8, 6], dtype=jnp.int32)        # atomic numbers
    batch = jnp.asarray(batch_np)

    idx = build_graph(batch_np)
    zeros_np = jn_zeros(NUM_SPHERICAL, NUM_RADIAL)
    consts = {
        "freq": jnp.asarray(np.arange(1, NUM_RADIAL + 1) * np.pi, jnp.float32),
        "zeros": jnp.asarray(zeros_np, jnp.float32),
        "norms": jnp.asarray(bessel_normalizers(zeros_np), jnp.float32),
    }
    params = init_params(k_param)

    fwd = jax.jit(lambda p, zz, pp, bb, ii: dimenet_forward(
        p, zz, pp, bb, ii, consts, NUM_GRAPHS))
    out = fwd(params, z, pos, batch, idx)
    out = jax.block_until_ready(out)

    assert out.shape == (NUM_GRAPHS, NUM_TARGETS)
    assert bool(jnp.all(jnp.isfinite(out)))
    print("KERNEL_OK")
</pallas_src>

<mosaic_0001>
module attributes {stable_mosaic.version = 11 : i64} {
  func.func @_embedding_out0_kernel(%arg0: memref<24x128xbf16, #tpu.memory_space<vmem>>, %arg1: memref<24x128xbf16, #tpu.memory_space<vmem>>, %arg2: memref<24x6xf32, #tpu.memory_space<vmem>>, %arg3: memref<8x24xbf16, #tpu.memory_space<vmem>>, %arg4: memref<6x128xbf16, #tpu.memory_space<vmem>>, %arg5: memref<1x128xf32, #tpu.memory_space<vmem>>, %arg6: memref<384x128xbf16, #tpu.memory_space<vmem>>, %arg7: memref<1x128xf32, #tpu.memory_space<vmem>>, %arg8: memref<6x128xbf16, #tpu.memory_space<vmem>>, %arg9: memref<128x128xbf16, #tpu.memory_space<vmem>>, %arg10: memref<1x128xf32, #tpu.memory_space<vmem>>, %arg11: memref<128x128xbf16, #tpu.memory_space<vmem>>, %arg12: memref<1x128xf32, #tpu.memory_space<vmem>>, %arg13: memref<128x128xbf16, #tpu.memory_space<vmem>>, %arg14: memref<1x128xf32, #tpu.memory_space<vmem>>, %arg15: memref<24x128xf32, #tpu.memory_space<vmem>>, %arg16: memref<8x128xf32, #tpu.memory_space<vmem>>) attributes {dimension_semantics = [], scalar_prefetch = 0 : i64, scratch_operands = 0 : i64, tpu.core_type = #tpu.core_type<tc>} {
    %c0 = arith.constant 0 : index
    %c0_0 = arith.constant 0 : index
    %0 = vector.load %arg2[%c0, %c0_0] : memref<24x6xf32, #tpu.memory_space<vmem>>, vector<24x6xf32>
    %c0_1 = arith.constant 0 : index
    %c0_2 = arith.constant 0 : index
    %1 = vector.load %arg4[%c0_1, %c0_2] : memref<6x128xbf16, #tpu.memory_space<vmem>>, vector<6x128xbf16>
    %2 = arith.truncf %0 : vector<24x6xf32> to vector<24x6xbf16>
    %cst = arith.constant dense<0.000000e+00> : vector<24x128xf32>
    %3 = tpu.matmul %2, %1, %cst {dimension_numbers = #tpu.dot_dimension_numbers<[1], [0], [0], [1], [0, 0, 1, 1], [], []>} : vector<24x6xbf16>, vector<6x128xbf16>, vector<24x128xf32> -> vector<24x128xf32>
    %c0_3 = arith.constant 0 : index
    %c0_4 = arith.constant 0 : index
    %4 = vector.load %arg5[%c0_3, %c0_4] : memref<1x128xf32, #tpu.memory_space<vmem>>, vector<1x128xf32>
    %5 = vector.broadcast %4 : vector<1x128xf32> to vector<24x128xf32>
    %6 = arith.addf %3, %5 : vector<24x128xf32>
    %7 = arith.negf %6 : vector<24x128xf32>
    %8 = math.exp %7 : vector<24x128xf32>
    %cst_5 = arith.constant 1.000000e+00 : f32
    %9 = vector.broadcast %cst_5 : f32 to vector<24x128xf32>
    %10 = arith.addf %9, %8 : vector<24x128xf32>
    %11 = arith.divf %9, %10 : vector<24x128xf32>
    %12 = arith.mulf %6, %11 : vector<24x128xf32>
    %c0_6 = arith.constant 0 : index
    %c0_7 = arith.constant 0 : index
    %13 = vector.load %arg6[%c0_6, %c0_7] : memref<384x128xbf16, #tpu.memory_space<vmem>>, vector<128x128xbf16>
    %c128 = arith.constant 128 : index
    %c0_8 = arith.constant 0 : index
    %14 = vector.load %arg6[%c128, %c0_8] : memref<384x128xbf16, #tpu.memory_space<vmem>>, vector<128x128xbf16>
    %c256 = arith.constant 256 : index
    %c0_9 = arith.constant 0 : index
    %15 = vector.load %arg6[%c256, %c0_9] : memref<384x128xbf16, #tpu.memory_space<vmem>>, vector<128x128xbf16>
    %c0_10 = arith.constant 0 : index
    %c0_11 = arith.constant 0 : index
    %16 = vector.load %arg0[%c0_10, %c0_11] : memref<24x128xbf16, #tpu.memory_space<vmem>>, vector<24x128xbf16>
    %cst_12 = arith.constant dense<0.000000e+00> : vector<24x128xf32>
    %17 = tpu.matmul %16, %13, %cst_12 {dimension_numbers = #tpu.dot_dimension_numbers<[1], [0], [0], [1], [0, 0, 1, 1], [], []>} : vector<24x128xbf16>, vector<128x128xbf16>, vector<24x128xf32> -> vector<24x128xf32>
    %c0_13 = arith.constant 0 : index
    %c0_14 = arith.constant 0 : index
    %18 = vector.load %arg1[%c0_13, %c0_14] : memref<24x128xbf16, #tpu.memory_space<vmem>>, vector<24x128xbf16>
    %cst_15 = arith.constant dense<0.000000e+00> : vector<24x128xf32>
    %19 = tpu.matmul %18, %14, %cst_15 {dimension_numbers = #tpu.dot_dimension_numbers<[1], [0], [0], [1], [0, 0, 1, 1], [], []>} : vector<24x128xbf16>, vector<128x128xbf16>, vector<24x128xf32> -> vector<24x128xf32>
    %20 = arith.addf %17, %19 : vector<24x128xf32>
    %21 = arith.truncf %12 : vector<24x128xf32> to vector<24x128xbf16>
    %cst_16 = arith.constant dense<0.000000e+00> : vector<24x128xf32>
    %22 = tpu.matmul %21, %15, %cst_16 {dimension_numbers = #tpu.dot_dimension_numbers<[1], [0], [0], [1], [0, 0, 1, 1], [], []>} : vector<24x128xbf16>, vector<128x128xbf16>, vector<24x128xf32> -> vector<24x128xf32>
    %23 = arith.addf %20, %22 : vector<24x128xf32>
    %c0_17 = arith.constant 0 : index
    %c0_18 = arith.constant 0 : index
    %24 = vector.load %arg7[%c0_17, %c0_18] : memref<1x128xf32, #tpu.memory_space<vmem>>, vector<1x128xf32>
    %25 = vector.broadcast %24 : vector<1x128xf32> to vector<24x128xf32>
    %26 = arith.addf %23, %25 : vector<24x128xf32>
    %27 = arith.negf %26 : vector<24x128xf32>
    %28 = math.exp %27 : vector<24x128xf32>
    %cst_19 = arith.constant 1.000000e+00 : f32
    %29 = vector.broadcast %cst_19 : f32 to vector<24x128xf32>
    %30 = arith.addf %29, %28 : vector<24x128xf32>
    %31 = arith.divf %29, %30 : vector<24x128xf32>
    %32 = arith.mulf %26, %31 : vector<24x128xf32>
    %c0_20 = arith.constant 0 : index
    %c0_21 = arith.constant 0 : index
    %33 = vector.load %arg15[%c0_20, %c0_21] : memref<24x128xf32, #tpu.memory_space<vmem>>, vector<24x128xf32>
    tpu.vector_store %arg15[%c0_20, %c0_21], %32 {strides = array<i32>} : memref<24x128xf32, #tpu.memory_space<vmem>>, vector<24x128xf32>,
    %c0_22 = arith.constant 0 : index
    %c0_23 = arith.constant 0 : index
    %34 = vector.load %arg3[%c0_22, %c0_23] : memref<8x24xbf16, #tpu.memory_space<vmem>>, vector<8x24xbf16>
    %c0_24 = arith.constant 0 : index
    %c0_25 = arith.constant 0 : index
    %35 = vector.load %arg8[%c0_24, %c0_25] : memref<6x128xbf16, #tpu.memory_space<vmem>>, vector<6x128xbf16>
    %c0_26 = arith.constant 0 : index
    %c0_27 = arith.constant 0 : index
    %36 = vector.load %arg9[%c0_26, %c0_27] : memref<128x128xbf16, #tpu.memory_space<vmem>>, vector<128x128xbf16>
    %c0_28 = arith.constant 0 : index
    %c0_29 = arith.constant 0 : index
    %37 = vector.load %arg10[%c0_28, %c0_29] : memref<1x128xf32, #tpu.memory_space<vmem>>, vector<1x128xf32>
    %c0_30 = arith.constant 0 : index
    %c0_31 = arith.constant 0 : index
    %38 = vector.load %arg11[%c0_30, %c0_31] : memref<128x128xbf16, #tpu.memory_space<vmem>>, vector<128x128xbf16>
    %c0_32 = arith.constant 0 : index
    %c0_33 = arith.constant 0 : index
    %39 = vector.load %arg12[%c0_32, %c0_33] : memref<1x128xf32, #tpu.memory_space<vmem>>, vector<1x128xf32>
    %c0_34 = arith.constant 0 : index
    %c0_35 = arith.constant 0 : index
    %40 = vector.load %arg13[%c0_34, %c0_35] : memref<128x128xbf16, #tpu.memory_space<vmem>>, vector<128x128xbf16>
    %c0_36 = arith.constant 0 : index
    %c0_37 = arith.constant 0 : index
    %41 = vector.load %arg14[%c0_36, %c0_37] : memref<1x128xf32, #tpu.memory_space<vmem>>, vector<1x128xf32>
    %42 = arith.truncf %0 : vector<24x6xf32> to vector<24x6xbf16>
    %cst_38 = arith.constant dense<0.000000e+00> : vector<24x128xf32>
    %43 = tpu.matmul %42, %35, %cst_38 {dimension_numbers = #tpu.dot_dimension_numbers<[1], [0], [0], [1], [0, 0, 1, 1], [], []>} : vector<24x6xbf16>, vector<6x128xbf16>, vector<24x128xf32> -> vector<24x128xf32>
    %44 = arith.mulf %43, %32 : vector<24x128xf32>
    %45 = arith.truncf %44 : vector<24x128xf32> to vector<24x128xbf16>
    %cst_39 = arith.constant dense<0.000000e+00> : vector<8x128xf32>
    %46 = tpu.matmul %34, %45, %cst_39 {dimension_numbers = #tpu.dot_dimension_numbers<[1], [0], [0], [1], [0, 0, 1, 1], [], []>} : vector<8x24xbf16>, vector<24x128xbf16>, vector<8x128xf32> -> vector<8x128xf32>
    %47 = arith.truncf %46 : vector<8x128xf32> to vector<8x128xbf16>
    %cst_40 = arith.constant dense<0.000000e+00> : vector<8x128xf32>
    %48 = tpu.matmul %47, %36, %cst_40 {dimension_numbers = #tpu.dot_dimension_numbers<[1], [0], [0], [1], [0, 0, 1, 1], [], []>} : vector<8x128xbf16>, vector<128x128xbf16>, vector<8x128xf32> -> vector<8x128xf32>
    %49 = vector.broadcast %37 : vector<1x128xf32> to vector<8x128xf32>
    %50 = arith.addf %48, %49 : vector<8x128xf32>
    %51 = arith.negf %50 : vector<8x128xf32>
    %52 = math.exp %51 : vector<8x128xf32>
    %cst_41 = arith.constant 1.000000e+00 : f32
    %53 = vector.broadcast %cst_41 : f32 to vector<8x128xf32>
    %54 = arith.addf %53, %52 : vector<8x128xf32>
    %55 = arith.divf %53, %54 : vector<8x128xf32>
    %56 = arith.mulf %50, %55 : vector<8x128xf32>
    %57 = arith.truncf %56 : vector<8x128xf32> to vector<8x128xbf16>
    %cst_42 = arith.constant dense<0.000000e+00> : vector<8x128xf32>
    %58 = tpu.matmul %57, %38, %cst_42 {dimension_numbers = #tpu.dot_dimension_numbers<[1], [0], [0], [1], [0, 0, 1, 1], [], []>} : vector<8x128xbf16>, vector<128x128xbf16>, vector<8x128xf32> -> vector<8x128xf32>
    %59 = vector.broadcast %39 : vector<1x128xf32> to vector<8x128xf32>
    %60 = arith.addf %58, %59 : vector<8x128xf32>
    %61 = arith.negf %60 : vector<8x128xf32>
    %62 = math.exp %61 : vector<8x128xf32>
    %cst_43 = arith.constant 1.000000e+00 : f32
    %63 = vector.broadcast %cst_43 : f32 to vector<8x128xf32>
    %64 = arith.addf %63, %62 : vector<8x128xf32>
    %65 = arith.divf %63, %64 : vector<8x128xf32>
    %66 = arith.mulf %60, %65 : vector<8x128xf32>
    %67 = arith.truncf %66 : vector<8x128xf32> to vector<8x128xbf16>
    %cst_44 = arith.constant dense<0.000000e+00> : vector<8x128xf32>
    %68 = tpu.matmul %67, %40, %cst_44 {dimension_numbers = #tpu.dot_dimension_numbers<[1], [0], [0], [1], [0, 0, 1, 1], [], []>} : vector<8x128xbf16>, vector<128x128xbf16>, vector<8x128xf32> -> vector<8x128xf32>
    %69 = vector.broadcast %41 : vector<1x128xf32> to vector<8x128xf32>
    %70 = arith.addf %68, %69 : vector<8x128xf32>
    %71 = arith.negf %70 : vector<8x128xf32>
    %72 = math.exp %71 : vector<8x128xf32>
    %cst_45 = arith.constant 1.000000e+00 : f32
    %73 = vector.broadcast %cst_45 : f32 to vector<8x128xf32>
    %74 = arith.addf %73, %72 : vector<8x128xf32>
    %75 = arith.divf %73, %74 : vector<8x128xf32>
    %76 = arith.mulf %70, %75 : vector<8x128xf32>
    %c0_46 = arith.constant 0 : index
    %c0_47 = arith.constant 0 : index
    %77 = vector.load %arg16[%c0_46, %c0_47] : memref<8x128xf32, #tpu.memory_space<vmem>>, vector<8x128xf32>
    tpu.vector_store %arg16[%c0_46, %c0_47], %76 {strides = array<i32>} : memref<8x128xf32, #tpu.memory_space<vmem>>, vector<8x128xf32>,
    return
  }
}

module attributes {stable_mosaic.version = 11 : i64} {
  func.func @_interaction_out_kernel(%arg0: memref<24x128xf32, #tpu.memory_space<vmem>>, %arg1: memref<24x6xf32, #tpu.memory_space<vmem>>, %arg2: memref<48x42xf32, #tpu.memory_space<vmem>>, %arg3: memref<48x24xbf16, #tpu.memory_space<vmem>>, %arg4: memref<24x48xbf16, #tpu.memory_space<vmem>>, %arg5: memref<8x24xbf16, #tpu.memory_space<vmem>>, %arg6: memref<6x128xbf16, #tpu.memory_space<vmem>>, %arg7: memref<42x8xbf16, #tpu.memory_space<vmem>>, %arg8: memref<128x256xbf16, #tpu.memory_space<vmem>>, %arg9: memref<1x256xf32, #tpu.memory_space<vmem>>, %arg10: memref<1024x128xbf16, #tpu.memory_space<vmem>>, %arg11: memref<128x128xbf16, #tpu.memory_space<vmem>>, %arg12: memref<1x128xf32, #tpu.memory_space<vmem>>, %arg13: memref<128x128xbf16, #tpu.memory_space<vmem>>, %arg14: memref<1x128xf32, #tpu.memory_space<vmem>>, %arg15: memref<128x128xbf16, #tpu.memory_space<vmem>>, %arg16: memref<1x128xf32, #tpu.memory_space<vmem>>, %arg17: memref<128x128xbf16, #tpu.memory_space<vmem>>, %arg18: memref<1x128xf32, #tpu.memory_space<vmem>>, %arg19: memref<128x128xbf16, #tpu.memory_space<vmem>>, %arg20: memref<1x128xf32, #tpu.memory_space<vmem>>, %arg21: memref<128x128xbf16, #tpu.memory_space<vmem>>, %arg22: memref<1x128xf32, #tpu.memory_space<vmem>>, %arg23: memref<128x128xbf16, #tpu.memory_space<vmem>>, %arg24: memref<1x128xf32, #tpu.memory_space<vmem>>, %arg25: memref<6x128xbf16, #tpu.memory_space<vmem>>, %arg26: memref<128x128xbf16, #tpu.memory_space<vmem>>, %arg27: memref<1x128xf32, #tpu.memory_space<vmem>>, %arg28: memref<128x128xbf16, #tpu.memory_space<vmem>>, %arg29: memref<1x128xf32, #tpu.memory_space<vmem>>, %arg30: memref<128x128xbf16, #tpu.memory_space<vmem>>, %arg31: memref<1x128xf32, #tpu.memory_space<vmem>>, %arg32: memref<24x128xf32, #tpu.memory_space<vmem>>, %arg33: memref<8x128xf32, #tpu.memory_space<vmem>>) attributes {dimension_semantics = [], scalar_prefetch = 0 : i64, scratch_operands = 0 : i64, tpu.core_type = #tpu.core_type<tc>} {
    %c0 = arith.constant 0 : index
    %c0_0 = arith.constant 0 : index
    %0 = vector.load %arg0[%c0, %c0_0] : memref<24x128xf32, #tpu.memory_space<vmem>>, vector<24x128xf32>
    %c0_1 = arith.constant 0 : index
    %c0_2 = arith.constant 0 : index
    %1 = vector.load %arg1[%c0_1, %c0_2] : memref<24x6xf32, #tpu.memory_space<vmem>>, vector<24x6xf32>
    %c0_3 = arith.constant 0 : index
    %c0_4 = arith.constant 0 : index
    %2 = vector.load %arg6[%c0_3, %c0_4] : memref<6x128xbf16, #tpu.memory_space<vmem>>, vector<6x128xbf16>
    %3 = arith.truncf %1 : vector<24x6xf32> to vector<24x6xbf16>
    %cst = arith.constant dense<0.000000e+00> : vector<24x128xf32>
    %4 = tpu.matmul %3, %2, %cst {dimension_numbers = #tpu.dot_dimension_numbers<[1], [0], [0], [1], [0, 0, 1, 1], [], []>} : vector<24x6xbf16>, vector<6x128xbf16>, vector<24x128xf32> -> vector<24x128xf32>
    %c0_5 = arith.constant 0 : index
    %c0_6 = arith.constant 0 : index
    %5 = vector.load %arg2[%c0_5, %c0_6] : memref<48x42xf32, #tpu.memory_space<vmem>>, vector<48x42xf32>
    %c0_7 = arith.constant 0 : index
    %c0_8 = arith.constant 0 : index
    %6 = vector.load %arg7[%c0_7, %c0_8] : memref<42x8xbf16, #tpu.memory_space<vmem>>, vector<42x8xbf16>
    %7 = arith.truncf %5 : vector<48x42xf32> to vector<48x42xbf16>
    %cst_9 = arith.constant dense<0.000000e+00> : vector<48x8xf32>
    %8 = tpu.matmul %7, %6, %cst_9 {dimension_numbers = #tpu.dot_dimension_numbers<[1], [0], [0], [1], [0, 0, 1, 1], [], []>} : vector<48x42xbf16>, vector<42x8xbf16>, vector<48x8xf32> -> vector<48x8xf32>
    %c0_10 = arith.constant 0 : index
    %c0_11 = arith.constant 0 : index
    %9 = vector.load %arg8[%c0_10, %c0_11] : memref<128x256xbf16, #tpu.memory_space<vmem>>, vector<128x256xbf16>
    %10 = arith.truncf %0 : vector<24x128xf32> to vector<24x128xbf16>
    %cst_12 = arith.constant dense<0.000000e+00> : vector<24x256xf32>
    %11 = tpu.matmul %10, %9, %cst_12 {dimension_numbers = #tpu.dot_dimension_numbers<[1], [0], [0], [1], [0, 0, 1, 1], [], []>} : vector<24x128xbf16>, vector<128x256xbf16>, vector<24x256xf32> -> vector<24x256xf32>
    %c0_13 = arith.constant 0 : index
    %c0_14 = arith.constant 0 : index
    %12 = vector.load %arg9[%c0_13, %c0_14] : memref<1x256xf32, #tpu.memory_space<vmem>>, vector<1x256xf32>
    %13 = vector.broadcast %12 : vector<1x256xf32> to vector<24x256xf32>
    %14 = arith.addf %11, %13 : vector<24x256xf32>
    %15 = vector.extract_strided_slice %14 {offsets = [0, 0], sizes = [24, 128], strides = [1, 1]} : vector<24x256xf32> to vector<24x128xf32>
    %16 = arith.negf %15 : vector<24x128xf32>
    %17 = math.exp %16 : vector<24x128xf32>
    %cst_15 = arith.constant 1.000000e+00 : f32
    %18 = vector.broadcast %cst_15 : f32 to vector<24x128xf32>
    %19 = arith.addf %18, %17 : vector<24x128xf32>
    %20 = arith.divf %18, %19 : vector<24x128xf32>
    %21 = arith.mulf %15, %20 : vector<24x128xf32>
    %22 = vector.extract_strided_slice %14 {offsets = [0, 128], sizes = [24, 128], strides = [1, 1]} : vector<24x256xf32> to vector<24x128xf32>
    %23 = arith.negf %22 : vector<24x128xf32>
    %24 = math.exp %23 : vector<24x128xf32>
    %cst_16 = arith.constant 1.000000e+00 : f32
    %25 = vector.broadcast %cst_16 : f32 to vector<24x128xf32>
    %26 = arith.addf %25, %24 : vector<24x128xf32>
    %27 = arith.divf %25, %26 : vector<24x128xf32>
    %28 = arith.mulf %22, %27 : vector<24x128xf32>
    %29 = arith.mulf %28, %4 : vector<24x128xf32>
    %c0_17 = arith.constant 0 : index
    %c0_18 = arith.constant 0 : index
    %30 = vector.load %arg3[%c0_17, %c0_18] : memref<48x24xbf16, #tpu.memory_space<vmem>>, vector<48x24xbf16>
    %31 = arith.truncf %29 : vector<24x128xf32> to vector<24x128xbf16>
    %cst_19 = arith.constant dense<0.000000e+00> : vector<48x128xf32>
    %32 = tpu.matmul %30, %31, %cst_19 {dimension_numbers = #tpu.dot_dimension_numbers<[1], [0], [0], [1], [0, 0, 1, 1], [], []>} : vector<48x24xbf16>, vector<24x128xbf16>, vector<48x128xf32> -> vector<48x128xf32>
    %33 = vector.extract_strided_slice %8 {offsets = [0, 0], sizes = [48, 1], strides = [1, 1]} : vector<48x8xf32> to vector<48x1xf32>
    %34 = vector.broadcast %33 : vector<48x1xf32> to vector<48x128xf32>
    %35 = arith.mulf %32, %34 : vector<48x128xf32>
    %36 = arith.truncf %35 : vector<48x128xf32> to vector<48x128xbf16>
    %37 = vector.extract_strided_slice %8 {offsets = [0, 1], sizes = [48, 1], strides = [1, 1]} : vector<48x8xf32> to vector<48x1xf32>
    %38 = vector.broadcast %37 : vector<48x1xf32> to vector<48x128xf32>
    %39 = arith.mulf %32, %38 : vector<48x128xf32>
    %40 = arith.truncf %39 : vector<48x128xf32> to vector<48x128xbf16>
    %41 = vector.extract_strided_slice %8 {offsets = [0, 2], sizes = [48, 1], strides = [1, 1]} : vector<48x8xf32> to vector<48x1xf32>
    %42 = vector.broadcast %41 : vector<48x1xf32> to vector<48x128xf32>
    %43 = arith.mulf %32, %42 : vector<48x128xf32>
    %44 = arith.truncf %43 : vector<48x128xf32> to vector<48x128xbf16>
    %45 = vector.extract_strided_slice %8 {offsets = [0, 3], sizes = [48, 1], strides = [1, 1]} : vector<48x8xf32> to vector<48x1xf32>
    %46 = vector.broadcast %45 : vector<48x1xf32> to vector<48x128xf32>
    %47 = arith.mulf %32, %46 : vector<48x128xf32>
    %48 = arith.truncf %47 : vector<48x128xf32> to vector<48x128xbf16>
    %49 = vector.extract_strided_slice %8 {offsets = [0, 4], sizes = [48, 1], strides = [1, 1]} : vector<48x8xf32> to vector<48x1xf32>
    %50 = vector.broadcast %49 : vector<48x1xf32> to vector<48x128xf32>
    %51 = arith.mulf %32, %50 : vector<48x128xf32>
    %52 = arith.truncf %51 : vector<48x128xf32> to vector<48x128xbf16>
    %53 = vector.extract_strided_slice %8 {offsets = [0, 5], sizes = [48, 1], strides = [1, 1]} : vector<48x8xf32> to vector<48x1xf32>
    %54 = vector.broadcast %53 : vector<48x1xf32> to vector<48x128xf32>
    %55 = arith.mulf %32, %54 : vector<48x128xf32>
    %56 = arith.truncf %55 : vector<48x128xf32> to vector<48x128xbf16>
    %57 = vector.extract_strided_slice %8 {offsets = [0, 6], sizes = [48, 1], strides = [1, 1]} : vector<48x8xf32> to vector<48x1xf32>
    %58 = vector.broadcast %57 : vector<48x1xf32> to vector<48x128xf32>
    %59 = arith.mulf %32, %58 : vector<48x128xf32>
    %60 = arith.truncf %59 : vector<48x128xf32> to vector<48x128xbf16>
    %61 = vector.extract_strided_slice %8 {offsets = [0, 7], sizes = [48, 1], strides = [1, 1]} : vector<48x8xf32> to vector<48x1xf32>
    %62 = vector.broadcast %61 : vector<48x1xf32> to vector<48x128xf32>
    %63 = arith.mulf %32, %62 : vector<48x128xf32>
    %64 = arith.truncf %63 : vector<48x128xf32> to vector<48x128xbf16>
    %65 = tpu.concatenate %36, %40, %44, %48, %52, %56, %60, %64 in 1 : vector<48x128xbf16>, vector<48x128xbf16>, vector<48x128xbf16>, vector<48x128xbf16>, vector<48x128xbf16>, vector<48x128xbf16>, vector<48x128xbf16>, vector<48x128xbf16> -> vector<48x1024xbf16>
    %c0_20 = arith.constant 0 : index
    %c0_21 = arith.constant 0 : index
    %66 = vector.load %arg10[%c0_20, %c0_21] : memref<1024x128xbf16, #tpu.memory_space<vmem>>, vector<1024x128xbf16>
    %cst_22 = arith.constant dense<0.000000e+00> : vector<48x128xf32>
    %67 = tpu.matmul %65, %66, %cst_22 {dimension_numbers = #tpu.dot_dimension_numbers<[1], [0], [0], [1], [0, 0, 1, 1], [], []>} : vector<48x1024xbf16>, vector<1024x128xbf16>, vector<48x128xf32> -> vector<48x128xf32>
    %c0_23 = arith.constant 0 : index
    %c0_24 = arith.constant 0 : index
    %68 = vector.load %arg4[%c0_23, %c0_24] : memref<24x48xbf16, #tpu.memory_space<vmem>>, vector<24x48xbf16>
    %69 = arith.truncf %67 : vector<48x128xf32> to vector<48x128xbf16>
    %cst_25 = arith.constant dense<0.000000e+00> : vector<24x128xf32>
    %70 = tpu.matmul %68, %69, %cst_25 {dimension_numbers = #tpu.dot_dimension_numbers<[1], [0], [0], [1], [0, 0, 1, 1], [], []>} : vector<24x48xbf16>, vector<48x128xbf16>, vector<24x128xf32> -> vector<24x128xf32>
    %71 = arith.addf %21, %70 : vector<24x128xf32>
    %c0_26 = arith.constant 0 : index
    %c0_27 = arith.constant 0 : index
    %72 = vector.load %arg11[%c0_26, %c0_27] : memref<128x128xbf16, #tpu.memory_space<vmem>>, vector<128x128xbf16>
    %c0_28 = arith.constant 0 : index
    %c0_29 = arith.constant 0 : index
    %73 = vector.load %arg12[%c0_28, %c0_29] : memref<1x128xf32, #tpu.memory_space<vmem>>, vector<1x128xf32>
    %c0_30 = arith.constant 0 : index
    %c0_31 = arith.constant 0 : index
    %74 = vector.load %arg13[%c0_30, %c0_31] : memref<128x128xbf16, #tpu.memory_space<vmem>>, vector<128x128xbf16>
    %c0_32 = arith.constant 0 : index
    %c0_33 = arith.constant 0 : index
    %75 = vector.load %arg14[%c0_32, %c0_33] : memref<1x128xf32, #tpu.memory_space<vmem>>, vector<1x128xf32>
    %76 = arith.truncf %71 : vector<24x128xf32> to vector<24x128xbf16>
    %cst_34 = arith.constant dense<0.000000e+00> : vector<24x128xf32>
    %77 = tpu.matmul %76, %72, %cst_34 {dimension_numbers = #tpu.dot_dimension_numbers<[1], [0], [0], [1], [0, 0, 1, 1], [], []>} : vector<24x128xbf16>, vector<128x128xbf16>, vector<24x128xf32> -> vector<24x128xf32>
    %78 = vector.broadcast %73 : vector<1x128xf32> to vector<24x128xf32>
    %79 = arith.addf %77, %78 : vector<24x128xf32>
    %80 = arith.negf %79 : vector<24x128xf32>
    %81 = math.exp %80 : vector<24x128xf32>
    %cst_35 = arith.constant 1.000000e+00 : f32
    %82 = vector.broadcast %cst_35 : f32 to vector<24x128xf32>
    %83 = arith.addf %82, %81 : vector<24x128xf32>
    %84 = arith.divf %82, %83 : vector<24x128xf32>
    %85 = arith.mulf %79, %84 : vector<24x128xf32>
    %86 = arith.truncf %85 : vector<24x128xf32> to vector<24x128xbf16>
    %cst_36 = arith.constant dense<0.000000e+00> : vector<24x128xf32>
    %87 = tpu.matmul %86, %74, %cst_36 {dimension_numbers = #tpu.dot_dimension_numbers<[1], [0], [0], [1], [0, 0, 1, 1], [], []>} : vector<24x128xbf16>, vector<128x128xbf16>, vector<24x128xf32> -> vector<24x128xf32>
    %88 = vector.broadcast %75 : vector<1x128xf32> to vector<24x128xf32>
    %89 = arith.addf %87, %88 : vector<24x128xf32>
    %90 = arith.negf %89 : vector<24x128xf32>
    %91 = math.exp %90 : vector<24x128xf32>
    %cst_37 = arith.constant 1.000000e+00 : f32
    %92 = vector.broadcast %cst_37 : f32 to vector<24x128xf32>
    %93 = arith.addf %92, %91 : vector<24x128xf32>
    %94 = arith.divf %92, %93 : vector<24x128xf32>
    %95 = arith.mulf %89, %94 : vector<24x128xf32>
    %96 = arith.addf %71, %95 : vector<24x128xf32>
    %c0_38 = arith.constant 0 : index
    %c0_39 = arith.constant 0 : index
    %97 = vector.load %arg15[%c0_38, %c0_39] : memref<128x128xbf16, #tpu.memory_space<vmem>>, vector<128x128xbf16>
    %98 = arith.truncf %96 : vector<24x128xf32> to vector<24x128xbf16>
    %cst_40 = arith.constant dense<0.000000e+00> : vector<24x128xf32>
    %99 = tpu.matmul %98, %97, %cst_40 {dimension_numbers = #tpu.dot_dimension_numbers<[1], [0], [0], [1], [0, 0, 1, 1], [], []>} : vector<24x128xbf16>, vector<128x128xbf16>, vector<24x128xf32> -> vector<24x128xf32>
    %c0_41 = arith.constant 0 : index
    %c0_42 = arith.constant 0 : index
    %100 = vector.load %arg16[%c0_41, %c0_42] : memref<1x128xf32, #tpu.memory_space<vmem>>, vector<1x128xf32>
    %101 = vector.broadcast %100 : vector<1x128xf32> to vector<24x128xf32>
    %102 = arith.addf %99, %101 : vector<24x128xf32>
    %103 = arith.negf %102 : vector<24x128xf32>
    %104 = math.exp %103 : vector<24x128xf32>
    %cst_43 = arith.constant 1.000000e+00 : f32
    %105 = vector.broadcast %cst_43 : f32 to vector<24x128xf32>
    %106 = arith.addf %105, %104 : vector<24x128xf32>
    %107 = arith.divf %105, %106 : vector<24x128xf32>
    %108 = arith.mulf %102, %107 : vector<24x128xf32>
    %109 = arith.addf %108, %0 : vector<24x128xf32>
    %c0_44 = arith.constant 0 : index
    %c0_45 = arith.constant 0 : index
    %110 = vector.load %arg17[%c0_44, %c0_45] : memref<128x128xbf16, #tpu.memory_space<vmem>>, vector<128x128xbf16>
    %c0_46 = arith.constant 0 : index
    %c0_47 = arith.constant 0 : index
    %111 = vector.load %arg18[%c0_46, %c0_47] : memref<1x128xf32, #tpu.memory_space<vmem>>, vector<1x128xf32>
    %c0_48 = arith.constant 0 : index
    %c0_49 = arith.constant 0 : index
    %112 = vector.load %arg19[%c0_48, %c0_49] : memref<128x128xbf16, #tpu.memory_space<vmem>>, vector<128x128xbf16>
    %c0_50 = arith.constant 0 : index
    %c0_51 = arith.constant 0 : index
    %113 = vector.load %arg20[%c0_50, %c0_51] : memref<1x128xf32, #tpu.memory_space<vmem>>, vector<1x128xf32>
    %114 = arith.truncf %109 : vector<24x128xf32> to vector<24x128xbf16>
    %cst_52 = arith.constant dense<0.000000e+00> : vector<24x128xf32>
    %115 = tpu.matmul %114, %110, %cst_52 {dimension_numbers = #tpu.dot_dimension_numbers<[1], [0], [0], [1], [0, 0, 1, 1], [], []>} : vector<24x128xbf16>, vector<128x128xbf16>, vector<24x128xf32> -> vector<24x128xf32>
    %116 = vector.broadcast %111 : vector<1x128xf32> to vector<24x128xf32>
    %117 = arith.addf %115, %116 : vector<24x128xf32>
    %118 = arith.negf %117 : vector<24x128xf32>
    %119 = math.exp %118 : vector<24x128xf32>
    %cst_53 = arith.constant 1.000000e+00 : f32
    %120 = vector.broadcast %cst_53 : f32 to vector<24x128xf32>
    %121 = arith.addf %120, %119 : vector<24x128xf32>
    %122 = arith.divf %120, %121 : vector<24x128xf32>
    %123 = arith.mulf %117, %122 : vector<24x128xf32>
    %124 = arith.truncf %123 : vector<24x128xf32> to vector<24x128xbf16>
    %cst_54 = arith.constant dense<0.000000e+00> : vector<24x128xf32>
    %125 = tpu.matmul %124, %112, %cst_54 {dimension_numbers = #tpu.dot_dimension_numbers<[1], [0], [0], [1], [0, 0, 1, 1], [], []>} : vector<24x128xbf16>, vector<128x128xbf16>, vector<24x128xf32> -> vector<24x128xf32>
    %126 = vector.broadcast %113 : vector<1x128xf32> to vector<24x128xf32>
    %127 = arith.addf %125, %126 : vector<24x128xf32>
    %128 = arith.negf %127 : vector<24x128xf32>
    %129 = math.exp %128 : vector<24x128xf32>
    %cst_55 = arith.constant 1.000000e+00 : f32
    %130 = vector.broadcast %cst_55 : f32 to vector<24x128xf32>
    %131 = arith.addf %130, %129 : vector<24x128xf32>
    %132 = arith.divf %130, %131 : vector<24x128xf32>
    %133 = arith.mulf %127, %132 : vector<24x128xf32>
    %134 = arith.addf %109, %133 : vector<24x128xf32>
    %c0_56 = arith.constant 0 : index
    %c0_57 = arith.constant 0 : index
    %135 = vector.load %arg21[%c0_56, %c0_57] : memref<128x128xbf16, #tpu.memory_space<vmem>>, vector<128x128xbf16>
    %c0_58 = arith.constant 0 : index
    %c0_59 = arith.constant 0 : index
    %136 = vector.load %arg22[%c0_58, %c0_59] : memref<1x128xf32, #tpu.memory_space<vmem>>, vector<1x128xf32>
    %c0_60 = arith.constant 0 : index
    %c0_61 = arith.constant 0 : index
    %137 = vector.load %arg23[%c0_60, %c0_61] : memref<128x128xbf16, #tpu.memory_space<vmem>>, vector<128x128xbf16>
    %c0_62 = arith.constant 0 : index
    %c0_63 = arith.constant 0 : index
    %138 = vector.load %arg24[%c0_62, %c0_63] : memref<1x128xf32, #tpu.memory_space<vmem>>, vector<1x128xf32>
    %139 = arith.truncf %134 : vector<24x128xf32> to vector<24x128xbf16>
    %cst_64 = arith.constant dense<0.000000e+00> : vector<24x128xf32>
    %140 = tpu.matmul %139, %135, %cst_64 {dimension_numbers = #tpu.dot_dimension_numbers<[1], [0], [0], [1], [0, 0, 1, 1], [], []>} : vector<24x128xbf16>, vector<128x128xbf16>, vector<24x128xf32> -> vector<24x128xf32>
    %141 = vector.broadcast %136 : vector<1x128xf32> to vector<24x128xf32>
    %142 = arith.addf %140, %141 : vector<24x128xf32>
    %143 = arith.negf %142 : vector<24x128xf32>
    %144 = math.exp %143 : vector<24x128xf32>
    %cst_65 = arith.constant 1.000000e+00 : f32
    %145 = vector.broadcast %cst_65 : f32 to vector<24x128xf32>
    %146 = arith.addf %145, %144 : vector<24x128xf32>
    %147 = arith.divf %145, %146 : vector<24x128xf32>
    %148 = arith.mulf %142, %147 : vector<24x128xf32>
    %149 = arith.truncf %148 : vector<24x128xf32> to vector<24x128xbf16>
    %cst_66 = arith.constant dense<0.000000e+00> : vector<24x128xf32>
    %150 = tpu.matmul %149, %137, %cst_66 {dimension_numbers = #tpu.dot_dimension_numbers<[1], [0], [0], [1], [0, 0, 1, 1], [], []>} : vector<24x128xbf16>, vector<128x128xbf16>, vector<24x128xf32> -> vector<24x128xf32>
    %151 = vector.broadcast %138 : vector<1x128xf32> to vector<24x128xf32>
    %152 = arith.addf %150, %151 : vector<24x128xf32>
    %153 = arith.negf %152 : vector<24x128xf32>
    %154 = math.exp %153 : vector<24x128xf32>
    %cst_67 = arith.constant 1.000000e+00 : f32
    %155 = vector.broadcast %cst_67 : f32 to vector<24x128xf32>
    %156 = arith.addf %155, %154 : vector<24x128xf32>
    %157 = arith.divf %155, %156 : vector<24x128xf32>
    %158 = arith.mulf %152, %157 : vector<24x128xf32>
    %159 = arith.addf %134, %158 : vector<24x128xf32>
    %c0_68 = arith.constant 0 : index
    %c0_69 = arith.constant 0 : index
    %160 = vector.load %arg32[%c0_68, %c0_69] : memref<24x128xf32, #tpu.memory_space<vmem>>, vector<24x128xf32>
    tpu.vector_store %arg32[%c0_68, %c0_69], %159 {strides = array<i32>} : memref<24x128xf32, #tpu.memory_space<vmem>>, vector<24x128xf32>,
    %c0_70 = arith.constant 0 : index
    %c0_71 = arith.constant 0 : index
    %161 = vector.load %arg5[%c0_70, %c0_71] : memref<8x24xbf16, #tpu.memory_space<vmem>>, vector<8x24xbf16>
    %c0_72 = arith.constant 0 : index
    %c0_73 = arith.constant 0 : index
    %162 = vector.load %arg25[%c0_72, %c0_73] : memref<6x128xbf16, #tpu.memory_space<vmem>>, vector<6x128xbf16>
    %c0_74 = arith.constant 0 : index
    %c0_75 = arith.constant 0 : index
    %163 = vector.load %arg26[%c0_74, %c0_75] : memref<128x128xbf16, #tpu.memory_space<vmem>>, vector<128x128xbf16>
    %c0_76 = arith.constant 0 : index
    %c0_77 = arith.constant 0 : index
    %164 = vector.load %arg27[%c0_76, %c0_77] : memref<1x128xf32, #tpu.memory_space<vmem>>, vector<1x128xf32>
    %c0_78 = arith.constant 0 : index
    %c0_79 = arith.constant 0 : index
    %165 = vector.load %arg28[%c0_78, %c0_79] : memref<128x128xbf16, #tpu.memory_space<vmem>>, vector<128x128xbf16>
    %c0_80 = arith.constant 0 : index
    %c0_81 = arith.constant 0 : index
    %166 = vector.load %arg29[%c0_80, %c0_81] : memref<1x128xf32, #tpu.memory_space<vmem>>, vector<1x128xf32>
    %c0_82 = arith.constant 0 : index
    %c0_83 = arith.constant 0 : index
    %167 = vector.load %arg30[%c0_82, %c0_83] : memref<128x128xbf16, #tpu.memory_space<vmem>>, vector<128x128xbf16>
    %c0_84 = arith.constant 0 : index
    %c0_85 = arith.constant 0 : index
    %168 = vector.load %arg31[%c0_84, %c0_85] : memref<1x128xf32, #tpu.memory_space<vmem>>, vector<1x128xf32>
    %169 = arith.truncf %1 : vector<24x6xf32> to vector<24x6xbf16>
    %cst_86 = arith.constant dense<0.000000e+00> : vector<24x128xf32>
    %170 = tpu.matmul %169, %162, %cst_86 {dimension_numbers = #tpu.dot_dimension_numbers<[1], [0], [0], [1], [0, 0, 1, 1], [], []>} : vector<24x6xbf16>, vector<6x128xbf16>, vector<24x128xf32> -> vector<24x128xf32>
    %171 = arith.mulf %170, %159 : vector<24x128xf32>
    %172 = arith.truncf %171 : vector<24x128xf32> to vector<24x128xbf16>
    %cst_87 = arith.constant dense<0.000000e+00> : vector<8x128xf32>
    %173 = tpu.matmul %161, %172, %cst_87 {dimension_numbers = #tpu.dot_dimension_numbers<[1], [0], [0], [1], [0, 0, 1, 1], [], []>} : vector<8x24xbf16>, vector<24x128xbf16>, vector<8x128xf32> -> vector<8x128xf32>
    %174 = arith.truncf %173 : vector<8x128xf32> to vector<8x128xbf16>
    %cst_88 = arith.constant dense<0.000000e+00> : vector<8x128xf32>
    %175 = tpu.matmul %174, %163, %cst_88 {dimension_numbers = #tpu.dot_dimension_numbers<[1], [0], [0], [1], [0, 0, 1, 1], [], []>} : vector<8x128xbf16>, vector<128x128xbf16>, vector<8x128xf32> -> vector<8x128xf32>
    %176 = vector.broadcast %164 : vector<1x128xf32> to vector<8x128xf32>
    %177 = arith.addf %175, %176 : vector<8x128xf32>
    %178 = arith.negf %177 : vector<8x128xf32>
    %179 = math.exp %178 : vector<8x128xf32>
    %cst_89 = arith.constant 1.000000e+00 : f32
    %180 = vector.broadcast %cst_89 : f32 to vector<8x128xf32>
    %181 = arith.addf %180, %179 : vector<8x128xf32>
    %182 = arith.divf %180, %181 : vector<8x128xf32>
    %183 = arith.mulf %177, %182 : vector<8x128xf32>
    %184 = arith.truncf %183 : vector<8x128xf32> to vector<8x128xbf16>
    %cst_90 = arith.constant dense<0.000000e+00> : vector<8x128xf32>
    %185 = tpu.matmul %184, %165, %cst_90 {dimension_numbers = #tpu.dot_dimension_numbers<[1], [0], [0], [1], [0, 0, 1, 1], [], []>} : vector<8x128xbf16>, vector<128x128xbf16>, vector<8x128xf32> -> vector<8x128xf32>
    %186 = vector.broadcast %166 : vector<1x128xf32> to vector<8x128xf32>
    %187 = arith.addf %185, %186 : vector<8x128xf32>
    %188 = arith.negf %187 : vector<8x128xf32>
    %189 = math.exp %188 : vector<8x128xf32>
    %cst_91 = arith.constant 1.000000e+00 : f32
    %190 = vector.broadcast %cst_91 : f32 to vector<8x128xf32>
    %191 = arith.addf %190, %189 : vector<8x128xf32>
    %192 = arith.divf %190, %191 : vector<8x128xf32>
    %193 = arith.mulf %187, %192 : vector<8x128xf32>
    %194 = arith.truncf %193 : vector<8x128xf32> to vector<8x128xbf16>
    %cst_92 = arith.constant dense<0.000000e+00> : vector<8x128xf32>
    %195 = tpu.matmul %194, %167, %cst_92 {dimension_numbers = #tpu.dot_dimension_numbers<[1], [0], [0], [1], [0, 0, 1, 1], [], []>} : vector<8x128xbf16>, vector<128x128xbf16>, vector<8x128xf32> -> vector<8x128xf32>
    %196 = vector.broadcast %168 : vector<1x128xf32> to vector<8x128xf32>
    %197 = arith.addf %195, %196 : vector<8x128xf32>
    %198 = arith.negf %197 : vector<8x128xf32>
    %199 = math.exp %198 : vector<8x128xf32>
    %cst_93 = arith.constant 1.000000e+00 : f32
    %200 = vector.broadcast %cst_93 : f32 to vector<8x128xf32>
    %201 = arith.addf %200, %199 : vector<8x128xf32>
    %202 = arith.divf %200, %201 : vector<8x128xf32>
    %203 = arith.mulf %197, %202 : vector<8x128xf32>
    %c0_94 = arith.constant 0 : index
    %c0_95 = arith.constant 0 : index
    %204 = vector.load %arg33[%c0_94, %c0_95] : memref<8x128xf32, #tpu.memory_space<vmem>>, vector<8x128xf32>
    tpu.vector_store %arg33[%c0_94, %c0_95], %203 {strides = array<i32>} : memref<8x128xf32, #tpu.memory_space<vmem>>, vector<8x128xf32>,
    return
  }
}

module attributes {stable_mosaic.version = 11 : i64} {
  func.func @_interaction_out_kernel(%arg0: memref<24x128xf32, #tpu.memory_space<vmem>>, %arg1: memref<24x6xf32, #tpu.memory_space<vmem>>, %arg2: memref<48x42xf32, #tpu.memory_space<vmem>>, %arg3: memref<48x24xbf16, #tpu.memory_space<vmem>>, %arg4: memref<24x48xbf16, #tpu.memory_space<vmem>>, %arg5: memref<8x24xbf16, #tpu.memory_space<vmem>>, %arg6: memref<6x128xbf16, #tpu.memory_space<vmem>>, %arg7: memref<42x8xbf16, #tpu.memory_space<vmem>>, %arg8: memref<128x256xbf16, #tpu.memory_space<vmem>>, %arg9: memref<1x256xf32, #tpu.memory_space<vmem>>, %arg10: memref<1024x128xbf16, #tpu.memory_space<vmem>>, %arg11: memref<128x128xbf16, #tpu.memory_space<vmem>>, %arg12: memref<1x128xf32, #tpu.memory_space<vmem>>, %arg13: memref<128x128xbf16, #tpu.memory_space<vmem>>, %arg14: memref<1x128xf32, #tpu.memory_space<vmem>>, %arg15: memref<128x128xbf16, #tpu.memory_space<vmem>>, %arg16: memref<1x128xf32, #tpu.memory_space<vmem>>, %arg17: memref<128x128xbf16, #tpu.memory_space<vmem>>, %arg18: memref<1x128xf32, #tpu.memory_space<vmem>>, %arg19: memref<128x128xbf16, #tpu.memory_space<vmem>>, %arg20: memref<1x128xf32, #tpu.memory_space<vmem>>, %arg21: memref<128x128xbf16, #tpu.memory_space<vmem>>, %arg22: memref<1x128xf32, #tpu.memory_space<vmem>>, %arg23: memref<128x128xbf16, #tpu.memory_space<vmem>>, %arg24: memref<1x128xf32, #tpu.memory_space<vmem>>, %arg25: memref<6x128xbf16, #tpu.memory_space<vmem>>, %arg26: memref<128x128xbf16, #tpu.memory_space<vmem>>, %arg27: memref<1x128xf32, #tpu.memory_space<vmem>>, %arg28: memref<128x128xbf16, #tpu.memory_space<vmem>>, %arg29: memref<1x128xf32, #tpu.memory_space<vmem>>, %arg30: memref<128x128xbf16, #tpu.memory_space<vmem>>, %arg31: memref<1x128xf32, #tpu.memory_space<vmem>>, %arg32: memref<24x128xf32, #tpu.memory_space<vmem>>, %arg33: memref<8x128xf32, #tpu.memory_space<vmem>>) attributes {dimension_semantics = [], scalar_prefetch = 0 : i64, scratch_operands = 0 : i64, tpu.core_type = #tpu.core_type<tc>} {
    %c0 = arith.constant 0 : index
    %c0_0 = arith.constant 0 : index
    %0 = vector.load %arg0[%c0, %c0_0] : memref<24x128xf32, #tpu.memory_space<vmem>>, vector<24x128xf32>
    %c0_1 = arith.constant 0 : index
    %c0_2 = arith.constant 0 : index
    %1 = vector.load %arg1[%c0_1, %c0_2] : memref<24x6xf32, #tpu.memory_space<vmem>>, vector<24x6xf32>
    %c0_3 = arith.constant 0 : index
    %c0_4 = arith.constant 0 : index
    %2 = vector.load %arg6[%c0_3, %c0_4] : memref<6x128xbf16, #tpu.memory_space<vmem>>, vector<6x128xbf16>
    %3 = arith.truncf %1 : vector<24x6xf32> to vector<24x6xbf16>
    %cst = arith.constant dense<0.000000e+00> : vector<24x128xf32>
    %4 = tpu.matmul %3, %2, %cst {dimension_numbers = #tpu.dot_dimension_numbers<[1], [0], [0], [1], [0, 0, 1, 1], [], []>} : vector<24x6xbf16>, vector<6x128xbf16>, vector<24x128xf32> -> vector<24x128xf32>
    %c0_5 = arith.constant 0 : index
    %c0_6 = arith.constant 0 : index
    %5 = vector.load %arg2[%c0_5, %c0_6] : memref<48x42xf32, #tpu.memory_space<vmem>>, vector<48x42xf32>
    %c0_7 = arith.constant 0 : index
    %c0_8 = arith.constant 0 : index
    %6 = vector.load %arg7[%c0_7, %c0_8] : memref<42x8xbf16, #tpu.memory_space<vmem>>, vector<42x8xbf16>
    %7 = arith.truncf %5 : vector<48x42xf32> to vector<48x42xbf16>
    %cst_9 = arith.constant dense<0.000000e+00> : vector<48x8xf32>
    %8 = tpu.matmul %7, %6, %cst_9 {dimension_numbers = #tpu.dot_dimension_numbers<[1], [0], [0], [1], [0, 0, 1, 1], [], []>} : vector<48x42xbf16>, vector<42x8xbf16>, vector<48x8xf32> -> vector<48x8xf32>
    %c0_10 = arith.constant 0 : index
    %c0_11 = arith.constant 0 : index
    %9 = vector.load %arg8[%c0_10, %c0_11] : memref<128x256xbf16, #tpu.memory_space<vmem>>, vector<128x256xbf16>
    %10 = arith.truncf %0 : vector<24x128xf32> to vector<24x128xbf16>
    %cst_12 = arith.constant dense<0.000000e+00> : vector<24x256xf32>
    %11 = tpu.matmul %10, %9, %cst_12 {dimension_numbers = #tpu.dot_dimension_numbers<[1], [0], [0], [1], [0, 0, 1, 1], [], []>} : vector<24x128xbf16>, vector<128x256xbf16>, vector<24x256xf32> -> vector<24x256xf32>
    %c0_13 = arith.constant 0 : index
    %c0_14 = arith.constant 0 : index
    %12 = vector.load %arg9[%c0_13, %c0_14] : memref<1x256xf32, #tpu.memory_space<vmem>>, vector<1x256xf32>
    %13 = vector.broadcast %12 : vector<1x256xf32> to vector<24x256xf32>
    %14 = arith.addf %11, %13 : vector<24x256xf32>
    %15 = vector.extract_strided_slice %14 {offsets = [0, 0], sizes = [24, 128], strides = [1, 1]} : vector<24x256xf32> to vector<24x128xf32>
    %16 = arith.negf %15 : vector<24x128xf32>
    %17 = math.exp %16 : vector<24x128xf32>
    %cst_15 = arith.constant 1.000000e+00 : f32
    %18 = vector.broadcast %cst_15 : f32 to vector<24x128xf32>
    %19 = arith.addf %18, %17 : vector<24x128xf32>
    %20 = arith.divf %18, %19 : vector<24x128xf32>
    %21 = arith.mulf %15, %20 : vector<24x128xf32>
    %22 = vector.extract_strided_slice %14 {offsets = [0, 128], sizes = [24, 128], strides = [1, 1]} : vector<24x256xf32> to vector<24x128xf32>
    %23 = arith.negf %22 : vector<24x128xf32>
    %24 = math.exp %23 : vector<24x128xf32>
    %cst_16 = arith.constant 1.000000e+00 : f32
    %25 = vector.broadcast %cst_16 : f32 to vector<24x128xf32>
    %26 = arith.addf %25, %24 : vector<24x128xf32>
    %27 = arith.divf %25, %26 : vector<24x128xf32>
    %28 = arith.mulf %22, %27 : vector<24x128xf32>
    %29 = arith.mulf %28, %4 : vector<24x128xf32>
    %c0_17 = arith.constant 0 : index
    %c0_18 = arith.constant 0 : index
    %30 = vector.load %arg3[%c0_17, %c0_18] : memref<48x24xbf16, #tpu.memory_space<vmem>>, vector<48x24xbf16>
    %31 = arith.truncf %29 : vector<24x128xf32> to vector<24x128xbf16>
    %cst_19 = arith.constant dense<0.000000e+00> : vector<48x128xf32>
    %32 = tpu.matmul %30, %31, %cst_19 {dimension_numbers = #tpu.dot_dimension_numbers<[1], [0], [0], [1], [0, 0, 1, 1], [], []>} : vector<48x24xbf16>, vector<24x128xbf16>, vector<48x128xf32> -> vector<48x128xf32>
    %33 = vector.extract_strided_slice %8 {offsets = [0, 0], sizes = [48, 1], strides = [1, 1]} : vector<48x8xf32> to vector<48x1xf32>
    %34 = vector.broadcast %33 : vector<48x1xf32> to vector<48x128xf32>
    %35 = arith.mulf %32, %34 : vector<48x128xf32>
    %36 = arith.truncf %35 : vector<48x128xf32> to vector<48x128xbf16>
    %37 = vector.extract_strided_slice %8 {offsets = [0, 1], sizes = [48, 1], strides = [1, 1]} : vector<48x8xf32> to vector<48x1xf32>
    %38 = vector.broadcast %37 : vector<48x1xf32> to vector<48x128xf32>
    %39 = arith.mulf %32, %38 : vector<48x128xf32>
    %40 = arith.truncf %39 : vector<48x128xf32> to vector<48x128xbf16>
    %41 = vector.extract_strided_slice %8 {offsets = [0, 2], sizes = [48, 1], strides = [1, 1]} : vector<48x8xf32> to vector<48x1xf32>
    %42 = vector.broadcast %41 : vector<48x1xf32> to vector<48x128xf32>
    %43 = arith.mulf %32, %42 : vector<48x128xf32>
    %44 = arith.truncf %43 : vector<48x128xf32> to vector<48x128xbf16>
    %45 = vector.extract_strided_slice %8 {offsets = [0, 3], sizes = [48, 1], strides = [1, 1]} : vector<48x8xf32> to vector<48x1xf32>
    %46 = vector.broadcast %45 : vector<48x1xf32> to vector<48x128xf32>
    %47 = arith.mulf %32, %46 : vector<48x128xf32>
    %48 = arith.truncf %47 : vector<48x128xf32> to vector<48x128xbf16>
    %49 = vector.extract_strided_slice %8 {offsets = [0, 4], sizes = [48, 1], strides = [1, 1]} : vector<48x8xf32> to vector<48x1xf32>
    %50 = vector.broadcast %49 : vector<48x1xf32> to vector<48x128xf32>
    %51 = arith.mulf %32, %50 : vector<48x128xf32>
    %52 = arith.truncf %51 : vector<48x128xf32> to vector<48x128xbf16>
    %53 = vector.extract_strided_slice %8 {offsets = [0, 5], sizes = [48, 1], strides = [1, 1]} : vector<48x8xf32> to vector<48x1xf32>
    %54 = vector.broadcast %53 : vector<48x1xf32> to vector<48x128xf32>
    %55 = arith.mulf %32, %54 : vector<48x128xf32>
    %56 = arith.truncf %55 : vector<48x128xf32> to vector<48x128xbf16>
    %57 = vector.extract_strided_slice %8 {offsets = [0, 6], sizes = [48, 1], strides = [1, 1]} : vector<48x8xf32> to vector<48x1xf32>
    %58 = vector.broadcast %57 : vector<48x1xf32> to vector<48x128xf32>
    %59 = arith.mulf %32, %58 : vector<48x128xf32>
    %60 = arith.truncf %59 : vector<48x128xf32> to vector<48x128xbf16>
    %61 = vector.extract_strided_slice %8 {offsets = [0, 7], sizes = [48, 1], strides = [1, 1]} : vector<48x8xf32> to vector<48x1xf32>
    %62 = vector.broadcast %61 : vector<48x1xf32> to vector<48x128xf32>
    %63 = arith.mulf %32, %62 : vector<48x128xf32>
    %64 = arith.truncf %63 : vector<48x128xf32> to vector<48x128xbf16>
    %65 = tpu.concatenate %36, %40, %44, %48, %52, %56, %60, %64 in 1 : vector<48x128xbf16>, vector<48x128xbf16>, vector<48x128xbf16>, vector<48x128xbf16>, vector<48x128xbf16>, vector<48x128xbf16>, vector<48x128xbf16>, vector<48x128xbf16> -> vector<48x1024xbf16>
    %c0_20 = arith.constant 0 : index
    %c0_21 = arith.constant 0 : index
    %66 = vector.load %arg10[%c0_20, %c0_21] : memref<1024x128xbf16, #tpu.memory_space<vmem>>, vector<1024x128xbf16>
    %cst_22 = arith.constant dense<0.000000e+00> : vector<48x128xf32>
    %67 = tpu.matmul %65, %66, %cst_22 {dimension_numbers = #tpu.dot_dimension_numbers<[1], [0], [0], [1], [0, 0, 1, 1], [], []>} : vector<48x1024xbf16>, vector<1024x128xbf16>, vector<48x128xf32> -> vector<48x128xf32>
    %c0_23 = arith.constant 0 : index
    %c0_24 = arith.constant 0 : index
    %68 = vector.load %arg4[%c0_23, %c0_24] : memref<24x48xbf16, #tpu.memory_space<vmem>>, vector<24x48xbf16>
    %69 = arith.truncf %67 : vector<48x128xf32> to vector<48x128xbf16>
    %cst_25 = arith.constant dense<0.000000e+00> : vector<24x128xf32>
    %70 = tpu.matmul %68, %69, %cst_25 {dimension_numbers = #tpu.dot_dimension_numbers<[1], [0], [0], [1], [0, 0, 1, 1], [], []>} : vector<24x48xbf16>, vector<48x128xbf16>, vector<24x128xf32> -> vector<24x128xf32>
    %71 = arith.addf %21, %70 : vector<24x128xf32>
    %c0_26 = arith.constant 0 : index
    %c0_27 = arith.constant 0 : index
    %72 = vector.load %arg11[%c0_26, %c0_27] : memref<128x128xbf16, #tpu.memory_space<vmem>>, vector<128x128xbf16>
    %c0_28 = arith.constant 0 : index
    %c0_29 = arith.constant 0 : index
    %73 = vector.load %arg12[%c0_28, %c0_29] : memref<1x128xf32, #tpu.memory_space<vmem>>, vector<1x128xf32>
    %c0_30 = arith.constant 0 : index
    %c0_31 = arith.constant 0 : index
    %74 = vector.load %arg13[%c0_30, %c0_31] : memref<128x128xbf16, #tpu.memory_space<vmem>>, vector<128x128xbf16>
    %c0_32 = arith.constant 0 : index
    %c0_33 = arith.constant 0 : index
    %75 = vector.load %arg14[%c0_32, %c0_33] : memref<1x128xf32, #tpu.memory_space<vmem>>, vector<1x128xf32>
    %76 = arith.truncf %71 : vector<24x128xf32> to vector<24x128xbf16>
    %cst_34 = arith.constant dense<0.000000e+00> : vector<24x128xf32>
    %77 = tpu.matmul %76, %72, %cst_34 {dimension_numbers = #tpu.dot_dimension_numbers<[1], [0], [0], [1], [0, 0, 1, 1], [], []>} : vector<24x128xbf16>, vector<128x128xbf16>, vector<24x128xf32> -> vector<24x128xf32>
    %78 = vector.broadcast %73 : vector<1x128xf32> to vector<24x128xf32>
    %79 = arith.addf %77, %78 : vector<24x128xf32>
    %80 = arith.negf %79 : vector<24x128xf32>
    %81 = math.exp %80 : vector<24x128xf32>
    %cst_35 = arith.constant 1.000000e+00 : f32
    %82 = vector.broadcast %cst_35 : f32 to vector<24x128xf32>
    %83 = arith.addf %82, %81 : vector<24x128xf32>
    %84 = arith.divf %82, %83 : vector<24x128xf32>
    %85 = arith.mulf %79, %84 : vector<24x128xf32>
    %86 = arith.truncf %85 : vector<24x128xf32> to vector<24x128xbf16>
    %cst_36 = arith.constant dense<0.000000e+00> : vector<24x128xf32>
    %87 = tpu.matmul %86, %74, %cst_36 {dimension_numbers = #tpu.dot_dimension_numbers<[1], [0], [0], [1], [0, 0, 1, 1], [], []>} : vector<24x128xbf16>, vector<128x128xbf16>, vector<24x128xf32> -> vector<24x128xf32>
    %88 = vector.broadcast %75 : vector<1x128xf32> to vector<24x128xf32>
    %89 = arith.addf %87, %88 : vector<24x128xf32>
    %90 = arith.negf %89 : vector<24x128xf32>
    %91 = math.exp %90 : vector<24x128xf32>
    %cst_37 = arith.constant 1.000000e+00 : f32
    %92 = vector.broadcast %cst_37 : f32 to vector<24x128xf32>
    %93 = arith.addf %92, %91 : vector<24x128xf32>
    %94 = arith.divf %92, %93 : vector<24x128xf32>
    %95 = arith.mulf %89, %94 : vector<24x128xf32>
    %96 = arith.addf %71, %95 : vector<24x128xf32>
    %c0_38 = arith.constant 0 : index
    %c0_39 = arith.constant 0 : index
    %97 = vector.load %arg15[%c0_38, %c0_39] : memref<128x128xbf16, #tpu.memory_space<vmem>>, vector<128x128xbf16>
    %98 = arith.truncf %96 : vector<24x128xf32> to vector<24x128xbf16>
    %cst_40 = arith.constant dense<0.000000e+00> : vector<24x128xf32>
    %99 = tpu.matmul %98, %97, %cst_40 {dimension_numbers = #tpu.dot_dimension_numbers<[1], [0], [0], [1], [0, 0, 1, 1], [], []>} : vector<24x128xbf16>, vector<128x128xbf16>, vector<24x128xf32> -> vector<24x128xf32>
    %c0_41 = arith.constant 0 : index
    %c0_42 = arith.constant 0 : index
    %100 = vector.load %arg16[%c0_41, %c0_42] : memref<1x128xf32, #tpu.memory_space<vmem>>, vector<1x128xf32>
    %101 = vector.broadcast %100 : vector<1x128xf32> to vector<24x128xf32>
    %102 = arith.addf %99, %101 : vector<24x128xf32>
    %103 = arith.negf %102 : vector<24x128xf32>
    %104 = math.exp %103 : vector<24x128xf32>
    %cst_43 = arith.constant 1.000000e+00 : f32
    %105 = vector.broadcast %cst_43 : f32 to vector<24x128xf32>
    %106 = arith.addf %105, %104 : vector<24x128xf32>
    %107 = arith.divf %105, %106 : vector<24x128xf32>
    %108 = arith.mulf %102, %107 : vector<24x128xf32>
    %109 = arith.addf %108, %0 : vector<24x128xf32>
    %c0_44 = arith.constant 0 : index
    %c0_45 = arith.constant 0 : index
    %110 = vector.load %arg17[%c0_44, %c0_45] : memref<128x128xbf16, #tpu.memory_space<vmem>>, vector<128x128xbf16>
    %c0_46 = arith.constant 0 : index
    %c0_47 = arith.constant 0 : index
    %111 = vector.load %arg18[%c0_46, %c0_47] : memref<1x128xf32, #tpu.memory_space<vmem>>, vector<1x128xf32>
    %c0_48 = arith.constant 0 : index
    %c0_49 = arith.constant 0 : index
    %112 = vector.load %arg19[%c0_48, %c0_49] : memref<128x128xbf16, #tpu.memory_space<vmem>>, vector<128x128xbf16>
    %c0_50 = arith.constant 0 : index
    %c0_51 = arith.constant 0 : index
    %113 = vector.load %arg20[%c0_50, %c0_51] : memref<1x128xf32, #tpu.memory_space<vmem>>, vector<1x128xf32>
    %114 = arith.truncf %109 : vector<24x128xf32> to vector<24x128xbf16>
    %cst_52 = arith.constant dense<0.000000e+00> : vector<24x128xf32>
    %115 = tpu.matmul %114, %110, %cst_52 {dimension_numbers = #tpu.dot_dimension_numbers<[1], [0], [0], [1], [0, 0, 1, 1], [], []>} : vector<24x128xbf16>, vector<128x128xbf16>, vector<24x128xf32> -> vector<24x128xf32>
    %116 = vector.broadcast %111 : vector<1x128xf32> to vector<24x128xf32>
    %117 = arith.addf %115, %116 : vector<24x128xf32>
    %118 = arith.negf %117 : vector<24x128xf32>
    %119 = math.exp %118 : vector<24x128xf32>
    %cst_53 = arith.constant 1.000000e+00 : f32
    %120 = vector.broadcast %cst_53 : f32 to vector<24x128xf32>
    %121 = arith.addf %120, %119 : vector<24x128xf32>
    %122 = arith.divf %120, %121 : vector<24x128xf32>
    %123 = arith.mulf %117, %122 : vector<24x128xf32>
    %124 = arith.truncf %123 : vector<24x128xf32> to vector<24x128xbf16>
    %cst_54 = arith.constant dense<0.000000e+00> : vector<24x128xf32>
    %125 = tpu.matmul %124, %112, %cst_54 {dimension_numbers = #tpu.dot_dimension_numbers<[1], [0], [0], [1], [0, 0, 1, 1], [], []>} : vector<24x128xbf16>, vector<128x128xbf16>, vector<24x128xf32> -> vector<24x128xf32>
    %126 = vector.broadcast %113 : vector<1x128xf32> to vector<24x128xf32>
    %127 = arith.addf %125, %126 : vector<24x128xf32>
    %128 = arith.negf %127 : vector<24x128xf32>
    %129 = math.exp %128 : vector<24x128xf32>
    %cst_55 = arith.constant 1.000000e+00 : f32
    %130 = vector.broadcast %cst_55 : f32 to vector<24x128xf32>
    %131 = arith.addf %130, %129 : vector<24x128xf32>
    %132 = arith.divf %130, %131 : vector<24x128xf32>
    %133 = arith.mulf %127, %132 : vector<24x128xf32>
    %134 = arith.addf %109, %133 : vector<24x128xf32>
    %c0_56 = arith.constant 0 : index
    %c0_57 = arith.constant 0 : index
    %135 = vector.load %arg21[%c0_56, %c0_57] : memref<128x128xbf16, #tpu.memory_space<vmem>>, vector<128x128xbf16>
    %c0_58 = arith.constant 0 : index
    %c0_59 = arith.constant 0 : index
    %136 = vector.load %arg22[%c0_58, %c0_59] : memref<1x128xf32, #tpu.memory_space<vmem>>, vector<1x128xf32>
    %c0_60 = arith.constant 0 : index
    %c0_61 = arith.constant 0 : index
    %137 = vector.load %arg23[%c0_60, %c0_61] : memref<128x128xbf16, #tpu.memory_space<vmem>>, vector<128x128xbf16>
    %c0_62 = arith.constant 0 : index
    %c0_63 = arith.constant 0 : index
    %138 = vector.load %arg24[%c0_62, %c0_63] : memref<1x128xf32, #tpu.memory_space<vmem>>, vector<1x128xf32>
    %139 = arith.truncf %134 : vector<24x128xf32> to vector<24x128xbf16>
    %cst_64 = arith.constant dense<0.000000e+00> : vector<24x128xf32>
    %140 = tpu.matmul %139, %135, %cst_64 {dimension_numbers = #tpu.dot_dimension_numbers<[1], [0], [0], [1], [0, 0, 1, 1], [], []>} : vector<24x128xbf16>, vector<128x128xbf16>, vector<24x128xf32> -> vector<24x128xf32>
    %141 = vector.broadcast %136 : vector<1x128xf32> to vector<24x128xf32>
    %142 = arith.addf %140, %141 : vector<24x128xf32>
    %143 = arith.negf %142 : vector<24x128xf32>
    %144 = math.exp %143 : vector<24x128xf32>
    %cst_65 = arith.constant 1.000000e+00 : f32
    %145 = vector.broadcast %cst_65 : f32 to vector<24x128xf32>
    %146 = arith.addf %145, %144 : vector<24x128xf32>
    %147 = arith.divf %145, %146 : vector<24x128xf32>
    %148 = arith.mulf %142, %147 : vector<24x128xf32>
    %149 = arith.truncf %148 : vector<24x128xf32> to vector<24x128xbf16>
    %cst_66 = arith.constant dense<0.000000e+00> : vector<24x128xf32>
    %150 = tpu.matmul %149, %137, %cst_66 {dimension_numbers = #tpu.dot_dimension_numbers<[1], [0], [0], [1], [0, 0, 1, 1], [], []>} : vector<24x128xbf16>, vector<128x128xbf16>, vector<24x128xf32> -> vector<24x128xf32>
    %151 = vector.broadcast %138 : vector<1x128xf32> to vector<24x128xf32>
    %152 = arith.addf %150, %151 : vector<24x128xf32>
    %153 = arith.negf %152 : vector<24x128xf32>
    %154 = math.exp %153 : vector<24x128xf32>
    %cst_67 = arith.constant 1.000000e+00 : f32
    %155 = vector.broadcast %cst_67 : f32 to vector<24x128xf32>
    %156 = arith.addf %155, %154 : vector<24x128xf32>
    %157 = arith.divf %155, %156 : vector<24x128xf32>
    %158 = arith.mulf %152, %157 : vector<24x128xf32>
    %159 = arith.addf %134, %158 : vector<24x128xf32>
    %c0_68 = arith.constant 0 : index
    %c0_69 = arith.constant 0 : index
    %160 = vector.load %arg32[%c0_68, %c0_69] : memref<24x128xf32, #tpu.memory_space<vmem>>, vector<24x128xf32>
    tpu.vector_store %arg32[%c0_68, %c0_69], %159 {strides = array<i32>} : memref<24x128xf32, #tpu.memory_space<vmem>>, vector<24x128xf32>,
    %c0_70 = arith.constant 0 : index
    %c0_71 = arith.constant 0 : index
    %161 = vector.load %arg5[%c0_70, %c0_71] : memref<8x24xbf16, #tpu.memory_space<vmem>>, vector<8x24xbf16>
    %c0_72 = arith.constant 0 : index
    %c0_73 = arith.constant 0 : index
    %162 = vector.load %arg25[%c0_72, %c0_73] : memref<6x128xbf16, #tpu.memory_space<vmem>>, vector<6x128xbf16>
    %c0_74 = arith.constant 0 : index
    %c0_75 = arith.constant 0 : index
    %163 = vector.load %arg26[%c0_74, %c0_75] : memref<128x128xbf16, #tpu.memory_space<vmem>>, vector<128x128xbf16>
    %c0_76 = arith.constant 0 : index
    %c0_77 = arith.constant 0 : index
    %164 = vector.load %arg27[%c0_76, %c0_77] : memref<1x128xf32, #tpu.memory_space<vmem>>, vector<1x128xf32>
    %c0_78 = arith.constant 0 : index
    %c0_79 = arith.constant 0 : index
    %165 = vector.load %arg28[%c0_78, %c0_79] : memref<128x128xbf16, #tpu.memory_space<vmem>>, vector<128x128xbf16>
    %c0_80 = arith.constant 0 : index
    %c0_81 = arith.constant 0 : index
    %166 = vector.load %arg29[%c0_80, %c0_81] : memref<1x128xf32, #tpu.memory_space<vmem>>, vector<1x128xf32>
    %c0_82 = arith.constant 0 : index
    %c0_83 = arith.constant 0 : index
    %167 = vector.load %arg30[%c0_82, %c0_83] : memref<128x128xbf16, #tpu.memory_space<vmem>>, vector<128x128xbf16>
    %c0_84 = arith.constant 0 : index
    %c0_85 = arith.constant 0 : index
    %168 = vector.load %arg31[%c0_84, %c0_85] : memref<1x128xf32, #tpu.memory_space<vmem>>, vector<1x128xf32>
    %169 = arith.truncf %1 : vector<24x6xf32> to vector<24x6xbf16>
    %cst_86 = arith.constant dense<0.000000e+00> : vector<24x128xf32>
    %170 = tpu.matmul %169, %162, %cst_86 {dimension_numbers = #tpu.dot_dimension_numbers<[1], [0], [0], [1], [0, 0, 1, 1], [], []>} : vector<24x6xbf16>, vector<6x128xbf16>, vector<24x128xf32> -> vector<24x128xf32>
    %171 = arith.mulf %170, %159 : vector<24x128xf32>
    %172 = arith.truncf %171 : vector<24x128xf32> to vector<24x128xbf16>
    %cst_87 = arith.constant dense<0.000000e+00> : vector<8x128xf32>
    %173 = tpu.matmul %161, %172, %cst_87 {dimension_numbers = #tpu.dot_dimension_numbers<[1], [0], [0], [1], [0, 0, 1, 1], [], []>} : vector<8x24xbf16>, vector<24x128xbf16>, vector<8x128xf32> -> vector<8x128xf32>
    %174 = arith.truncf %173 : vector<8x128xf32> to vector<8x128xbf16>
    %cst_88 = arith.constant dense<0.000000e+00> : vector<8x128xf32>
    %175 = tpu.matmul %174, %163, %cst_88 {dimension_numbers = #tpu.dot_dimension_numbers<[1], [0], [0], [1], [0, 0, 1, 1], [], []>} : vector<8x128xbf16>, vector<128x128xbf16>, vector<8x128xf32> -> vector<8x128xf32>
    %176 = vector.broadcast %164 : vector<1x128xf32> to vector<8x128xf32>
    %177 = arith.addf %175, %176 : vector<8x128xf32>
    %178 = arith.negf %177 : vector<8x128xf32>
    %179 = math.exp %178 : vector<8x128xf32>
    %cst_89 = arith.constant 1.000000e+00 : f32
    %180 = vector.broadcast %cst_89 : f32 to vector<8x128xf32>
    %181 = arith.addf %180, %179 : vector<8x128xf32>
    %182 = arith.divf %180, %181 : vector<8x128xf32>
    %183 = arith.mulf %177, %182 : vector<8x128xf32>
    %184 = arith.truncf %183 : vector<8x128xf32> to vector<8x128xbf16>
    %cst_90 = arith.constant dense<0.000000e+00> : vector<8x128xf32>
    %185 = tpu.matmul %184, %165, %cst_90 {dimension_numbers = #tpu.dot_dimension_numbers<[1], [0], [0], [1], [0, 0, 1, 1], [], []>} : vector<8x128xbf16>, vector<128x128xbf16>, vector<8x128xf32> -> vector<8x128xf32>
    %186 = vector.broadcast %166 : vector<1x128xf32> to vector<8x128xf32>
    %187 = arith.addf %185, %186 : vector<8x128xf32>
    %188 = arith.negf %187 : vector<8x128xf32>
    %189 = math.exp %188 : vector<8x128xf32>
    %cst_91 = arith.constant 1.000000e+00 : f32
    %190 = vector.broadcast %cst_91 : f32 to vector<8x128xf32>
    %191 = arith.addf %190, %189 : vector<8x128xf32>
    %192 = arith.divf %190, %191 : vector<8x128xf32>
    %193 = arith.mulf %187, %192 : vector<8x128xf32>
    %194 = arith.truncf %193 : vector<8x128xf32> to vector<8x128xbf16>
    %cst_92 = arith.constant dense<0.000000e+00> : vector<8x128xf32>
    %195 = tpu.matmul %194, %167, %cst_92 {dimension_numbers = #tpu.dot_dimension_numbers<[1], [0], [0], [1], [0, 0, 1, 1], [], []>} : vector<8x128xbf16>, vector<128x128xbf16>, vector<8x128xf32> -> vector<8x128xf32>
    %196 = vector.broadcast %168 : vector<1x128xf32> to vector<8x128xf32>
    %197 = arith.addf %195, %196 : vector<8x128xf32>
    %198 = arith.negf %197 : vector<8x128xf32>
    %199 = math.exp %198 : vector<8x128xf32>
    %cst_93 = arith.constant 1.000000e+00 : f32
    %200 = vector.broadcast %cst_93 : f32 to vector<8x128xf32>
    %201 = arith.addf %200, %199 : vector<8x128xf32>
    %202 = arith.divf %200, %201 : vector<8x128xf32>
    %203 = arith.mulf %197, %202 : vector<8x128xf32>
    %c0_94 = arith.constant 0 : index
    %c0_95 = arith.constant 0 : index
    %204 = vector.load %arg33[%c0_94, %c0_95] : memref<8x128xf32, #tpu.memory_space<vmem>>, vector<8x128xf32>
    tpu.vector_store %arg33[%c0_94, %c0_95], %203 {strides = array<i32>} : memref<8x128xf32, #tpu.memory_space<vmem>>, vector<8x128xf32>,
    return
  }
}

module attributes {stable_mosaic.version = 11 : i64} {
  func.func @_interaction_out_kernel(%arg0: memref<24x128xf32, #tpu.memory_space<vmem>>, %arg1: memref<24x6xf32, #tpu.memory_space<vmem>>, %arg2: memref<48x42xf32, #tpu.memory_space<vmem>>, %arg3: memref<48x24xbf16, #tpu.memory_space<vmem>>, %arg4: memref<24x48xbf16, #tpu.memory_space<vmem>>, %arg5: memref<8x24xbf16, #tpu.memory_space<vmem>>, %arg6: memref<6x128xbf16, #tpu.memory_space<vmem>>, %arg7: memref<42x8xbf16, #tpu.memory_space<vmem>>, %arg8: memref<128x256xbf16, #tpu.memory_space<vmem>>, %arg9: memref<1x256xf32, #tpu.memory_space<vmem>>, %arg10: memref<1024x128xbf16, #tpu.memory_space<vmem>>, %arg11: memref<128x128xbf16, #tpu.memory_space<vmem>>, %arg12: memref<1x128xf32, #tpu.memory_space<vmem>>, %arg13: memref<128x128xbf16, #tpu.memory_space<vmem>>, %arg14: memref<1x128xf32, #tpu.memory_space<vmem>>, %arg15: memref<128x128xbf16, #tpu.memory_space<vmem>>, %arg16: memref<1x128xf32, #tpu.memory_space<vmem>>, %arg17: memref<128x128xbf16, #tpu.memory_space<vmem>>, %arg18: memref<1x128xf32, #tpu.memory_space<vmem>>, %arg19: memref<128x128xbf16, #tpu.memory_space<vmem>>, %arg20: memref<1x128xf32, #tpu.memory_space<vmem>>, %arg21: memref<128x128xbf16, #tpu.memory_space<vmem>>, %arg22: memref<1x128xf32, #tpu.memory_space<vmem>>, %arg23: memref<128x128xbf16, #tpu.memory_space<vmem>>, %arg24: memref<1x128xf32, #tpu.memory_space<vmem>>, %arg25: memref<6x128xbf16, #tpu.memory_space<vmem>>, %arg26: memref<128x128xbf16, #tpu.memory_space<vmem>>, %arg27: memref<1x128xf32, #tpu.memory_space<vmem>>, %arg28: memref<128x128xbf16, #tpu.memory_space<vmem>>, %arg29: memref<1x128xf32, #tpu.memory_space<vmem>>, %arg30: memref<128x128xbf16, #tpu.memory_space<vmem>>, %arg31: memref<1x128xf32, #tpu.memory_space<vmem>>, %arg32: memref<24x128xf32, #tpu.memory_space<vmem>>, %arg33: memref<8x128xf32, #tpu.memory_space<vmem>>) attributes {dimension_semantics = [], scalar_prefetch = 0 : i64, scratch_operands = 0 : i64, tpu.core_type = #tpu.core_type<tc>} {
    %c0 = arith.constant 0 : index
    %c0_0 = arith.constant 0 : index
    %0 = vector.load %arg0[%c0, %c0_0] : memref<24x128xf32, #tpu.memory_space<vmem>>, vector<24x128xf32>
    %c0_1 = arith.constant 0 : index
    %c0_2 = arith.constant 0 : index
    %1 = vector.load %arg1[%c0_1, %c0_2] : memref<24x6xf32, #tpu.memory_space<vmem>>, vector<24x6xf32>
    %c0_3 = arith.constant 0 : index
    %c0_4 = arith.constant 0 : index
    %2 = vector.load %arg6[%c0_3, %c0_4] : memref<6x128xbf16, #tpu.memory_space<vmem>>, vector<6x128xbf16>
    %3 = arith.truncf %1 : vector<24x6xf32> to vector<24x6xbf16>
    %cst = arith.constant dense<0.000000e+00> : vector<24x128xf32>
    %4 = tpu.matmul %3, %2, %cst {dimension_numbers = #tpu.dot_dimension_numbers<[1], [0], [0], [1], [0, 0, 1, 1], [], []>} : vector<24x6xbf16>, vector<6x128xbf16>, vector<24x128xf32> -> vector<24x128xf32>
    %c0_5 = arith.constant 0 : index
    %c0_6 = arith.constant 0 : index
    %5 = vector.load %arg2[%c0_5, %c0_6] : memref<48x42xf32, #tpu.memory_space<vmem>>, vector<48x42xf32>
    %c0_7 = arith.constant 0 : index
    %c0_8 = arith.constant 0 : index
    %6 = vector.load %arg7[%c0_7, %c0_8] : memref<42x8xbf16, #tpu.memory_space<vmem>>, vector<42x8xbf16>
    %7 = arith.truncf %5 : vector<48x42xf32> to vector<48x42xbf16>
    %cst_9 = arith.constant dense<0.000000e+00> : vector<48x8xf32>
    %8 = tpu.matmul %7, %6, %cst_9 {dimension_numbers = #tpu.dot_dimension_numbers<[1], [0], [0], [1], [0, 0, 1, 1], [], []>} : vector<48x42xbf16>, vector<42x8xbf16>, vector<48x8xf32> -> vector<48x8xf32>
    %c0_10 = arith.constant 0 : index
    %c0_11 = arith.constant 0 : index
    %9 = vector.load %arg8[%c0_10, %c0_11] : memref<128x256xbf16, #tpu.memory_space<vmem>>, vector<128x256xbf16>
    %10 = arith.truncf %0 : vector<24x128xf32> to vector<24x128xbf16>
    %cst_12 = arith.constant dense<0.000000e+00> : vector<24x256xf32>
    %11 = tpu.matmul %10, %9, %cst_12 {dimension_numbers = #tpu.dot_dimension_numbers<[1], [0], [0], [1], [0, 0, 1, 1], [], []>} : vector<24x128xbf16>, vector<128x256xbf16>, vector<24x256xf32> -> vector<24x256xf32>
    %c0_13 = arith.constant 0 : index
    %c0_14 = arith.constant 0 : index
    %12 = vector.load %arg9[%c0_13, %c0_14] : memref<1x256xf32, #tpu.memory_space<vmem>>, vector<1x256xf32>
    %13 = vector.broadcast %12 : vector<1x256xf32> to vector<24x256xf32>
    %14 = arith.addf %11, %13 : vector<24x256xf32>
    %15 = vector.extract_strided_slice %14 {offsets = [0, 0], sizes = [24, 128], strides = [1, 1]} : vector<24x256xf32> to vector<24x128xf32>
    %16 = arith.negf %15 : vector<24x128xf32>
    %17 = math.exp %16 : vector<24x128xf32>
    %cst_15 = arith.constant 1.000000e+00 : f32
    %18 = vector.broadcast %cst_15 : f32 to vector<24x128xf32>
    %19 = arith.addf %18, %17 : vector<24x128xf32>
    %20 = arith.divf %18, %19 : vector<24x128xf32>
    %21 = arith.mulf %15, %20 : vector<24x128xf32>
    %22 = vector.extract_strided_slice %14 {offsets = [0, 128], sizes = [24, 128], strides = [1, 1]} : vector<24x256xf32> to vector<24x128xf32>
    %23 = arith.negf %22 : vector<24x128xf32>
    %24 = math.exp %23 : vector<24x128xf32>
    %cst_16 = arith.constant 1.000000e+00 : f32
    %25 = vector.broadcast %cst_16 : f32 to vector<24x128xf32>
    %26 = arith.addf %25, %24 : vector<24x128xf32>
    %27 = arith.divf %25, %26 : vector<24x128xf32>
    %28 = arith.mulf %22, %27 : vector<24x128xf32>
    %29 = arith.mulf %28, %4 : vector<24x128xf32>
    %c0_17 = arith.constant 0 : index
    %c0_18 = arith.constant 0 : index
    %30 = vector.load %arg3[%c0_17, %c0_18] : memref<48x24xbf16, #tpu.memory_space<vmem>>, vector<48x24xbf16>
    %31 = arith.truncf %29 : vector<24x128xf32> to vector<24x128xbf16>
    %cst_19 = arith.constant dense<0.000000e+00> : vector<48x128xf32>
    %32 = tpu.matmul %30, %31, %cst_19 {dimension_numbers = #tpu.dot_dimension_numbers<[1], [0], [0], [1], [0, 0, 1, 1], [], []>} : vector<48x24xbf16>, vector<24x128xbf16>, vector<48x128xf32> -> vector<48x128xf32>
    %33 = vector.extract_strided_slice %8 {offsets = [0, 0], sizes = [48, 1], strides = [1, 1]} : vector<48x8xf32> to vector<48x1xf32>
    %34 = vector.broadcast %33 : vector<48x1xf32> to vector<48x128xf32>
    %35 = arith.mulf %32, %34 : vector<48x128xf32>
    %36 = arith.truncf %35 : vector<48x128xf32> to vector<48x128xbf16>
    %37 = vector.extract_strided_slice %8 {offsets = [0, 1], sizes = [48, 1], strides = [1, 1]} : vector<48x8xf32> to vector<48x1xf32>
    %38 = vector.broadcast %37 : vector<48x1xf32> to vector<48x128xf32>
    %39 = arith.mulf %32, %38 : vector<48x128xf32>
    %40 = arith.truncf %39 : vector<48x128xf32> to vector<48x128xbf16>
    %41 = vector.extract_strided_slice %8 {offsets = [0, 2], sizes = [48, 1], strides = [1, 1]} : vector<48x8xf32> to vector<48x1xf32>
    %42 = vector.broadcast %41 : vector<48x1xf32> to vector<48x128xf32>
    %43 = arith.mulf %32, %42 : vector<48x128xf32>
    %44 = arith.truncf %43 : vector<48x128xf32> to vector<48x128xbf16>
    %45 = vector.extract_strided_slice %8 {offsets = [0, 3], sizes = [48, 1], strides = [1, 1]} : vector<48x8xf32> to vector<48x1xf32>
    %46 = vector.broadcast %45 : vector<48x1xf32> to vector<48x128xf32>
    %47 = arith.mulf %32, %46 : vector<48x128xf32>
    %48 = arith.truncf %47 : vector<48x128xf32> to vector<48x128xbf16>
    %49 = vector.extract_strided_slice %8 {offsets = [0, 4], sizes = [48, 1], strides = [1, 1]} : vector<48x8xf32> to vector<48x1xf32>
    %50 = vector.broadcast %49 : vector<48x1xf32> to vector<48x128xf32>
    %51 = arith.mulf %32, %50 : vector<48x128xf32>
    %52 = arith.truncf %51 : vector<48x128xf32> to vector<48x128xbf16>
    %53 = vector.extract_strided_slice %8 {offsets = [0, 5], sizes = [48, 1], strides = [1, 1]} : vector<48x8xf32> to vector<48x1xf32>
    %54 = vector.broadcast %53 : vector<48x1xf32> to vector<48x128xf32>
    %55 = arith.mulf %32, %54 : vector<48x128xf32>
    %56 = arith.truncf %55 : vector<48x128xf32> to vector<48x128xbf16>
    %57 = vector.extract_strided_slice %8 {offsets = [0, 6], sizes = [48, 1], strides = [1, 1]} : vector<48x8xf32> to vector<48x1xf32>
    %58 = vector.broadcast %57 : vector<48x1xf32> to vector<48x128xf32>
    %59 = arith.mulf %32, %58 : vector<48x128xf32>
    %60 = arith.truncf %59 : vector<48x128xf32> to vector<48x128xbf16>
    %61 = vector.extract_strided_slice %8 {offsets = [0, 7], sizes = [48, 1], strides = [1, 1]} : vector<48x8xf32> to vector<48x1xf32>
    %62 = vector.broadcast %61 : vector<48x1xf32> to vector<48x128xf32>
    %63 = arith.mulf %32, %62 : vector<48x128xf32>
    %64 = arith.truncf %63 : vector<48x128xf32> to vector<48x128xbf16>
    %65 = tpu.concatenate %36, %40, %44, %48, %52, %56, %60, %64 in 1 : vector<48x128xbf16>, vector<48x128xbf16>, vector<48x128xbf16>, vector<48x128xbf16>, vector<48x128xbf16>, vector<48x128xbf16>, vector<48x128xbf16>, vector<48x128xbf16> -> vector<48x1024xbf16>
    %c0_20 = arith.constant 0 : index
    %c0_21 = arith.constant 0 : index
    %66 = vector.load %arg10[%c0_20, %c0_21] : memref<1024x128xbf16, #tpu.memory_space<vmem>>, vector<1024x128xbf16>
    %cst_22 = arith.constant dense<0.000000e+00> : vector<48x128xf32>
    %67 = tpu.matmul %65, %66, %cst_22 {dimension_numbers = #tpu.dot_dimension_numbers<[1], [0], [0], [1], [0, 0, 1, 1], [], []>} : vector<48x1024xbf16>, vector<1024x128xbf16>, vector<48x128xf32> -> vector<48x128xf32>
    %c0_23 = arith.constant 0 : index
    %c0_24 = arith.constant 0 : index
    %68 = vector.load %arg4[%c0_23, %c0_24] : memref<24x48xbf16, #tpu.memory_space<vmem>>, vector<24x48xbf16>
    %69 = arith.truncf %67 : vector<48x128xf32> to vector<48x128xbf16>
    %cst_25 = arith.constant dense<0.000000e+00> : vector<24x128xf32>
    %70 = tpu.matmul %68, %69, %cst_25 {dimension_numbers = #tpu.dot_dimension_numbers<[1], [0], [0], [1], [0, 0, 1, 1], [], []>} : vector<24x48xbf16>, vector<48x128xbf16>, vector<24x128xf32> -> vector<24x128xf32>
    %71 = arith.addf %21, %70 : vector<24x128xf32>
    %c0_26 = arith.constant 0 : index
    %c0_27 = arith.constant 0 : index
    %72 = vector.load %arg11[%c0_26, %c0_27] : memref<128x128xbf16, #tpu.memory_space<vmem>>, vector<128x128xbf16>
    %c0_28 = arith.constant 0 : index
    %c0_29 = arith.constant 0 : index
    %73 = vector.load %arg12[%c0_28, %c0_29] : memref<1x128xf32, #tpu.memory_space<vmem>>, vector<1x128xf32>
    %c0_30 = arith.constant 0 : index
    %c0_31 = arith.constant 0 : index
    %74 = vector.load %arg13[%c0_30, %c0_31] : memref<128x128xbf16, #tpu.memory_space<vmem>>, vector<128x128xbf16>
    %c0_32 = arith.constant 0 : index
    %c0_33 = arith.constant 0 : index
    %75 = vector.load %arg14[%c0_32, %c0_33] : memref<1x128xf32, #tpu.memory_space<vmem>>, vector<1x128xf32>
    %76 = arith.truncf %71 : vector<24x128xf32> to vector<24x128xbf16>
    %cst_34 = arith.constant dense<0.000000e+00> : vector<24x128xf32>
    %77 = tpu.matmul %76, %72, %cst_34 {dimension_numbers = #tpu.dot_dimension_numbers<[1], [0], [0], [1], [0, 0, 1, 1], [], []>} : vector<24x128xbf16>, vector<128x128xbf16>, vector<24x128xf32> -> vector<24x128xf32>
    %78 = vector.broadcast %73 : vector<1x128xf32> to vector<24x128xf32>
    %79 = arith.addf %77, %78 : vector<24x128xf32>
    %80 = arith.negf %79 : vector<24x128xf32>
    %81 = math.exp %80 : vector<24x128xf32>
    %cst_35 = arith.constant 1.000000e+00 : f32
    %82 = vector.broadcast %cst_35 : f32 to vector<24x128xf32>
    %83 = arith.addf %82, %81 : vector<24x128xf32>
    %84 = arith.divf %82, %83 : vector<24x128xf32>
    %85 = arith.mulf %79, %84 : vector<24x128xf32>
    %86 = arith.truncf %85 : vector<24x128xf32> to vector<24x128xbf16>
    %cst_36 = arith.constant dense<0.000000e+00> : vector<24x128xf32>
    %87 = tpu.matmul %86, %74, %cst_36 {dimension_numbers = #tpu.dot_dimension_numbers<[1], [0], [0], [1], [0, 0, 1, 1], [], []>} : vector<24x128xbf16>, vector<128x128xbf16>, vector<24x128xf32> -> vector<24x128xf32>
    %88 = vector.broadcast %75 : vector<1x128xf32> to vector<24x128xf32>
    %89 = arith.addf %87, %88 : vector<24x128xf32>
    %90 = arith.negf %89 : vector<24x128xf32>
    %91 = math.exp %90 : vector<24x128xf32>
    %cst_37 = arith.constant 1.000000e+00 : f32
    %92 = vector.broadcast %cst_37 : f32 to vector<24x128xf32>
    %93 = arith.addf %92, %91 : vector<24x128xf32>
    %94 = arith.divf %92, %93 : vector<24x128xf32>
    %95 = arith.mulf %89, %94 : vector<24x128xf32>
    %96 = arith.addf %71, %95 : vector<24x128xf32>
    %c0_38 = arith.constant 0 : index
    %c0_39 = arith.constant 0 : index
    %97 = vector.load %arg15[%c0_38, %c0_39] : memref<128x128xbf16, #tpu.memory_space<vmem>>, vector<128x128xbf16>
    %98 = arith.truncf %96 : vector<24x128xf32> to vector<24x128xbf16>
    %cst_40 = arith.constant dense<0.000000e+00> : vector<24x128xf32>
    %99 = tpu.matmul %98, %97, %cst_40 {dimension_numbers = #tpu.dot_dimension_numbers<[1], [0], [0], [1], [0, 0, 1, 1], [], []>} : vector<24x128xbf16>, vector<128x128xbf16>, vector<24x128xf32> -> vector<24x128xf32>
    %c0_41 = arith.constant 0 : index
    %c0_42 = arith.constant 0 : index
    %100 = vector.load %arg16[%c0_41, %c0_42] : memref<1x128xf32, #tpu.memory_space<vmem>>, vector<1x128xf32>
    %101 = vector.broadcast %100 : vector<1x128xf32> to vector<24x128xf32>
    %102 = arith.addf %99, %101 : vector<24x128xf32>
    %103 = arith.negf %102 : vector<24x128xf32>
    %104 = math.exp %103 : vector<24x128xf32>
    %cst_43 = arith.constant 1.000000e+00 : f32
    %105 = vector.broadcast %cst_43 : f32 to vector<24x128xf32>
    %106 = arith.addf %105, %104 : vector<24x128xf32>
    %107 = arith.divf %105, %106 : vector<24x128xf32>
    %108 = arith.mulf %102, %107 : vector<24x128xf32>
    %109 = arith.addf %108, %0 : vector<24x128xf32>
    %c0_44 = arith.constant 0 : index
    %c0_45 = arith.constant 0 : index
    %110 = vector.load %arg17[%c0_44, %c0_45] : memref<128x128xbf16, #tpu.memory_space<vmem>>, vector<128x128xbf16>
    %c0_46 = arith.constant 0 : index
    %c0_47 = arith.constant 0 : index
    %111 = vector.load %arg18[%c0_46, %c0_47] : memref<1x128xf32, #tpu.memory_space<vmem>>, vector<1x128xf32>
    %c0_48 = arith.constant 0 : index
    %c0_49 = arith.constant 0 : index
    %112 = vector.load %arg19[%c0_48, %c0_49] : memref<128x128xbf16, #tpu.memory_space<vmem>>, vector<128x128xbf16>
    %c0_50 = arith.constant 0 : index
    %c0_51 = arith.constant 0 : index
    %113 = vector.load %arg20[%c0_50, %c0_51] : memref<1x128xf32, #tpu.memory_space<vmem>>, vector<1x128xf32>
    %114 = arith.truncf %109 : vector<24x128xf32> to vector<24x128xbf16>
    %cst_52 = arith.constant dense<0.000000e+00> : vector<24x128xf32>
    %115 = tpu.matmul %114, %110, %cst_52 {dimension_numbers = #tpu.dot_dimension_numbers<[1], [0], [0], [1], [0, 0, 1, 1], [], []>} : vector<24x128xbf16>, vector<128x128xbf16>, vector<24x128xf32> -> vector<24x128xf32>
    %116 = vector.broadcast %111 : vector<1x128xf32> to vector<24x128xf32>
    %117 = arith.addf %115, %116 : vector<24x128xf32>
    %118 = arith.negf %117 : vector<24x128xf32>
    %119 = math.exp %118 : vector<24x128xf32>
    %cst_53 = arith.constant 1.000000e+00 : f32
    %120 = vector.broadcast %cst_53 : f32 to vector<24x128xf32>
    %121 = arith.addf %120, %119 : vector<24x128xf32>
    %122 = arith.divf %120, %121 : vector<24x128xf32>
    %123 = arith.mulf %117, %122 : vector<24x128xf32>
    %124 = arith.truncf %123 : vector<24x128xf32> to vector<24x128xbf16>
    %cst_54 = arith.constant dense<0.000000e+00> : vector<24x128xf32>
    %125 = tpu.matmul %124, %112, %cst_54 {dimension_numbers = #tpu.dot_dimension_numbers<[1], [0], [0], [1], [0, 0, 1, 1], [], []>} : vector<24x128xbf16>, vector<128x128xbf16>, vector<24x128xf32> -> vector<24x128xf32>
    %126 = vector.broadcast %113 : vector<1x128xf32> to vector<24x128xf32>
    %127 = arith.addf %125, %126 : vector<24x128xf32>
    %128 = arith.negf %127 : vector<24x128xf32>
    %129 = math.exp %128 : vector<24x128xf32>
    %cst_55 = arith.constant 1.000000e+00 : f32
    %130 = vector.broadcast %cst_55 : f32 to vector<24x128xf32>
    %131 = arith.addf %130, %129 : vector<24x128xf32>
    %132 = arith.divf %130, %131 : vector<24x128xf32>
    %133 = arith.mulf %127, %132 : vector<24x128xf32>
    %134 = arith.addf %109, %133 : vector<24x128xf32>
    %c0_56 = arith.constant 0 : index
    %c0_57 = arith.constant 0 : index
    %135 = vector.load %arg21[%c0_56, %c0_57] : memref<128x128xbf16, #tpu.memory_space<vmem>>, vector<128x128xbf16>
    %c0_58 = arith.constant 0 : index
    %c0_59 = arith.constant 0 : index
    %136 = vector.load %arg22[%c0_58, %c0_59] : memref<1x128xf32, #tpu.memory_space<vmem>>, vector<1x128xf32>
    %c0_60 = arith.constant 0 : index
    %c0_61 = arith.constant 0 : index
    %137 = vector.load %arg23[%c0_60, %c0_61] : memref<128x128xbf16, #tpu.memory_space<vmem>>, vector<128x128xbf16>
    %c0_62 = arith.constant 0 : index
    %c0_63 = arith.constant 0 : index
    %138 = vector.load %arg24[%c0_62, %c0_63] : memref<1x128xf32, #tpu.memory_space<vmem>>, vector<1x128xf32>
    %139 = arith.truncf %134 : vector<24x128xf32> to vector<24x128xbf16>
    %cst_64 = arith.constant dense<0.000000e+00> : vector<24x128xf32>
    %140 = tpu.matmul %139, %135, %cst_64 {dimension_numbers = #tpu.dot_dimension_numbers<[1], [0], [0], [1], [0, 0, 1, 1], [], []>} : vector<24x128xbf16>, vector<128x128xbf16>, vector<24x128xf32> -> vector<24x128xf32>
    %141 = vector.broadcast %136 : vector<1x128xf32> to vector<24x128xf32>
    %142 = arith.addf %140, %141 : vector<24x128xf32>
    %143 = arith.negf %142 : vector<24x128xf32>
    %144 = math.exp %143 : vector<24x128xf32>
    %cst_65 = arith.constant 1.000000e+00 : f32
    %145 = vector.broadcast %cst_65 : f32 to vector<24x128xf32>
    %146 = arith.addf %145, %144 : vector<24x128xf32>
    %147 = arith.divf %145, %146 : vector<24x128xf32>
    %148 = arith.mulf %142, %147 : vector<24x128xf32>
    %149 = arith.truncf %148 : vector<24x128xf32> to vector<24x128xbf16>
    %cst_66 = arith.constant dense<0.000000e+00> : vector<24x128xf32>
    %150 = tpu.matmul %149, %137, %cst_66 {dimension_numbers = #tpu.dot_dimension_numbers<[1], [0], [0], [1], [0, 0, 1, 1], [], []>} : vector<24x128xbf16>, vector<128x128xbf16>, vector<24x128xf32> -> vector<24x128xf32>
    %151 = vector.broadcast %138 : vector<1x128xf32> to vector<24x128xf32>
    %152 = arith.addf %150, %151 : vector<24x128xf32>
    %153 = arith.negf %152 : vector<24x128xf32>
    %154 = math.exp %153 : vector<24x128xf32>
    %cst_67 = arith.constant 1.000000e+00 : f32
    %155 = vector.broadcast %cst_67 : f32 to vector<24x128xf32>
    %156 = arith.addf %155, %154 : vector<24x128xf32>
    %157 = arith.divf %155, %156 : vector<24x128xf32>
    %158 = arith.mulf %152, %157 : vector<24x128xf32>
    %159 = arith.addf %134, %158 : vector<24x128xf32>
    %c0_68 = arith.constant 0 : index
    %c0_69 = arith.constant 0 : index
    %160 = vector.load %arg32[%c0_68, %c0_69] : memref<24x128xf32, #tpu.memory_space<vmem>>, vector<24x128xf32>
    tpu.vector_store %arg32[%c0_68, %c0_69], %159 {strides = array<i32>} : memref<24x128xf32, #tpu.memory_space<vmem>>, vector<24x128xf32>,
    %c0_70 = arith.constant 0 : index
    %c0_71 = arith.constant 0 : index
    %161 = vector.load %arg5[%c0_70, %c0_71] : memref<8x24xbf16, #tpu.memory_space<vmem>>, vector<8x24xbf16>
    %c0_72 = arith.constant 0 : index
    %c0_73 = arith.constant 0 : index
    %162 = vector.load %arg25[%c0_72, %c0_73] : memref<6x128xbf16, #tpu.memory_space<vmem>>, vector<6x128xbf16>
    %c0_74 = arith.constant 0 : index
    %c0_75 = arith.constant 0 : index
    %163 = vector.load %arg26[%c0_74, %c0_75] : memref<128x128xbf16, #tpu.memory_space<vmem>>, vector<128x128xbf16>
    %c0_76 = arith.constant 0 : index
    %c0_77 = arith.constant 0 : index
    %164 = vector.load %arg27[%c0_76, %c0_77] : memref<1x128xf32, #tpu.memory_space<vmem>>, vector<1x128xf32>
    %c0_78 = arith.constant 0 : index
    %c0_79 = arith.constant 0 : index
    %165 = vector.load %arg28[%c0_78, %c0_79] : memref<128x128xbf16, #tpu.memory_space<vmem>>, vector<128x128xbf16>
    %c0_80 = arith.constant 0 : index
    %c0_81 = arith.constant 0 : index
    %166 = vector.load %arg29[%c0_80, %c0_81] : memref<1x128xf32, #tpu.memory_space<vmem>>, vector<1x128xf32>
    %c0_82 = arith.constant 0 : index
    %c0_83 = arith.constant 0 : index
    %167 = vector.load %arg30[%c0_82, %c0_83] : memref<128x128xbf16, #tpu.memory_space<vmem>>, vector<128x128xbf16>
    %c0_84 = arith.constant 0 : index
    %c0_85 = arith.constant 0 : index
    %168 = vector.load %arg31[%c0_84, %c0_85] : memref<1x128xf32, #tpu.memory_space<vmem>>, vector<1x128xf32>
    %169 = arith.truncf %1 : vector<24x6xf32> to vector<24x6xbf16>
    %cst_86 = arith.constant dense<0.000000e+00> : vector<24x128xf32>
    %170 = tpu.matmul %169, %162, %cst_86 {dimension_numbers = #tpu.dot_dimension_numbers<[1], [0], [0], [1], [0, 0, 1, 1], [], []>} : vector<24x6xbf16>, vector<6x128xbf16>, vector<24x128xf32> -> vector<24x128xf32>
    %171 = arith.mulf %170, %159 : vector<24x128xf32>
    %172 = arith.truncf %171 : vector<24x128xf32> to vector<24x128xbf16>
    %cst_87 = arith.constant dense<0.000000e+00> : vector<8x128xf32>
    %173 = tpu.matmul %161, %172, %cst_87 {dimension_numbers = #tpu.dot_dimension_numbers<[1], [0], [0], [1], [0, 0, 1, 1], [], []>} : vector<8x24xbf16>, vector<24x128xbf16>, vector<8x128xf32> -> vector<8x128xf32>
    %174 = arith.truncf %173 : vector<8x128xf32> to vector<8x128xbf16>
    %cst_88 = arith.constant dense<0.000000e+00> : vector<8x128xf32>
    %175 = tpu.matmul %174, %163, %cst_88 {dimension_numbers = #tpu.dot_dimension_numbers<[1], [0], [0], [1], [0, 0, 1, 1], [], []>} : vector<8x128xbf16>, vector<128x128xbf16>, vector<8x128xf32> -> vector<8x128xf32>
    %176 = vector.broadcast %164 : vector<1x128xf32> to vector<8x128xf32>
    %177 = arith.addf %175, %176 : vector<8x128xf32>
    %178 = arith.negf %177 : vector<8x128xf32>
    %179 = math.exp %178 : vector<8x128xf32>
    %cst_89 = arith.constant 1.000000e+00 : f32
    %180 = vector.broadcast %cst_89 : f32 to vector<8x128xf32>
    %181 = arith.addf %180, %179 : vector<8x128xf32>
    %182 = arith.divf %180, %181 : vector<8x128xf32>
    %183 = arith.mulf %177, %182 : vector<8x128xf32>
    %184 = arith.truncf %183 : vector<8x128xf32> to vector<8x128xbf16>
    %cst_90 = arith.constant dense<0.000000e+00> : vector<8x128xf32>
    %185 = tpu.matmul %184, %165, %cst_90 {dimension_numbers = #tpu.dot_dimension_numbers<[1], [0], [0], [1], [0, 0, 1, 1], [], []>} : vector<8x128xbf16>, vector<128x128xbf16>, vector<8x128xf32> -> vector<8x128xf32>
    %186 = vector.broadcast %166 : vector<1x128xf32> to vector<8x128xf32>
    %187 = arith.addf %185, %186 : vector<8x128xf32>
    %188 = arith.negf %187 : vector<8x128xf32>
    %189 = math.exp %188 : vector<8x128xf32>
    %cst_91 = arith.constant 1.000000e+00 : f32
    %190 = vector.broadcast %cst_91 : f32 to vector<8x128xf32>
    %191 = arith.addf %190, %189 : vector<8x128xf32>
    %192 = arith.divf %190, %191 : vector<8x128xf32>
    %193 = arith.mulf %187, %192 : vector<8x128xf32>
    %194 = arith.truncf %193 : vector<8x128xf32> to vector<8x128xbf16>
    %cst_92 = arith.constant dense<0.000000e+00> : vector<8x128xf32>
    %195 = tpu.matmul %194, %167, %cst_92 {dimension_numbers = #tpu.dot_dimension_numbers<[1], [0], [0], [1], [0, 0, 1, 1], [], []>} : vector<8x128xbf16>, vector<128x128xbf16>, vector<8x128xf32> -> vector<8x128xf32>
    %196 = vector.broadcast %168 : vector<1x128xf32> to vector<8x128xf32>
    %197 = arith.addf %195, %196 : vector<8x128xf32>
    %198 = arith.negf %197 : vector<8x128xf32>
    %199 = math.exp %198 : vector<8x128xf32>
    %cst_93 = arith.constant 1.000000e+00 : f32
    %200 = vector.broadcast %cst_93 : f32 to vector<8x128xf32>
    %201 = arith.addf %200, %199 : vector<8x128xf32>
    %202 = arith.divf %200, %201 : vector<8x128xf32>
    %203 = arith.mulf %197, %202 : vector<8x128xf32>
    %c0_94 = arith.constant 0 : index
    %c0_95 = arith.constant 0 : index
    %204 = vector.load %arg33[%c0_94, %c0_95] : memref<8x128xf32, #tpu.memory_space<vmem>>, vector<8x128xf32>
    tpu.vector_store %arg33[%c0_94, %c0_95], %203 {strides = array<i32>} : memref<8x128xf32, #tpu.memory_space<vmem>>, vector<8x128xf32>,
    return
  }
}

module attributes {stable_mosaic.version = 11 : i64} {
  func.func @_readout_kernel(%arg0: memref<8x896xf32, #tpu.memory_space<vmem>>, %arg1: memref<896x1xbf16, #tpu.memory_space<vmem>>, %arg2: memref<2x8xbf16, #tpu.memory_space<vmem>>, %arg3: memref<2x1xf32, #tpu.memory_space<vmem>>) attributes {dimension_semantics = [], scalar_prefetch = 0 : i64, scratch_operands = 0 : i64, tpu.core_type = #tpu.core_type<tc>} {
    %c0 = arith.constant 0 : index
    %c0_0 = arith.constant 0 : index
    %0 = vector.load %arg0[%c0, %c0_0] : memref<8x896xf32, #tpu.memory_space<vmem>>, vector<8x896xf32>
    %c0_1 = arith.constant 0 : index
    %c0_2 = arith.constant 0 : index
    %1 = vector.load %arg1[%c0_1, %c0_2] : memref<896x1xbf16, #tpu.memory_space<vmem>>, vector<896x1xbf16>
    %2 = arith.truncf %0 : vector<8x896xf32> to vector<8x896xbf16>
    %cst = arith.constant dense<0.000000e+00> : vector<8x1xf32>
    %3 = tpu.matmul %2, %1, %cst {dimension_numbers = #tpu.dot_dimension_numbers<[1], [0], [0], [1], [0, 0, 1, 1], [], []>} : vector<8x896xbf16>, vector<896x1xbf16>, vector<8x1xf32> -> vector<8x1xf32>
    %c0_3 = arith.constant 0 : index
    %c0_4 = arith.constant 0 : index
    %4 = vector.load %arg2[%c0_3, %c0_4] : memref<2x8xbf16, #tpu.memory_space<vmem>>, vector<2x8xbf16>
    %5 = arith.truncf %3 : vector<8x1xf32> to vector<8x1xbf16>
    %cst_5 = arith.constant dense<0.000000e+00> : vector<2x1xf32>
    %6 = tpu.matmul %4, %5, %cst_5 {dimension_numbers = #tpu.dot_dimension_numbers<[1], [0], [0], [1], [0, 0, 1, 1], [], []>} : vector<2x8xbf16>, vector<8x1xbf16>, vector<2x1xf32> -> vector<2x1xf32>
    %c0_6 = arith.constant 0 : index
    %c0_7 = arith.constant 0 : index
    %7 = vector.load %arg3[%c0_6, %c0_7] : memref<2x1xf32, #tpu.memory_space<vmem>>, vector<2x1xf32>
    tpu.vector_store %arg3[%c0_6, %c0_7], %6 {strides = array<i32>} : memref<2x1xf32, #tpu.memory_space<vmem>>, vector<2x1xf32>,
    return
  }
}

</mosaic_0001>

<bundles_post_ra>
// kernel: mul.234
= control target key start
LH: loop header
LB: loop body
LE: loop exit
PB: predicated region body
PF: predicated region fallthrough
CT: control target
= control target key end

     0   :  { %s144_s0 = inlined_call_operand.vmem [shape: f32[48,42], index: 0, kind: input, shape index: {}]   ;;  %s145_s1 = inlined_call_operand.vmem [shape: f32[48,42], index: 1, kind: input, shape index: {}]   ;;  %s146_s2 = inlined_call_operand.vmem [shape: f32[48,42], index: 2, kind: output, shape index: {}]  }
   0x1   :  { %v3_v0 = vld [vmem:[%s144_s0] sm:$0xff]  ;;  %v60_v2 = vld [vmem:[%s144_s0 + $0x8] sm:$0xff]  ;;  %v63_v5 = vld [vmem:[%s144_s0 + $0x10] sm:$0xff] }
   0x2   :  { %v4_v1 = vld [vmem:[%s145_s1] sm:$0xff]  ;;  %v61_v4 = vld [vmem:[%s145_s1 + $0x8] sm:$0xff]  ;;  %v64_v6 = vld [vmem:[%s145_s1 + $0x10] sm:$0xff] }
   0x3   :  { %v7_v3 = vmul.f32 %v4_v1, %v3_v0  ;;  %v16_v7 = vmul.f32 %v61_v4, %v60_v2  ;;  %v26_v8 = vmul.f32 %v64_v6, %v63_v5  ;;  %v66_v9 = vld [vmem:[%s144_s0 + $0x18] sm:$0xff]  ;;  %v69_v11 = vld [vmem:[%s144_s0 + $0x20] sm:$0xff]  ;;  %v72_v14 = vld [vmem:[%s144_s0 + $0x28] sm:$0xff] }
   0x4   :  { %v67_v10 = vld [vmem:[%s145_s1 + $0x18] sm:$0xff]  ;;  %v70_v13 = vld [vmem:[%s145_s1 + $0x20] sm:$0xff]  ;;  %v73_v15 = vld [vmem:[%s145_s1 + $0x28] sm:$0xff] }
   0x5   :  { %9 = vst [vmem:[%s146_s2] sm:$0xff] %v7_v3  ;;  %v36_v12 = vmul.f32 %v67_v10, %v66_v9  ;;  %v46_v16 = vmul.f32 %v70_v13, %v69_v11  ;;  %v56_v17 = vmul.f32 %v73_v15, %v72_v14 }
   0x6   :  { %62 = vst [vmem:[%s146_s2 + $0x8] sm:$0xff] %v16_v7 }
   0x7   :  { %65 = vst [vmem:[%s146_s2 + $0x10] sm:$0xff] %v26_v8 }
   0x8   :  { %68 = vst [vmem:[%s146_s2 + $0x18] sm:$0xff] %v36_v12 }
   0x9   :  { %71 = vst [vmem:[%s146_s2 + $0x20] sm:$0xff] %v46_v16 }
   0xa   :  { %74 = vst [vmem:[%s146_s2 + $0x28] sm:$0xff] %v56_v17 }

// kernel: _lambda_.8
= control target key start
LH: loop header
LB: loop body
LE: loop exit
PB: predicated region body
PF: predicated region fallthrough
CT: control target
= control target key end

     0   :  { %vm70_vm0 = vcmask 1042432   ;;  %vm63_vm1 = vcmask 48128   ;;  %s1489_s4 = inlined_call_operand.vmem [shape: bf16[6,128], index: 4, kind: input, shape index: {}]   ;;  %s1490_s2 = inlined_call_operand.vmem [shape: f32[24,6], index: 2, kind: input, shape index: {}]   ;;  %s1491_s5 = inlined_call_operand.vmem [shape: f32[1,128], index: 5, kind: input, shape index: {}]   ;;  %s1492_s6 = inlined_call_operand.vmem [shape: bf16[384,128], index: 6, kind: input, shape index: {}]   ;;  %s1493_s0 = inlined_call_operand.vmem [shape: bf16[24,128], index: 0, kind: input, shape index: {}]   ;;  %s1494_s1 = inlined_call_operand.vmem [shape: bf16[24,128], index: 1, kind: input, shape index: {}]   ;;  %s1495_s7 = inlined_call_operand.vmem [shape: f32[1,128], index: 7, kind: input, shape index: {}]   ;;  %s1496_s8 = inlined_call_operand.vmem [shape: bf16[6,128], index: 8, kind: input, shape index: {}]   ;;  %s1497_s9 = inlined_call_operand.vmem [shape: bf16[128,128], index: 9, kind: input, shape index: {}]   ;;  %s1498_s15 = inlined_call_operand.vmem [shape: f32[24,128], index: 15, kind: output, shape index: {0}]   ;;  %s1499_s3 = inlined_call_operand.vmem [shape: bf16[8,24], index: 3, kind: input, shape index: {}]   ;;  %s1500_s10 = inlined_call_operand.vmem [shape: f32[1,128], index: 10, kind: input, shape index: {}]   ;;  %s1501_s12 = inlined_call_operand.vmem [shape: f32[1,128], index: 12, kind: input, shape index: {}]   ;;  %s1502_s11 = inlined_call_operand.vmem [shape: bf16[128,128], index: 11, kind: input, shape index: {}]   ;;  %s1503_s14 = inlined_call_operand.vmem [shape: f32[1,128], index: 14, kind: input, shape index: {}]   ;;  %s1504_s13 = inlined_call_operand.vmem [shape: bf16[128,128], index: 13, kind: input, shape index: {}]   ;;  %s1505_s16 = inlined_call_operand.vmem [shape: f32[8,128], index: 16, kind: output, shape index: {1}]  }
   0x1   :  { %1506 = sst [smem:[#allocation2_spill]] %s1489_s4  ;;  %v53_v1 = vld [vmem:[%s1490_s2] sm:$0xff]  ;;  %v54_v2 = vld [vmem:[%s1490_s2 + $0x8] sm:$0xff]  ;;  %v55_v5 = vld [vmem:[%s1490_s2 + $0x10] sm:$0xff] }
   0x2   :  { %s1507_s23 = sld [smem:[#allocation2_spill]]  ;;  %v1263_v4 = vpack.c.bf16 %v54_v2, %v53_v1  ;;  %v1270_v6 = vpack.c.bf16 %v55_v5, %v55_v5  ;;  %v1084_v7 = vld [vmem:[%s1492_s6 + $0x38] sm:$0xff]  ;;  %v1083_v8 = vld [vmem:[%s1492_s6 + $0x30] sm:$0xff]  ;;  %v1082_v10 = vld [vmem:[%s1492_s6 + $0x28] sm:$0xff] }
   0x3   :  { %340 = vmatpush.bf16.msra.mxu2 %v1084_v7  ;;  %v1092_v9 = vld [vmem:[%s1492_s6 + $0x78] sm:$0xff]  ;;  %v1091_v11 = vld [vmem:[%s1492_s6 + $0x70] sm:$0xff]  ;;  %v1081_v13 = vld [vmem:[%s1492_s6 + $0x20] sm:$0xff] }
   0x4   :  { %264 = vmatpush.bf16.msra.mxu1 %v1092_v9  ;;  %v1100_v12 = vld [vmem:[%s1492_s6 + $0xb8] sm:$0xff]  ;;  %v1090_v14 = vld [vmem:[%s1492_s6 + $0x68] sm:$0xff]  ;;  %v1099_v15 = vld [vmem:[%s1492_s6 + $0xb0] sm:$0xff] }
   0x5   :  { %408 = vmatpush.bf16.msra.mxu3 %v1100_v12  ;;  %v1080_v16 = vld [vmem:[%s1492_s6 + $0x18] sm:$0xff]  ;;  %v1089_v17 = vld [vmem:[%s1492_s6 + $0x60] sm:$0xff]  ;;  %v1098_v18 = vld [vmem:[%s1492_s6 + $0xa8] sm:$0xff] }
   0x6   :  { %v1079_v19 = vld [vmem:[%s1492_s6 + $0x10] sm:$0xff]  ;;  %v1088_v20 = vld [vmem:[%s1492_s6 + $0x58] sm:$0xff]  ;;  %v1097_v21 = vld [vmem:[%s1492_s6 + $0xa0] sm:$0xff] }
   0x7   :  { %341 = vmatpush.bf16.msra.mxu2 %v1083_v8  ;;  %v1078_v22 = vld [vmem:[%s1492_s6 + $0x8] sm:$0xff]  ;;  %v1087_v23 = vld [vmem:[%s1492_s6 + $0x50] sm:$0xff]  ;;  %v1096_v24 = vld [vmem:[%s1492_s6 + $0x98] sm:$0xff] }
   0x8   :  { %v56_v0 = vld [vmem:[%s1507_s23] sm:$0x7]  ;;  %265 = vmatpush.bf16.msra.mxu1 %v1091_v11  ;;  %v1086_v27 = vld [vmem:[%s1492_s6 + $0x48] sm:$0xff]  ;;  %v1095_v28 = vld [vmem:[%s1492_s6 + $0x90] sm:$0xff] }
   0x9   :  { %v72_v3 = vsel %vm70_vm0, %v56_v0, 0  ;;  %409 = vmatpush.bf16.msra.mxu3 %v1099_v15  ;;  %v1077_v25 = vld [vmem:[%s1492_s6] sm:$0xff]  ;;  %v1094_v33 = vld [vmem:[%s1492_s6 + $0x88] sm:$0xff] }
   0xa   :  { %81 = vmatpush.bf16.msra.mxu0 %v72_v3  ;;  %v1127_v26 = vld [vmem:[%s1491_s5] ss:$0 sm:$0xff]  ;;  %v202_v41 = vld [vmem:[%s1493_s0 + $0x8] sm:$0xf] }
   0xb   :  { %342 = vmatpush.bf16.msra.mxu2 %v1082_v10  ;;  %v1101_v29 = vld [vmem:[%s1493_s0] sm:$0xff]  ;;  %v287_v43 = vunpack.c.l.b16 %v202_v41  ;;  %v205_v44 = vld [vmem:[%s1494_s1 + $0x8] sm:$0xf] }
   0xc   :  { %266 = vmatpush.bf16.msra.mxu1 %v1090_v14  ;;  %v1085_v32 = vld [vmem:[%s1492_s6 + $0x40] sm:$0xff]  ;;  %v211_v46 = vunpack.c.l.b16 %v205_v44 }
   0xd   :  { %863 = vmatmul.msk.bf16.vlgmr.msra.gmra.mxu0 %vm63_vm1, %v1263_v4  ;;  %410 = vmatpush.bf16.msra.mxu3 %v1098_v18  ;;  %v1102_v35 = vld [vmem:[%s1494_s1] sm:$0xff]  ;;  %v289_v45 = vpack.c.b16 %v287_v43, %v287_v43 }
   0xe   :  { %v1093_v36 = vld [vmem:[%s1492_s6 + $0x80] sm:$0xff]  ;;  %v213_v51 = vpack.c.b16 %v211_v46, %v211_v46 }
   0xf   :  { %343 = vmatpush.bf16.msra.mxu2 %v1081_v13  ;;  %v500_v59 = vld [vmem:[%s1496_s8] sm:$0x7] }
  0x10   :  { %267 = vmatpush.bf16.msra.mxu1 %v1089_v17  ;;  %v553_v62 = vsel %vm70_vm0, %v500_v59, 0 }
  0x11   :  { %411 = vmatpush.bf16.msra.mxu3 %v1097_v21  ;;  %562 = vmatpush.bf16.msrb.mxu0 %v553_v62 }
  0x13   :  { %344 = vmatpush.bf16.msra.mxu2 %v1080_v16 }
  0x14   :  { %268 = vmatpush.bf16.msra.mxu1 %v1088_v20 }
  0x15   :  { %412 = vmatpush.bf16.msra.mxu3 %v1096_v24 }
  0x17   :  { %345 = vmatpush.bf16.msra.mxu2 %v1079_v19 }
  0x18   :  { %269 = vmatpush.bf16.msra.mxu1 %v1087_v23 }
  0x19   :  { %413 = vmatpush.bf16.msra.mxu3 %v1095_v28 }
  0x1b   :  { %346 = vmatpush.bf16.msra.mxu2 %v1078_v22 }
  0x1c   :  { %270 = vmatpush.bf16.msra.mxu1 %v1086_v27 }
  0x1d   :  { %864 = vmatmul.msk.bf16.gmra.mxu0 %vm63_vm1, %v1270_v6  ;;  %414 = vmatpush.bf16.msra.mxu3 %v1094_v33 }
  0x1f   :  { %347 = vmatpush.bf16.msra.mxu2 %v1077_v25 }
  0x20   :  { %271 = vmatpush.bf16.msra.mxu1 %v1085_v32 }
  0x21   :  { %415 = vmatpush.bf16.msra.mxu3 %v1093_v36 }
  0x22   :  { %348 = vmatmul.bf16.vlgmr.msra.gmra.mxu2 %v1101_v29 }
  0x23   :  { %272 = vmatmul.bf16.vlgmr.msra.gmra.mxu1 %v1102_v35 }
  0x2d   :  { %975 = vmatmul.msk.bf16.vlgmr.msrb.gmra.mxu0 %vm63_vm1, %v1263_v4 }
  0x32   :  { %353 = vmatmul.bf16.gmra.mxu2 %v289_v45 }
  0x33   :  { %277 = vmatmul.bf16.gmra.mxu1 %v213_v51 }
  0x3d   :  { %976 = vmatmul.msk.bf16.gmra.mxu0 %vm63_vm1, %v1270_v6  ;;  %v1128_v6 = vld [vmem:[%s1495_s7] ss:$0 sm:$0xff] }
  0x8a   :  { %v83_v30 = vpop.f32.mrf.mxu0 }
  0x8b   :  { %v1343_v31 = vadd.f32 %v1127_v26, %v83_v30 }
  0x8d   :  { %v865_v34 = vmul.f32 -1.442695, %v1343_v31 }
  0x8f   :  { %1132 = vpow2.f32 %v865_v34 }
  0x92   :  { %v85_v37 = vpop.f32.mrf.mxu0 }
  0x93   :  { %v86_v38 = vadd.f32 %v1127_v26, %v85_v37 }
  0x95   :  { %v1133_v39 = vpop.eup %1132  ;;  %v866_v40 = vmul.f32 -1.442695, %v86_v38 }
  0x96   :  { %v101_v42 = vadd.f32 1.0, %v1133_v39 }
  0x97   :  { %1134 = vpow2.f32 %v866_v40 }
  0x98   :  { %1136 = vrcp.f32 %v101_v42  ;;  %v115_v1 = vand.u32 2147483648, %v101_v42  ;;  %vm109_vm3 = vweird.f32 %v101_v42  ;;  %v113_v2 = vand.u32 2147483647, %v101_v42 }
  0x9a   :  { %v88_v47 = vpop.f32.mrf.mxu0  ;;  %v116_v10 = vor.u32 1.1754944e-38, %v115_v1  ;;  %vm114_vm6 = vcmp.eq.f32.partialorder %v113_v2, 8.507059e+37 }
  0x9b   :  { %v1364_v48 = vadd.f32 %v1127_v26, %v88_v47 }
  0x9d   :  { %v1135_v49 = vpop.eup %1134  ;;  %v867_v50 = vmul.f32 -1.442695, %v1364_v48 }
  0x9e   :  { %v1137_v52 = vpop.eup %1136  ;;  %v102_v53 = vadd.f32 1.0, %v1135_v49 }
  0x9f   :  { %v105_v54 = vmul.f32 %v1137_v52, %v101_v42  ;;  %1138 = vpow2.f32 %v867_v50  ;;  %vm110_vm2 = vweird.f32 %v1137_v52 }
  0xa0   :  { %1140 = vrcp.f32 %v102_v53  ;;  %vm111_vm4 = vmor %vm109_vm3, %vm110_vm2  ;;  %v130_v5 = vand.u32 2147483648, %v102_v53  ;;  %v128_v9 = vand.u32 2147483647, %v102_v53  ;;  %vm124_vm7 = vweird.f32 %v102_v53  ;;  %v273_v30 = vpop.f32.mrf.mxu1 }
  0xa1   :  { %v106_v55 = vsub.f32 1.0, %v105_v54 }
  0xa2   :  { %v90_v56 = vpop.f32.mrf.mxu0  ;;  %v131_v14 = vor.u32 1.1754944e-38, %v130_v5  ;;  %vm129_vm9 = vcmp.eq.f32.partialorder %v128_v9, 8.507059e+37 }
  0xa3   :  { %v107_v57 = vmul.f32 %v1137_v52, %v106_v55 }
  0xa5   :  { %v1139_v58 = vpop.eup %1138  ;;  %v108_v63 = vadd.f32 %v1137_v52, %v107_v57 }
  0xa6   :  { %v1141_v60 = vpop.eup %1140  ;;  %v103_v61 = vadd.f32 1.0, %v1139_v58 }
  0xa7   :  { %v120_v0 = vmul.f32 %v1141_v60, %v102_v53  ;;  %v112_v7 = vsel %vm111_vm4, %v1137_v52, %v108_v63  ;;  %vm125_vm5 = vweird.f32 %v1141_v60 }
  0xa8   :  { %1142 = vrcp.f32 %v103_v61  ;;  %v117_v13 = vsel %vm114_vm6, %v116_v10, %v112_v7  ;;  %vm126_vm8 = vmor %vm124_vm7, %vm125_vm5  ;;  %vm139_vm10 = vweird.f32 %v103_v61  ;;  %v145_v23 = vand.u32 2147483648, %v103_v61  ;;  %v275_v32 = vpop.f32.mrf.mxu1 }
  0xa9   :  { %v121_v3 = vsub.f32 1.0, %v120_v0  ;;  %v149_v18 = vmul.f32 %v117_v13, %v1343_v31  ;;  %v143_v24 = vand.u32 2147483647, %v103_v61  ;;  %v349_v31 = vpop.f32.mrf.mxu2  ;;  %v1110_v13 = vld [vmem:[%s1497_s9 + $0x38] sm:$0xff] }
  0xaa   :  { %v146_v26 = vor.u32 1.1754944e-38, %v145_v23  ;;  %v350_v39 = vadd.f32 %v349_v31, %v273_v30  ;;  %651 = vmatpush.bf16.msrb.mxu2 %v1110_v13 }
  0xab   :  { %v122_v8 = vmul.f32 %v1141_v60, %v121_v3  ;;  %vm144_vm13 = vcmp.eq.f32.partialorder %v143_v24, 8.507059e+37 }
  0xad   :  { %v123_v11 = vadd.f32 %v1141_v60, %v122_v8 }
  0xae   :  { %v1143_v12 = vpop.eup %1142 }
  0xaf   :  { %v127_v15 = vsel %vm126_vm8, %v1141_v60, %v123_v11  ;;  %v135_v16 = vmul.f32 %v1143_v12, %v103_v61  ;;  %vm140_vm11 = vweird.f32 %v1143_v12 }
  0xb0   :  { %v132_v17 = vsel %vm129_vm9, %v131_v14, %v127_v15  ;;  %vm141_vm12 = vmor %vm139_vm10, %vm140_vm11  ;;  %v278_v34 = vpop.f32.mrf.mxu1  ;;  %vm582_vm10 = vcmask 1043456   ;;  %vm578_vm11 = vcmask 195584  }
  0xb1   :  { %v150_v19 = vmul.f32 %v132_v17, %v86_v38  ;;  %v136_v4 = vsub.f32 1.0, %v135_v16  ;;  %v351_v33 = vpop.f32.mrf.mxu2  ;;  %v1377_v38 = vpop.f32.mrf.mxu0  ;;  %v1109_v17 = vld [vmem:[%s1497_s9 + $0x30] sm:$0xff] }
  0xb2   :  { %v352_v45 = vadd.f32 %v351_v33, %v275_v32  ;;  %652 = vmatpush.bf16.msrb.mxu2 %v1109_v17  ;;  %v1125_v17 = vld [vmem:[%s1504_s13 + $0x30] sm:$0xff] }
  0xb3   :  { %v358_v20 = vpack.c.bf16 %v150_v19, %v149_v18  ;;  %v137_v21 = vmul.f32 %v1143_v12, %v136_v4 }
  0xb5   :  { %416 = vmatmul.bf16.vlgmr.msra.gmra.mxu3 %v358_v20  ;;  %v138_v22 = vadd.f32 %v1143_v12, %v137_v21  ;;  %v1108_v21 = vld [vmem:[%s1497_s9 + $0x28] sm:$0xff] }
  0xb6   :  { %653 = vmatpush.bf16.msrb.mxu2 %v1108_v21  ;;  %v1120_v21 = vld [vmem:[%s1504_s13 + $0x8] sm:$0xff] }
  0xb7   :  { %v142_v25 = vsel %vm141_vm12, %v1143_v12, %v138_v22 }
  0xb8   :  { %v147_v27 = vsel %vm144_vm13, %v146_v26, %v142_v25  ;;  %v280_v36 = vpop.f32.mrf.mxu1 }
  0xb9   :  { %v151_v28 = vmul.f32 %v147_v27, %v1364_v48  ;;  %v354_v35 = vpop.f32.mrf.mxu2  ;;  %v1382_v42 = vpop.f32.mrf.mxu0 }
  0xba   :  { %v355_v51 = vadd.f32 %v354_v35, %v278_v34  ;;  %v1106_v34 = vld [vmem:[%s1497_s9 + $0x18] sm:$0xff] }
  0xbb   :  { %v359_v29 = vpack.c.bf16 %v151_v28, %v151_v28 }
  0xc1   :  { %v356_v37 = vpop.f32.mrf.mxu2  ;;  %v1384_v49 = vpop.f32.mrf.mxu0 }
  0xc5   :  { %421 = vmatmul.bf16.gmra.mxu3 %v359_v29  ;;  %v1107_v29 = vld [vmem:[%s1497_s9 + $0x20] sm:$0xff] }
  0xc6   :  { %654 = vmatpush.bf16.msrb.mxu2 %v1107_v29 }
  0xc9   :  { %v571_v57 = vpop.f32.mrf.mxu0 }
  0xca   :  { %655 = vmatpush.bf16.msrb.mxu2 %v1106_v34  ;;  %v1112_v57 = vld [vmem:[%s1502_s11 + $0x8] sm:$0xff] }
 0x138   :  { %v417_v40 = vpop.f32.mrf.mxu3 }
 0x139   :  { %v426_v41 = vadd.f32 %v417_v40, %v350_v39 }
 0x13b   :  { %v433_v43 = vadd.f32 %v1128_v6, %v426_v41 }
 0x13d   :  { %v972_v44 = vmul.f32 -1.442695, %v433_v43 }
 0x13f   :  { %1144 = vpow2.f32 %v972_v44 }
 0x140   :  { %v419_v46 = vpop.f32.mrf.mxu3 }
 0x141   :  { %v427_v47 = vadd.f32 %v419_v46, %v352_v45 }
 0x143   :  { %v434_v48 = vadd.f32 %v1128_v6, %v427_v47 }
 0x145   :  { %v1145_v50 = vpop.eup %1144  ;;  %v973_v52 = vmul.f32 -1.442695, %v434_v48 }
 0x146   :  { %v445_v53 = vadd.f32 1.0, %v1145_v50 }
 0x147   :  { %1146 = vpow2.f32 %v973_v52  ;;  %v1117_v52 = vld [vmem:[%s1502_s11 + $0x30] sm:$0xff] }
 0x148   :  { %1148 = vrcp.f32 %v445_v53  ;;  %v422_v54 = vpop.f32.mrf.mxu3  ;;  %v459_v1 = vand.u32 2147483648, %v445_v53  ;;  %v457_v3 = vand.u32 2147483647, %v445_v53  ;;  %vm453_vm15 = vweird.f32 %v445_v53 }
 0x149   :  { %v428_v55 = vadd.f32 %v422_v54, %v355_v51  ;;  %v1115_v54 = vld [vmem:[%s1502_s11 + $0x20] sm:$0xff] }
 0x14a   :  { %v460_v10 = vor.u32 1.1754944e-38, %v459_v1  ;;  %vm458_vm1 = vcmp.eq.f32.partialorder %v457_v3, 8.507059e+37 }
 0x14b   :  { %v1386_v56 = vadd.f32 %v1128_v6, %v428_v55  ;;  %v1105_v6 = vld [vmem:[%s1497_s9 + $0x10] sm:$0xff]  ;;  %v1114_v55 = vld [vmem:[%s1502_s11 + $0x18] sm:$0xff] }
 0x14c   :  { %656 = vmatpush.bf16.msrb.mxu2 %v1105_v6 }
 0x14d   :  { %v1147_v58 = vpop.eup %1146  ;;  %v974_v59 = vmul.f32 -1.442695, %v1386_v56 }
 0x14e   :  { %v1149_v60 = vpop.eup %1148  ;;  %v446_v61 = vadd.f32 1.0, %v1147_v58  ;;  %v1129_v58 = vld [vmem:[%s1500_s10] ss:$0 sm:$0xff] }
 0x14f   :  { %1150 = vpow2.f32 %v974_v59  ;;  %v449_v62 = vmul.f32 %v1149_v60, %v445_v53  ;;  %vm454_vm14 = vweird.f32 %v1149_v60  ;;  %v1116_v53 = vld [vmem:[%s1502_s11 + $0x28] sm:$0xff]  ;;  %v1111_v59 = vld [vmem:[%s1502_s11] sm:$0xff] }
 0x150   :  { %1152 = vrcp.f32 %v446_v61  ;;  %v424_v63 = vpop.f32.mrf.mxu3  ;;  %vm455_vm0 = vmor %vm453_vm15, %vm454_vm14  ;;  %v474_v18 = vand.u32 2147483648, %v446_v61  ;;  %v472_v4 = vand.u32 2147483647, %v446_v61  ;;  %vm468_vm3 = vweird.f32 %v446_v61 }
 0x151   :  { %v450_v0 = vsub.f32 1.0, %v449_v62 }
 0x152   :  { %v475_v23 = vor.u32 1.1754944e-38, %v474_v18  ;;  %vm473_vm5 = vcmp.eq.f32.partialorder %v472_v4, 8.507059e+37  ;;  %v1124_v18 = vld [vmem:[%s1504_s13 + $0x28] sm:$0xff]  ;;  %v1122_v4 = vld [vmem:[%s1504_s13 + $0x18] sm:$0xff] }
 0x153   :  { %v451_v2 = vmul.f32 %v1149_v60, %v450_v0 }
 0x155   :  { %v1151_v5 = vpop.eup %1150  ;;  %v452_v7 = vadd.f32 %v1149_v60, %v451_v2 }
 0x156   :  { %v1153_v8 = vpop.eup %1152  ;;  %v447_v9 = vadd.f32 1.0, %v1151_v5 }
 0x157   :  { %v456_v11 = vsel %vm455_vm0, %v1149_v60, %v452_v7  ;;  %v464_v12 = vmul.f32 %v1153_v8, %v446_v61  ;;  %vm469_vm2 = vweird.f32 %v1153_v8 }
 0x158   :  { %1154 = vrcp.f32 %v447_v9  ;;  %v461_v14 = vsel %vm458_vm1, %v460_v10, %v456_v11  ;;  %vm470_vm4 = vmor %vm468_vm3, %vm469_vm2  ;;  %v489_v30 = vand.u32 2147483648, %v447_v9  ;;  %v487_v32 = vand.u32 2147483647, %v447_v9 }
 0x159   :  { %v493_v15 = vmul.f32 %v461_v14, %v433_v43  ;;  %v465_v16 = vsub.f32 1.0, %v464_v12  ;;  %vm483_vm7 = vweird.f32 %v447_v9  ;;  %v1104_v43 = vld [vmem:[%s1497_s9 + $0x8] sm:$0xff] }
 0x15a   :  { %v490_v35 = vor.u32 1.1754944e-38, %v489_v30  ;;  %vm488_vm9 = vcmp.eq.f32.partialorder %v487_v32, 8.507059e+37  ;;  %657 = vmatpush.bf16.msrb.mxu2 %v1104_v43  ;;  %v1131_v43 = vld [vmem:[%s1503_s14] ss:$0 sm:$0xff] }
 0x15b   :  { %496 = vst [vmem:[%s1498_s15] sm:$0xff] %v493_v15  ;;  %v466_v19 = vmul.f32 %v1153_v8, %v465_v16  ;;  %v573_v46 = vmul.f32 %v1377_v38, %v493_v15  ;;  %v1118_v38 = vld [vmem:[%s1502_s11 + $0x38] sm:$0xff] }
 0x15c   :  { %736 = vmatpush.bf16.msrb.mxu3 %v1118_v38  ;;  %v1126_v16 = vld [vmem:[%s1504_s13 + $0x38] sm:$0xff] }
 0x15d   :  { %v467_v20 = vadd.f32 %v1153_v8, %v466_v19  ;;  %821 = vmatpush.bf16.msra.mxu0 %v1126_v16  ;;  %v1123_v19 = vld [vmem:[%s1504_s13 + $0x20] sm:$0xff] }
 0x15e   :  { %v1155_v22 = vpop.eup %1154 }
 0x15f   :  { %v471_v24 = vsel %vm470_vm4, %v1153_v8, %v467_v20  ;;  %v479_v25 = vmul.f32 %v1155_v22, %v447_v9  ;;  %vm484_vm6 = vweird.f32 %v1155_v22  ;;  %v1121_v20 = vld [vmem:[%s1504_s13 + $0x10] sm:$0xff] }
 0x160   :  { %v476_v26 = vsel %vm473_vm5, %v475_v23, %v471_v24  ;;  %vm485_vm8 = vmor %vm483_vm7, %vm484_vm6  ;;  %737 = vmatpush.bf16.msrb.mxu3 %v1117_v52  ;;  %v1119_v23 = vld [vmem:[%s1504_s13] sm:$0xff] }
 0x161   :  { %v494_v27 = vmul.f32 %v476_v26, %v434_v48  ;;  %v480_v28 = vsub.f32 1.0, %v479_v25  ;;  %v499_v48 = vld [vmem:[%s1499_s3] sm:$0xf]  ;;  %822 = vmatpush.bf16.msra.mxu0 %v1125_v17 }
 0x163   :  { %497 = vst [vmem:[%s1498_s15 + $0x8] sm:$0xff] %v494_v27  ;;  %v481_v31 = vmul.f32 %v1155_v22, %v480_v28  ;;  %v574_v44 = vmul.f32 %v1382_v42, %v494_v27 }
 0x164   :  { %738 = vmatpush.bf16.msrb.mxu3 %v1116_v53 }
 0x165   :  { %v482_v33 = vadd.f32 %v1155_v22, %v481_v31  ;;  %v576_v47 = vpack.c.bf16 %v574_v44, %v573_v46  ;;  %823 = vmatpush.bf16.msra.mxu0 %v1124_v18 }
 0x167   :  { %v486_v36 = vsel %vm485_vm8, %v1155_v22, %v482_v33  ;;  %v1130_v22 = vld [vmem:[%s1501_s12] ss:$0 sm:$0xff] }
 0x168   :  { %v491_v37 = vsel %vm488_vm9, %v490_v35, %v486_v36  ;;  %739 = vmatpush.bf16.msrb.mxu3 %v1115_v54 }
 0x169   :  { %v495_v39 = vmul.f32 %v491_v37, %v1386_v56  ;;  %v1113_v56 = vld [vmem:[%s1502_s11 + $0x10] sm:$0xff]  ;;  %824 = vmatpush.bf16.msra.mxu0 %v1123_v19 }
 0x16b   :  { %498 = vst [vmem:[%s1498_s15 + $0x10] sm:$0xff] %v495_v39  ;;  %v575_v40 = vmul.f32 %v1384_v49, %v495_v39  ;;  %v1103_v49 = vld [vmem:[%s1497_s9] sm:$0xff] }
 0x16c   :  { %658 = vmatpush.bf16.msrb.mxu2 %v1103_v49  ;;  %740 = vmatpush.bf16.msrb.mxu3 %v1114_v55 }
 0x16d   :  { %v577_v41 = vpack.c.bf16 %v575_v40, %v575_v40  ;;  %825 = vmatpush.bf16.msra.mxu0 %v1122_v4 }
 0x16f   :  { %v584_v45 = vsel %vm582_vm10, %v577_v41, 0 }
 0x170   :  { %592 = vmatpush.bf16.msrb.mxu1 %v584_v45  ;;  %741 = vmatpush.bf16.msrb.mxu3 %v1113_v56 }
 0x171   :  { %826 = vmatpush.bf16.msra.mxu0 %v1121_v20 }
 0x174   :  { %593 = vmatpush.bf16.msrb.mxu1 %v576_v47  ;;  %742 = vmatpush.bf16.msrb.mxu3 %v1112_v57 }
 0x175   :  { %827 = vmatpush.bf16.msra.mxu0 %v1120_v21 }
 0x177   :  { %977 = vmatmul.msk.bf16.vlgmr.msrb.gmra.mxu1 %vm578_vm11, %v499_v48 }
 0x178   :  { %743 = vmatpush.bf16.msrb.mxu3 %v1111_v59 }
 0x179   :  { %828 = vmatpush.bf16.msra.mxu0 %v1119_v23 }
 0x1f4   :  { %v595_v50 = vpop.f32.mrf.mxu1 }
 0x1f5   :  { %v599_v42 = vpack.c.bf16 %v595_v50, %v595_v50 }
 0x1f7   :  { %659 = vmatmul.bf16.vlgmr.msrb.gmra.mxu2 %v599_v42 }
 0x1fc   :  { %v597_v51 = vpop.f32.mrf.mxu1 }
 0x27a   :  { %v660_v60 = vpop.f32.mrf.mxu2 }
 0x27b   :  { %v661_v61 = vadd.f32 %v1129_v58, %v660_v60 }
 0x27d   :  { %v1010_v62 = vmul.f32 -1.442695, %v661_v61 }
 0x27f   :  { %1156 = vpow2.f32 %v1010_v62 }
 0x282   :  { %v662_v63 = vpop.f32.mrf.mxu2 }
 0x285   :  { %v1157_v0 = vpop.eup %1156 }
 0x286   :  { %v667_v1 = vadd.f32 1.0, %v1157_v0 }
 0x288   :  { %1158 = vrcp.f32 %v667_v1  ;;  %v679_v7 = vand.u32 2147483648, %v667_v1  ;;  %v677_v9 = vand.u32 2147483647, %v667_v1  ;;  %vm673_vm13 = vweird.f32 %v667_v1 }
 0x28a   :  { %v680_v11 = vor.u32 1.1754944e-38, %v679_v7  ;;  %vm678_vm15 = vcmp.eq.f32.partialorder %v677_v9, 8.507059e+37 }
 0x28e   :  { %v1159_v2 = vpop.eup %1158 }
 0x28f   :  { %v669_v3 = vmul.f32 %v1159_v2, %v667_v1  ;;  %vm674_vm12 = vweird.f32 %v1159_v2 }
 0x290   :  { %vm675_vm14 = vmor %vm673_vm13, %vm674_vm12 }
 0x291   :  { %v670_v5 = vsub.f32 1.0, %v669_v3 }
 0x293   :  { %v671_v8 = vmul.f32 %v1159_v2, %v670_v5 }
 0x295   :  { %v672_v10 = vadd.f32 %v1159_v2, %v671_v8 }
 0x297   :  { %v676_v12 = vsel %vm675_vm14, %v1159_v2, %v672_v10 }
 0x298   :  { %v681_v13 = vsel %vm678_vm15, %v680_v11, %v676_v12 }
 0x299   :  { %v683_v14 = vmul.f32 %v681_v13, %v661_v61 }
 0x29b   :  { %v684_v15 = vpack.c.bf16 %v683_v14, %v683_v14 }
 0x29d   :  { %744 = vmatmul.bf16.vlgmr.msrb.gmra.mxu3 %v684_v15 }
 0x320   :  { %v745_v24 = vpop.f32.mrf.mxu3 }
 0x321   :  { %v746_v25 = vadd.f32 %v1130_v22, %v745_v24 }
 0x323   :  { %v1043_v26 = vmul.f32 -1.442695, %v746_v25 }
 0x325   :  { %1160 = vpow2.f32 %v1043_v26 }
 0x328   :  { %v747_v27 = vpop.f32.mrf.mxu3 }
 0x32b   :  { %v1161_v28 = vpop.eup %1160 }
 0x32c   :  { %v752_v29 = vadd.f32 1.0, %v1161_v28 }
 0x32e   :  { %1162 = vrcp.f32 %v752_v29  ;;  %v764_v33 = vand.u32 2147483648, %v752_v29  ;;  %v762_v35 = vand.u32 2147483647, %v752_v29  ;;  %vm758_vm1 = vweird.f32 %v752_v29 }
 0x330   :  { %v765_v37 = vor.u32 1.1754944e-38, %v764_v33  ;;  %vm763_vm3 = vcmp.eq.f32.partialorder %v762_v35, 8.507059e+37 }
 0x334   :  { %v1163_v30 = vpop.eup %1162 }
 0x335   :  { %v754_v31 = vmul.f32 %v1163_v30, %v752_v29  ;;  %vm759_vm0 = vweird.f32 %v1163_v30 }
 0x336   :  { %vm760_vm2 = vmor %vm758_vm1, %vm759_vm0 }
 0x337   :  { %v755_v32 = vsub.f32 1.0, %v754_v31 }
 0x339   :  { %v756_v34 = vmul.f32 %v1163_v30, %v755_v32 }
 0x33b   :  { %v757_v36 = vadd.f32 %v1163_v30, %v756_v34 }
 0x33d   :  { %v761_v39 = vsel %vm760_vm2, %v1163_v30, %v757_v36 }
 0x33e   :  { %v766_v6 = vsel %vm763_vm3, %v765_v37, %v761_v39 }
 0x33f   :  { %v768_v40 = vmul.f32 %v766_v6, %v746_v25 }
 0x341   :  { %v769_v41 = vpack.c.bf16 %v768_v40, %v768_v40 }
 0x343   :  { %829 = vmatmul.bf16.vlgmr.msra.gmra.mxu0 %v769_v41 }
 0x3c0   :  { %v830_v44 = vpop.f32.mrf.mxu0 }
 0x3c1   :  { %v831_v45 = vadd.f32 %v1131_v43, %v830_v44 }
 0x3c3   :  { %v1076_v46 = vmul.f32 -1.442695, %v831_v45 }
 0x3c5   :  { %1164 = vpow2.f32 %v1076_v46 }
 0x3c8   :  { %v832_v47 = vpop.f32.mrf.mxu0 }
 0x3cb   :  { %v1165_v48 = vpop.eup %1164 }
 0x3cc   :  { %v837_v49 = vadd.f32 1.0, %v1165_v48 }
 0x3ce   :  { %1166 = vrcp.f32 %v837_v49  ;;  %v849_v38 = vand.u32 2147483648, %v837_v49  ;;  %v847_v53 = vand.u32 2147483647, %v837_v49  ;;  %vm843_vm5 = vweird.f32 %v837_v49 }
 0x3d0   :  { %v850_v55 = vor.u32 1.1754944e-38, %v849_v38  ;;  %vm848_vm7 = vcmp.eq.f32.partialorder %v847_v53, 8.507059e+37 }
 0x3d4   :  { %v1167_v50 = vpop.eup %1166 }
 0x3d5   :  { %v839_v42 = vmul.f32 %v1167_v50, %v837_v49  ;;  %vm844_vm4 = vweird.f32 %v1167_v50 }
 0x3d6   :  { %vm845_vm6 = vmor %vm843_vm5, %vm844_vm4 }
 0x3d7   :  { %v840_v51 = vsub.f32 1.0, %v839_v42 }
 0x3d9   :  { %v841_v52 = vmul.f32 %v1167_v50, %v840_v51 }
 0x3db   :  { %v842_v54 = vadd.f32 %v1167_v50, %v841_v52 }
 0x3dd   :  { %v846_v56 = vsel %vm845_vm6, %v1167_v50, %v842_v54 }
 0x3de   :  { %v851_v57 = vsel %vm848_vm7, %v850_v55, %v846_v56 }
 0x3df   :  { %v853_v58 = vmul.f32 %v851_v57, %v831_v45 }
 0x3e1   :  { %854 = vst [vmem:[%s1505_s16] sm:$0xff] %v853_v58 }

// kernel: _lambda_.10
= control target key start
LH: loop header
LB: loop body
LE: loop exit
PB: predicated region body
PF: predicated region fallthrough
CT: control target
= control target key end

     0   :  { %s4742_s6 = smov 1   ;;  %s4743_s10 = smov 2   ;;  %s5617_s0 = inlined_call_operand.smem [shape: u32[34], index: -1, kind: input, shape index: {}] }
   0x1   :  { %s4802_s5 = sld [smem:[%s5617_s0]]   ;;  %s4744_s14 = smov 3  }
   0x2   :  { %s4807_s9 = sld [smem:[%s5617_s0 + %s4742_s6]]   ;;  %s4745_s18 = smov 4  }
   0x3   :  { %s4812_s13 = sld [smem:[%s5617_s0 + %s4743_s10]]   ;;  %s4746_s22 = smov 5  }
   0x4   :  { %s4817_s17 = sld [smem:[%s5617_s0 + %s4744_s14]]   ;;  %s4747_s26 = smov 6  }
   0x5   :  { %s4822_s21 = sld [smem:[%s5617_s0 + %s4745_s18]]   ;;  %s4748_s30 = smov 7  }
   0x6   :  { %s4827_s25 = sld [smem:[%s5617_s0 + %s4746_s22]]   ;;  %s4749_s4 = smov 8  }
   0x7   :  { %5632 = sst [smem:[#allocation25_spill]] %s4802_s5  ;;  %s4750_s10 = smov 9  }
   0x8   :  { %s4832_s29 = sld [smem:[%s5617_s0 + %s4747_s26]]   ;;  %s4751_s15 = smov 10  }
   0x9   :  { %5633 = sst [smem:[#allocation26_spill]] %s4812_s13  ;;  %s4752_s20 = smov 11  }
   0xa   :  { %5634 = sst [smem:[#allocation27_spill]] %s4817_s17  ;;  %s4753_s26 = smov 12  }
   0xb   :  { %5635 = sst [smem:[#allocation28_spill]] %s4822_s21  ;;  %s4754_s1 = smov 13  }
   0xc   :  { %5636 = sst [smem:[#allocation29_spill]] %s4827_s25  ;;  %s4755_s7 = smov 14  }
   0xd   :  { %s4837_s3 = sld [smem:[%s5617_s0 + %s4748_s30]]   ;;  %s4757_s22 = smov 16  }
   0xe   :  { %s4842_s8 = sld [smem:[%s5617_s0 + %s4749_s4]]   ;;  %s4758_s28 = smov 17  }
   0xf   :  { %s4847_s14 = sld [smem:[%s5617_s0 + %s4750_s10]]  }
  0x10   :  { %s4852_s19 = sld [smem:[%s5617_s0 + %s4751_s15]]   ;;  %s4756_s15 = smov 15  }
  0x11   :  { %s4857_s24 = sld [smem:[%s5617_s0 + %s4752_s20]]  }
  0x12   :  { %s4862_s30 = sld [smem:[%s5617_s0 + %s4753_s26]]  }
  0x13   :  { %s4867_s6 = sld [smem:[%s5617_s0 + %s4754_s1]]  }
  0x14   :  { %s4872_s12 = sld [smem:[%s5617_s0 + %s4755_s7]]   ;;  %s4759_s7 = smov 18  }
  0x15   :  { %s4877_s20 = sld [smem:[%s5617_s0 + %s4756_s15]]   ;;  %s4760_s15 = smov 19  }
  0x16   :  { %5637 = sst [smem:[#allocation30_spill]] %s4852_s19 }
  0x17   :  { %5638 = sst [smem:[#allocation31_spill]] %s4857_s24 }
  0x18   :  { %s4882_s27 = sld [smem:[%s5617_s0 + %s4757_s22]]   ;;  %s4761_s22 = smov 20  }
  0x19   :  { %5639 = sst [smem:[#allocation32_spill]] %s4867_s6 }
  0x1a   :  { %s4887_s4 = sld [smem:[%s5617_s0 + %s4758_s28]]   ;;  %s4762_s28 = smov 21  }
  0x1b   :  { %5640 = sst [smem:[#allocation33_spill]] %s4877_s20 }
  0x1c   :  { %s4892_s25 = sld [smem:[%s5617_s0 + %s4759_s7]]   ;;  %s4763_s7 = smov 22  }
  0x1d   :  { %s4897_s20 = sld [smem:[%s5617_s0 + %s4760_s15]]   ;;  %s4764_s15 = smov 23  }
  0x1e   :  { %s4902_s6 = sld [smem:[%s5617_s0 + %s4761_s22]]   ;;  %s4765_s22 = smov 24  }
  0x1f   :  { %s4912_s21 = sld [smem:[%s5617_s0 + %s4763_s7]]   ;;  %s4767_s7 = smov 26  }
  0x20   :  { %5641 = sst [smem:[#allocation34_spill]] %s4887_s4 }
  0x21   :  { %s4907_s4 = sld [smem:[%s5617_s0 + %s4762_s28]]   ;;  %s4766_s28 = smov 25  }
  0x22   :  { %s4922_s24 = sld [smem:[%s5617_s0 + %s4765_s22]]   ;;  %s4769_s22 = smov 28  }
  0x23   :  { %5642 = sst [smem:[#allocation35_spill]] %s4897_s20 }
  0x24   :  { %s4917_s20 = sld [smem:[%s5617_s0 + %s4764_s15]]   ;;  %s4768_s15 = smov 27  }
  0x25   :  { %s4932_s19 = sld [smem:[%s5617_s0 + %s4767_s7]]   ;;  %s4771_s7 = smov 30  }
  0x26   :  { %s4942_s17 = sld [smem:[%s5617_s0 + %s4769_s22]]   ;;  %s4773_s22 = smov 32  }
  0x27   :  { %5643 = sst [smem:[#allocation36_spill]] %s4907_s4 }
  0x28   :  { %s4927_s4 = sld [smem:[%s5617_s0 + %s4766_s28]]   ;;  %s4770_s28 = smov 29  }
  0x2a   :  { %5644 = sst [smem:[#allocation37_spill]] %s4917_s20 }
  0x2b   :  { %5646 = sst [smem:[#allocation39_spill]] %s4932_s19 }
  0x2c   :  { %s4937_s20 = sld [smem:[%s5617_s0 + %s4768_s15]]   ;;  %s4772_s15 = smov 31  }
  0x2d   :  { %5647 = sst [smem:[#allocation40_spill]] %s4942_s17 }
  0x2e   :  { %5645 = sst [smem:[#allocation38_spill]] %s4927_s4 }
  0x2f   :  { %s4947_s4 = sld [smem:[%s5617_s0 + %s4770_s28]]   ;;  %s4774_s28 = smov 33  }
  0x30   :  { %s4952_s19 = sld [smem:[%s5617_s0 + %s4771_s7]]  }
  0x31   :  { %s4957_s5 = sld [smem:[%s5617_s0 + %s4772_s15]]  }
  0x32   :  { %s4962_s17 = sld [smem:[%s5617_s0 + %s4773_s22]]  }
  0x33   :  { %s4967_s13 = sld [smem:[%s5617_s0 + %s4774_s28]]  }
  0x34   :  { %73 = vsyncpa [#allocation3], 0 }
  0x35   :  { %74 = vsyncpa [#allocation5], 0 }
  0x36   :  { %75 = vsyncpa [#allocation8], 0 }
  0x37   :  { %76 = vsyncpa [#allocation11], 0 }
  0x38   :  { %77 = vsyncpa [#allocation14], 0  ;;  %s117_s7 = sshll.u32 %s4862_s30, 4  ;;  %s118_s7 = int_to_ptr.hbm [resolvable:$true] %s117_s7 }
  0x39   :  { %78 = vsyncpa [#allocation17], 0  ;;  %s4775_s10 = smov [#allocation4]   ;;  %s143_s15 = sshll.u32 %s4882_s27, 4  ;;  %s144_s15 = int_to_ptr.hbm [resolvable:$true] %s143_s15 }
  0x3a   :  { %s119_s11 = sshll.u32 %s4775_s10, 4  ;;  %s4466_s16 = sshra.s32 %s118_s7, 4  ;;  %s120_s11 = int_to_ptr.vmem [resolvable:$true] %s119_s11  ;;  %s4467_s16 = int_to_ptr.hbm [resolvable:$true] %s4466_s16 }
  0x3b   :  { %s4468_s0 = scalar_lea.hbm %s4467_s16, 1  ;;  %s4470_s18 = scalar_lea.hbm %s4862_s30, 1 }
  0x3c   :  { %p4469_p0 = scmp.ne.s32.totalorder %s4467_s16, %s4468_s0  ;;  %p4471_p1 = scmp.lt.s32.totalorder %s4467_s16, %s4862_s30 }
  0x3d   :  { %p4472_p2 = scmp.lt.s32.totalorder %s4470_s18, %s4468_s0 }
  0x3f   :  { %p4473_p3 = por %p4472_p2, %p4471_p1 }
  0x41   :  { %p4474_p4 = pnand %p4473_p3, %p4469_p0 }
  0x43   :  { %4477 = shalt.err (!%p4474_p4)
}
  0x44   :  { %122 = dma.hbm_to_vmem [thread:$0]  %s118_s7, 16, %s120_s11, [#allocation5]  }
  0x45   :  { %s4776_s22 = smov [#allocation7]   ;;  %s169_s26 = sshll.u32 %s4902_s6, 4  ;;  %s170_s26 = int_to_ptr.hbm [resolvable:$true] %s169_s26 }
  0x46   :  { %s145_s23 = sshll.u32 %s4776_s22, 4  ;;  %s4490_s28 = sshra.s32 %s144_s15, 4  ;;  %s146_s23 = int_to_ptr.vmem [resolvable:$true] %s145_s23  ;;  %s4491_s28 = int_to_ptr.hbm [resolvable:$true] %s4490_s28 }
  0x47   :  { %s4492_s1 = scalar_lea.hbm %s4491_s28, 1  ;;  %s4494_s2 = scalar_lea.hbm %s4882_s27, 1 }
  0x48   :  { %p4493_p5 = scmp.ne.s32.totalorder %s4491_s28, %s4492_s1  ;;  %p4495_p6 = scmp.lt.s32.totalorder %s4491_s28, %s4882_s27 }
  0x49   :  { %p4496_p7 = scmp.lt.s32.totalorder %s4494_s2, %s4492_s1 }
  0x4b   :  { %p4497_p8 = por %p4496_p7, %p4495_p6 }
  0x4d   :  { %p4498_p9 = pnand %p4497_p8, %p4493_p5 }
  0x4f   :  { %4501 = shalt.err (!%p4498_p9)
}
  0x50   :  { %148 = dma.hbm_to_vmem [thread:$0]  %s144_s15, 16, %s146_s23, [#allocation8]  }
  0x51   :  { %s195_s30 = sshll.u32 %s4922_s24, 4  ;;  %s4777_s7 = smov [#allocation10]   ;;  %s196_s30 = int_to_ptr.hbm [resolvable:$true] %s195_s30 }
  0x52   :  { %s171_s10 = sshll.u32 %s4777_s7, 4  ;;  %s4514_s11 = sshra.s32 %s170_s26, 4  ;;  %s172_s10 = int_to_ptr.vmem [resolvable:$true] %s171_s10  ;;  %s4515_s11 = int_to_ptr.hbm [resolvable:$true] %s4514_s11 }
  0x53   :  { %s4516_s16 = scalar_lea.hbm %s4515_s11, 1  ;;  %s4518_s0 = scalar_lea.hbm %s4902_s6, 1 }
  0x54   :  { %p4517_p10 = scmp.ne.s32.totalorder %s4515_s11, %s4516_s16  ;;  %p4519_p11 = scmp.lt.s32.totalorder %s4515_s11, %s4902_s6 }
  0x55   :  { %p4520_p12 = scmp.lt.s32.totalorder %s4518_s0, %s4516_s16 }
  0x57   :  { %p4521_p13 = por %p4520_p12, %p4519_p11 }
  0x59   :  { %p4522_p0 = pnand %p4521_p13, %p4517_p10 }
  0x5b   :  { %4525 = shalt.err (!%p4522_p0)
}
  0x5c   :  { %174 = dma.hbm_to_vmem [thread:$0]  %s170_s26, 16, %s172_s10, [#allocation11]  }
  0x5d   :  { %s4778_s27 = smov [#allocation13]   ;;  %s223_s18 = sshll.u32 %s4947_s4, 4  ;;  %s224_s18 = int_to_ptr.hbm [resolvable:$true] %s223_s18 }
  0x5e   :  { %s197_s15 = sshll.u32 %s4778_s27, 4  ;;  %s4538_s22 = sshra.s32 %s196_s30, 4  ;;  %s198_s15 = int_to_ptr.vmem [resolvable:$true] %s197_s15  ;;  %s4539_s22 = int_to_ptr.hbm [resolvable:$true] %s4538_s22 }
  0x5f   :  { %s4540_s23 = scalar_lea.hbm %s4539_s22, 1  ;;  %s4542_s28 = scalar_lea.hbm %s4922_s24, 1 }
  0x60   :  { %p4541_p1 = scmp.ne.s32.totalorder %s4539_s22, %s4540_s23  ;;  %p4543_p2 = scmp.lt.s32.totalorder %s4539_s22, %s4922_s24 }
  0x61   :  { %p4544_p3 = scmp.lt.s32.totalorder %s4542_s28, %s4540_s23 }
  0x63   :  { %p4545_p4 = por %p4544_p3, %p4543_p2 }
  0x65   :  { %p4546_p5 = pnand %p4545_p4, %p4541_p1 }
  0x67   :  { %4549 = shalt.err (!%p4546_p5)
}
  0x68   :  { %200 = dma.hbm_to_vmem [thread:$0]  %s196_s30, 16, %s198_s15, [#allocation14]  }
  0x69   :  { %s102_s6 = sshll.u32 %s4847_s14, 4  ;;  %s4779_s26 = smov [#allocation16]   ;;  %s103_s6 = int_to_ptr.hbm [resolvable:$true] %s102_s6 }
  0x6a   :  { %s225_s1 = sshll.u32 %s4779_s26, 4  ;;  %s4562_s2 = sshra.s32 %s224_s18, 4  ;;  %s226_s1 = int_to_ptr.vmem [resolvable:$true] %s225_s1  ;;  %s4563_s2 = int_to_ptr.hbm [resolvable:$true] %s4562_s2 }
  0x6b   :  { %s4564_s7 = scalar_lea.hbm %s4563_s2, 1  ;;  %s4566_s10 = scalar_lea.hbm %s4947_s4, 1 }
  0x6c   :  { %p4565_p6 = scmp.ne.s32.totalorder %s4563_s2, %s4564_s7  ;;  %p4567_p7 = scmp.lt.s32.totalorder %s4563_s2, %s4947_s4 }
  0x6d   :  { %p4568_p8 = scmp.lt.s32.totalorder %s4566_s10, %s4564_s7 }
  0x6f   :  { %p4569_p9 = por %p4568_p8, %p4567_p7 }
  0x71   :  { %p4570_p10 = pnand %p4569_p9, %p4565_p6 }
  0x73   :  { %4573 = shalt.err (!%p4570_p10)
}
  0x74   :  { %228 = dma.hbm_to_vmem [thread:$0]  %s224_s18, 16, %s226_s1, [#allocation17]  }
  0x75   :  { %s4780_s24 = smov [#allocation2]   ;;  %s130_s11 = sshll.u32 %s4872_s12, 4  ;;  %s131_s11 = int_to_ptr.hbm [resolvable:$true] %s130_s11 }
  0x76   :  { %s104_s30 = sshll.u32 %s4780_s24, 4  ;;  %s4586_s16 = sshra.s32 %s103_s6, 4  ;;  %s105_s30 = int_to_ptr.vmem [resolvable:$true] %s104_s30  ;;  %s4587_s16 = int_to_ptr.hbm [resolvable:$true] %s4586_s16 }
  0x77   :  { %s4588_s0 = scalar_lea.hbm %s4587_s16, 2  ;;  %s4590_s27 = scalar_lea.hbm %s4847_s14, 2 }
  0x78   :  { %p4589_p11 = scmp.ne.s32.totalorder %s4587_s16, %s4588_s0  ;;  %p4591_p12 = scmp.lt.s32.totalorder %s4587_s16, %s4847_s14 }
  0x79   :  { %p4592_p13 = scmp.lt.s32.totalorder %s4590_s27, %s4588_s0 }
  0x7b   :  { %p4593_p0 = por %p4592_p13, %p4591_p12 }
  0x7d   :  { %p4594_p1 = pnand %p4593_p0, %p4589_p11 }
  0x7f   :  { %4597 = shalt.err (!%p4594_p1)
}
  0x80   :  { %107 = dma.hbm_to_vmem [thread:$0]  %s103_s6, 32, %s105_s30, [#allocation3]  }
  0x81   :  { %s156_s4 = sshll.u32 %s4892_s25, 4  ;;  %s4781_s15 = smov [#allocation6]   ;;  %s157_s4 = int_to_ptr.hbm [resolvable:$true] %s156_s4 }
  0x82   :  { %s132_s18 = sshll.u32 %s4781_s15, 4  ;;  %s4610_s22 = sshra.s32 %s131_s11, 4  ;;  %s133_s18 = int_to_ptr.vmem [resolvable:$true] %s132_s18  ;;  %s4611_s22 = int_to_ptr.hbm [resolvable:$true] %s4610_s22 }
  0x83   :  { %s4612_s23 = scalar_lea.hbm %s4611_s22, 1  ;;  %s4614_s28 = scalar_lea.hbm %s4872_s12, 1 }
  0x84   :  { %p4613_p2 = scmp.ne.s32.totalorder %s4611_s22, %s4612_s23  ;;  %p4615_p3 = scmp.lt.s32.totalorder %s4611_s22, %s4872_s12 }
  0x85   :  { %p4616_p4 = scmp.lt.s32.totalorder %s4614_s28, %s4612_s23 }
  0x87   :  { %p4617_p5 = por %p4616_p4, %p4615_p3 }
  0x89   :  { %p4618_p6 = pnand %p4617_p5, %p4613_p2 }
  0x8b   :  { %4621 = shalt.err (!%p4618_p6)
}
  0x8c   :  { %135 = dma.hbm_to_vmem [thread:$0]  %s131_s11, 16, %s133_s18, [#allocation5]  }
  0x8d   :  { %s4782_s14 = smov [#allocation9]   ;;  %s182_s26 = sshll.u32 %s4912_s21, 4  ;;  %s183_s26 = int_to_ptr.hbm [resolvable:$true] %s182_s26 }
  0x8e   :  { %s158_s6 = sshll.u32 %s4782_s14, 4  ;;  %s4634_s1 = sshra.s32 %s157_s4, 4  ;;  %s159_s6 = int_to_ptr.vmem [resolvable:$true] %s158_s6  ;;  %s4635_s1 = int_to_ptr.hbm [resolvable:$true] %s4634_s1 }
  0x8f   :  { %s4636_s2 = scalar_lea.hbm %s4635_s1, 1  ;;  %s4638_s7 = scalar_lea.hbm %s4892_s25, 1 }
  0x90   :  { %p4637_p7 = scmp.ne.s32.totalorder %s4635_s1, %s4636_s2  ;;  %p4639_p8 = scmp.lt.s32.totalorder %s4635_s1, %s4892_s25 }
  0x91   :  { %p4640_p9 = scmp.lt.s32.totalorder %s4638_s7, %s4636_s2 }
  0x93   :  { %p4641_p10 = por %p4640_p9, %p4639_p8 }
  0x95   :  { %p4642_p11 = pnand %p4641_p10, %p4637_p7 }
  0x97   :  { %4645 = shalt.err (!%p4642_p11)
}
  0x98   :  { %161 = dma.hbm_to_vmem [thread:$0]  %s157_s4, 16, %s159_s6, [#allocation8]  }
  0x99   :  { %s210_s12 = sshll.u32 %s4937_s20, 4  ;;  %s4783_s10 = smov [#allocation12]   ;;  %s211_s12 = int_to_ptr.hbm [resolvable:$true] %s210_s12 }
  0x9a   :  { %s184_s24 = sshll.u32 %s4783_s10, 4  ;;  %s4658_s30 = sshra.s32 %s183_s26, 4  ;;  %s185_s24 = int_to_ptr.vmem [resolvable:$true] %s184_s24  ;;  %s4659_s30 = int_to_ptr.hbm [resolvable:$true] %s4658_s30 }
  0x9b   :  { %s4660_s11 = scalar_lea.hbm %s4659_s30, 1  ;;  %s4662_s16 = scalar_lea.hbm %s4912_s21, 1 }
  0x9c   :  { %p4661_p12 = scmp.ne.s32.totalorder %s4659_s30, %s4660_s11  ;;  %p4663_p13 = scmp.lt.s32.totalorder %s4659_s30, %s4912_s21 }
  0x9d   :  { %p4664_p0 = scmp.lt.s32.totalorder %s4662_s16, %s4660_s11 }
  0x9f   :  { %p4665_p1 = por %p4664_p0, %p4663_p13 }
  0xa1   :  { %p4666_p2 = pnand %p4665_p1, %p4661_p12 }
  0xa3   :  { %4669 = shalt.err (!%p4666_p2)
}
  0xa4   :  { %187 = dma.hbm_to_vmem [thread:$0]  %s183_s26, 16, %s185_s24, [#allocation11]  }
  0xa5   :  { %s4784_s25 = smov [#allocation15]   ;;  %s236_s27 = sshll.u32 %s4957_s5, 4  ;;  %s237_s27 = int_to_ptr.hbm [resolvable:$true] %s236_s27 }
  0xa6   :  { %s212_s0 = sshll.u32 %s4784_s25, 4  ;;  %s4682_s4 = sshra.s32 %s211_s12, 4  ;;  %s213_s0 = int_to_ptr.vmem [resolvable:$true] %s212_s0  ;;  %s4683_s4 = int_to_ptr.hbm [resolvable:$true] %s4682_s4 }
  0xa7   :  { %s4684_s15 = scalar_lea.hbm %s4683_s4, 1  ;;  %s4686_s18 = scalar_lea.hbm %s4937_s20, 1 }
  0xa8   :  { %p4685_p3 = scmp.ne.s32.totalorder %s4683_s4, %s4684_s15  ;;  %p4687_p4 = scmp.lt.s32.totalorder %s4683_s4, %s4937_s20 }
  0xa9   :  { %p4688_p5 = scmp.lt.s32.totalorder %s4686_s18, %s4684_s15 }
  0xab   :  { %p4689_p6 = por %p4688_p5, %p4687_p4 }
  0xad   :  { %p4690_p7 = pnand %p4689_p6, %p4685_p3 }
  0xaf   :  { %4693 = shalt.err (!%p4690_p7)
}
  0xb0   :  { %215 = dma.hbm_to_vmem [thread:$0]  %s211_s12, 16, %s213_s0, [#allocation14]  }
  0xb1   :  { %s4785_s21 = smov [#allocation18]   ;;  %s4706_s23 = sshra.s32 %s237_s27, 4  ;;  %s4707_s23 = int_to_ptr.hbm [resolvable:$true] %s4706_s23 }
  0xb2   :  { %s238_s22 = sshll.u32 %s4785_s21, 4  ;;  %s4708_s28 = scalar_lea.hbm %s4707_s23, 1  ;;  %s239_s22 = int_to_ptr.vmem [resolvable:$true] %s238_s22 }
  0xb3   :  { %p4709_p8 = scmp.ne.s32.totalorder %s4707_s23, %s4708_s28  ;;  %s4710_s14 = scalar_lea.hbm %s4957_s5, 1 }
  0xb4   :  { %p4711_p9 = scmp.lt.s32.totalorder %s4707_s23, %s4957_s5  ;;  %p4712_p10 = scmp.lt.s32.totalorder %s4710_s14, %s4708_s28 }
  0xb6   :  { %p4713_p11 = por %p4712_p10, %p4711_p9 }
  0xb8   :  { %p4714_p12 = pnand %p4713_p11, %p4709_p8 }
  0xba   :  { %4717 = shalt.err (!%p4714_p12)
}
  0xbb   :  { %241 = dma.hbm_to_vmem [thread:$0]  %s237_s27, 16, %s239_s22, [#allocation17]  }
  0xbc   :  { %4730 = dma.done.wait [#allocation3], 32  }
  0xbd   :  { %4731 = vsyncadd [#allocation3], 4294967264 }
  0xbe   :  { %4732 = dma.done.wait [#allocation5], 32  }
  0xbf   :  { %4733 = vsyncadd [#allocation5], 4294967264 }
  0xc0   :  { %4734 = dma.done.wait [#allocation8], 32  }
  0xc1   :  { %4735 = vsyncadd [#allocation8], 4294967264 }
  0xc2   :  { %4736 = dma.done.wait [#allocation11], 32  }
  0xc3   :  { %4737 = vsyncadd [#allocation11], 4294967264 }
  0xc4   :  { %4738 = dma.done.wait [#allocation14], 32  }
  0xc5   :  { %4739 = vsyncadd [#allocation14], 4294967264 }
  0xc6   :  { %4740 = dma.done.wait [#allocation17], 32  }
  0xc7   :  { %4741 = vsyncadd [#allocation17], 4294967264  ;;  %vm303_vm0 = vcmask 1042432   ;;  %v293_v0 = vld [vmem:[%s4832_s29] sm:$0x7]  ;;  %vm367_vm1 = vcmask 1044480  }
  0xc8   :  { %v3367_v1 = vld [vmem:[%s4837_s3 + $0x10] sm:$0xf]  ;;  %v305_v2 = vsel %vm303_vm0, %v293_v0, 0  ;;  %v4068_v3 = vld [vmem:[%s4837_s3 + $0x10] sm:$0x10]  ;;  %v290_v4 = vld [vmem:[%s4807_s9] sm:$0xff] }
  0xc9   :  { %v291_v5 = vld [vmem:[%s4807_s9 + $0x8] sm:$0xff]  ;;  %314 = vmatpush.bf16.msra.mxu3 %v305_v2  ;;  %v3368_v6 = vor.u32 %v4068_v3, %v3367_v1  ;;  %vm296_vm2 = vcmask 48128   ;;  %v4083_v8 = vld [vmem:[%s4842_s8 + $0x74] sm:$0xf]  ;;  %s5648_s5 = sld [smem:[#allocation26_spill]]  ;;  %v4066_v18 = vld [vmem:[%s4837_s3] sm:$0xff] }
  0xca   :  { %v5008_v7 = vpack.c.bf16 %v291_v5, %v290_v4  ;;  %v3432_v9 = vld [vmem:[%s4842_s8 + $0x78] sm:$0xf0]  ;;  %v4081_v11 = vld [vmem:[%s4842_s8 + $0x64] sm:$0xf]  ;;  %v3424_v12 = vld [vmem:[%s4842_s8 + $0x68] sm:$0xf0] }
  0xcb   :  { %v3435_v10 = vor.u32 %v4083_v8, %v3432_v9  ;;  %v369_v13 = vsel %vm367_vm1, %v3368_v6, 0  ;;  %v4067_v14 = vld [vmem:[%s4837_s3 + $0x8] sm:$0xff]  ;;  %v3427_v15 = vor.u32 %v4081_v11, %v3424_v12  ;;  %v4079_v16 = vld [vmem:[%s4842_s8 + $0x54] sm:$0xf]  ;;  %v3416_v17 = vld [vmem:[%s4842_s8 + $0x58] sm:$0xf0] }
  0xcc   :  { %376 = vmatpush.bf16.msra.mxu1 %v369_v13  ;;  %3355 = vmatmul.msk.bf16.vlgmr.msra.gmra.mxu3 %vm296_vm2, %v5008_v7  ;;  %v3419_v21 = vor.u32 %v4079_v16, %v3416_v17  ;;  %vm357_vm3 = vcmask 343040   ;;  %v4077_v24 = vld [vmem:[%s4842_s8 + $0x44] sm:$0xf]  ;;  %v3408_v25 = vld [vmem:[%s4842_s8 + $0x48] sm:$0xf0]  ;;  %v292_v29 = vld [vmem:[%s4807_s9 + $0x10] sm:$0xff] }
  0xcd   :  { %517 = vmatpush.bf16.msrb.mxu3 %v3435_v10  ;;  %4233 = vmatpush.bf16.msra.mxu2 %v369_v13  ;;  %v3411_v28 = vor.u32 %v4077_v24, %v3408_v25  ;;  %v4075_v30 = vld [vmem:[%s4842_s8 + $0x34] sm:$0xf]  ;;  %v3400_v31 = vld [vmem:[%s4842_s8 + $0x38] sm:$0xf0]  ;;  %v5031_v32 = vpack.c.bf16 %v292_v29, %v292_v29  ;;  %v4073_v34 = vld [vmem:[%s4842_s8 + $0x24] sm:$0xf] }
  0xce   :  { %v3403_v33 = vor.u32 %v4075_v30, %v3400_v31  ;;  %s5649_s29 = sld [smem:[#allocation25_spill]]  ;;  %v3392_v35 = vld [vmem:[%s4842_s8 + $0x28] sm:$0xf0]  ;;  %v4071_v37 = vld [vmem:[%s4842_s8 + $0x14] sm:$0xf]  ;;  %v4786_v51 = vmov 2  }
  0xcf   :  { %v325_v19 = vld [vmem:[%s5648_s5] sm:$0xff]  ;;  %v326_v20 = vld [vmem:[%s5648_s5 + $0x8] sm:$0xff]  ;;  %v3395_v36 = vor.u32 %v4073_v34, %v3392_v35  ;;  %v3384_v38 = vld [vmem:[%s4842_s8 + $0x18] sm:$0xf0]  ;;  %4289 = vset.pattern.permute.xlu1 %v4786_v51  ;;  %v4787_v52 = vmov 1   ;;  %v4788_v53 = vmov 0  }
  0xd0   :  { %377 = vmatpush.bf16.msra.mxu1 %v4067_v14  ;;  %v329_v22 = vld [vmem:[%s5648_s5 + $0x20] sm:$0xff]  ;;  %v330_v23 = vld [vmem:[%s5648_s5 + $0x28] sm:$0xff]  ;;  %v337_v26 = vpack.c.bf16 %v326_v20, %v325_v19  ;;  %v327_v39 = vld [vmem:[%s5648_s5 + $0x10] sm:$0xff]  ;;  %v3387_v41 = vor.u32 %v4071_v37, %v3384_v38  ;;  %4288 = vset.pattern.permute.xlu0 %v4787_v52  ;;  %v4789_v58 = vmov 3   ;;  %v4790_v20 = vmov 6   ;;  %s5654_s9 = sld [smem:[#allocation27_spill]] }
  0xd1   :  { %518 = vmatpush.bf16.msrb.mxu3 %v3427_v15  ;;  %4234 = vmatpush.bf16.msra.mxu2 %v4067_v14  ;;  %v339_v27 = vpack.c.bf16 %v330_v23, %v329_v22  ;;  %v328_v40 = vld [vmem:[%s5648_s5 + $0x18] sm:$0xff]  ;;  %v4069_v42 = vld [vmem:[%s4842_s8 + $0x4] sm:$0xf]  ;;  %v3376_v43 = vld [vmem:[%s4842_s8 + $0x8] sm:$0xf0]  ;;  %v4791_v29 = vmov 5  }
  0xd2   :  { %v338_v44 = vpack.c.bf16 %v328_v40, %v327_v39  ;;  %v3379_v45 = vor.u32 %v4069_v42, %v3376_v43  ;;  %4290 = vset.pattern.permute.xlu2 %v4788_v53  ;;  %v413_v62 = vld [vmem:[#allocation2] sm:$0x3]  ;;  %v4792_v30 = vmov 7   ;;  %vm691_vm1 = vcmask 1043456   ;;  %s5655_s3 = sld [smem:[#allocation30_spill]] }
  0xd3   :  { %v416_v63 = vperm.slane %v413_v62, 1  ;;  %v4793_v62 = vmov 4   ;;  %s5657_s20 = sld [smem:[#allocation28_spill]] }
  0xd4   :  { %378 = vmatpush.bf16.msra.mxu1 %v4066_v18  ;;  %v287_v46 = vld [vmem:[%s5649_s29] sm:$0xff]  ;;  %v288_v47 = vld [vmem:[%s5649_s29 + $0x8] sm:$0xff]  ;;  %v289_v49 = vld [vmem:[%s5649_s29 + $0x10] sm:$0xff]  ;;  %s5658_s6 = sld [smem:[#allocation32_spill]] }
  0xd5   :  { %519 = vmatpush.bf16.msrb.mxu3 %v3419_v21  ;;  %4235 = vmatpush.bf16.msra.mxu2 %v4066_v18  ;;  %v5046_v48 = vpack.c.bf16 %v288_v47, %v287_v46  ;;  %v5050_v50 = vpack.c.bf16 %v289_v49, %v289_v49  ;;  %s5659_s26 = sld [smem:[#allocation33_spill]] }
  0xd6   :  { %s5660_s1 = sld [smem:[#allocation34_spill]] }
  0xd7   :  { %3369 = vmatmul.msk.bf16.vlgmr.msra.gmra.mxu1 %vm357_vm3, %v337_v26  ;;  %s5661_s2 = sld [smem:[#allocation38_spill]] }
  0xd8   :  { %3371 = vmatmul.msk.bf16.vlgmr.msra.gmra.mxu2 %vm357_vm3, %v339_v27  ;;  %s5662_s7 = sld [smem:[#allocation35_spill]] }
  0xd9   :  { %520 = vmatpush.bf16.msrb.mxu3 %v3411_v28  ;;  %s5663_s12 = sld [smem:[#allocation36_spill]] }
  0xda   :  { %s5664_s10 = sld [smem:[#allocation37_spill]] }
  0xdb   :  { %s5665_s24 = sld [smem:[#allocation39_spill]] }
  0xdc   :  { %3356 = vmatmul.msk.bf16.gmra.mxu3 %vm296_vm2, %v5031_v32  ;;  %s5666_s30 = sld [smem:[#allocation29_spill]] }
  0xdd   :  { %521 = vmatpush.bf16.msrb.mxu3 %v3403_v33  ;;  %s5667_s11 = sld [smem:[#allocation40_spill]] }
  0xe1   :  { %522 = vmatpush.bf16.msrb.mxu3 %v3395_v36 }
  0xe5   :  { %523 = vmatpush.bf16.msrb.mxu3 %v3387_v41 }
  0xe7   :  { %3370 = vmatmul.msk.bf16.gmra.mxu1 %vm357_vm3, %v338_v44  ;;  %vm681_vm3 = vcmask 195584  }
  0xe9   :  { %524 = vmatpush.bf16.msrb.mxu3 %v3379_v45 }
  0xec   :  { %525 = vmatmul.bf16.vlgmr.msrb.gmra.mxu3 %v5046_v48 }
  0xfc   :  { %530 = vmatmul.bf16.gmra.mxu3 %v5050_v50 }
 0x14f   :  { %v5056_v54 = vpop.f32.mrf.mxu3 }
 0x154   :  { %v5058_v55 = vpop.f32.mrf.mxu1 }
 0x155   :  { %721 = vperm.xlu2 %4290, %v5058_v55   ;;  %798 = vperm.xlu1 %4289, %v5058_v55  }
 0x156   :  { %762 = vperm.xlu0 %4288, %v5058_v55  }
 0x157   :  { %v5063_v56 = vpop.f32.mrf.mxu3 }
 0x15b   :  { %v5065_v57 = vpop.f32.mrf.mxu2 }
 0x15c   :  { %v5076_v60 = vpop.f32.mrf.mxu1 }
 0x15d   :  { %4293 = vset.pattern.permute.xlu2 %v4786_v51  ;;  %4295 = vset.pattern.permute.xlu1 %v4789_v58 }
 0x15e   :  { %4291 = vset.pattern.permute.xlu0 %v4789_v58  ;;  %814 = vperm.xlu2 %4293, %v5065_v57  }
 0x15f   :  { %850 = vperm.xlu1 %4295, %v5065_v57   ;;  %834 = vperm.xlu0 %4291, %v5058_v55   ;;  %v5073_v59 = vpop.f32.mrf.mxu3 }
 0x163   :  { %v5092_v4 = vpop.f32.mrf.mxu2 }
 0x164   :  { %v5090_v3 = vpop.f32.mrf.mxu1 }
 0x166   :  { %4294 = vset.pattern.permute.xlu2 %v4788_v53 }
 0x167   :  { %4296 = vset.pattern.permute.xlu1 %v4786_v51  ;;  %4292 = vset.pattern.permute.xlu0 %v4787_v52  ;;  %v323_v61 = vpop.f32.mrf.mxu3 }
 0x168   :  { %741 = vperm.xlu2 %4294, %v5065_v57   ;;  %778 = vperm.xlu0 %4292, %v5065_v57  }
 0x169   :  { %802 = vperm.xlu1 %4296, %v5076_v60  }
 0x16c   :  { %v5105_v11 = vpop.f32.mrf.mxu1 }
 0x16f   :  { %v526_v0 = vpop.f32.mrf.mxu3 }
 0x170   :  { %726 = vperm.xlu2 %4294, %v5076_v60   ;;  %766 = vperm.xlu0 %4292, %v5076_v60   ;;  %v5085_v1 = vadd.f32 %v526_v0, %v416_v63 }
 0x171   :  { %4297 = vset.pattern.permute.xlu1 %v4789_v58 }
 0x172   :  { %838 = vperm.xlu1 %4297, %v5076_v60   ;;  %v3439_v2 = vmul.f32 -1.442695, %v5085_v1 }
 0x174   :  { %4342 = vpow2.f32 %v3439_v2 }
 0x177   :  { %v528_v5 = vpop.f32.mrf.mxu3 }
 0x178   :  { %4301 = vset.pattern.permute.xlu2 %v4789_v58  ;;  %4300 = vset.pattern.permute.xlu0 %v4788_v53  ;;  %v5096_v6 = vadd.f32 %v528_v5, %v416_v63 }
 0x179   :  { %854 = vperm.xlu2 %4301, %v5092_v4   ;;  %746 = vperm.xlu0 %4300, %v5092_v4  }
 0x17a   :  { %4298 = vset.pattern.permute.xlu1 %v4787_v52  ;;  %v3440_v8 = vmul.f32 -1.442695, %v5096_v6  ;;  %v4343_v9 = vpop.eup %4342 }
 0x17b   :  { %782 = vperm.xlu1 %4298, %v5092_v4   ;;  %v5103_v10 = vadd.f32 1.0, %v4343_v9 }
 0x17c   :  { %4344 = vpow2.f32 %v3440_v8 }
 0x17d   :  { %4346 = vrcp.f32 %v5103_v10  ;;  %v618_v42 = vand.u32 2147483648, %v5103_v10  ;;  %vm612_vm10 = vweird.f32 %v5103_v10  ;;  %v616_v45 = vand.u32 2147483647, %v5103_v10 }
 0x17f   :  { %v531_v12 = vpop.f32.mrf.mxu3  ;;  %v619_v2 = vor.u32 1.1754944e-38, %v618_v42  ;;  %vm617_vm15 = vcmp.eq.f32.partialorder %v616_v45, 8.507059e+37  ;;  %v4111_v45 = vld [vmem:[%s5655_s3 + $0xb8] sm:$0xff] }
 0x180   :  { %v5107_v13 = vadd.f32 %v531_v12, %v416_v63  ;;  %1717 = vmatpush.bf16.msra.mxu3 %v4111_v45 }
 0x181   :  { %4302 = vset.pattern.permute.xlu2 %v4787_v52  ;;  %4309 = vset.pattern.permute.xlu0 %v4786_v51 }
 0x182   :  { %v4345_v14 = vpop.eup %4344  ;;  %v3441_v15 = vmul.f32 -1.442695, %v5107_v13  ;;  %770 = vperm.xlu2 %4302, %v5090_v3   ;;  %810 = vperm.xlu0 %4309, %v5105_v11  }
 0x183   :  { %v5115_v16 = vadd.f32 1.0, %v4345_v14  ;;  %4299 = vset.pattern.permute.xlu1 %v4786_v51  ;;  %v5120_v18 = vpop.eup %4346 }
 0x184   :  { %4348 = vpow2.f32 %v3441_v15  ;;  %818 = vperm.xlu1 %4299, %v5092_v4   ;;  %v608_v24 = vmul.f32 %v5120_v18, %v5103_v10  ;;  %vm613_vm6 = vweird.f32 %v5120_v18 }
 0x185   :  { %4350 = vrcp.f32 %v5115_v16  ;;  %v633_v37 = vand.u32 2147483648, %v5115_v16  ;;  %vm627_vm7 = vweird.f32 %v5115_v16  ;;  %v631_v41 = vand.u32 2147483647, %v5115_v16  ;;  %vm5152_vm12 = vmor %vm612_vm10, %vm613_vm6 }
 0x186   :  { %v609_v26 = vsub.f32 1.0, %v608_v24  ;;  %v3398_v24 = vld [vmem:[%s4842_s8 + $0x30] sm:$0xf] }
 0x187   :  { %v533_v17 = vpop.f32.mrf.mxu3  ;;  %vm632_vm14 = vcmp.eq.f32.partialorder %v631_v41, 8.507059e+37 }
 0x188   :  { %v610_v33 = vmul.f32 %v5120_v18, %v609_v26  ;;  %v4082_v17 = vld [vmem:[%s4842_s8 + $0x64] sm:$0xf0] }
 0x18a   :  { %v4349_v19 = vpop.eup %4348  ;;  %4303 = vset.pattern.permute.xlu2 %v4786_v51  ;;  %4310 = vset.pattern.permute.xlu0 %v4790_v20  ;;  %v611_v40 = vadd.f32 %v5120_v18, %v610_v33  ;;  %v634_v51 = vor.u32 1.1754944e-38, %v633_v37  ;;  %v4074_v33 = vld [vmem:[%s4842_s8 + $0x24] sm:$0xf0]  ;;  %v3374_v37 = vld [vmem:[%s4842_s8] sm:$0xf] }
 0x18b   :  { %v4351_v21 = vpop.eup %4350  ;;  %v606_v22 = vadd.f32 1.0, %v4349_v19  ;;  %806 = vperm.xlu2 %4303, %v5090_v3   ;;  %942 = vperm.xlu0 %4310, %v5058_v55   ;;  %v3414_v19 = vld [vmem:[%s4842_s8 + $0x50] sm:$0xf] }
 0x18c   :  { %v623_v23 = vmul.f32 %v4351_v21, %v5115_v16  ;;  %4304 = vset.pattern.permute.xlu1 %v4788_v53  ;;  %vm628_vm4 = vweird.f32 %v4351_v21  ;;  %v615_v63 = vsel %vm5152_vm12, %v5120_v18, %v611_v40  ;;  %v3422_v16 = vld [vmem:[%s4842_s8 + $0x60] sm:$0xf] }
 0x18d   :  { %4352 = vrcp.f32 %v606_v22  ;;  %731 = vperm.xlu1 %4304, %v5090_v3   ;;  %v648_v36 = vand.u32 2147483648, %v606_v22  ;;  %v646_v39 = vand.u32 2147483647, %v606_v22  ;;  %vm5144_vm8 = vmor %vm627_vm7, %vm628_vm4  ;;  %vm642_vm9 = vweird.f32 %v606_v22 }
 0x18e   :  { %v624_v25 = vsub.f32 1.0, %v623_v23  ;;  %v3423_v18 = vor.u32 %v4082_v17, %v3422_v16  ;;  %v4089_v16 = vld [vmem:[%s5655_s3 + $0x8] sm:$0xff]  ;;  %vm1875_vm4 = vcmask 392192  }
 0x18f   :  { %v649_v47 = vor.u32 1.1754944e-38, %v648_v36  ;;  %vm647_vm13 = vcmp.eq.f32.partialorder %v646_v39, 8.507059e+37  ;;  %v4072_v36 = vld [vmem:[%s4842_s8 + $0x14] sm:$0xf0]  ;;  %v4070_v39 = vld [vmem:[%s4842_s8 + $0x4] sm:$0xf0] }
 0x190   :  { %v625_v28 = vmul.f32 %v4351_v21, %v624_v25  ;;  %v4076_v25 = vld [vmem:[%s4842_s8 + $0x34] sm:$0xf0]  ;;  %v3375_v40 = vor.u32 %v4070_v39, %v3374_v37  ;;  %v4097_v17 = vld [vmem:[%s5655_s3 + $0x48] sm:$0xff] }
 0x191   :  { %v3399_v26 = vor.u32 %v4076_v25, %v3398_v24  ;;  %v4143_v37 = vld [vmem:[%s5655_s3 + $0x1b8] sm:$0xff] }
 0x192   :  { %v626_v35 = vadd.f32 %v4351_v21, %v625_v28  ;;  %v4087_v28 = vld [vmem:[%s5654_s9 + $0x10] sm:$0xff] }
 0x193   :  { %v4353_v27 = vpop.eup %4352  ;;  %4308 = vset.pattern.permute.xlu2 %v4791_v29  ;;  %4317 = vset.pattern.permute.xlu0 %v4792_v30 }
 0x194   :  { %v638_v31 = vmul.f32 %v4353_v27, %v606_v22  ;;  %910 = vperm.xlu2 %4308, %v5076_v60   ;;  %982 = vperm.xlu0 %4317, %v5076_v60   ;;  %vm643_vm5 = vweird.f32 %v4353_v27  ;;  %v630_v46 = vsel %vm5144_vm8, %v4351_v21, %v626_v35  ;;  %v4080_v21 = vld [vmem:[%s4842_s8 + $0x54] sm:$0xf0]  ;;  %v3382_v35 = vld [vmem:[%s4842_s8 + $0x10] sm:$0xf] }
 0x195   :  { %4305 = vset.pattern.permute.xlu1 %v4789_v58  ;;  %vm644_vm11 = vmor %vm642_vm9, %vm643_vm5  ;;  %v635_v5 = vsel %vm632_vm14, %v634_v51, %v630_v46  ;;  %v3415_v22 = vor.u32 %v4080_v21, %v3414_v19  ;;  %v4119_v46 = vld [vmem:[%s5655_s3 + $0xf8] sm:$0xff]  ;;  %v4118_v51 = vld [vmem:[%s5655_s3 + $0xf0] sm:$0xff] }
 0x196   :  { %v639_v34 = vsub.f32 1.0, %v638_v31  ;;  %842 = vperm.xlu1 %4305, %v5090_v3   ;;  %v653_v10 = vmul.f32 %v635_v5, %v5096_v6  ;;  %v3390_v31 = vld [vmem:[%s4842_s8 + $0x20] sm:$0xf]  ;;  %v4113_v19 = vld [vmem:[%s5655_s3 + $0xc8] sm:$0xff] }
 0x197   :  { %v4092_v5 = vld [vmem:[%s5655_s3 + $0x20] sm:$0xff] }
 0x198   :  { %v640_v38 = vmul.f32 %v4353_v27, %v639_v34  ;;  %v3391_v34 = vor.u32 %v4074_v33, %v3390_v31  ;;  %v4088_v21 = vld [vmem:[%s5655_s3] sm:$0xff] }
 0x19a   :  { %v641_v44 = vadd.f32 %v4353_v27, %v640_v38  ;;  %v3383_v38 = vor.u32 %v4072_v36, %v3382_v35  ;;  %v4127_v35 = vld [vmem:[%s5655_s3 + $0x138] sm:$0xff] }
 0x19b   :  { %v4135_v36 = vld [vmem:[%s5655_s3 + $0x178] sm:$0xff] }
 0x19c   :  { %v645_v61 = vsel %vm644_vm11, %v4353_v27, %v641_v44  ;;  %4312 = vset.pattern.permute.xlu2 %v4788_v53  ;;  %4320 = vset.pattern.permute.xlu0 %v4793_v62  ;;  %v620_v53 = vsel %vm617_vm15, %v619_v2, %v615_v63  ;;  %v4109_v63 = vld [vmem:[%s5655_s3 + $0xa8] sm:$0xff] }
 0x19d   :  { %v650_v0 = vsel %vm647_vm13, %v649_v47, %v645_v61  ;;  %736 = vperm.xlu2 %4312, %v5105_v11   ;;  %878 = vperm.xlu0 %4320, %v5090_v3   ;;  %v652_v14 = vmul.f32 %v620_v53, %v5085_v1  ;;  %v4102_v47 = vld [vmem:[%s5655_s3 + $0x70] sm:$0xff]  ;;  %v4093_v61 = vld [vmem:[%s5655_s3 + $0x28] sm:$0xff]  ;;  %v4108_v53 = vld [vmem:[%s5655_s3 + $0xa0] sm:$0xff] }
 0x19e   :  { %v654_v8 = vmul.f32 %v650_v0, %v5107_v13  ;;  %4306 = vset.pattern.permute.xlu1 %v4787_v52  ;;  %v656_v52 = vmul.f32 %v653_v10, %v5063_v56  ;;  %v4084_v56 = vld [vmem:[%s4842_s8 + $0x74] sm:$0xf0]  ;;  %v4086_v13 = vld [vmem:[%s5654_s9 + $0x8] sm:$0xff] }
 0x19f   :  { %774 = vperm.xlu1 %4306, %v5105_v11   ;;  %v4117_v0 = vld [vmem:[%s5655_s3 + $0xe8] sm:$0xff] }
 0x1a0   :  { %v657_v9 = vmul.f32 %v654_v8, %v5073_v59  ;;  %v655_v59 = vmul.f32 %v652_v14, %v5056_v54  ;;  %v3430_v54 = vld [vmem:[%s4842_s8 + $0x70] sm:$0xf]  ;;  %v4100_v8 = vld [vmem:[%s5655_s3 + $0x60] sm:$0xff]  ;;  %v4099_v14 = vld [vmem:[%s5655_s3 + $0x58] sm:$0xff] }
 0x1a1   :  { %v3431_v6 = vor.u32 %v4084_v56, %v3430_v54  ;;  %v4106_v54 = vld [vmem:[%s5655_s3 + $0x90] sm:$0xff] }
 0x1a2   :  { %v665_v12 = vpack.c.bf16 %v657_v9, %v657_v9  ;;  %v664_v1 = vpack.c.bf16 %v656_v52, %v655_v59  ;;  %v4116_v9 = vld [vmem:[%s5655_s3 + $0xe0] sm:$0xff]  ;;  %v4115_v52 = vld [vmem:[%s5655_s3 + $0xd8] sm:$0xff]  ;;  %v4090_v59 = vld [vmem:[%s5655_s3 + $0x10] sm:$0xff] }
 0x1a3   :  { %499 = vmatpush.bf16.msrb.mxu2 %v3431_v6  ;;  %v4114_v56 = vld [vmem:[%s5655_s3 + $0xd0] sm:$0xff] }
 0x1a4   :  { %v693_v15 = vsel %vm691_vm1, %v665_v12, 0  ;;  %v4091_v12 = vld [vmem:[%s5655_s3 + $0x18] sm:$0xff] }
 0x1a5   :  { %4313 = vset.pattern.permute.xlu2 %v4789_v58  ;;  %4324 = vset.pattern.permute.xlu0 %v4791_v29  ;;  %v4085_v58 = vld [vmem:[%s5654_s9] sm:$0xff] }
 0x1a6   :  { %846 = vperm.xlu2 %4313, %v5105_v11   ;;  %926 = vperm.xlu0 %4324, %v5092_v4  }
 0x1a7   :  { %4307 = vset.pattern.permute.xlu1 %v4791_v29  ;;  %701 = vmatpush.bf16.msra.mxu0 %v693_v15  ;;  %v4107_v15 = vld [vmem:[%s5655_s3 + $0x98] sm:$0xff] }
 0x1a8   :  { %906 = vperm.xlu1 %4307, %v5058_v55   ;;  %500 = vmatpush.bf16.msrb.mxu2 %v3423_v18  ;;  %v4105_v18 = vld [vmem:[%s5655_s3 + $0x88] sm:$0xff] }
 0x1ab   :  { %702 = vmatpush.bf16.msra.mxu0 %v664_v1  ;;  %v4098_v1 = vld [vmem:[%s5655_s3 + $0x50] sm:$0xff] }
 0x1ac   :  { %501 = vmatpush.bf16.msrb.mxu2 %v3415_v22  ;;  %v4096_v22 = vld [vmem:[%s5655_s3 + $0x40] sm:$0xff] }
 0x1ae   :  { %4314 = vset.pattern.permute.xlu2 %v4793_v62  ;;  %4330 = vset.pattern.permute.xlu0 %v4792_v30 }
 0x1af   :  { %3454 = vmatmul.msk.bf16.vlgmr.msra.gmra.mxu0 %vm681_vm3, %v4085_v58  ;;  %870 = vperm.xlu2 %4314, %v5058_v55  }
 0x1b0   :  { %994 = vperm.xlu0 %4330, %v5065_v57   ;;  %4311 = vset.pattern.permute.xlu1 %v4790_v20 }
 0x1b1   :  { %946 = vperm.xlu1 %4311, %v5076_v60   ;;  %1741 = vmatpush.bf16.msrb.mxu0 %v4119_v46 }
 0x1b5   :  { %1742 = vmatpush.bf16.msrb.mxu0 %v4118_v51 }
 0x1b7   :  { %4316 = vset.pattern.permute.xlu2 %v4792_v30 }
 0x1b8   :  { %978 = vperm.xlu2 %4316, %v5058_v55   ;;  %v3406_v55 = vld [vmem:[%s4842_s8 + $0x40] sm:$0xf] }
 0x1b9   :  { %4315 = vset.pattern.permute.xlu1 %v4793_v62  ;;  %1743 = vmatpush.bf16.msrb.mxu0 %v4117_v0  ;;  %v4125_v0 = vld [vmem:[%s5655_s3 + $0x128] sm:$0xff] }
 0x1ba   :  { %874 = vperm.xlu1 %4315, %v5076_v60   ;;  %v4078_v60 = vld [vmem:[%s4842_s8 + $0x44] sm:$0xf0]  ;;  %s5656_s8 = sld [smem:[#allocation31_spill]] }
 0x1bb   :  { %v3407_v23 = vor.u32 %v4078_v60, %v3406_v55  ;;  %v4104_v55 = vld [vmem:[%s5655_s3 + $0x80] sm:$0xff] }
 0x1bc   :  { %v4112_v60 = vld [vmem:[%s5655_s3 + $0xc0] sm:$0xff] }
 0x1bd   :  { %502 = vmatpush.bf16.msrb.mxu2 %v3407_v23  ;;  %1744 = vmatpush.bf16.msrb.mxu0 %v4116_v9 }
 0x1bf   :  { %3455 = vmatmul.msk.bf16.gmra.mxu0 %vm681_vm3, %v4086_v13 }
 0x1c0   :  { %986 = vperm.xlu2 %4316, %v5090_v3  }
 0x1c1   :  { %503 = vmatpush.bf16.msrb.mxu2 %v3399_v26  ;;  %1745 = vmatpush.bf16.msrb.mxu0 %v4115_v52 }
 0x1c2   :  { %4318 = vset.pattern.permute.xlu1 %v4791_v29 }
 0x1c3   :  { %914 = vperm.xlu1 %4318, %v5090_v3  }
 0x1c5   :  { %504 = vmatpush.bf16.msrb.mxu2 %v3391_v34  ;;  %1746 = vmatpush.bf16.msrb.mxu0 %v4114_v56 }
 0x1c7   :  { %v5208_v27 = vpop.permute.xlu1 %798 }
 0x1c8   :  { %4321 = vset.pattern.permute.xlu2 %v4791_v29  ;;  %v763_v6 = vpop.permute.xlu0 %762 }
 0x1c9   :  { %918 = vperm.xlu2 %4321, %v5105_v11   ;;  %505 = vmatpush.bf16.msrb.mxu2 %v3383_v38  ;;  %v4151_v38 = vld [vmem:[%s5655_s3 + $0x1f8] sm:$0xff] }
 0x1ca   :  { %1747 = vmatpush.bf16.msrb.mxu0 %v4113_v19 }
 0x1cb   :  { %4319 = vset.pattern.permute.xlu1 %v4790_v20 }
 0x1cc   :  { %950 = vperm.xlu1 %4319, %v5090_v3   ;;  %v5224_v3 = vpop.permute.xlu2 %721 }
 0x1cd   :  { %506 = vmatpush.bf16.msrb.mxu2 %v3375_v40 }
 0x1ce   :  { %1748 = vmatpush.bf16.msrb.mxu0 %v4112_v60  ;;  %v4140_v60 = vld [vmem:[%s5655_s3 + $0x1a0] sm:$0xff] }
 0x1cf   :  { %3456 = vmatmul.msk.bf16.gmra.mxu0 %vm681_vm3, %v4087_v28 }
 0x1d0   :  { %507 = vmatmul.bf16.vlgmr.msrb.gmra.mxu2 %v5046_v48 }
 0x1d1   :  { %4322 = vset.pattern.permute.xlu2 %v4790_v20  ;;  %v5222_v41 = vpop.permute.xlu1 %850  ;;  %v835_v24 = vpop.permute.xlu0 %834 }
 0x1d2   :  { %954 = vperm.xlu2 %4322, %v5105_v11   ;;  %1837 = vmatpush.bf16.msra.mxu0 %v4151_v38 }
 0x1d4   :  { %958 = vperm.xlu1 %4319, %v5065_v57   ;;  %v5233_v43 = vpop.permute.xlu2 %814 }
 0x1da   :  { %4323 = vset.pattern.permute.xlu2 %v4791_v29  ;;  %v5304_v28 = vpop.permute.xlu0 %778 }
 0x1db   :  { %922 = vperm.xlu2 %4323, %v5065_v57   ;;  %v5231_v42 = vpop.permute.xlu1 %802 }
 0x1dc   :  { %4326 = vset.pattern.permute.xlu1 %v4793_v62  ;;  %v5242_v29 = vpop.permute.xlu2 %741 }
 0x1dd   :  { %882 = vperm.xlu1 %4326, %v5105_v11  }
 0x1e0   :  { %512 = vmatmul.bf16.gmra.mxu2 %v5050_v50  ;;  %v4095_v50 = vld [vmem:[%s5655_s3 + $0x38] sm:$0xff] }
 0x1e1   :  { %1669 = vmatpush.bf16.msrb.mxu1 %v4095_v50 }
 0x1e2   :  { %v767_v39 = vpop.permute.xlu0 %766 }
 0x1e3   :  { %4325 = vset.pattern.permute.xlu2 %v4790_v20 }
 0x1e4   :  { %962 = vperm.xlu2 %4325, %v5092_v4   ;;  %v5239_v48 = vpop.permute.xlu1 %838  ;;  %v5250_v44 = vpop.permute.xlu2 %726 }
 0x1e5   :  { %4327 = vset.pattern.permute.xlu1 %v4792_v30 }
 0x1e6   :  { %990 = vperm.xlu1 %4327, %v5105_v11   ;;  %v4103_v11 = vld [vmem:[%s5655_s3 + $0x78] sm:$0xff] }
 0x1e7   :  { %1693 = vmatpush.bf16.msra.mxu2 %v4103_v11 }
 0x1eb   :  { %1694 = vmatpush.bf16.msra.mxu2 %v4102_v47  ;;  %v4134_v47 = vld [vmem:[%s5655_s3 + $0x170] sm:$0xff] }
 0x1ec   :  { %4329 = vset.pattern.permute.xlu2 %v4793_v62 }
 0x1ed   :  { %890 = vperm.xlu2 %4329, %v5092_v4   ;;  %v5248_v20 = vpop.permute.xlu1 %782 }
 0x1ee   :  { %4328 = vset.pattern.permute.xlu1 %v4793_v62  ;;  %v4101_v62 = vld [vmem:[%s5655_s3 + $0x68] sm:$0xff] }
 0x1ef   :  { %886 = vperm.xlu1 %4328, %v5065_v57   ;;  %v4094_v57 = vld [vmem:[%s5655_s3 + $0x30] sm:$0xff]  ;;  %1695 = vmatpush.bf16.msra.mxu2 %v4101_v62 }
 0x1f0   :  { %1670 = vmatpush.bf16.msrb.mxu1 %v4094_v57  ;;  %v4126_v57 = vld [vmem:[%s5655_s3 + $0x130] sm:$0xff] }
 0x1f3   :  { %1696 = vmatpush.bf16.msra.mxu2 %v4100_v8  ;;  %v4141_v8 = vld [vmem:[%s5655_s3 + $0x1a8] sm:$0xff] }
 0x1f4   :  { %1671 = vmatpush.bf16.msrb.mxu1 %v4093_v61 }
 0x1f6   :  { %v5260_v49 = vpop.permute.xlu1 %818 }
 0x1f7   :  { %4331 = vset.pattern.permute.xlu1 %v4792_v30  ;;  %v4110_v30 = vld [vmem:[%s5655_s3 + $0xb0] sm:$0xff]  ;;  %1697 = vmatpush.bf16.msra.mxu2 %v4099_v14 }
 0x1f8   :  { %998 = vperm.xlu1 %4331, %v5092_v4   ;;  %v5262_v4 = vpop.permute.xlu2 %854  ;;  %1718 = vmatpush.bf16.msra.mxu3 %v4110_v30  ;;  %v4142_v30 = vld [vmem:[%s5655_s3 + $0x1b0] sm:$0xff] }
 0x1f9   :  { %1672 = vmatpush.bf16.msrb.mxu1 %v4092_v5  ;;  %v4133_v5 = vld [vmem:[%s5655_s3 + $0x168] sm:$0xff] }
 0x1fb   :  { %1698 = vmatpush.bf16.msra.mxu2 %v4098_v1 }
 0x1fc   :  { %1719 = vmatpush.bf16.msra.mxu3 %v4109_v63 }
 0x1fd   :  { %1673 = vmatpush.bf16.msrb.mxu1 %v4091_v12 }
 0x1ff   :  { %v5270_v2 = vpop.permute.xlu1 %731  ;;  %1699 = vmatpush.bf16.msra.mxu2 %v4097_v17 }
 0x200   :  { %v5276_v10 = vpop.permute.xlu2 %770  ;;  %1720 = vmatpush.bf16.msra.mxu3 %v4108_v53 }
 0x201   :  { %1674 = vmatpush.bf16.msrb.mxu1 %v4090_v59 }
 0x203   :  { %1700 = vmatpush.bf16.msra.mxu2 %v4096_v22  ;;  %v4124_v22 = vld [vmem:[%s5655_s3 + $0x120] sm:$0xff] }
 0x204   :  { %1721 = vmatpush.bf16.msra.mxu3 %v4107_v15  ;;  %v4149_v15 = vld [vmem:[%s5655_s3 + $0x1e8] sm:$0xff] }
 0x205   :  { %1675 = vmatpush.bf16.msrb.mxu1 %v4089_v16 }
 0x207   :  { %1789 = vmatpush.bf16.msrb.mxu2 %v4135_v36 }
 0x208   :  { %v5284_v58 = vpop.permute.xlu1 %842  ;;  %1722 = vmatpush.bf16.msra.mxu3 %v4106_v54  ;;  %v5288_v13 = vpop.permute.xlu2 %806 }
 0x209   :  { %1676 = vmatpush.bf16.msrb.mxu1 %v4088_v21 }
 0x20b   :  { %1790 = vmatpush.bf16.msrb.mxu2 %v4134_v47  ;;  %v4147_v47 = vld [vmem:[%s5655_s3 + $0x1d8] sm:$0xff] }
 0x20c   :  { %1723 = vmatpush.bf16.msra.mxu3 %v4105_v18 }
 0x20d   :  { %1765 = vmatpush.bf16.msra.mxu1 %v4127_v35 }
 0x20f   :  { %1791 = vmatpush.bf16.msrb.mxu2 %v4133_v5 }
 0x210   :  { %1724 = vmatpush.bf16.msra.mxu3 %v4104_v55  ;;  %v5300_v25 = vpop.permute.xlu2 %910  ;;  %v4132_v55 = vld [vmem:[%s5655_s3 + $0x160] sm:$0xff] }
 0x211   :  { %v5298_v23 = vpop.permute.xlu1 %774  ;;  %1766 = vmatpush.bf16.msra.mxu1 %v4126_v57 }
 0x213   :  { %1792 = vmatpush.bf16.msrb.mxu2 %v4132_v55 }
 0x214   :  { %1813 = vmatpush.bf16.msrb.mxu3 %v4143_v37 }
 0x215   :  { %1767 = vmatpush.bf16.msra.mxu1 %v4125_v0 }
 0x218   :  { %v5306_v31 = vpop.permute.xlu2 %736  ;;  %1814 = vmatpush.bf16.msrb.mxu3 %v4142_v30 }
 0x219   :  { %1768 = vmatpush.bf16.msra.mxu1 %v4124_v22 }
 0x21a   :  { %v5302_v26 = vpop.permute.xlu1 %906 }
 0x21c   :  { %1815 = vmatpush.bf16.msrb.mxu3 %v4141_v8 }
 0x220   :  { %v5318_v50 = vpop.permute.xlu2 %846  ;;  %1816 = vmatpush.bf16.msrb.mxu3 %v4140_v60 }
 0x223   :  { %v5310_v34 = vpop.permute.xlu1 %946 }
 0x22c   :  { %v5308_v33 = vpop.f32.mrf.mxu0  ;;  %v5341_v52 = vpop.permute.xlu1 %874 }
 0x22d   :  { %v749_v40 = vmul.f32 %v5224_v3, %v5308_v33  ;;  %v785_v11 = vmul.f32 %v763_v6, %v5308_v33  ;;  %v821_v45 = vmul.f32 %v5208_v27, %v5308_v33  ;;  %v857_v46 = vmul.f32 %v835_v24, %v5308_v33  ;;  %v4150_v3 = vld [vmem:[%s5655_s3 + $0x1f0] sm:$0xff]  ;;  %v5348_v24 = vpop.permute.xlu2 %870 }
 0x22e   :  { %1838 = vmatpush.bf16.msra.mxu0 %v4150_v3 }
 0x22f   :  { %v755_v51 = vpack.c.bf16 %v749_v40, %v749_v40  ;;  %v791_v62 = vpack.c.bf16 %v785_v11, %v785_v11  ;;  %v827_v63 = vpack.c.bf16 %v821_v45, %v821_v45  ;;  %v863_v27 = vpack.c.bf16 %v857_v46, %v857_v46  ;;  %v4123_v11 = vld [vmem:[%s5655_s3 + $0x118] sm:$0xff] }
 0x230   :  { %v4131_v45 = vld [vmem:[%s5655_s3 + $0x158] sm:$0xff]  ;;  %1769 = vmatpush.bf16.msra.mxu1 %v4123_v11 }
 0x231   :  { %v1037_v6 = vunpack.c.l.b16 %v791_v62  ;;  %v1055_v16 = vunpack.c.l.b16 %v827_v63  ;;  %v1073_v17 = vunpack.c.l.b16 %v863_v27  ;;  %v4139_v46 = vld [vmem:[%s5655_s3 + $0x198] sm:$0xff]  ;;  %1793 = vmatpush.bf16.msrb.mxu2 %v4131_v45  ;;  %v4122_v63 = vld [vmem:[%s5655_s3 + $0x110] sm:$0xff]  ;;  %v4136_v45 = vld [vmem:[%s5655_s3 + $0x180] sm:$0xff] }
 0x232   :  { %1839 = vmatpush.bf16.msra.mxu0 %v4149_v15  ;;  %1817 = vmatpush.bf16.msrb.mxu3 %v4139_v46  ;;  %v4130_v27 = vld [vmem:[%s5655_s3 + $0x150] sm:$0xff]  ;;  %v4144_v46 = vld [vmem:[%s5655_s3 + $0x1c0] sm:$0xff] }
 0x234   :  { %v5328_v61 = vpop.f32.mrf.mxu0  ;;  %1770 = vmatpush.bf16.msra.mxu1 %v4122_v63 }
 0x235   :  { %v750_v53 = vmul.f32 %v5250_v44, %v5328_v61  ;;  %v786_v9 = vmul.f32 %v767_v39, %v5328_v61  ;;  %v822_v12 = vmul.f32 %v5231_v42, %v5328_v61  ;;  %v858_v14 = vmul.f32 %v5239_v48, %v5328_v61  ;;  %v5343_v42 = vpop.permute.xlu0 %746  ;;  %v4148_v39 = vld [vmem:[%s5655_s3 + $0x1e0] sm:$0xff]  ;;  %v5365_v62 = vpop.permute.xlu1 %914  ;;  %1794 = vmatpush.bf16.msrb.mxu2 %v4130_v27 }
 0x236   :  { %v1019_v44 = vunpack.c.l.b16 %v755_v51  ;;  %1840 = vmatpush.bf16.msra.mxu0 %v4148_v39  ;;  %v5371_v8 = vpop.permute.xlu2 %978 }
 0x237   :  { %v756_v59 = vpack.c.bf16 %v750_v53, %v750_v53  ;;  %v792_v1 = vpack.c.bf16 %v786_v9, %v786_v9  ;;  %v828_v54 = vpack.c.bf16 %v822_v12, %v822_v12  ;;  %v864_v56 = vpack.c.bf16 %v858_v14, %v858_v14 }
 0x239   :  { %v1020_v48 = vunpack.c.l.b16 %v756_v59  ;;  %v1038_v18 = vunpack.c.l.b16 %v792_v1  ;;  %v1056_v19 = vunpack.c.l.b16 %v828_v54  ;;  %v1074_v21 = vunpack.c.l.b16 %v864_v56  ;;  %v4121_v1 = vld [vmem:[%s5655_s3 + $0x108] sm:$0xff] }
 0x23a   :  { %1841 = vmatpush.bf16.msra.mxu0 %v4147_v47  ;;  %v4129_v54 = vld [vmem:[%s5655_s3 + $0x148] sm:$0xff]  ;;  %1771 = vmatpush.bf16.msra.mxu1 %v4121_v1 }
 0x23b   :  { %v1025_v35 = vpack.c.b16 %v1020_v48, %v1019_v44  ;;  %v1043_v36 = vpack.c.b16 %v1038_v18, %v1037_v6  ;;  %v1061_v37 = vpack.c.b16 %v1056_v19, %v1055_v16  ;;  %v1079_v38 = vpack.c.b16 %v1074_v21, %v1073_v17  ;;  %v4137_v56 = vld [vmem:[%s5655_s3 + $0x188] sm:$0xff]  ;;  %1795 = vmatpush.bf16.msrb.mxu2 %v4129_v54 }
 0x23c   :  { %v5351_v40 = vpop.f32.mrf.mxu0 }
 0x23d   :  { %1677 = vmatmul.bf16.vlgmr.msrb.gmra.mxu1 %v1025_v35  ;;  %1701 = vmatmul.bf16.vlgmr.msra.gmra.mxu2 %v1043_v36  ;;  %v751_v57 = vmul.f32 %v5270_v2, %v5351_v40  ;;  %v787_v30 = vmul.f32 %v5276_v10, %v5351_v40  ;;  %v823_v3 = vmul.f32 %v5288_v13, %v5351_v40  ;;  %v4138_v2 = vld [vmem:[%s5655_s3 + $0x190] sm:$0xff]  ;;  %v811_v0 = vpop.permute.xlu0 %810  ;;  %v4128_v35 = vld [vmem:[%s5655_s3 + $0x140] sm:$0xff] }
 0x23e   :  { %1725 = vmatmul.bf16.vlgmr.msra.gmra.mxu3 %v1061_v37  ;;  %1749 = vmatmul.bf16.vlgmr.msrb.gmra.mxu0 %v1079_v38  ;;  %v859_v51 = vmul.f32 %v5284_v58, %v5351_v40  ;;  %v4146_v10 = vld [vmem:[%s5655_s3 + $0x1d0] sm:$0xff]  ;;  %v5388_v36 = vpop.permute.xlu1 %950  ;;  %v5394_v47 = vpop.permute.xlu2 %986 }
 0x23f   :  { %v757_v5 = vpack.c.bf16 %v751_v57, %v751_v57  ;;  %v793_v58 = vpack.c.bf16 %v787_v30, %v787_v30  ;;  %v829_v53 = vpack.c.bf16 %v823_v3, %v823_v3  ;;  %1818 = vmatpush.bf16.msrb.mxu3 %v4138_v2  ;;  %1842 = vmatpush.bf16.msra.mxu0 %v4146_v10 }
 0x240   :  { %v865_v9 = vpack.c.bf16 %v859_v51, %v859_v51  ;;  %1796 = vmatpush.bf16.msrb.mxu2 %v4128_v35 }
 0x241   :  { %v1021_v48 = vunpack.c.l.b16 %v757_v5  ;;  %v1039_v18 = vunpack.c.l.b16 %v793_v58 }
 0x242   :  { %v1075_v19 = vunpack.c.l.b16 %v865_v9 }
 0x243   :  { %1819 = vmatpush.bf16.msrb.mxu3 %v4137_v56 }
 0x244   :  { %v5373_v13 = vpop.f32.mrf.mxu0 }
 0x245   :  { %v752_v12 = vmul.f32 %v5306_v31, %v5373_v13  ;;  %v788_v14 = vmul.f32 %v5298_v23, %v5373_v13  ;;  %v824_v15 = vmul.f32 %v811_v0, %v5373_v13  ;;  %v860_v59 = vmul.f32 %v5318_v50, %v5373_v13  ;;  %v4145_v31 = vld [vmem:[%s5655_s3 + $0x1c8] sm:$0xff]  ;;  %v4120_v50 = vld [vmem:[%s5655_s3 + $0x100] sm:$0xff]  ;;  %v943_v10 = vpop.permute.xlu0 %942 }
 0x246   :  { %v1057_v23 = vunpack.c.l.b16 %v829_v53  ;;  %1843 = vmatpush.bf16.msra.mxu0 %v4145_v31  ;;  %1772 = vmatpush.bf16.msra.mxu1 %v4120_v50  ;;  %v5406_v58 = vpop.permute.xlu1 %958  ;;  %v930_v50 = vmul.f32 %v5300_v25, %v5328_v61 }
 0x247   :  { %v758_v44 = vpack.c.bf16 %v752_v12, %v752_v12  ;;  %v794_v6 = vpack.c.bf16 %v788_v14, %v788_v14  ;;  %v830_v16 = vpack.c.bf16 %v824_v15, %v824_v15  ;;  %v866_v17 = vpack.c.bf16 %v860_v59, %v860_v59  ;;  %1820 = vmatpush.bf16.msrb.mxu3 %v4136_v45  ;;  %v919_v59 = vpop.permute.xlu2 %918 }
 0x249   :  { %v1022_v21 = vunpack.c.l.b16 %v758_v44  ;;  %v1040_v22 = vunpack.c.l.b16 %v794_v6  ;;  %v1058_v55 = vunpack.c.l.b16 %v830_v16  ;;  %v1076_v60 = vunpack.c.l.b16 %v866_v17 }
 0x24a   :  { %1844 = vmatpush.bf16.msra.mxu0 %v4144_v46 }
 0x24b   :  { %v1026_v37 = vpack.c.b16 %v1022_v21, %v1021_v48  ;;  %v1044_v38 = vpack.c.b16 %v1040_v22, %v1039_v18  ;;  %v1062_v39 = vpack.c.b16 %v1058_v55, %v1057_v23  ;;  %v1080_v11 = vpack.c.b16 %v1076_v60, %v1075_v19 }
 0x24c   :  { %v5392_v57 = vpop.f32.mrf.mxu0  ;;  %v894_v19 = vmul.f32 %v5341_v52, %v5328_v61  ;;  %v966_v21 = vmul.f32 %v5310_v34, %v5328_v61  ;;  %v893_v55 = vmul.f32 %v5348_v24, %v5308_v33  ;;  %v929_v60 = vmul.f32 %v5302_v26, %v5308_v33 }
 0x24d   :  { %1682 = vmatmul.bf16.gmra.mxu1 %v1026_v37  ;;  %1706 = vmatmul.bf16.gmra.mxu2 %v1044_v38  ;;  %v753_v30 = vmul.f32 %v5242_v29, %v5392_v57  ;;  %v789_v3 = vmul.f32 %v5304_v28, %v5392_v57  ;;  %v825_v51 = vmul.f32 %v5233_v43, %v5392_v57 }
 0x24e   :  { %1730 = vmatmul.bf16.gmra.mxu3 %v1062_v39  ;;  %1754 = vmatmul.bf16.gmra.mxu0 %v1080_v11  ;;  %v861_v63 = vmul.f32 %v5222_v41, %v5392_v57  ;;  %v965_v37 = vmul.f32 %v943_v10, %v5308_v33  ;;  %v1001_v52 = vmul.f32 %v5371_v8, %v5308_v33 }
 0x24f   :  { %v759_v2 = vpack.c.bf16 %v753_v30, %v753_v30  ;;  %v795_v0 = vpack.c.bf16 %v789_v3, %v789_v3  ;;  %v831_v5 = vpack.c.bf16 %v825_v51, %v825_v51  ;;  %v883_v23 = vpop.permute.xlu1 %882  ;;  %v955_v35 = vpop.permute.xlu2 %954  ;;  %v900_v38 = vpack.c.bf16 %v894_v19, %v894_v19 }
 0x250   :  { %v867_v53 = vpack.c.bf16 %v861_v63, %v861_v63  ;;  %v936_v39 = vpack.c.bf16 %v930_v50, %v930_v50  ;;  %v972_v25 = vpack.c.bf16 %v966_v21, %v966_v21  ;;  %v899_v45 = vpack.c.bf16 %v893_v55, %v893_v55 }
 0x251   :  { %v1023_v1 = vunpack.c.l.b16 %v759_v2  ;;  %v1041_v54 = vunpack.c.l.b16 %v795_v0  ;;  %v935_v34 = vpack.c.bf16 %v929_v60, %v929_v60  ;;  %v971_v46 = vpack.c.bf16 %v965_v37, %v965_v37 }
 0x252   :  { %v1077_v16 = vunpack.c.l.b16 %v867_v53  ;;  %v1092_v24 = vunpack.c.l.b16 %v900_v38  ;;  %v1110_v3 = vunpack.c.l.b16 %v936_v39  ;;  %v1128_v51 = vunpack.c.l.b16 %v972_v25 }
 0x253   :  { %v5416_v18 = vpop.f32.mrf.mxu2  ;;  %v1091_v2 = vunpack.c.l.b16 %v899_v45  ;;  %v1109_v0 = vunpack.c.l.b16 %v935_v34 }
 0x254   :  { %v5404_v27 = vpop.f32.mrf.mxu0 }
 0x255   :  { %v754_v29 = vmul.f32 %v5343_v42, %v5404_v27  ;;  %v790_v28 = vmul.f32 %v5248_v20, %v5404_v27  ;;  %v826_v43 = vmul.f32 %v5260_v49, %v5404_v27  ;;  %v862_v41 = vmul.f32 %v5262_v4, %v5404_v27  ;;  %v983_v4 = vpop.permute.xlu0 %982 }
 0x256   :  { %v1059_v42 = vunpack.c.l.b16 %v831_v5  ;;  %v1002_v22 = vmul.f32 %v983_v4, %v5328_v61  ;;  %v1007_v61 = vpack.c.bf16 %v1001_v52, %v1001_v52  ;;  %v1127_v5 = vunpack.c.l.b16 %v971_v46 }
 0x257   :  { %v760_v9 = vpack.c.bf16 %v754_v29, %v754_v29  ;;  %v796_v12 = vpack.c.bf16 %v790_v28, %v790_v28  ;;  %v832_v14 = vpack.c.bf16 %v826_v43, %v826_v43  ;;  %v868_v15 = vpack.c.bf16 %v862_v41, %v862_v41  ;;  %v923_v29 = vpop.permute.xlu2 %922 }
 0x258   :  { %v1008_v11 = vpack.c.bf16 %v1002_v22, %v1002_v22  ;;  %v991_v63 = vpop.permute.xlu1 %990  ;;  %v1145_v10 = vunpack.c.l.b16 %v1007_v61  ;;  %v1097_v33 = vpack.c.b16 %v1092_v24, %v1091_v2  ;;  %v1115_v8 = vpack.c.b16 %v1110_v3, %v1109_v0 }
 0x259   :  { %v1024_v56 = vunpack.c.l.b16 %v760_v9  ;;  %v1042_v44 = vunpack.c.l.b16 %v796_v12  ;;  %v1060_v6 = vunpack.c.l.b16 %v832_v14  ;;  %v1078_v20 = vunpack.c.l.b16 %v868_v15 }
 0x25a   :  { %v1146_v26 = vunpack.c.l.b16 %v1008_v11  ;;  %v1133_v28 = vpack.c.b16 %v1128_v51, %v1127_v5  ;;  %v896_v9 = vmul.f32 %v883_v23, %v5373_v13  ;;  %v932_v12 = vmul.f32 %v919_v59, %v5373_v13 }
 0x25b   :  { %v1027_v17 = vpack.c.b16 %v1024_v56, %v1023_v1  ;;  %v1045_v31 = vpack.c.b16 %v1042_v44, %v1041_v54  ;;  %v1063_v49 = vpack.c.b16 %v1060_v6, %v1059_v42  ;;  %v1081_v48 = vpack.c.b16 %v1078_v20, %v1077_v16  ;;  %v5432_v30 = vpop.f32.mrf.mxu2 }
 0x25c   :  { %v1151_v43 = vpack.c.b16 %v1146_v26, %v1145_v10  ;;  %v1004_v14 = vmul.f32 %v991_v63, %v5373_v13  ;;  %v968_v15 = vmul.f32 %v955_v35, %v5373_v13  ;;  %v931_v54 = vmul.f32 %v5365_v62, %v5351_v40 }
 0x25d   :  { %1687 = vmatmul.bf16.gmra.mxu1 %v1027_v17  ;;  %1711 = vmatmul.bf16.gmra.mxu2 %v1045_v31  ;;  %v879_v41 = vpop.permute.xlu0 %878  ;;  %v967_v56 = vmul.f32 %v5388_v36, %v5351_v40  ;;  %v1003_v44 = vmul.f32 %v5394_v47, %v5351_v40  ;;  %v902_v42 = vpack.c.bf16 %v896_v9, %v896_v9 }
 0x25e   :  { %1735 = vmatmul.bf16.gmra.mxu3 %v1063_v49  ;;  %1759 = vmatmul.bf16.gmra.mxu0 %v1081_v48  ;;  %v895_v1 = vmul.f32 %v879_v41, %v5351_v40  ;;  %v938_v16 = vpack.c.bf16 %v932_v12, %v932_v12  ;;  %v1010_v20 = vpack.c.bf16 %v1004_v14, %v1004_v14 }
 0x25f   :  { %v974_v59 = vpack.c.bf16 %v968_v15, %v968_v15  ;;  %v937_v31 = vpack.c.bf16 %v931_v54, %v931_v54  ;;  %v973_v49 = vpack.c.bf16 %v967_v56, %v967_v56  ;;  %v963_v13 = vpop.permute.xlu2 %962  ;;  %v1009_v48 = vpack.c.bf16 %v1003_v44, %v1003_v44 }
 0x260   :  { %v901_v17 = vpack.c.bf16 %v895_v1, %v895_v1  ;;  %v1094_v19 = vunpack.c.l.b16 %v902_v42  ;;  %v1112_v62 = vunpack.c.l.b16 %v938_v16  ;;  %v1148_v50 = vunpack.c.l.b16 %v1010_v20 }
 0x261   :  { %v887_v6 = vpop.permute.xlu1 %886  ;;  %v1130_v21 = vunpack.c.l.b16 %v974_v59  ;;  %v1111_v22 = vunpack.c.l.b16 %v937_v31  ;;  %v1129_v55 = vunpack.c.l.b16 %v973_v49  ;;  %v1147_v40 = vunpack.c.l.b16 %v1009_v48 }
 0x262   :  { %v1093_v36 = vunpack.c.l.b16 %v901_v17  ;;  %v897_v38 = vmul.f32 %v887_v6, %v5392_v57  ;;  %v970_v45 = vmul.f32 %v963_v13, %v5404_v27  ;;  %v933_v61 = vmul.f32 %v923_v29, %v5392_v57 }
 0x263   :  { %v5434_v53 = vpop.f32.mrf.mxu2  ;;  %v1116_v60 = vpack.c.b16 %v1112_v62, %v1111_v22  ;;  %v1134_v35 = vpack.c.b16 %v1130_v21, %v1129_v55  ;;  %v1152_v37 = vpack.c.b16 %v1148_v50, %v1147_v40  ;;  %v969_v24 = vmul.f32 %v5406_v58, %v5392_v57 }
 0x264   :  { %v1098_v47 = vpack.c.b16 %v1094_v19, %v1093_v36  ;;  %v903_v51 = vpack.c.bf16 %v897_v38, %v897_v38  ;;  %v976_v2 = vpack.c.bf16 %v970_v45, %v970_v45  ;;  %v939_v5 = vpack.c.bf16 %v933_v61, %v933_v61 }
 0x265   :  { %v927_v23 = vpop.permute.xlu0 %926  ;;  %v975_v10 = vpack.c.bf16 %v969_v24, %v969_v24 }
 0x266   :  { %v934_v39 = vmul.f32 %v927_v23, %v5404_v27  ;;  %v1132_v41 = vunpack.c.l.b16 %v976_v2  ;;  %v1113_v9 = vunpack.c.l.b16 %v939_v5 }
 0x267   :  { %v891_v25 = vpop.permute.xlu2 %890  ;;  %v1131_v29 = vunpack.c.l.b16 %v975_v10 }
 0x268   :  { %v898_v46 = vmul.f32 %v891_v25, %v5404_v27  ;;  %v940_v26 = vpack.c.bf16 %v934_v39, %v934_v39 }
 0x269   :  { %v1135_v15 = vpack.c.b16 %v1132_v41, %v1131_v29 }
 0x26a   :  { %v999_v52 = vpop.permute.xlu1 %998  ;;  %v904_v0 = vpack.c.bf16 %v898_v46, %v898_v46 }
 0x26b   :  { %v515_v4 = vpop.f32.mrf.mxu2  ;;  %v1006_v11 = vmul.f32 %v999_v52, %v5404_v27 }
 0x26c   :  { %v1096_v27 = vunpack.c.l.b16 %v904_v0 }
 0x26d   :  { %1773 = vmatmul.bf16.vlgmr.msra.gmra.mxu1 %v1097_v33  ;;  %1797 = vmatmul.bf16.vlgmr.msrb.gmra.mxu2 %v1115_v8  ;;  %v995_v34 = vpop.permute.xlu0 %994  ;;  %v1012_v63 = vpack.c.bf16 %v1006_v11, %v1006_v11  ;;  %v1095_v8 = vunpack.c.l.b16 %v903_v51 }
 0x26e   :  { %1821 = vmatmul.bf16.vlgmr.msrb.gmra.mxu3 %v1133_v28  ;;  %1845 = vmatmul.bf16.vlgmr.msra.gmra.mxu0 %v1151_v43  ;;  %v1005_v3 = vmul.f32 %v995_v34, %v5392_v57  ;;  %v1114_v28 = vunpack.c.l.b16 %v940_v26 }
 0x26f   :  { %v1150_v43 = vunpack.c.l.b16 %v1012_v63  ;;  %v1099_v14 = vpack.c.b16 %v1096_v27, %v1095_v8 }
 0x270   :  { %v1011_v33 = vpack.c.bf16 %v1005_v3, %v1005_v3  ;;  %v1117_v58 = vpack.c.b16 %v1114_v28, %v1113_v9 }
 0x272   :  { %v1149_v12 = vunpack.c.l.b16 %v1011_v33 }
 0x274   :  { %v1153_v57 = vpack.c.b16 %v1150_v43, %v1149_v12 }
 0x27d   :  { %1778 = vmatmul.bf16.gmra.mxu1 %v1098_v47  ;;  %1802 = vmatmul.bf16.gmra.mxu2 %v1116_v60 }
 0x27e   :  { %1826 = vmatmul.bf16.gmra.mxu3 %v1134_v35  ;;  %1850 = vmatmul.bf16.gmra.mxu0 %v1152_v37 }
 0x28d   :  { %1783 = vmatmul.bf16.gmra.mxu1 %v1099_v14  ;;  %1807 = vmatmul.bf16.gmra.mxu2 %v1117_v58 }
 0x28e   :  { %1831 = vmatmul.bf16.gmra.mxu3 %v1135_v15  ;;  %1855 = vmatmul.bf16.gmra.mxu0 %v1153_v57 }
 0x2ba   :  { %v1678_v1 = vpop.f32.mrf.mxu1 }
 0x2bb   :  { %v1750_v54 = vpop.f32.mrf.mxu0 }
 0x2c0   :  { %v1702_v56 = vpop.f32.mrf.mxu2 }
 0x2c1   :  { %v1703_v44 = vadd.f32 %v1702_v56, %v1678_v1  ;;  %v1726_v42 = vpop.f32.mrf.mxu3 }
 0x2c2   :  { %v1680_v6 = vpop.f32.mrf.mxu1 }
 0x2c3   :  { %v1727_v16 = vadd.f32 %v1726_v42, %v1703_v44  ;;  %v1752_v20 = vpop.f32.mrf.mxu0 }
 0x2c5   :  { %v1751_v59 = vadd.f32 %v1750_v54, %v1727_v16 }
 0x2c8   :  { %v1704_v17 = vpop.f32.mrf.mxu2 }
 0x2c9   :  { %v1705_v31 = vadd.f32 %v1704_v17, %v1680_v6  ;;  %v1728_v49 = vpop.f32.mrf.mxu3 }
 0x2ca   :  { %v1683_v13 = vpop.f32.mrf.mxu1 }
 0x2cb   :  { %v1729_v48 = vadd.f32 %v1728_v49, %v1705_v31  ;;  %v1755_v4 = vpop.f32.mrf.mxu0 }
 0x2cd   :  { %v1753_v23 = vadd.f32 %v1752_v20, %v1729_v48 }
 0x2d0   :  { %v1707_v19 = vpop.f32.mrf.mxu2 }
 0x2d1   :  { %v1708_v62 = vadd.f32 %v1707_v19, %v1683_v13  ;;  %v1731_v50 = vpop.f32.mrf.mxu3 }
 0x2d2   :  { %v1685_v21 = vpop.f32.mrf.mxu1 }
 0x2d3   :  { %v1732_v36 = vadd.f32 %v1731_v50, %v1708_v62  ;;  %v1757_v22 = vpop.f32.mrf.mxu0 }
 0x2d5   :  { %v1756_v55 = vadd.f32 %v1755_v4, %v1732_v36 }
 0x2d8   :  { %v1709_v40 = vpop.f32.mrf.mxu2 }
 0x2d9   :  { %v1733_v47 = vpop.f32.mrf.mxu3  ;;  %v1710_v54 = vadd.f32 %v1709_v40, %v1685_v21 }
 0x2da   :  { %v1688_v60 = vpop.f32.mrf.mxu1 }
 0x2db   :  { %v1760_v35 = vpop.f32.mrf.mxu0  ;;  %v1734_v42 = vadd.f32 %v1733_v47, %v1710_v54 }
 0x2dd   :  { %v1758_v31 = vadd.f32 %v1757_v22, %v1734_v42  ;;  %v4160_v22 = vld [vmem:[%s5656_s8 + $0x38] sm:$0xff] }
 0x2de   :  { %1990 = vmatpush.bf16.msra.mxu2 %v4160_v22 }
 0x2e0   :  { %v1712_v37 = vpop.f32.mrf.mxu2 }
 0x2e1   :  { %v1736_v52 = vpop.f32.mrf.mxu3  ;;  %v1713_v15 = vadd.f32 %v1712_v37, %v1688_v60 }
 0x2e2   :  { %v1690_v38 = vpop.f32.mrf.mxu1 }
 0x2e3   :  { %v1762_v39 = vpop.f32.mrf.mxu0  ;;  %v1737_v56 = vadd.f32 %v1736_v52, %v1713_v15 }
 0x2e5   :  { %v1761_v20 = vadd.f32 %v1760_v35, %v1737_v56 }
 0x2e8   :  { %v1714_v25 = vpop.f32.mrf.mxu2 }
 0x2e9   :  { %v1738_v11 = vpop.f32.mrf.mxu3  ;;  %v1715_v44 = vadd.f32 %v1714_v25, %v1690_v38 }
 0x2ea   :  { %v1774_v45 = vpop.f32.mrf.mxu1 }
 0x2eb   :  { %v1846_v34 = vpop.f32.mrf.mxu0  ;;  %v1775_v3 = vadd.f32 %v1774_v45, %v1751_v59  ;;  %v1739_v16 = vadd.f32 %v1738_v11, %v1715_v44 }
 0x2f0   :  { %v1798_v46 = vpop.f32.mrf.mxu2 }
 0x2f1   :  { %v1822_v61 = vpop.f32.mrf.mxu3  ;;  %v1799_v26 = vadd.f32 %v1798_v46, %v1775_v3  ;;  %v4158_v46 = vld [vmem:[%s5656_s8 + $0x28] sm:$0xff]  ;;  %v4152_v3 = vld [vmem:[%s5657_s20] sm:$0xff] }
 0x2f2   :  { %v1776_v24 = vpop.f32.mrf.mxu1 }
 0x2f3   :  { %v1848_v51 = vpop.f32.mrf.mxu0  ;;  %v1777_v63 = vadd.f32 %v1776_v24, %v1753_v23  ;;  %v1823_v0 = vadd.f32 %v1822_v61, %v1799_v26  ;;  %v1763_v23 = vadd.f32 %v1762_v39, %v1739_v16  ;;  %v4157_v24 = vld [vmem:[%s5656_s8 + $0x20] sm:$0xff]  ;;  %v1863_v26 = vld [vmem:[%s5657_s20 + $0x8] sm:$0xf] }
 0x2f5   :  { %v1847_v28 = vadd.f32 %v1846_v34, %v1823_v0  ;;  %v4462_v0 = vld [vmem:[#allocation2] sm:$0x3] }
 0x2f8   :  { %v1800_v2 = vpop.f32.mrf.mxu2 }
 0x2f9   :  { %v1801_v5 = vadd.f32 %v1800_v2, %v1777_v63  ;;  %v1824_v10 = vpop.f32.mrf.mxu3  ;;  %v1872_v63 = vunpack.c.l.b16 %v1863_v26  ;;  %v4168_v26 = vld [vmem:[%s5658_s6 + $0x38] sm:$0xff] }
 0x2fa   :  { %v1779_v33 = vpop.f32.mrf.mxu1  ;;  %2121 = vmatpush.bf16.msra.mxu3 %v4168_v26 }
 0x2fb   :  { %v1825_v8 = vadd.f32 %v1824_v10, %v1801_v5  ;;  %v1851_v41 = vpop.f32.mrf.mxu0  ;;  %v1780_v19 = vadd.f32 %v1779_v33, %v1756_v55  ;;  %v4159_v55 = vld [vmem:[%s5656_s8 + $0x30] sm:$0xff]  ;;  %v1874_v2 = vpack.c.b16 %v1872_v63, %v1872_v63  ;;  %v415_v5 = vperm.slane %v4462_v0, 0  ;;  %v4332_v0 = vld [vmem:[#allocation4] ss:$0 sm:$0xff] }
 0x2fc   :  { %1991 = vmatpush.bf16.msra.mxu2 %v4159_v55  ;;  %v4167_v63 = vld [vmem:[%s5658_s6 + $0x30] sm:$0xff] }
 0x2fd   :  { %v1849_v43 = vadd.f32 %v1848_v51, %v1825_v8  ;;  %v4156_v51 = vld [vmem:[%s5656_s8 + $0x18] sm:$0xff]  ;;  %v509_v10 = vadd.f32 %v5416_v18, %v415_v5  ;;  %v511_v33 = vadd.f32 %v5432_v30, %v415_v5  ;;  %v4153_v18 = vld [vmem:[%s5656_s8] sm:$0xff] }
 0x2fe   :  { %2122 = vmatpush.bf16.msra.mxu3 %v4167_v63  ;;  %v4176_v63 = vld [vmem:[%s5659_s26 + $0x38] sm:$0xff] }
 0x2ff   :  { %v1864_v27 = vpack.c.bf16 %v1849_v43, %v1847_v28  ;;  %v3436_v8 = vmul.f32 -1.442695, %v509_v10  ;;  %v3437_v28 = vmul.f32 -1.442695, %v511_v33  ;;  %2272 = vmatpush.bf16.msrb.mxu0 %v4176_v63 }
 0x300   :  { %v1803_v9 = vpop.f32.mrf.mxu2  ;;  %1992 = vmatpush.bf16.msra.mxu2 %v4158_v46 }
 0x301   :  { %v1827_v29 = vpop.f32.mrf.mxu3  ;;  %v1804_v36 = vadd.f32 %v1803_v9, %v1780_v19  ;;  %4354 = vpow2.f32 %v3436_v8  ;;  %v4155_v9 = vld [vmem:[%s5656_s8 + $0x10] sm:$0xff]  ;;  %v4164_v8 = vld [vmem:[%s5658_s6 + $0x18] sm:$0xff] }
 0x302   :  { %v1781_v12 = vpop.f32.mrf.mxu1  ;;  %4356 = vpow2.f32 %v3437_v28 }
 0x303   :  { %v1853_v14 = vpop.f32.mrf.mxu0  ;;  %v1782_v48 = vadd.f32 %v1781_v12, %v1758_v31  ;;  %v1828_v38 = vadd.f32 %v1827_v29, %v1804_v36  ;;  %v4154_v12 = vld [vmem:[%s5656_s8 + $0x8] sm:$0xff] }
 0x304   :  { %1993 = vmatpush.bf16.msra.mxu2 %v4157_v24 }
 0x305   :  { %v1852_v34 = vadd.f32 %v1851_v41, %v1828_v38 }
 0x307   :  { %v4355_v43 = vpop.eup %4354 }
 0x308   :  { %v1805_v58 = vpop.f32.mrf.mxu2  ;;  %1994 = vmatpush.bf16.msra.mxu2 %v4156_v51  ;;  %v4357_v41 = vpop.eup %4356  ;;  %v544_v29 = vadd.f32 1.0, %v4355_v43  ;;  %v4163_v43 = vld [vmem:[%s5658_s6 + $0x10] sm:$0xff] }
 0x309   :  { %v1829_v57 = vpop.f32.mrf.mxu3  ;;  %v1806_v62 = vadd.f32 %v1805_v58, %v1782_v48 }
 0x30a   :  { %v1784_v1 = vpop.f32.mrf.mxu1  ;;  %4358 = vrcp.f32 %v544_v29  ;;  %vm552_vm5 = vweird.f32 %v544_v29  ;;  %v556_v31 = vand.u32 2147483647, %v544_v29 }
 0x30b   :  { %v1856_v17 = vpop.f32.mrf.mxu0  ;;  %v1785_v49 = vadd.f32 %v1784_v1, %v1761_v20  ;;  %v1830_v35 = vadd.f32 %v1829_v57, %v1806_v62  ;;  %v558_v20 = vand.u32 2147483648, %v544_v29 }
 0x30c   :  { %1995 = vmatpush.bf16.msra.mxu2 %v4155_v9  ;;  %vm557_vm11 = vcmp.eq.f32.partialorder %v556_v31, 8.507059e+37  ;;  %v4162_v9 = vld [vmem:[%s5658_s6 + $0x8] sm:$0xff] }
 0x30d   :  { %v1854_v39 = vadd.f32 %v1853_v14, %v1830_v35  ;;  %v545_v14 = vadd.f32 1.0, %v4357_v41 }
 0x30f   :  { %v1865_v61 = vpack.c.bf16 %v1854_v39, %v1852_v34  ;;  %4360 = vrcp.f32 %v545_v14  ;;  %vm567_vm7 = vweird.f32 %v545_v14 }
 0x310   :  { %v1808_v6 = vpop.f32.mrf.mxu2  ;;  %1996 = vmatpush.bf16.msra.mxu2 %v4154_v12  ;;  %v4359_v30 = vpop.eup %4358 }
 0x311   :  { %v1832_v59 = vpop.f32.mrf.mxu3  ;;  %v1809_v4 = vadd.f32 %v1808_v6, %v1785_v49  ;;  %v548_v1 = vmul.f32 %v4359_v30, %v544_v29  ;;  %vm553_vm6 = vweird.f32 %v4359_v30 }
 0x312   :  { %v1786_v13 = vpop.f32.mrf.mxu1  ;;  %vm554_vm9 = vmor %vm552_vm5, %vm553_vm6 }
 0x313   :  { %v1787_v50 = vadd.f32 %v1786_v13, %v1763_v23  ;;  %v1833_v40 = vadd.f32 %v1832_v59, %v1809_v4  ;;  %v1858_v52 = vpop.f32.mrf.mxu0  ;;  %v549_v56 = vsub.f32 1.0, %v548_v1  ;;  %v573_v59 = vand.u32 2147483648, %v545_v14 }
 0x314   :  { %1997 = vmatpush.bf16.msra.mxu2 %v4153_v18  ;;  %v571_v13 = vand.u32 2147483647, %v545_v14  ;;  %v559_v4 = vor.u32 1.1754944e-38, %v558_v20 }
 0x315   :  { %v1857_v25 = vadd.f32 %v1856_v17, %v1833_v40  ;;  %v4361_v15 = vpop.eup %4360  ;;  %v550_v42 = vmul.f32 %v4359_v30, %v549_v56  ;;  %v574_v19 = vor.u32 1.1754944e-38, %v573_v59 }
 0x316   :  { %v563_v54 = vmul.f32 %v4361_v15, %v545_v14  ;;  %vm568_vm8 = vweird.f32 %v4361_v15  ;;  %vm572_vm12 = vcmp.eq.f32.partialorder %v571_v13, 8.507059e+37  ;;  %v4161_v14 = vld [vmem:[%s5658_s6] sm:$0xff] }
 0x317   :  { %v551_v17 = vadd.f32 %v4359_v30, %v550_v42  ;;  %vm569_vm10 = vmor %vm567_vm7, %vm568_vm8 }
 0x318   :  { %v1810_v21 = vpop.f32.mrf.mxu2  ;;  %v564_v44 = vsub.f32 1.0, %v563_v54 }
 0x319   :  { %v1811_v47 = vadd.f32 %v1810_v21, %v1787_v50  ;;  %v1834_v60 = vpop.f32.mrf.mxu3  ;;  %v555_v62 = vsel %vm554_vm9, %v4359_v30, %v551_v17 }
 0x31a   :  { %v565_v6 = vmul.f32 %v4361_v15, %v564_v44  ;;  %v560_v36 = vsel %vm557_vm11, %v559_v4, %v555_v62 }
 0x31b   :  { %v1835_v37 = vadd.f32 %v1834_v60, %v1811_v47  ;;  %v592_v47 = vmul.f32 %v560_v36, %v509_v10 }
 0x31c   :  { %v566_v49 = vadd.f32 %v4361_v15, %v565_v6 }
 0x31d   :  { %v1859_v11 = vadd.f32 %v1858_v52, %v1835_v37 }
 0x31e   :  { %v570_v50 = vsel %vm569_vm10, %v4361_v15, %v566_v49 }
 0x31f   :  { %v1866_v45 = vpack.c.bf16 %v1859_v11, %v1857_v25  ;;  %v575_v40 = vsel %vm572_vm12, %v574_v19, %v570_v50 }
 0x320   :  { %v593_v60 = vmul.f32 %v575_v40, %v511_v33 }
 0x321   :  { %1887 = vmatpush.bf16.msrb.mxu1 %v1866_v45 }
 0x325   :  { %1888 = vmatpush.bf16.msrb.mxu1 %v1865_v61 }
 0x329   :  { %1889 = vmatpush.bf16.msrb.mxu1 %v1864_v27  ;;  %v5466_v27 = vadd.f32 %v5434_v53, %v415_v5  ;;  %v4165_v5 = vld [vmem:[%s5658_s6 + $0x20] sm:$0xff] }
 0x32b   :  { %v3438_v58 = vmul.f32 -1.442695, %v5466_v27 }
 0x32c   :  { %3717 = vmatmul.msk.bf16.vlgmr.msrb.gmra.mxu1 %vm1875_vm4, %v4152_v3 }
 0x32d   :  { %4362 = vpow2.f32 %v3438_v58 }
 0x333   :  { %v4363_v57 = vpop.eup %4362 }
 0x334   :  { %v546_v53 = vadd.f32 1.0, %v4363_v57 }
 0x336   :  { %4364 = vrcp.f32 %v546_v53  ;;  %vm582_vm13 = vweird.f32 %v546_v53  ;;  %v588_v38 = vand.u32 2147483648, %v546_v53  ;;  %v586_v55 = vand.u32 2147483647, %v546_v53 }
 0x338   :  { %v589_v39 = vor.u32 1.1754944e-38, %v588_v38 }
 0x33c   :  { %3718 = vmatmul.msk.bf16.gmra.mxu1 %vm1875_vm4, %v1874_v2  ;;  %v4365_v16 = vpop.eup %4364  ;;  %vm587_vm4 = vcmp.eq.f32.partialorder %v586_v55, 8.507059e+37  ;;  %v4166_v2 = vld [vmem:[%s5658_s6 + $0x28] sm:$0xff] }
 0x33d   :  { %v578_v48 = vmul.f32 %v4365_v16, %v546_v53  ;;  %vm583_vm14 = vweird.f32 %v4365_v16  ;;  %2123 = vmatpush.bf16.msra.mxu3 %v4166_v2  ;;  %v4175_v2 = vld [vmem:[%s5659_s26 + $0x30] sm:$0xff] }
 0x33e   :  { %vm584_vm15 = vmor %vm582_vm13, %vm583_vm14  ;;  %2273 = vmatpush.bf16.msrb.mxu0 %v4175_v2 }
 0x33f   :  { %v579_v21 = vsub.f32 1.0, %v578_v48 }
 0x341   :  { %v580_v35 = vmul.f32 %v4365_v16, %v579_v21  ;;  %2124 = vmatpush.bf16.msra.mxu3 %v4165_v5  ;;  %v4333_v5 = vld [vmem:[#allocation6] ss:$0 sm:$0xff] }
 0x343   :  { %v581_v11 = vadd.f32 %v4365_v16, %v580_v35 }
 0x345   :  { %v585_v45 = vsel %vm584_vm15, %v4365_v16, %v581_v11  ;;  %2125 = vmatpush.bf16.msra.mxu3 %v4164_v8 }
 0x346   :  { %v590_v46 = vsel %vm587_vm4, %v589_v39, %v585_v45 }
 0x347   :  { %v594_v61 = vmul.f32 %v590_v46, %v5466_v27 }
 0x349   :  { %2126 = vmatpush.bf16.msra.mxu3 %v4163_v43  ;;  %v4172_v43 = vld [vmem:[%s5659_s26 + $0x18] sm:$0xff] }
 0x34d   :  { %2127 = vmatpush.bf16.msra.mxu3 %v4162_v9 }
 0x351   :  { %2128 = vmatpush.bf16.msra.mxu3 %v4161_v14  ;;  %v4170_v14 = vld [vmem:[%s5659_s26 + $0x8] sm:$0xff] }
 0x3a9   :  { %v1891_v23 = vpop.f32.mrf.mxu1 }
 0x3aa   :  { %v5472_v52 = vadd.f32 %v1891_v23, %v592_v47 }
 0x3b1   :  { %v1893_v37 = vpop.f32.mrf.mxu1 }
 0x3b2   :  { %v5474_v22 = vadd.f32 %v1893_v37, %v593_v60 }
 0x3b4   :  { %v1937_v25 = vpack.c.bf16 %v5474_v22, %v5472_v52 }
 0x3b6   :  { %1998 = vmatmul.bf16.vlgmr.msra.gmra.mxu2 %v1937_v25 }
 0x3b9   :  { %v1896_v34 = vpop.f32.mrf.mxu1 }
 0x3ba   :  { %v5479_v24 = vadd.f32 %v1896_v34, %v594_v61 }
 0x3bc   :  { %v1938_v51 = vpack.c.bf16 %v5479_v24, %v5479_v24 }
 0x3c1   :  { %v1898_v3 = vpop.f32.mrf.mxu1 }
 0x3c6   :  { %2003 = vmatmul.bf16.gmra.mxu2 %v1938_v51 }
 0x439   :  { %v1999_v10 = vpop.f32.mrf.mxu2 }
 0x43a   :  { %v2000_v33 = vadd.f32 %v4332_v0, %v1999_v10  ;;  %v4173_v10 = vld [vmem:[%s5659_s26 + $0x20] sm:$0xff] }
 0x43c   :  { %v3751_v28 = vmul.f32 -1.442695, %v2000_v33 }
 0x43e   :  { %4366 = vpow2.f32 %v3751_v28 }
 0x441   :  { %v2001_v41 = vpop.f32.mrf.mxu2 }
 0x442   :  { %v2002_v27 = vadd.f32 %v4332_v0, %v2001_v41  ;;  %v4171_v41 = vld [vmem:[%s5659_s26 + $0x10] sm:$0xff] }
 0x444   :  { %v4367_v29 = vpop.eup %4366  ;;  %v3752_v12 = vmul.f32 -1.442695, %v2002_v27 }
 0x445   :  { %v2017_v58 = vadd.f32 1.0, %v4367_v29 }
 0x446   :  { %4368 = vpow2.f32 %v3752_v12 }
 0x447   :  { %4370 = vrcp.f32 %v2017_v58  ;;  %v2031_v31 = vand.u32 2147483648, %v2017_v58  ;;  %vm2025_vm6 = vweird.f32 %v2017_v58  ;;  %v2029_v49 = vand.u32 2147483647, %v2017_v58 }
 0x449   :  { %v2004_v18 = vpop.f32.mrf.mxu2  ;;  %v2032_v62 = vor.u32 1.1754944e-38, %v2031_v31  ;;  %vm2030_vm9 = vcmp.eq.f32.partialorder %v2029_v49, 8.507059e+37 }
 0x44a   :  { %v2005_v30 = vadd.f32 %v4332_v0, %v2004_v18  ;;  %v4174_v0 = vld [vmem:[%s5659_s26 + $0x28] sm:$0xff]  ;;  %v4169_v18 = vld [vmem:[%s5659_s26] sm:$0xff] }
 0x44b   :  { %2274 = vmatpush.bf16.msrb.mxu0 %v4174_v0  ;;  %v4184_v0 = vld [vmem:[%s5660_s1 + $0x38] sm:$0xff] }
 0x44c   :  { %v4369_v15 = vpop.eup %4368  ;;  %v3753_v57 = vmul.f32 -1.442695, %v2005_v30  ;;  %2440 = vmatpush.bf16.msra.mxu1 %v4184_v0 }
 0x44d   :  { %v4371_v1 = vpop.eup %4370  ;;  %v2018_v54 = vadd.f32 1.0, %v4369_v15 }
 0x44e   :  { %v2021_v53 = vmul.f32 %v4371_v1, %v2017_v58  ;;  %4372 = vpow2.f32 %v3753_v57  ;;  %vm2026_vm5 = vweird.f32 %v4371_v1 }
 0x44f   :  { %4374 = vrcp.f32 %v2018_v54  ;;  %vm2027_vm7 = vmor %vm2025_vm6, %vm2026_vm5  ;;  %v2046_v48 = vand.u32 2147483648, %v2018_v54  ;;  %v2044_v19 = vand.u32 2147483647, %v2018_v54  ;;  %vm2040_vm10 = vweird.f32 %v2018_v54  ;;  %2275 = vmatpush.bf16.msrb.mxu0 %v4173_v10  ;;  %v4182_v10 = vld [vmem:[%s5660_s1 + $0x28] sm:$0xff] }
 0x450   :  { %v2022_v56 = vsub.f32 1.0, %v2021_v53 }
 0x451   :  { %v2006_v44 = vpop.f32.mrf.mxu2  ;;  %v2047_v40 = vor.u32 1.1754944e-38, %v2046_v48  ;;  %vm2045_vm12 = vcmp.eq.f32.partialorder %v2044_v19, 8.507059e+37 }
 0x452   :  { %v2023_v42 = vmul.f32 %v4371_v1, %v2022_v56 }
 0x453   :  { %2276 = vmatpush.bf16.msrb.mxu0 %v4172_v43 }
 0x454   :  { %v4373_v6 = vpop.eup %4372  ;;  %v2024_v59 = vadd.f32 %v4371_v1, %v2023_v42 }
 0x455   :  { %v4375_v16 = vpop.eup %4374  ;;  %v2019_v20 = vadd.f32 1.0, %v4373_v6 }
 0x456   :  { %v2036_v17 = vmul.f32 %v4375_v16, %v2018_v54  ;;  %v2028_v4 = vsel %vm2027_vm7, %v4371_v1, %v2024_v59  ;;  %vm2041_vm8 = vweird.f32 %v4375_v16 }
 0x457   :  { %4376 = vrcp.f32 %v2019_v20  ;;  %v2033_v36 = vsel %vm2030_vm9, %v2032_v62, %v2028_v4  ;;  %vm2042_vm11 = vmor %vm2040_vm10, %vm2041_vm8  ;;  %v2061_v45 = vand.u32 2147483648, %v2019_v20  ;;  %vm2055_vm14 = vweird.f32 %v2019_v20  ;;  %2277 = vmatpush.bf16.msrb.mxu0 %v4171_v41 }
 0x458   :  { %v2037_v13 = vsub.f32 1.0, %v2036_v17  ;;  %v2065_v37 = vmul.f32 %v2033_v36, %v2000_v33  ;;  %v2059_v34 = vand.u32 2147483647, %v2019_v20 }
 0x459   :  { %v2062_v61 = vor.u32 1.1754944e-38, %v2061_v45 }
 0x45a   :  { %v2038_v23 = vmul.f32 %v4375_v16, %v2037_v13  ;;  %vm2060_vm4 = vcmp.eq.f32.partialorder %v2059_v34, 8.507059e+37 }
 0x45b   :  { %2278 = vmatpush.bf16.msrb.mxu0 %v4170_v14 }
 0x45c   :  { %v2039_v50 = vadd.f32 %v4375_v16, %v2038_v23 }
 0x45d   :  { %v4377_v21 = vpop.eup %4376 }
 0x45e   :  { %v2043_v47 = vsel %vm2042_vm11, %v4375_v16, %v2039_v50  ;;  %v2051_v60 = vmul.f32 %v4377_v21, %v2019_v20  ;;  %vm2056_vm13 = vweird.f32 %v4377_v21 }
 0x45f   :  { %v2048_v35 = vsel %vm2045_vm12, %v2047_v40, %v2043_v47  ;;  %vm2057_vm15 = vmor %vm2055_vm14, %vm2056_vm13  ;;  %2279 = vmatpush.bf16.msrb.mxu0 %v4169_v18  ;;  %v2955_v18 = vld [vmem:[%s5661_s2] sm:$0x7] }
 0x460   :  { %v2066_v38 = vmul.f32 %v2048_v35, %v2002_v27  ;;  %v2052_v25 = vsub.f32 1.0, %v2051_v60 }
 0x462   :  { %v2068_v11 = vpack.c.bf16 %v2066_v38, %v2065_v37  ;;  %v2053_v55 = vmul.f32 %v4377_v21, %v2052_v25 }
 0x464   :  { %2129 = vmatmul.bf16.vlgmr.msra.gmra.mxu3 %v2068_v11  ;;  %v2054_v39 = vadd.f32 %v4377_v21, %v2053_v55 }
 0x466   :  { %v2058_v46 = vsel %vm2057_vm15, %v4377_v21, %v2054_v39 }
 0x467   :  { %v2063_v3 = vsel %vm2060_vm4, %v2062_v61, %v2058_v46 }
 0x468   :  { %v2067_v51 = vmul.f32 %v2063_v3, %v2005_v30 }
 0x46a   :  { %v2069_v26 = vpack.c.bf16 %v2067_v51, %v2067_v51 }
 0x474   :  { %2134 = vmatmul.bf16.gmra.mxu3 %v2069_v26 }
 0x4e7   :  { %v2130_v33 = vpop.f32.mrf.mxu3 }
 0x4e8   :  { %v2131_v8 = vadd.f32 %v4333_v5, %v2130_v33  ;;  %v4334_v33 = vld [vmem:[#allocation7] ss:$0 sm:$0xff] }
 0x4ea   :  { %v3786_v28 = vmul.f32 -1.442695, %v2131_v8 }
 0x4ec   :  { %4378 = vpow2.f32 %v3786_v28 }
 0x4ef   :  { %v2132_v27 = vpop.f32.mrf.mxu3 }
 0x4f0   :  { %v2133_v9 = vadd.f32 %v4333_v5, %v2132_v27  ;;  %v4180_v27 = vld [vmem:[%s5660_s1 + $0x18] sm:$0xff] }
 0x4f2   :  { %v4379_v29 = vpop.eup %4378  ;;  %v3787_v12 = vmul.f32 -1.442695, %v2133_v9 }
 0x4f3   :  { %v2148_v58 = vadd.f32 1.0, %v4379_v29 }
 0x4f4   :  { %4380 = vpow2.f32 %v3787_v12 }
 0x4f5   :  { %4382 = vrcp.f32 %v2148_v58  ;;  %v2162_v17 = vand.u32 2147483648, %v2148_v58  ;;  %vm2156_vm6 = vweird.f32 %v2148_v58  ;;  %v2160_v49 = vand.u32 2147483647, %v2148_v58 }
 0x4f7   :  { %v2135_v30 = vpop.f32.mrf.mxu3  ;;  %v2163_v23 = vor.u32 1.1754944e-38, %v2162_v17  ;;  %vm2161_vm8 = vcmp.eq.f32.partialorder %v2160_v49, 8.507059e+37 }
 0x4f8   :  { %v2136_v15 = vadd.f32 %v4333_v5, %v2135_v30  ;;  %v4183_v5 = vld [vmem:[%s5660_s1 + $0x30] sm:$0xff] }
 0x4f9   :  { %2441 = vmatpush.bf16.msra.mxu1 %v4183_v5 }
 0x4fa   :  { %v4381_v57 = vpop.eup %4380  ;;  %v3788_v1 = vmul.f32 -1.442695, %v2136_v15 }
 0x4fb   :  { %v4383_v54 = vpop.eup %4382  ;;  %v2149_v53 = vadd.f32 1.0, %v4381_v57  ;;  %v4177_v57 = vld [vmem:[%s5660_s1] sm:$0xff] }
 0x4fc   :  { %v2152_v56 = vmul.f32 %v4383_v54, %v2148_v58  ;;  %4384 = vpow2.f32 %v3788_v1  ;;  %vm2157_vm5 = vweird.f32 %v4383_v54  ;;  %v4178_v58 = vld [vmem:[%s5660_s1 + $0x8] sm:$0xff] }
 0x4fd   :  { %4386 = vrcp.f32 %v2149_v53  ;;  %vm2158_vm7 = vmor %vm2156_vm6, %vm2157_vm5  ;;  %v2177_v19 = vand.u32 2147483648, %v2149_v53  ;;  %v2175_v50 = vand.u32 2147483647, %v2149_v53  ;;  %vm2171_vm10 = vweird.f32 %v2149_v53  ;;  %2442 = vmatpush.bf16.msra.mxu1 %v4182_v10 }
 0x4fe   :  { %v2153_v44 = vsub.f32 1.0, %v2152_v56 }
 0x4ff   :  { %v2137_v42 = vpop.f32.mrf.mxu3  ;;  %v2178_v47 = vor.u32 1.1754944e-38, %v2177_v19  ;;  %vm2176_vm12 = vcmp.eq.f32.partialorder %v2175_v50, 8.507059e+37 }
 0x500   :  { %v2154_v6 = vmul.f32 %v4383_v54, %v2153_v44 }
 0x502   :  { %v4385_v16 = vpop.eup %4384  ;;  %v2155_v20 = vadd.f32 %v4383_v54, %v2154_v6 }
 0x503   :  { %v4387_v59 = vpop.eup %4386  ;;  %v2150_v31 = vadd.f32 1.0, %v4385_v16 }
 0x504   :  { %v2167_v13 = vmul.f32 %v4387_v59, %v2149_v53  ;;  %v2159_v48 = vsel %vm2158_vm7, %v4383_v54, %v2155_v20  ;;  %vm2172_vm9 = vweird.f32 %v4387_v59 }
 0x505   :  { %4388 = vrcp.f32 %v2150_v31  ;;  %v2164_v21 = vsel %vm2161_vm8, %v2163_v23, %v2159_v48  ;;  %vm2173_vm11 = vmor %vm2171_vm10, %vm2172_vm9  ;;  %v2192_v34 = vand.u32 2147483648, %v2150_v31  ;;  %vm2186_vm14 = vweird.f32 %v2150_v31 }
 0x506   :  { %v2168_v4 = vsub.f32 1.0, %v2167_v13  ;;  %v2196_v60 = vmul.f32 %v2164_v21, %v2131_v8  ;;  %v2190_v3 = vand.u32 2147483647, %v2150_v31  ;;  %v4181_v8 = vld [vmem:[%s5660_s1 + $0x20] sm:$0xff] }
 0x507   :  { %v2193_v26 = vor.u32 1.1754944e-38, %v2192_v34  ;;  %2443 = vmatpush.bf16.msra.mxu1 %v4181_v8  ;;  %v4463_v34 = vld [vmem:[%s5649_s29] sm:$0xff] }
 0x508   :  { %v2169_v62 = vmul.f32 %v4387_v59, %v2168_v4  ;;  %v2199_v55 = vadd.f32 %v2196_v60, %v5472_v52  ;;  %vm2191_vm4 = vcmp.eq.f32.partialorder %v2190_v3, 8.507059e+37 }
 0x50a   :  { %v2170_v36 = vadd.f32 %v4387_v59, %v2169_v62 }
 0x50b   :  { %v4389_v40 = vpop.eup %4388  ;;  %2444 = vmatpush.bf16.msra.mxu1 %v4180_v27  ;;  %v4190_v27 = vld [vmem:[%s5662_s7 + $0x28] sm:$0xff] }
 0x50c   :  { %v2174_v35 = vsel %vm2173_vm11, %v4387_v59, %v2170_v36  ;;  %v2182_v37 = vmul.f32 %v4389_v40, %v2150_v31  ;;  %vm2187_vm13 = vweird.f32 %v4389_v40 }
 0x50d   :  { %v2179_v38 = vsel %vm2176_vm12, %v2178_v47, %v2174_v35  ;;  %vm2188_vm15 = vmor %vm2186_vm14, %vm2187_vm13 }
 0x50e   :  { %v2197_v25 = vmul.f32 %v2179_v38, %v2133_v9  ;;  %v2183_v11 = vsub.f32 1.0, %v2182_v37 }
 0x510   :  { %v2200_v39 = vadd.f32 %v2197_v25, %v5474_v22  ;;  %v2184_v45 = vmul.f32 %v4389_v40, %v2183_v11 }
 0x512   :  { %v2218_v46 = vpack.c.bf16 %v2200_v39, %v2199_v55  ;;  %v2185_v61 = vadd.f32 %v4389_v40, %v2184_v45 }
 0x514   :  { %v2189_v51 = vsel %vm2188_vm15, %v4389_v40, %v2185_v61  ;;  %2280 = vmatmul.bf16.vlgmr.msrb.gmra.mxu0 %v2218_v46  ;;  %v4464_v61 = vld [vmem:[%s5649_s29 + $0x8] sm:$0xff] }
 0x515   :  { %v2194_v63 = vsel %vm2191_vm4, %v2193_v26, %v2189_v51 }
 0x516   :  { %v2198_v52 = vmul.f32 %v2194_v63, %v2136_v15  ;;  %v3008_v15 = vsel %vm303_vm0, %v2955_v18, 0 }
 0x518   :  { %v2201_v22 = vadd.f32 %v2198_v52, %v5479_v24  ;;  %v4179_v24 = vld [vmem:[%s5660_s1 + $0x10] sm:$0xff] }
 0x519   :  { %2445 = vmatpush.bf16.msra.mxu1 %v4179_v24  ;;  %v4335_v24 = vld [vmem:[#allocation9] ss:$0 sm:$0xff] }
 0x51a   :  { %v2219_v2 = vpack.c.bf16 %v2201_v22, %v2201_v22 }
 0x51d   :  { %2446 = vmatpush.bf16.msra.mxu1 %v4178_v58 }
 0x521   :  { %2447 = vmatpush.bf16.msra.mxu1 %v4177_v57 }
 0x524   :  { %2285 = vmatmul.bf16.gmra.mxu0 %v2219_v2 }
 0x525   :  { %3017 = vmatpush.bf16.msrb.mxu1 %v3008_v15 }
 0x591   :  { %v2281_v28 = vpop.f32.mrf.mxu0 }
 0x592   :  { %v2282_v43 = vadd.f32 %v4334_v33, %v2281_v28 }
 0x594   :  { %v3821_v41 = vmul.f32 -1.442695, %v2282_v43 }
 0x596   :  { %4390 = vpow2.f32 %v3821_v41  ;;  %v4191_v41 = vld [vmem:[%s5662_s7 + $0x30] sm:$0xff] }
 0x599   :  { %v2283_v9 = vpop.f32.mrf.mxu0 }
 0x59a   :  { %v2284_v29 = vadd.f32 %v4334_v33, %v2283_v9  ;;  %v4189_v9 = vld [vmem:[%s5662_s7 + $0x20] sm:$0xff] }
 0x59c   :  { %v4391_v12 = vpop.eup %4390  ;;  %v3822_v14 = vmul.f32 -1.442695, %v2284_v29 }
 0x59d   :  { %v2299_v30 = vadd.f32 1.0, %v4391_v12 }
 0x59e   :  { %4392 = vpow2.f32 %v3822_v14  ;;  %v4188_v14 = vld [vmem:[%s5662_s7 + $0x18] sm:$0xff] }
 0x59f   :  { %4394 = vrcp.f32 %v2299_v30  ;;  %v2313_v13 = vand.u32 2147483648, %v2299_v30  ;;  %vm2307_vm5 = vweird.f32 %v2299_v30  ;;  %v2311_v4 = vand.u32 2147483647, %v2299_v30 }
 0x5a1   :  { %v2286_v1 = vpop.f32.mrf.mxu0  ;;  %v2314_v50 = vor.u32 1.1754944e-38, %v2313_v13  ;;  %vm2312_vm7 = vcmp.eq.f32.partialorder %v2311_v4, 8.507059e+37 }
 0x5a2   :  { %v5512_v54 = vadd.f32 %v4334_v33, %v2286_v1  ;;  %v4465_v33 = vld [vmem:[%s5649_s29 + $0x10] sm:$0xff] }
 0x5a4   :  { %v4393_v53 = vpop.eup %4392  ;;  %v3823_v56 = vmul.f32 -1.442695, %v5512_v54 }
 0x5a5   :  { %v4395_v44 = vpop.eup %4394  ;;  %v2300_v42 = vadd.f32 1.0, %v4393_v53 }
 0x5a6   :  { %v2303_v6 = vmul.f32 %v4395_v44, %v2299_v30  ;;  %4396 = vpow2.f32 %v3823_v56  ;;  %vm2308_vm0 = vweird.f32 %v4395_v44  ;;  %v4186_v30 = vld [vmem:[%s5662_s7 + $0x8] sm:$0xff] }
 0x5a7   :  { %4398 = vrcp.f32 %v2300_v42  ;;  %vm2309_vm6 = vmor %vm2307_vm5, %vm2308_vm0  ;;  %v2328_v21 = vand.u32 2147483648, %v2300_v42  ;;  %v2326_v40 = vand.u32 2147483647, %v2300_v42  ;;  %vm2322_vm9 = vweird.f32 %v2300_v42 }
 0x5a8   :  { %v2304_v16 = vsub.f32 1.0, %v2303_v6 }
 0x5a9   :  { %v2288_v20 = vpop.f32.mrf.mxu0  ;;  %v2329_v37 = vor.u32 1.1754944e-38, %v2328_v21  ;;  %vm2327_vm11 = vcmp.eq.f32.partialorder %v2326_v40, 8.507059e+37 }
 0x5aa   :  { %v2305_v59 = vmul.f32 %v4395_v44, %v2304_v16 }
 0x5ac   :  { %v4397_v17 = vpop.eup %4396  ;;  %v2306_v31 = vadd.f32 %v4395_v44, %v2305_v59 }
 0x5ad   :  { %v4399_v49 = vpop.eup %4398  ;;  %v2301_v48 = vadd.f32 1.0, %v4397_v17 }
 0x5ae   :  { %v2318_v23 = vmul.f32 %v4399_v49, %v2300_v42  ;;  %v2310_v19 = vsel %vm2309_vm6, %v4395_v44, %v2306_v31  ;;  %vm2323_vm8 = vweird.f32 %v4399_v49 }
 0x5af   :  { %4400 = vrcp.f32 %v2301_v48  ;;  %v2315_v47 = vsel %vm2312_vm7, %v2314_v50, %v2310_v19  ;;  %vm2324_vm10 = vmor %vm2322_vm9, %vm2323_vm8  ;;  %v2343_v26 = vand.u32 2147483648, %v2301_v48  ;;  %vm2337_vm13 = vweird.f32 %v2301_v48 }
 0x5b0   :  { %v2319_v62 = vsub.f32 1.0, %v2318_v23  ;;  %v2347_v38 = vmul.f32 %v2315_v47, %v2282_v43  ;;  %v2341_v22 = vand.u32 2147483647, %v2301_v48  ;;  %v4192_v43 = vld [vmem:[%s5662_s7 + $0x38] sm:$0xff] }
 0x5b1   :  { %v2344_v0 = vor.u32 1.1754944e-38, %v2343_v26  ;;  %2571 = vmatpush.bf16.msrb.mxu2 %v4192_v43  ;;  %v4199_v43 = vld [vmem:[%s5663_s12 + $0x30] sm:$0xff] }
 0x5b2   :  { %v2320_v36 = vmul.f32 %v4399_v49, %v2319_v62  ;;  %v5516_v46 = vadd.f32 %v4463_v34, %v2347_v38  ;;  %vm2342_vm15 = vcmp.eq.f32.partialorder %v2341_v22, 8.507059e+37 }
 0x5b4   :  { %v2321_v60 = vadd.f32 %v4399_v49, %v2320_v36 }
 0x5b5   :  { %v4401_v35 = vpop.eup %4400  ;;  %2572 = vmatpush.bf16.msrb.mxu2 %v4191_v41  ;;  %v4198_v41 = vld [vmem:[%s5663_s12 + $0x28] sm:$0xff] }
 0x5b6   :  { %v2325_v25 = vsel %vm2324_vm10, %v4399_v49, %v2321_v60  ;;  %v2333_v11 = vmul.f32 %v4401_v35, %v2301_v48  ;;  %vm2338_vm12 = vweird.f32 %v4401_v35 }
 0x5b7   :  { %v2330_v55 = vsel %vm2327_vm11, %v2329_v37, %v2325_v25  ;;  %vm2339_vm14 = vmor %vm2337_vm13, %vm2338_vm12 }
 0x5b8   :  { %v2348_v39 = vmul.f32 %v2330_v55, %v2284_v29  ;;  %v2334_v45 = vsub.f32 1.0, %v2333_v11 }
 0x5b9   :  { %2573 = vmatpush.bf16.msrb.mxu2 %v4190_v27  ;;  %v4336_v27 = vld [vmem:[#allocation10] ss:$0 sm:$0xff] }
 0x5ba   :  { %v5519_v3 = vadd.f32 %v4464_v61, %v2348_v39  ;;  %v2335_v51 = vmul.f32 %v4401_v35, %v2334_v45 }
 0x5bc   :  { %v2387_v63 = vpack.c.bf16 %v5519_v3, %v5516_v46  ;;  %v2336_v52 = vadd.f32 %v4401_v35, %v2335_v51 }
 0x5bd   :  { %2574 = vmatpush.bf16.msrb.mxu2 %v4189_v9 }
 0x5be   :  { %v2340_v2 = vsel %vm2339_vm14, %v4401_v35, %v2336_v52  ;;  %2448 = vmatmul.bf16.vlgmr.msra.gmra.mxu1 %v2387_v63 }
 0x5bf   :  { %v2345_v5 = vsel %vm2342_vm15, %v2344_v0, %v2340_v2 }
 0x5c0   :  { %v2349_v10 = vmul.f32 %v2345_v5, %v5512_v54  ;;  %v4185_v54 = vld [vmem:[%s5662_s7] sm:$0xff] }
 0x5c1   :  { %2575 = vmatpush.bf16.msrb.mxu2 %v4188_v14  ;;  %v4196_v14 = vld [vmem:[%s5663_s12 + $0x18] sm:$0xff] }
 0x5c2   :  { %v5525_v8 = vadd.f32 %v4465_v33, %v2349_v10 }
 0x5c4   :  { %v2388_v28 = vpack.c.bf16 %v5525_v8, %v5525_v8 }
 0x5ce   :  { %2453 = vmatmul.bf16.gmra.mxu1 %v2388_v28  ;;  %v4200_v28 = vld [vmem:[%s5663_s12 + $0x38] sm:$0xff] }
 0x5cf   :  { %2739 = vmatpush.bf16.msrb.mxu3 %v4200_v28  ;;  %v4208_v28 = vld [vmem:[%s5664_s10 + $0x38] sm:$0xff] }
 0x5d0   :  { %2870 = vmatpush.bf16.msra.mxu0 %v4208_v28 }
 0x5d3   :  { %2740 = vmatpush.bf16.msrb.mxu3 %v4199_v43  ;;  %v4207_v43 = vld [vmem:[%s5664_s10 + $0x30] sm:$0xff] }
 0x5d4   :  { %2871 = vmatpush.bf16.msra.mxu0 %v4207_v43 }
 0x5d7   :  { %2741 = vmatpush.bf16.msrb.mxu3 %v4198_v41  ;;  %v4206_v41 = vld [vmem:[%s5664_s10 + $0x28] sm:$0xff] }
 0x5d8   :  { %2872 = vmatpush.bf16.msra.mxu0 %v4206_v41 }
 0x5de   :  { %3964 = vmatmul.msk.bf16.vlgmr.msrb.gmra.mxu1 %vm296_vm2, %v5008_v7  ;;  %v4187_v7 = vld [vmem:[%s5662_s7 + $0x10] sm:$0xff] }
 0x5df   :  { %2576 = vmatpush.bf16.msrb.mxu2 %v4187_v7 }
 0x5e3   :  { %2577 = vmatpush.bf16.msrb.mxu2 %v4186_v30 }
 0x5e7   :  { %2578 = vmatpush.bf16.msrb.mxu2 %v4185_v54 }
 0x5ee   :  { %3965 = vmatmul.msk.bf16.gmra.mxu1 %vm296_vm2, %v5031_v32 }
 0x63b   :  { %v2449_v29 = vpop.f32.mrf.mxu1 }
 0x63c   :  { %v2450_v12 = vadd.f32 %v4335_v24, %v2449_v29 }
 0x63e   :  { %v3856_v58 = vmul.f32 -1.442695, %v2450_v12 }
 0x640   :  { %4402 = vpow2.f32 %v3856_v58  ;;  %v4195_v58 = vld [vmem:[%s5663_s12 + $0x10] sm:$0xff] }
 0x643   :  { %v2451_v32 = vpop.f32.mrf.mxu1 }
 0x644   :  { %v2452_v18 = vadd.f32 %v4335_v24, %v2451_v32 }
 0x646   :  { %v4403_v15 = vpop.eup %4402  ;;  %v3857_v57 = vmul.f32 -1.442695, %v2452_v18 }
 0x647   :  { %v2467_v1 = vadd.f32 1.0, %v4403_v15  ;;  %v4194_v15 = vld [vmem:[%s5663_s12 + $0x8] sm:$0xff] }
 0x648   :  { %4404 = vpow2.f32 %v3857_v57 }
 0x649   :  { %4406 = vrcp.f32 %v2467_v1  ;;  %v2481_v19 = vand.u32 2147483648, %v2467_v1  ;;  %vm2475_vm4 = vweird.f32 %v2467_v1  ;;  %v2479_v62 = vand.u32 2147483647, %v2467_v1 }
 0x64b   :  { %v2454_v53 = vpop.f32.mrf.mxu1  ;;  %v2482_v60 = vor.u32 1.1754944e-38, %v2481_v19  ;;  %vm2480_vm6 = vcmp.eq.f32.partialorder %v2479_v62, 8.507059e+37 }
 0x64c   :  { %v2455_v56 = vadd.f32 %v4335_v24, %v2454_v53  ;;  %v4197_v24 = vld [vmem:[%s5663_s12 + $0x20] sm:$0xff] }
 0x64d   :  { %2742 = vmatpush.bf16.msrb.mxu3 %v4197_v24  ;;  %v4205_v24 = vld [vmem:[%s5664_s10 + $0x20] sm:$0xff] }
 0x64e   :  { %v4405_v44 = vpop.eup %4404  ;;  %v3858_v42 = vmul.f32 -1.442695, %v2455_v56  ;;  %2873 = vmatpush.bf16.msra.mxu0 %v4205_v24 }
 0x64f   :  { %v4407_v6 = vpop.eup %4406  ;;  %v2468_v16 = vadd.f32 1.0, %v4405_v44 }
 0x650   :  { %v2471_v20 = vmul.f32 %v4407_v6, %v2467_v1  ;;  %4408 = vpow2.f32 %v3858_v42  ;;  %vm2476_vm2 = vweird.f32 %v4407_v6  ;;  %v4193_v1 = vld [vmem:[%s5663_s12] sm:$0xff] }
 0x651   :  { %4410 = vrcp.f32 %v2468_v16  ;;  %vm2477_vm0 = vmor %vm2475_vm4, %vm2476_vm2  ;;  %v2496_v21 = vand.u32 2147483648, %v2468_v16  ;;  %v2494_v47 = vand.u32 2147483647, %v2468_v16  ;;  %vm2490_vm7 = vweird.f32 %v2468_v16  ;;  %2743 = vmatpush.bf16.msrb.mxu3 %v4196_v14  ;;  %v4203_v14 = vld [vmem:[%s5664_s10 + $0x10] sm:$0xff] }
 0x652   :  { %v2472_v59 = vsub.f32 1.0, %v2471_v20 }
 0x653   :  { %v2456_v17 = vpop.f32.mrf.mxu1  ;;  %v2497_v25 = vor.u32 1.1754944e-38, %v2496_v21  ;;  %vm2495_vm9 = vcmp.eq.f32.partialorder %v2494_v47, 8.507059e+37 }
 0x654   :  { %v2473_v31 = vmul.f32 %v4407_v6, %v2472_v59 }
 0x655   :  { %2744 = vmatpush.bf16.msrb.mxu3 %v4195_v58 }
 0x656   :  { %v4409_v49 = vpop.eup %4408  ;;  %v2474_v4 = vadd.f32 %v4407_v6, %v2473_v31 }
 0x657   :  { %v4411_v13 = vpop.eup %4410  ;;  %v2469_v48 = vadd.f32 1.0, %v4409_v49 }
 0x658   :  { %v2486_v23 = vmul.f32 %v4411_v13, %v2468_v16  ;;  %v2478_v36 = vsel %vm2477_vm0, %v4407_v6, %v2474_v4  ;;  %vm2491_vm5 = vweird.f32 %v4411_v13 }
 0x659   :  { %4412 = vrcp.f32 %v2469_v48  ;;  %v2483_v38 = vsel %vm2480_vm6, %v2482_v60, %v2478_v36  ;;  %vm2492_vm8 = vmor %vm2490_vm7, %vm2491_vm5  ;;  %v2511_v52 = vand.u32 2147483648, %v2469_v48  ;;  %vm2505_vm11 = vweird.f32 %v2469_v48  ;;  %2745 = vmatpush.bf16.msrb.mxu3 %v4194_v15 }
 0x65a   :  { %v2487_v50 = vsub.f32 1.0, %v2486_v23  ;;  %v2515_v45 = vmul.f32 %v2483_v38, %v2450_v12  ;;  %v2509_v22 = vand.u32 2147483647, %v2469_v48 }
 0x65b   :  { %v2512_v0 = vor.u32 1.1754944e-38, %v2511_v52  ;;  %v5570_v41 = vpop.f32.mrf.mxu1 }
 0x65c   :  { %v2488_v40 = vmul.f32 %v4411_v13, %v2487_v50  ;;  %vm2510_vm13 = vcmp.eq.f32.partialorder %v2509_v22, 8.507059e+37 }
 0x65d   :  { %2746 = vmatpush.bf16.msrb.mxu3 %v4193_v1 }
 0x65e   :  { %v2489_v35 = vadd.f32 %v4411_v13, %v2488_v40 }
 0x65f   :  { %v4413_v37 = vpop.eup %4412 }
 0x660   :  { %v2493_v11 = vsel %vm2492_vm8, %v4411_v13, %v2489_v35  ;;  %v2501_v55 = vmul.f32 %v4413_v37, %v2469_v48  ;;  %vm2506_vm10 = vweird.f32 %v4413_v37 }
 0x661   :  { %v2498_v39 = vsel %vm2495_vm9, %v2497_v25, %v2493_v11  ;;  %vm2507_vm12 = vmor %vm2505_vm11, %vm2506_vm10 }
 0x662   :  { %v2516_v34 = vmul.f32 %v2498_v39, %v2452_v18  ;;  %v2502_v61 = vsub.f32 1.0, %v2501_v55 }
 0x664   :  { %v2518_v51 = vpack.c.bf16 %v2516_v34, %v2515_v45  ;;  %v2503_v26 = vmul.f32 %v4413_v37, %v2502_v61 }
 0x666   :  { %v2504_v63 = vadd.f32 %v4413_v37, %v2503_v26  ;;  %2579 = vmatmul.bf16.vlgmr.msrb.gmra.mxu2 %v2518_v51 }
 0x668   :  { %v2508_v2 = vsel %vm2507_vm12, %v4413_v37, %v2504_v63 }
 0x669   :  { %v2513_v5 = vsel %vm2510_vm13, %v2512_v0, %v2508_v2 }
 0x66a   :  { %v2517_v10 = vmul.f32 %v2513_v5, %v2455_v56 }
 0x66c   :  { %v2519_v33 = vpack.c.bf16 %v2517_v10, %v2517_v10 }
 0x676   :  { %2584 = vmatmul.bf16.gmra.mxu2 %v2519_v33 }
 0x6e9   :  { %v2580_v9 = vpop.f32.mrf.mxu2 }
 0x6ea   :  { %v2581_v29 = vadd.f32 %v4336_v27, %v2580_v9 }
 0x6ec   :  { %v3891_v12 = vmul.f32 -1.442695, %v2581_v29 }
 0x6ee   :  { %4414 = vpow2.f32 %v3891_v12 }
 0x6f1   :  { %v2582_v7 = vpop.f32.mrf.mxu2 }
 0x6f2   :  { %v2583_v32 = vadd.f32 %v4336_v27, %v2582_v7 }
 0x6f4   :  { %v4415_v18 = vpop.eup %4414  ;;  %v3892_v30 = vmul.f32 -1.442695, %v2583_v32 }
 0x6f5   :  { %v2598_v57 = vadd.f32 1.0, %v4415_v18 }
 0x6f6   :  { %4416 = vpow2.f32 %v3892_v30 }
 0x6f7   :  { %4418 = vrcp.f32 %v2598_v57  ;;  %v2612_v48 = vand.u32 2147483648, %v2598_v57  ;;  %vm2606_vm15 = vweird.f32 %v2598_v57  ;;  %v2610_v23 = vand.u32 2147483647, %v2598_v57 }
 0x6f9   :  { %v2585_v54 = vpop.f32.mrf.mxu2  ;;  %v2613_v21 = vor.u32 1.1754944e-38, %v2612_v48  ;;  %vm2611_vm4 = vcmp.eq.f32.partialorder %v2610_v23, 8.507059e+37 }
 0x6fa   :  { %v2586_v53 = vadd.f32 %v4336_v27, %v2585_v54  ;;  %v4337_v27 = vld [vmem:[#allocation12] ss:$0 sm:$0xff] }
 0x6fc   :  { %v4417_v56 = vpop.eup %4416  ;;  %v3893_v44 = vmul.f32 -1.442695, %v2586_v53 }
 0x6fd   :  { %v4419_v42 = vpop.eup %4418  ;;  %v2599_v6 = vadd.f32 1.0, %v4417_v56 }
 0x6fe   :  { %v2602_v16 = vmul.f32 %v4419_v42, %v2598_v57  ;;  %4420 = vpow2.f32 %v3893_v44  ;;  %vm2607_vm14 = vweird.f32 %v4419_v42  ;;  %v4201_v57 = vld [vmem:[%s5664_s10] sm:$0xff] }
 0x6ff   :  { %4422 = vrcp.f32 %v2599_v6  ;;  %vm2608_vm2 = vmor %vm2606_vm15, %vm2607_vm14  ;;  %v2627_v36 = vand.u32 2147483648, %v2599_v6  ;;  %v2625_v47 = vand.u32 2147483647, %v2599_v6  ;;  %vm2621_vm5 = vweird.f32 %v2599_v6 }
 0x700   :  { %v2603_v20 = vsub.f32 1.0, %v2602_v16 }
 0x701   :  { %v2587_v59 = vpop.f32.mrf.mxu2  ;;  %v2628_v38 = vor.u32 1.1754944e-38, %v2627_v36  ;;  %vm2626_vm7 = vcmp.eq.f32.partialorder %v2625_v47, 8.507059e+37 }
 0x702   :  { %v2604_v17 = vmul.f32 %v4419_v42, %v2603_v20 }
 0x704   :  { %v4421_v31 = vpop.eup %4420  ;;  %v2605_v49 = vadd.f32 %v4419_v42, %v2604_v17 }
 0x705   :  { %v4423_v13 = vpop.eup %4422  ;;  %v2600_v4 = vadd.f32 1.0, %v4421_v31 }
 0x706   :  { %v2617_v19 = vmul.f32 %v4423_v13, %v2599_v6  ;;  %v2609_v62 = vsel %vm2608_vm2, %v4419_v42, %v2605_v49  ;;  %vm2622_vm0 = vweird.f32 %v4423_v13 }
 0x707   :  { %4424 = vrcp.f32 %v2600_v4  ;;  %v2614_v60 = vsel %vm2611_vm4, %v2613_v21, %v2609_v62  ;;  %vm2623_vm6 = vmor %vm2621_vm5, %vm2622_vm0  ;;  %v2642_v63 = vand.u32 2147483648, %v2600_v4  ;;  %vm2636_vm9 = vweird.f32 %v2600_v4 }
 0x708   :  { %v2618_v50 = vsub.f32 1.0, %v2617_v19  ;;  %v2646_v25 = vmul.f32 %v2614_v60, %v2581_v29  ;;  %v2640_v2 = vand.u32 2147483647, %v2600_v4 }
 0x70a   :  { %v2619_v40 = vmul.f32 %v4423_v13, %v2618_v50  ;;  %v5550_v61 = vadd.f32 %v2646_v25, %v5516_v46  ;;  %v2643_v46 = vor.u32 1.1754944e-38, %v2642_v63  ;;  %vm2641_vm11 = vcmp.eq.f32.partialorder %v2640_v2, 8.507059e+37 }
 0x70c   :  { %v2620_v35 = vadd.f32 %v4423_v13, %v2619_v40 }
 0x70d   :  { %v4425_v37 = vpop.eup %4424 }
 0x70e   :  { %v2624_v11 = vsel %vm2623_vm6, %v4423_v13, %v2620_v35  ;;  %v2632_v55 = vmul.f32 %v4425_v37, %v2600_v4  ;;  %vm2637_vm8 = vweird.f32 %v4425_v37 }
 0x70f   :  { %v2629_v39 = vsel %vm2626_vm7, %v2628_v38, %v2624_v11  ;;  %vm2638_vm10 = vmor %vm2636_vm9, %vm2637_vm8 }
 0x710   :  { %v2647_v45 = vmul.f32 %v2629_v39, %v2583_v32  ;;  %v2633_v34 = vsub.f32 1.0, %v2632_v55  ;;  %v4202_v32 = vld [vmem:[%s5664_s10 + $0x8] sm:$0xff] }
 0x712   :  { %v5553_v51 = vadd.f32 %v2647_v45, %v5519_v3  ;;  %v2634_v26 = vmul.f32 %v4425_v37, %v2633_v34 }
 0x714   :  { %v2686_v52 = vpack.c.bf16 %v5553_v51, %v5550_v61  ;;  %v2635_v22 = vadd.f32 %v4425_v37, %v2634_v26 }
 0x716   :  { %v2639_v0 = vsel %vm2638_vm10, %v4425_v37, %v2635_v22  ;;  %2747 = vmatmul.bf16.vlgmr.msrb.gmra.mxu3 %v2686_v52 }
 0x717   :  { %v2644_v3 = vsel %vm2641_vm11, %v2643_v46, %v2639_v0 }
 0x718   :  { %v2648_v5 = vmul.f32 %v2644_v3, %v2586_v53 }
 0x71a   :  { %v5558_v10 = vadd.f32 %v2648_v5, %v5525_v8  ;;  %v4204_v8 = vld [vmem:[%s5664_s10 + $0x18] sm:$0xff] }
 0x71b   :  { %2874 = vmatpush.bf16.msra.mxu0 %v4204_v8 }
 0x71c   :  { %v2687_v33 = vpack.c.bf16 %v5558_v10, %v5558_v10 }
 0x71f   :  { %2875 = vmatpush.bf16.msra.mxu0 %v4203_v14 }
 0x723   :  { %2876 = vmatpush.bf16.msra.mxu0 %v4202_v32 }
 0x726   :  { %2752 = vmatmul.bf16.gmra.mxu3 %v2687_v33  ;;  %v4338_v33 = vld [vmem:[#allocation13] ss:$0 sm:$0xff] }
 0x727   :  { %2877 = vmatpush.bf16.msra.mxu0 %v4201_v57 }
 0x799   :  { %v2748_v9 = vpop.f32.mrf.mxu3 }
 0x79a   :  { %v2749_v29 = vadd.f32 %v4337_v27, %v2748_v9 }
 0x79c   :  { %v3926_v12 = vmul.f32 -1.442695, %v2749_v29 }
 0x79e   :  { %4426 = vpow2.f32 %v3926_v12 }
 0x7a1   :  { %v2750_v58 = vpop.f32.mrf.mxu3 }
 0x7a2   :  { %v2751_v7 = vadd.f32 %v4337_v27, %v2750_v58 }
 0x7a4   :  { %v4427_v18 = vpop.eup %4426  ;;  %v3927_v30 = vmul.f32 -1.442695, %v2751_v7 }
 0x7a5   :  { %v2766_v15 = vadd.f32 1.0, %v4427_v18 }
 0x7a6   :  { %4428 = vpow2.f32 %v3927_v30 }
 0x7a7   :  { %4430 = vrcp.f32 %v2766_v15  ;;  %v2780_v4 = vand.u32 2147483648, %v2766_v15  ;;  %vm2774_vm13 = vweird.f32 %v2766_v15  ;;  %v2778_v23 = vand.u32 2147483647, %v2766_v15 }
 0x7a9   :  { %v2753_v1 = vpop.f32.mrf.mxu3  ;;  %v2781_v40 = vor.u32 1.1754944e-38, %v2780_v4  ;;  %vm2779_vm2 = vcmp.eq.f32.partialorder %v2778_v23, 8.507059e+37 }
 0x7aa   :  { %v2754_v54 = vadd.f32 %v4337_v27, %v2753_v1 }
 0x7ac   :  { %v4429_v53 = vpop.eup %4428  ;;  %v3928_v56 = vmul.f32 -1.442695, %v2754_v54 }
 0x7ad   :  { %v4431_v44 = vpop.eup %4430  ;;  %v2767_v42 = vadd.f32 1.0, %v4429_v53 }
 0x7ae   :  { %v2770_v6 = vmul.f32 %v4431_v44, %v2766_v15  ;;  %4432 = vpow2.f32 %v3928_v56  ;;  %vm2775_vm12 = vweird.f32 %v4431_v44 }
 0x7af   :  { %4434 = vrcp.f32 %v2767_v42  ;;  %vm2776_vm14 = vmor %vm2774_vm13, %vm2775_vm12  ;;  %v2795_v62 = vand.u32 2147483648, %v2767_v42  ;;  %v2793_v36 = vand.u32 2147483647, %v2767_v42  ;;  %vm2789_vm4 = vweird.f32 %v2767_v42 }
 0x7b0   :  { %v2771_v16 = vsub.f32 1.0, %v2770_v6 }
 0x7b1   :  { %v2755_v20 = vpop.f32.mrf.mxu3  ;;  %v2796_v37 = vor.u32 1.1754944e-38, %v2795_v62  ;;  %vm2794_vm5 = vcmp.eq.f32.partialorder %v2793_v36, 8.507059e+37 }
 0x7b2   :  { %v2772_v59 = vmul.f32 %v4431_v44, %v2771_v16 }
 0x7b4   :  { %v4433_v17 = vpop.eup %4432  ;;  %v2773_v13 = vadd.f32 %v4431_v44, %v2772_v59 }
 0x7b5   :  { %v4435_v31 = vpop.eup %4434  ;;  %v2768_v49 = vadd.f32 1.0, %v4433_v17 }
 0x7b6   :  { %v2785_v48 = vmul.f32 %v4435_v31, %v2767_v42  ;;  %v2777_v50 = vsel %vm2776_vm14, %v4431_v44, %v2773_v13  ;;  %vm2790_vm15 = vweird.f32 %v4435_v31 }
 0x7b7   :  { %4436 = vrcp.f32 %v2768_v49  ;;  %v2782_v35 = vsel %vm2779_vm2, %v2781_v40, %v2777_v50  ;;  %vm2791_vm0 = vmor %vm2789_vm4, %vm2790_vm15  ;;  %v2810_v52 = vand.u32 2147483648, %v2768_v49  ;;  %vm2804_vm7 = vweird.f32 %v2768_v49  ;;  %v4215_v40 = vld [vmem:[%s5665_s24 + $0x30] sm:$0xff] }
 0x7b8   :  { %v2786_v19 = vsub.f32 1.0, %v2785_v48  ;;  %v2814_v55 = vmul.f32 %v2782_v35, %v2749_v29  ;;  %v2808_v22 = vand.u32 2147483647, %v2768_v49  ;;  %v5572_v29 = vpop.f32.mrf.mxu1 }
 0x7b9   :  { %v2811_v0 = vor.u32 1.1754944e-38, %v2810_v52 }
 0x7ba   :  { %v2787_v21 = vmul.f32 %v4435_v31, %v2786_v19  ;;  %vm2809_vm9 = vcmp.eq.f32.partialorder %v2808_v22, 8.507059e+37  ;;  %v4216_v19 = vld [vmem:[%s5665_s24 + $0x38] sm:$0xff] }
 0x7bb   :  { %3104 = vmatpush.bf16.msra.mxu3 %v4216_v19 }
 0x7bc   :  { %v2788_v47 = vadd.f32 %v4435_v31, %v2787_v21 }
 0x7bd   :  { %v4437_v60 = vpop.eup %4436 }
 0x7be   :  { %v2792_v38 = vsel %vm2791_vm0, %v4435_v31, %v2788_v47  ;;  %v2800_v25 = vmul.f32 %v4437_v60, %v2768_v49  ;;  %vm2805_vm6 = vweird.f32 %v4437_v60 }
 0x7bf   :  { %v2797_v11 = vsel %vm2794_vm5, %v2796_v37, %v2792_v38  ;;  %vm2806_vm8 = vmor %vm2804_vm7, %vm2805_vm6  ;;  %3105 = vmatpush.bf16.msra.mxu3 %v4215_v40  ;;  %v4230_v40 = vld [vmem:[%s4952_s19 + $0x28] sm:$0xff] }
 0x7c0   :  { %v2815_v39 = vmul.f32 %v2797_v11, %v2751_v7  ;;  %v2801_v45 = vsub.f32 1.0, %v2800_v25  ;;  %v5576_v32 = vpop.f32.mrf.mxu1  ;;  %v4214_v25 = vld [vmem:[%s5665_s24 + $0x28] sm:$0xff] }
 0x7c2   :  { %v2817_v34 = vpack.c.bf16 %v2815_v39, %v2814_v55  ;;  %v2802_v26 = vmul.f32 %v4437_v60, %v2801_v45 }
 0x7c3   :  { %3106 = vmatpush.bf16.msra.mxu3 %v4214_v25 }
 0x7c4   :  { %v2803_v63 = vadd.f32 %v4437_v60, %v2802_v26  ;;  %2878 = vmatmul.bf16.vlgmr.msra.gmra.mxu0 %v2817_v34 }
 0x7c6   :  { %v2807_v2 = vsel %vm2806_vm8, %v4437_v60, %v2803_v63  ;;  %v4213_v63 = vld [vmem:[%s5665_s24 + $0x20] sm:$0xff] }
 0x7c7   :  { %v2812_v46 = vsel %vm2809_vm9, %v2811_v0, %v2807_v2  ;;  %3107 = vmatpush.bf16.msra.mxu3 %v4213_v63  ;;  %v4212_v0 = vld [vmem:[%s5665_s24 + $0x18] sm:$0xff] }
 0x7c8   :  { %v2816_v3 = vmul.f32 %v2812_v46, %v2754_v54  ;;  %v3026_v6 = vpop.f32.mrf.mxu1 }
 0x7ca   :  { %v2818_v5 = vpack.c.bf16 %v2816_v3, %v2816_v3 }
 0x7cb   :  { %3108 = vmatpush.bf16.msra.mxu3 %v4212_v0 }
 0x7d4   :  { %2883 = vmatmul.bf16.gmra.mxu0 %v2818_v5  ;;  %v4211_v5 = vld [vmem:[%s5665_s24 + $0x10] sm:$0xff] }
 0x7d5   :  { %3109 = vmatpush.bf16.msra.mxu3 %v4211_v5 }
 0x841   :  { %v2879_v28 = vpop.f32.mrf.mxu0 }
 0x842   :  { %v2880_v43 = vadd.f32 %v4338_v33, %v2879_v28 }
 0x844   :  { %v3961_v27 = vmul.f32 -1.442695, %v2880_v43 }
 0x846   :  { %4438 = vpow2.f32 %v3961_v27 }
 0x849   :  { %v2881_v24 = vpop.f32.mrf.mxu0 }
 0x84a   :  { %v2882_v9 = vadd.f32 %v4338_v33, %v2881_v24 }
 0x84c   :  { %v4439_v8 = vpop.eup %4438  ;;  %v3962_v12 = vmul.f32 -1.442695, %v2882_v9 }
 0x84d   :  { %v2897_v14 = vadd.f32 1.0, %v4439_v8  ;;  %v2954_v8 = vld [vmem:[%s5666_s30] sm:$0xf] }
 0x84e   :  { %4440 = vpow2.f32 %v3962_v12  ;;  %v4209_v12 = vld [vmem:[%s5665_s24] sm:$0xff] }
 0x84f   :  { %4442 = vrcp.f32 %v2897_v14  ;;  %v2911_v53 = vand.u32 2147483648, %v2897_v14  ;;  %v2909_v42 = vand.u32 2147483647, %v2897_v14  ;;  %vm2905_vm11 = vweird.f32 %v2897_v14 }
 0x851   :  { %v2884_v58 = vpop.f32.mrf.mxu0  ;;  %v2912_v17 = vor.u32 1.1754944e-38, %v2911_v53  ;;  %vm2910_vm13 = vcmp.eq.f32.partialorder %v2909_v42, 8.507059e+37  ;;  %v4218_v53 = vld [vmem:[%s5667_s11 + $0x8] sm:$0xff] }
 0x852   :  { %v5574_v7 = vadd.f32 %v4338_v33, %v2884_v58 }
 0x854   :  { %v4441_v18 = vpop.eup %4440  ;;  %v3963_v30 = vmul.f32 -1.442695, %v5574_v7 }
 0x855   :  { %v4443_v15 = vpop.eup %4442  ;;  %v2898_v57 = vadd.f32 1.0, %v4441_v18  ;;  %v4221_v18 = vld [vmem:[%s5667_s11 + $0x20] sm:$0xff] }
 0x856   :  { %v2901_v1 = vmul.f32 %v4443_v15, %v2897_v14  ;;  %4444 = vpow2.f32 %v3963_v30  ;;  %vm2906_vm10 = vweird.f32 %v4443_v15  ;;  %v4220_v30 = vld [vmem:[%s5667_s11 + $0x18] sm:$0xff] }
 0x857   :  { %4446 = vrcp.f32 %v2898_v57  ;;  %vm2907_vm12 = vmor %vm2905_vm11, %vm2906_vm10  ;;  %v2926_v62 = vand.u32 2147483648, %v2898_v57  ;;  %v2924_v21 = vand.u32 2147483647, %v2898_v57  ;;  %vm2920_vm15 = vweird.f32 %v2898_v57 }
 0x858   :  { %v2902_v54 = vsub.f32 1.0, %v2901_v1 }
 0x859   :  { %v2886_v56 = vpop.f32.mrf.mxu0  ;;  %v2927_v35 = vor.u32 1.1754944e-38, %v2926_v62  ;;  %vm2925_vm4 = vcmp.eq.f32.partialorder %v2924_v21, 8.507059e+37  ;;  %v4232_v21 = vld [vmem:[%s4952_s19 + $0x38] sm:$0xff] }
 0x85a   :  { %v2903_v44 = vmul.f32 %v4443_v15, %v2902_v54  ;;  %3274 = vmatpush.bf16.msra.mxu1 %v4232_v21 }
 0x85c   :  { %v4445_v16 = vpop.eup %4444  ;;  %v2904_v20 = vadd.f32 %v4443_v15, %v2903_v44  ;;  %v4217_v44 = vld [vmem:[%s5667_s11] sm:$0xff] }
 0x85d   :  { %v4447_v59 = vpop.eup %4446  ;;  %v2899_v31 = vadd.f32 1.0, %v4445_v16 }
 0x85e   :  { %v2908_v49 = vsel %vm2907_vm12, %v4443_v15, %v2904_v20  ;;  %v2916_v13 = vmul.f32 %v4447_v59, %v2898_v57  ;;  %vm2921_vm14 = vweird.f32 %v4447_v59  ;;  %v4339_v15 = vld [vmem:[#allocation15] ss:$0 sm:$0xff] }
 0x85f   :  { %v2913_v48 = vsel %vm2910_vm13, %v2912_v17, %v2908_v49  ;;  %4448 = vrcp.f32 %v2899_v31  ;;  %vm2922_vm2 = vmor %vm2920_vm15, %vm2921_vm14  ;;  %v2939_v34 = vand.u32 2147483647, %v2899_v31  ;;  %vm2935_vm5 = vweird.f32 %v2899_v31  ;;  %v4219_v57 = vld [vmem:[%s5667_s11 + $0x10] sm:$0xff] }
 0x860   :  { %v2945_v4 = vmul.f32 %v2913_v48, %v2880_v43  ;;  %v2917_v23 = vsub.f32 1.0, %v2916_v13  ;;  %v4210_v43 = vld [vmem:[%s5665_s24 + $0x8] sm:$0xff] }
 0x861   :  { %vm2940_vm7 = vcmp.eq.f32.partialorder %v2939_v34, 8.507059e+37  ;;  %3110 = vmatpush.bf16.msra.mxu3 %v4210_v43  ;;  %v4341_v43 = vld [vmem:[#allocation18] ss:$0 sm:$0xff] }
 0x862   :  { %v2918_v50 = vmul.f32 %v4447_v59, %v2917_v23  ;;  %v2948_v36 = vadd.f32 %v2945_v4, %v5550_v61  ;;  %v2941_v61 = vand.u32 2147483648, %v2899_v31 }
 0x864   :  { %v2919_v47 = vadd.f32 %v4447_v59, %v2918_v50  ;;  %2951 = vst [vmem:[%s4962_s17] sm:$0xff] %v2948_v36  ;;  %v2942_v22 = vor.u32 1.1754944e-38, %v2941_v61 }
 0x865   :  { %v4449_v60 = vpop.eup %4448  ;;  %3111 = vmatpush.bf16.msra.mxu3 %v4209_v12 }
 0x866   :  { %v2923_v37 = vsel %vm2922_vm2, %v4447_v59, %v2919_v47  ;;  %v2931_v38 = vmul.f32 %v4449_v60, %v2899_v31  ;;  %vm2936_vm0 = vweird.f32 %v4449_v60  ;;  %v4229_v47 = vld [vmem:[%s4952_s19 + $0x20] sm:$0xff] }
 0x867   :  { %v2928_v11 = vsel %vm2925_vm4, %v2927_v35, %v2923_v37  ;;  %vm2937_vm6 = vmor %vm2935_vm5, %vm2936_vm0  ;;  %v4340_v35 = vld [vmem:[#allocation16] ss:$0 sm:$0xff] }
 0x868   :  { %v2946_v55 = vmul.f32 %v2928_v11, %v2882_v9  ;;  %v2932_v39 = vsub.f32 1.0, %v2931_v38  ;;  %v3028_v9 = vmul.f32 %v5570_v41, %v2948_v36  ;;  %v4223_v41 = vld [vmem:[%s5667_s11 + $0x30] sm:$0xff]  ;;  %v4226_v11 = vld [vmem:[%s4952_s19 + $0x8] sm:$0xff] }
 0x869   :  { %v4231_v36 = vld [vmem:[%s4952_s19 + $0x30] sm:$0xff] }
 0x86a   :  { %v2933_v45 = vmul.f32 %v4449_v60, %v2932_v39  ;;  %v2949_v26 = vadd.f32 %v2946_v55, %v5553_v51  ;;  %3275 = vmatpush.bf16.msra.mxu1 %v4231_v36  ;;  %v4227_v37 = vld [vmem:[%s4952_s19 + $0x10] sm:$0xff]  ;;  %v4225_v39 = vld [vmem:[%s4952_s19] sm:$0xff] }
 0x86c   :  { %v2934_v52 = vadd.f32 %v4449_v60, %v2933_v45  ;;  %2952 = vst [vmem:[%s4962_s17 + $0x8] sm:$0xff] %v2949_v26  ;;  %v3029_v27 = vmul.f32 %v5572_v29, %v2949_v26 }
 0x86e   :  { %v2938_v2 = vsel %vm2937_vm6, %v4449_v60, %v2934_v52  ;;  %3276 = vmatpush.bf16.msra.mxu1 %v4230_v40  ;;  %v4228_v60 = vld [vmem:[%s4952_s19 + $0x18] sm:$0xff] }
 0x86f   :  { %v2943_v46 = vsel %vm2940_vm7, %v2942_v22, %v2938_v2 }
 0x870   :  { %v2947_v3 = vmul.f32 %v2943_v46, %v5574_v7  ;;  %v4224_v7 = vld [vmem:[%s5667_s11 + $0x38] sm:$0xff] }
 0x871   :  { %3189 = vmatpush.bf16.msrb.mxu0 %v4224_v7 }
 0x872   :  { %v2950_v51 = vadd.f32 %v2947_v3, %v5558_v10  ;;  %v3031_v10 = vpack.c.bf16 %v3029_v27, %v3028_v9  ;;  %3277 = vmatpush.bf16.msra.mxu1 %v4229_v47 }
 0x874   :  { %2953 = vst [vmem:[%s4962_s17 + $0x10] sm:$0xff] %v2950_v51  ;;  %v3030_v33 = vmul.f32 %v5576_v32, %v2950_v51  ;;  %v4222_v32 = vld [vmem:[%s5667_s11 + $0x28] sm:$0xff] }
 0x875   :  { %3190 = vmatpush.bf16.msrb.mxu0 %v4223_v41 }
 0x876   :  { %v3032_v28 = vpack.c.bf16 %v3030_v33, %v3030_v33  ;;  %3278 = vmatpush.bf16.msra.mxu1 %v4228_v60 }
 0x878   :  { %v3037_v24 = vsel %vm691_vm1, %v3032_v28, 0 }
 0x879   :  { %3045 = vmatpush.bf16.msra.mxu2 %v3037_v24  ;;  %3191 = vmatpush.bf16.msrb.mxu0 %v4222_v32 }
 0x87a   :  { %3279 = vmatpush.bf16.msra.mxu1 %v4227_v37 }
 0x87d   :  { %3046 = vmatpush.bf16.msra.mxu2 %v3031_v10  ;;  %3192 = vmatpush.bf16.msrb.mxu0 %v4221_v18 }
 0x87e   :  { %3280 = vmatpush.bf16.msra.mxu1 %v4226_v11 }
 0x880   :  { %3966 = vmatmul.msk.bf16.vlgmr.msra.gmra.mxu2 %vm681_vm3, %v2954_v8 }
 0x881   :  { %3193 = vmatpush.bf16.msrb.mxu0 %v4220_v30 }
 0x882   :  { %3281 = vmatpush.bf16.msra.mxu1 %v4225_v39 }
 0x885   :  { %3194 = vmatpush.bf16.msrb.mxu0 %v4219_v57 }
 0x889   :  { %3195 = vmatpush.bf16.msrb.mxu0 %v4218_v53 }
 0x88d   :  { %3196 = vmatpush.bf16.msrb.mxu0 %v4217_v44 }
 0x903   :  { %v3048_v14 = vpop.f32.mrf.mxu2 }
 0x904   :  { %v3052_v29 = vpack.c.bf16 %v3048_v14, %v3048_v14 }
 0x906   :  { %3112 = vmatmul.bf16.vlgmr.msra.gmra.mxu3 %v3052_v29 }
 0x90b   :  { %v3050_v58 = vpop.f32.mrf.mxu2 }
 0x989   :  { %v3113_v1 = vpop.f32.mrf.mxu3 }
 0x98a   :  { %v3114_v54 = vadd.f32 %v4339_v15, %v3113_v1 }
 0x98c   :  { %v3999_v56 = vmul.f32 -1.442695, %v3114_v54 }
 0x98e   :  { %4450 = vpow2.f32 %v3999_v56 }
 0x991   :  { %v3115_v42 = vpop.f32.mrf.mxu3 }
 0x994   :  { %v4451_v6 = vpop.eup %4450 }
 0x995   :  { %v3120_v16 = vadd.f32 1.0, %v4451_v6 }
 0x997   :  { %4452 = vrcp.f32 %v3120_v16  ;;  %v3132_v31 = vand.u32 2147483648, %v3120_v16  ;;  %v3130_v13 = vand.u32 2147483647, %v3120_v16  ;;  %vm3126_vm3 = vweird.f32 %v3120_v16 }
 0x999   :  { %v3133_v4 = vor.u32 1.1754944e-38, %v3132_v31  ;;  %vm3131_vm9 = vcmp.eq.f32.partialorder %v3130_v13, 8.507059e+37 }
 0x99d   :  { %v4453_v20 = vpop.eup %4452 }
 0x99e   :  { %v3122_v59 = vmul.f32 %v4453_v20, %v3120_v16  ;;  %vm3127_vm1 = vweird.f32 %v4453_v20 }
 0x99f   :  { %vm3128_vm8 = vmor %vm3126_vm3, %vm3127_vm1 }
 0x9a0   :  { %v3123_v17 = vsub.f32 1.0, %v3122_v59 }
 0x9a2   :  { %v3124_v49 = vmul.f32 %v4453_v20, %v3123_v17 }
 0x9a4   :  { %v3125_v48 = vadd.f32 %v4453_v20, %v3124_v49 }
 0x9a6   :  { %v3129_v23 = vsel %vm3128_vm8, %v4453_v20, %v3125_v48 }
 0x9a7   :  { %v3134_v19 = vsel %vm3131_vm9, %v3133_v4, %v3129_v23 }
 0x9a8   :  { %v3136_v62 = vmul.f32 %v3134_v19, %v3114_v54 }
 0x9aa   :  { %v3137_v50 = vpack.c.bf16 %v3136_v62, %v3136_v62 }
 0x9ac   :  { %3197 = vmatmul.bf16.vlgmr.msrb.gmra.mxu0 %v3137_v50 }
 0xa29   :  { %v3198_v38 = vpop.f32.mrf.mxu0 }
 0xa2a   :  { %v3199_v25 = vadd.f32 %v4340_v35, %v3198_v38 }
 0xa2c   :  { %v4032_v55 = vmul.f32 -1.442695, %v3199_v25 }
 0xa2e   :  { %4454 = vpow2.f32 %v4032_v55 }
 0xa31   :  { %v3200_v61 = vpop.f32.mrf.mxu0 }
 0xa34   :  { %v4455_v45 = vpop.eup %4454 }
 0xa35   :  { %v3205_v34 = vadd.f32 1.0, %v4455_v45 }
 0xa37   :  { %4456 = vrcp.f32 %v3205_v34  ;;  %v3217_v22 = vand.u32 2147483648, %v3205_v34  ;;  %v3215_v0 = vand.u32 2147483647, %v3205_v34  ;;  %vm3211_vm11 = vweird.f32 %v3205_v34 }
 0xa39   :  { %v3218_v3 = vor.u32 1.1754944e-38, %v3217_v22  ;;  %vm3216_vm13 = vcmp.eq.f32.partialorder %v3215_v0, 8.507059e+37 }
 0xa3d   :  { %v4457_v26 = vpop.eup %4456 }
 0xa3e   :  { %v3207_v63 = vmul.f32 %v4457_v26, %v3205_v34  ;;  %vm3212_vm10 = vweird.f32 %v4457_v26 }
 0xa3f   :  { %vm3213_vm12 = vmor %vm3211_vm11, %vm3212_vm10 }
 0xa40   :  { %v3208_v52 = vsub.f32 1.0, %v3207_v63 }
 0xa42   :  { %v3209_v2 = vmul.f32 %v4457_v26, %v3208_v52 }
 0xa44   :  { %v3210_v46 = vadd.f32 %v4457_v26, %v3209_v2 }
 0xa46   :  { %v3214_v51 = vsel %vm3213_vm12, %v4457_v26, %v3210_v46 }
 0xa47   :  { %v3219_v5 = vsel %vm3216_vm13, %v3218_v3, %v3214_v51 }
 0xa48   :  { %v3221_v33 = vmul.f32 %v3219_v5, %v3199_v25 }
 0xa4a   :  { %v3222_v28 = vpack.c.bf16 %v3221_v33, %v3221_v33 }
 0xa4c   :  { %3282 = vmatmul.bf16.vlgmr.msra.gmra.mxu1 %v3222_v28 }
 0xac9   :  { %v3283_v27 = vpop.f32.mrf.mxu1 }
 0xaca   :  { %v3284_v24 = vadd.f32 %v4341_v43, %v3283_v27 }
 0xacc   :  { %v4065_v9 = vmul.f32 -1.442695, %v3284_v24 }
 0xace   :  { %4458 = vpow2.f32 %v4065_v9 }
 0xad1   :  { %v3285_v10 = vpop.f32.mrf.mxu1 }
 0xad4   :  { %v4459_v8 = vpop.eup %4458 }
 0xad5   :  { %v3290_v12 = vadd.f32 1.0, %v4459_v8 }
 0xad7   :  { %4460 = vrcp.f32 %v3290_v12  ;;  %v3302_v7 = vand.u32 2147483648, %v3290_v12  ;;  %v3300_v32 = vand.u32 2147483647, %v3290_v12  ;;  %vm3296_vm15 = vweird.f32 %v3290_v12 }
 0xad9   :  { %v3303_v30 = vor.u32 1.1754944e-38, %v3302_v7  ;;  %vm3301_vm4 = vcmp.eq.f32.partialorder %v3300_v32, 8.507059e+37 }
 0xadd   :  { %v4461_v14 = vpop.eup %4460 }
 0xade   :  { %v3292_v29 = vmul.f32 %v4461_v14, %v3290_v12  ;;  %vm3297_vm14 = vweird.f32 %v4461_v14 }
 0xadf   :  { %vm3298_vm2 = vmor %vm3296_vm15, %vm3297_vm14 }
 0xae0   :  { %v3293_v58 = vsub.f32 1.0, %v3292_v29 }
 0xae2   :  { %v3294_v41 = vmul.f32 %v4461_v14, %v3293_v58 }
 0xae4   :  { %v3295_v18 = vadd.f32 %v4461_v14, %v3294_v41 }
 0xae6   :  { %v3299_v15 = vsel %vm3298_vm2, %v4461_v14, %v3295_v18 }
 0xae7   :  { %v3304_v57 = vsel %vm3301_vm4, %v3303_v30, %v3299_v15 }
 0xae8   :  { %v3306_v1 = vmul.f32 %v3304_v57, %v3284_v24 }
 0xaea   :  { %3307 = vst [vmem:[%s4967_s13] sm:$0xff] %v3306_v1 }
 0xaeb   :  { %3316 = vsyncpa [#allocation3], 1 }
 0xaec   :  { %3317 = vsyncpa [#allocation5], 1 }
 0xaed   :  { %3318 = vsyncpa [#allocation8], 1 }
 0xaee   :  { %3319 = vsyncpa [#allocation11], 1 }
 0xaef   :  { %3320 = vsyncpa [#allocation14], 1 }
 0xaf0   :  { %3321 = vsyncpa [#allocation17], 1 }

// kernel: _lambda_.9
= control target key start
LH: loop header
LB: loop body
LE: loop exit
PB: predicated region body
PF: predicated region fallthrough
CT: control target
= control target key end

     0   :  { %s4704_s6 = smov 1   ;;  %s4705_s10 = smov 2   ;;  %s5577_s0 = inlined_call_operand.smem [shape: u32[34], index: -1, kind: input, shape index: {}] }
   0x1   :  { %s4763_s5 = sld [smem:[%s5577_s0]]   ;;  %s4706_s14 = smov 3  }
   0x2   :  { %s4768_s9 = sld [smem:[%s5577_s0 + %s4704_s6]]   ;;  %s4707_s18 = smov 4  }
   0x3   :  { %s4773_s13 = sld [smem:[%s5577_s0 + %s4705_s10]]   ;;  %s4708_s22 = smov 5  }
   0x4   :  { %s4778_s17 = sld [smem:[%s5577_s0 + %s4706_s14]]   ;;  %s4709_s26 = smov 6  }
   0x5   :  { %s4783_s21 = sld [smem:[%s5577_s0 + %s4707_s18]]   ;;  %s4710_s30 = smov 7  }
   0x6   :  { %s4788_s25 = sld [smem:[%s5577_s0 + %s4708_s22]]   ;;  %s4711_s4 = smov 8  }
   0x7   :  { %5592 = sst [smem:[#allocation24_spill]] %s4763_s5  ;;  %s4712_s10 = smov 9  }
   0x8   :  { %s4793_s29 = sld [smem:[%s5577_s0 + %s4709_s26]]   ;;  %s4713_s15 = smov 10  }
   0x9   :  { %s4798_s3 = sld [smem:[%s5577_s0 + %s4710_s30]]   ;;  %s4714_s20 = smov 11  }
   0xa   :  { %5593 = sst [smem:[#allocation25_spill]] %s4778_s17  ;;  %s4715_s26 = smov 12  }
   0xb   :  { %5594 = sst [smem:[#allocation26_spill]] %s4783_s21  ;;  %s4716_s1 = smov 13  }
   0xc   :  { %5595 = sst [smem:[#allocation27_spill]] %s4788_s25  ;;  %s4717_s7 = smov 14  }
   0xd   :  { %s4803_s8 = sld [smem:[%s5577_s0 + %s4711_s4]]   ;;  %s4719_s22 = smov 16  }
   0xe   :  { %s4808_s14 = sld [smem:[%s5577_s0 + %s4712_s10]]   ;;  %s4720_s28 = smov 17  }
   0xf   :  { %s4813_s19 = sld [smem:[%s5577_s0 + %s4713_s15]]   ;;  %s4718_s15 = smov 15  }
  0x10   :  { %s4818_s24 = sld [smem:[%s5577_s0 + %s4714_s20]]  }
  0x11   :  { %s4823_s30 = sld [smem:[%s5577_s0 + %s4715_s26]]  }
  0x12   :  { %s4828_s6 = sld [smem:[%s5577_s0 + %s4716_s1]]  }
  0x13   :  { %s4833_s12 = sld [smem:[%s5577_s0 + %s4717_s7]]   ;;  %s4721_s7 = smov 18  }
  0x14   :  { %5596 = sst [smem:[#allocation28_spill]] %s4808_s14 }
  0x15   :  { %5597 = sst [smem:[#allocation29_spill]] %s4813_s19 }
  0x16   :  { %5598 = sst [smem:[#allocation30_spill]] %s4818_s24 }
  0x17   :  { %s4838_s20 = sld [smem:[%s5577_s0 + %s4718_s15]]   ;;  %s4722_s15 = smov 19  }
  0x18   :  { %5599 = sst [smem:[#allocation31_spill]] %s4828_s6 }
  0x19   :  { %s4843_s27 = sld [smem:[%s5577_s0 + %s4719_s22]]   ;;  %s4723_s22 = smov 20  }
  0x1a   :  { %s4848_s4 = sld [smem:[%s5577_s0 + %s4720_s28]]   ;;  %s4724_s28 = smov 21  }
  0x1b   :  { %s4853_s25 = sld [smem:[%s5577_s0 + %s4721_s7]]   ;;  %s4725_s7 = smov 22  }
  0x1c   :  { %s4863_s6 = sld [smem:[%s5577_s0 + %s4723_s22]]   ;;  %s4727_s22 = smov 24  }
  0x1d   :  { %5600 = sst [smem:[#allocation32_spill]] %s4838_s20 }
  0x1e   :  { %s4858_s20 = sld [smem:[%s5577_s0 + %s4722_s15]]   ;;  %s4726_s15 = smov 23  }
  0x1f   :  { %s4873_s21 = sld [smem:[%s5577_s0 + %s4725_s7]]   ;;  %s4729_s7 = smov 26  }
  0x20   :  { %5601 = sst [smem:[#allocation33_spill]] %s4848_s4 }
  0x21   :  { %s4868_s4 = sld [smem:[%s5577_s0 + %s4724_s28]]   ;;  %s4728_s28 = smov 25  }
  0x22   :  { %s4883_s24 = sld [smem:[%s5577_s0 + %s4727_s22]]   ;;  %s4731_s22 = smov 28  }
  0x23   :  { %s4893_s19 = sld [smem:[%s5577_s0 + %s4729_s7]]   ;;  %s4733_s7 = smov 30  }
  0x24   :  { %5602 = sst [smem:[#allocation34_spill]] %s4858_s20 }
  0x25   :  { %s4878_s20 = sld [smem:[%s5577_s0 + %s4726_s15]]   ;;  %s4730_s15 = smov 27  }
  0x26   :  { %s4903_s17 = sld [smem:[%s5577_s0 + %s4731_s22]]   ;;  %s4735_s22 = smov 32  }
  0x27   :  { %5603 = sst [smem:[#allocation35_spill]] %s4868_s4 }
  0x28   :  { %s4888_s4 = sld [smem:[%s5577_s0 + %s4728_s28]]   ;;  %s4732_s28 = smov 29  }
  0x29   :  { %5606 = sst [smem:[#allocation38_spill]] %s4893_s19 }
  0x2a   :  { %s4913_s19 = sld [smem:[%s5577_s0 + %s4733_s7]]  }
  0x2b   :  { %5604 = sst [smem:[#allocation36_spill]] %s4878_s20 }
  0x2c   :  { %s4898_s20 = sld [smem:[%s5577_s0 + %s4730_s15]]   ;;  %s4734_s15 = smov 31  }
  0x2d   :  { %5607 = sst [smem:[#allocation39_spill]] %s4903_s17 }
  0x2e   :  { %5605 = sst [smem:[#allocation37_spill]] %s4888_s4 }
  0x2f   :  { %s4908_s4 = sld [smem:[%s5577_s0 + %s4732_s28]]   ;;  %s4736_s28 = smov 33  }
  0x30   :  { %s4918_s14 = sld [smem:[%s5577_s0 + %s4734_s15]]  }
  0x31   :  { %s4923_s17 = sld [smem:[%s5577_s0 + %s4735_s22]]  }
  0x32   :  { %s4928_s5 = sld [smem:[%s5577_s0 + %s4736_s28]]  }
  0x33   :  { %73 = vsyncpa [#allocation3], 0 }
  0x34   :  { %74 = vsyncpa [#allocation5], 0 }
  0x35   :  { %75 = vsyncpa [#allocation8], 0 }
  0x36   :  { %76 = vsyncpa [#allocation11], 0 }
  0x37   :  { %77 = vsyncpa [#allocation14], 0  ;;  %s121_s7 = sshll.u32 %s4833_s12, 4  ;;  %s122_s7 = int_to_ptr.hbm [resolvable:$true] %s121_s7 }
  0x38   :  { %78 = vsyncpa [#allocation17], 0  ;;  %s4737_s10 = smov [#allocation4]   ;;  %s147_s15 = sshll.u32 %s4853_s25, 4  ;;  %s148_s15 = int_to_ptr.hbm [resolvable:$true] %s147_s15 }
  0x39   :  { %s123_s11 = sshll.u32 %s4737_s10, 4  ;;  %s4452_s16 = sshra.s32 %s122_s7, 4  ;;  %s124_s11 = int_to_ptr.vmem [resolvable:$true] %s123_s11  ;;  %s4453_s16 = int_to_ptr.hbm [resolvable:$true] %s4452_s16 }
  0x3a   :  { %s4454_s0 = scalar_lea.hbm %s4453_s16, 1  ;;  %s4456_s18 = scalar_lea.hbm %s4833_s12, 1 }
  0x3b   :  { %p4455_p0 = scmp.ne.s32.totalorder %s4453_s16, %s4454_s0  ;;  %p4457_p1 = scmp.lt.s32.totalorder %s4453_s16, %s4833_s12 }
  0x3c   :  { %p4458_p2 = scmp.lt.s32.totalorder %s4456_s18, %s4454_s0 }
  0x3e   :  { %p4459_p3 = por %p4458_p2, %p4457_p1 }
  0x40   :  { %p4460_p4 = pnand %p4459_p3, %p4455_p0 }
  0x42   :  { %4463 = shalt.err (!%p4460_p4)
}
  0x43   :  { %126 = dma.hbm_to_vmem [thread:$0]  %s122_s7, 16, %s124_s11, [#allocation5]  }
  0x44   :  { %s4738_s22 = smov [#allocation7]   ;;  %s173_s26 = sshll.u32 %s4873_s21, 4  ;;  %s174_s26 = int_to_ptr.hbm [resolvable:$true] %s173_s26 }
  0x45   :  { %s149_s23 = sshll.u32 %s4738_s22, 4  ;;  %s4476_s28 = sshra.s32 %s148_s15, 4  ;;  %s150_s23 = int_to_ptr.vmem [resolvable:$true] %s149_s23  ;;  %s4477_s28 = int_to_ptr.hbm [resolvable:$true] %s4476_s28 }
  0x46   :  { %s4478_s1 = scalar_lea.hbm %s4477_s28, 1  ;;  %s4480_s2 = scalar_lea.hbm %s4853_s25, 1 }
  0x47   :  { %p4479_p5 = scmp.ne.s32.totalorder %s4477_s28, %s4478_s1  ;;  %p4481_p6 = scmp.lt.s32.totalorder %s4477_s28, %s4853_s25 }
  0x48   :  { %p4482_p7 = scmp.lt.s32.totalorder %s4480_s2, %s4478_s1 }
  0x4a   :  { %p4483_p8 = por %p4482_p7, %p4481_p6 }
  0x4c   :  { %p4484_p9 = pnand %p4483_p8, %p4479_p5 }
  0x4e   :  { %4487 = shalt.err (!%p4484_p9)
}
  0x4f   :  { %152 = dma.hbm_to_vmem [thread:$0]  %s148_s15, 16, %s150_s23, [#allocation8]  }
  0x50   :  { %s201_s12 = sshll.u32 %s4898_s20, 4  ;;  %s4739_s7 = smov [#allocation10]   ;;  %s202_s12 = int_to_ptr.hbm [resolvable:$true] %s201_s12 }
  0x51   :  { %s175_s10 = sshll.u32 %s4739_s7, 4  ;;  %s4500_s11 = sshra.s32 %s174_s26, 4  ;;  %s176_s10 = int_to_ptr.vmem [resolvable:$true] %s175_s10  ;;  %s4501_s11 = int_to_ptr.hbm [resolvable:$true] %s4500_s11 }
  0x52   :  { %s4502_s16 = scalar_lea.hbm %s4501_s11, 1  ;;  %s4504_s0 = scalar_lea.hbm %s4873_s21, 1 }
  0x53   :  { %p4503_p10 = scmp.ne.s32.totalorder %s4501_s11, %s4502_s16  ;;  %p4505_p11 = scmp.lt.s32.totalorder %s4501_s11, %s4873_s21 }
  0x54   :  { %p4506_p12 = scmp.lt.s32.totalorder %s4504_s0, %s4502_s16 }
  0x56   :  { %p4507_p13 = por %p4506_p12, %p4505_p11 }
  0x58   :  { %p4508_p0 = pnand %p4507_p13, %p4503_p10 }
  0x5a   :  { %4511 = shalt.err (!%p4508_p0)
}
  0x5b   :  { %178 = dma.hbm_to_vmem [thread:$0]  %s174_s26, 16, %s176_s10, [#allocation11]  }
  0x5c   :  { %s4740_s25 = smov [#allocation13]   ;;  %s108_s18 = sshll.u32 %s4823_s30, 4  ;;  %s109_s18 = int_to_ptr.hbm [resolvable:$true] %s108_s18 }
  0x5d   :  { %s203_s15 = sshll.u32 %s4740_s25, 4  ;;  %s4524_s22 = sshra.s32 %s202_s12, 4  ;;  %s204_s15 = int_to_ptr.vmem [resolvable:$true] %s203_s15  ;;  %s4525_s22 = int_to_ptr.hbm [resolvable:$true] %s4524_s22 }
  0x5e   :  { %s4526_s23 = scalar_lea.hbm %s4525_s22, 1  ;;  %s4528_s28 = scalar_lea.hbm %s4898_s20, 1 }
  0x5f   :  { %p4527_p1 = scmp.ne.s32.totalorder %s4525_s22, %s4526_s23  ;;  %p4529_p2 = scmp.lt.s32.totalorder %s4525_s22, %s4898_s20 }
  0x60   :  { %p4530_p3 = scmp.lt.s32.totalorder %s4528_s28, %s4526_s23 }
  0x62   :  { %p4531_p4 = por %p4530_p3, %p4529_p2 }
  0x64   :  { %p4532_p5 = pnand %p4531_p4, %p4527_p1 }
  0x66   :  { %4535 = shalt.err (!%p4532_p5)
}
  0x67   :  { %206 = dma.hbm_to_vmem [thread:$0]  %s202_s12, 16, %s204_s15, [#allocation14]  }
  0x68   :  { %s134_s21 = sshll.u32 %s4843_s27, 4  ;;  %s4741_s26 = smov [#allocation2]   ;;  %s135_s21 = int_to_ptr.hbm [resolvable:$true] %s134_s21 }
  0x69   :  { %s110_s1 = sshll.u32 %s4741_s26, 4  ;;  %s4548_s2 = sshra.s32 %s109_s18, 4  ;;  %s111_s1 = int_to_ptr.vmem [resolvable:$true] %s110_s1  ;;  %s4549_s2 = int_to_ptr.hbm [resolvable:$true] %s4548_s2 }
  0x6a   :  { %s4550_s7 = scalar_lea.hbm %s4549_s2, 1  ;;  %s4552_s10 = scalar_lea.hbm %s4823_s30, 1 }
  0x6b   :  { %p4551_p6 = scmp.ne.s32.totalorder %s4549_s2, %s4550_s7  ;;  %p4553_p7 = scmp.lt.s32.totalorder %s4549_s2, %s4823_s30 }
  0x6c   :  { %p4554_p8 = scmp.lt.s32.totalorder %s4552_s10, %s4550_s7 }
  0x6e   :  { %p4555_p9 = por %p4554_p8, %p4553_p7 }
  0x70   :  { %p4556_p10 = pnand %p4555_p9, %p4551_p6 }
  0x72   :  { %4559 = shalt.err (!%p4556_p10)
}
  0x73   :  { %113 = dma.hbm_to_vmem [thread:$0]  %s109_s18, 16, %s111_s1, [#allocation3]  }
  0x74   :  { %s4742_s20 = smov [#allocation6]   ;;  %s160_s11 = sshll.u32 %s4863_s6, 4  ;;  %s161_s11 = int_to_ptr.hbm [resolvable:$true] %s160_s11 }
  0x75   :  { %s136_s12 = sshll.u32 %s4742_s20, 4  ;;  %s4572_s16 = sshra.s32 %s135_s21, 4  ;;  %s137_s12 = int_to_ptr.vmem [resolvable:$true] %s136_s12  ;;  %s4573_s16 = int_to_ptr.hbm [resolvable:$true] %s4572_s16 }
  0x76   :  { %s4574_s0 = scalar_lea.hbm %s4573_s16, 1  ;;  %s4576_s25 = scalar_lea.hbm %s4843_s27, 1 }
  0x77   :  { %p4575_p11 = scmp.ne.s32.totalorder %s4573_s16, %s4574_s0  ;;  %p4577_p12 = scmp.lt.s32.totalorder %s4573_s16, %s4843_s27 }
  0x78   :  { %p4578_p13 = scmp.lt.s32.totalorder %s4576_s25, %s4574_s0 }
  0x7a   :  { %p4579_p0 = por %p4578_p13, %p4577_p12 }
  0x7c   :  { %p4580_p1 = pnand %p4579_p0, %p4575_p11 }
  0x7e   :  { %4583 = shalt.err (!%p4580_p1)
}
  0x7f   :  { %139 = dma.hbm_to_vmem [thread:$0]  %s135_s21, 16, %s137_s12, [#allocation5]  }
  0x80   :  { %s186_s30 = sshll.u32 %s4883_s24, 4  ;;  %s4743_s15 = smov [#allocation9]   ;;  %s187_s30 = int_to_ptr.hbm [resolvable:$true] %s186_s30 }
  0x81   :  { %s162_s18 = sshll.u32 %s4743_s15, 4  ;;  %s4596_s22 = sshra.s32 %s161_s11, 4  ;;  %s163_s18 = int_to_ptr.vmem [resolvable:$true] %s162_s18  ;;  %s4597_s22 = int_to_ptr.hbm [resolvable:$true] %s4596_s22 }
  0x82   :  { %s4598_s23 = scalar_lea.hbm %s4597_s22, 1  ;;  %s4600_s28 = scalar_lea.hbm %s4863_s6, 1 }
  0x83   :  { %p4599_p2 = scmp.ne.s32.totalorder %s4597_s22, %s4598_s23  ;;  %p4601_p3 = scmp.lt.s32.totalorder %s4597_s22, %s4863_s6 }
  0x84   :  { %p4602_p4 = scmp.lt.s32.totalorder %s4600_s28, %s4598_s23 }
  0x86   :  { %p4603_p5 = por %p4602_p4, %p4601_p3 }
  0x88   :  { %p4604_p6 = pnand %p4603_p5, %p4599_p2 }
  0x8a   :  { %4607 = shalt.err (!%p4604_p6)
}
  0x8b   :  { %165 = dma.hbm_to_vmem [thread:$0]  %s161_s11, 16, %s163_s18, [#allocation8]  }
  0x8c   :  { %s4744_s27 = smov [#allocation12]   ;;  %s214_s26 = sshll.u32 %s4908_s4, 4  ;;  %s215_s26 = int_to_ptr.hbm [resolvable:$true] %s214_s26 }
  0x8d   :  { %s188_s21 = sshll.u32 %s4744_s27, 4  ;;  %s4620_s1 = sshra.s32 %s187_s30, 4  ;;  %s189_s21 = int_to_ptr.vmem [resolvable:$true] %s188_s21  ;;  %s4621_s1 = int_to_ptr.hbm [resolvable:$true] %s4620_s1 }
  0x8e   :  { %s4622_s2 = scalar_lea.hbm %s4621_s1, 1  ;;  %s4624_s7 = scalar_lea.hbm %s4883_s24, 1 }
  0x8f   :  { %p4623_p7 = scmp.ne.s32.totalorder %s4621_s1, %s4622_s2  ;;  %p4625_p8 = scmp.lt.s32.totalorder %s4621_s1, %s4883_s24 }
  0x90   :  { %p4626_p9 = scmp.lt.s32.totalorder %s4624_s7, %s4622_s2 }
  0x92   :  { %p4627_p10 = por %p4626_p9, %p4625_p8 }
  0x94   :  { %p4628_p11 = pnand %p4627_p10, %p4623_p7 }
  0x96   :  { %4631 = shalt.err (!%p4628_p11)
}
  0x97   :  { %191 = dma.hbm_to_vmem [thread:$0]  %s187_s30, 16, %s189_s21, [#allocation11]  }
  0x98   :  { %s227_s6 = sshll.u32 %s4918_s14, 4  ;;  %s4745_s10 = smov [#allocation15]   ;;  %s228_s6 = int_to_ptr.hbm [resolvable:$true] %s227_s6 }
  0x99   :  { %s216_s20 = sshll.u32 %s4745_s10, 4  ;;  %s4644_s12 = sshra.s32 %s215_s26, 4  ;;  %s217_s20 = int_to_ptr.vmem [resolvable:$true] %s216_s20  ;;  %s4645_s12 = int_to_ptr.hbm [resolvable:$true] %s4644_s12 }
  0x9a   :  { %s4646_s11 = scalar_lea.hbm %s4645_s12, 1  ;;  %s4648_s16 = scalar_lea.hbm %s4908_s4, 1 }
  0x9b   :  { %p4647_p12 = scmp.ne.s32.totalorder %s4645_s12, %s4646_s11  ;;  %p4649_p13 = scmp.lt.s32.totalorder %s4645_s12, %s4908_s4 }
  0x9c   :  { %p4650_p0 = scmp.lt.s32.totalorder %s4648_s16, %s4646_s11 }
  0x9e   :  { %p4651_p1 = por %p4650_p0, %p4649_p13 }
  0xa0   :  { %p4652_p2 = pnand %p4651_p1, %p4647_p12 }
  0xa2   :  { %4655 = shalt.err (!%p4652_p2)
}
  0xa3   :  { %219 = dma.hbm_to_vmem [thread:$0]  %s215_s26, 16, %s217_s20, [#allocation14]  }
  0xa4   :  { %s4746_s24 = smov [#allocation16]   ;;  %s4668_s25 = sshra.s32 %s228_s6, 4  ;;  %s4669_s25 = int_to_ptr.hbm [resolvable:$true] %s4668_s25 }
  0xa5   :  { %s229_s0 = sshll.u32 %s4746_s24, 4  ;;  %s4670_s30 = scalar_lea.hbm %s4669_s25, 1  ;;  %s230_s0 = int_to_ptr.vmem [resolvable:$true] %s229_s0 }
  0xa6   :  { %p4671_p3 = scmp.ne.s32.totalorder %s4669_s25, %s4670_s30  ;;  %s4672_s15 = scalar_lea.hbm %s4918_s14, 1 }
  0xa7   :  { %p4673_p4 = scmp.lt.s32.totalorder %s4669_s25, %s4918_s14  ;;  %p4674_p5 = scmp.lt.s32.totalorder %s4672_s15, %s4670_s30 }
  0xa9   :  { %p4675_p6 = por %p4674_p5, %p4673_p4 }
  0xab   :  { %p4676_p7 = pnand %p4675_p6, %p4671_p3 }
  0xad   :  { %4679 = shalt.err (!%p4676_p7)
}
  0xae   :  { %232 = dma.hbm_to_vmem [thread:$0]  %s228_s6, 16, %s230_s0, [#allocation17]  }
  0xaf   :  { %4692 = dma.done.wait [#allocation3], 16  }
  0xb0   :  { %4693 = vsyncadd [#allocation3], 4294967280 }
  0xb1   :  { %4694 = dma.done.wait [#allocation5], 32  }
  0xb2   :  { %4695 = vsyncadd [#allocation5], 4294967264 }
  0xb3   :  { %4696 = dma.done.wait [#allocation8], 32  }
  0xb4   :  { %4697 = vsyncadd [#allocation8], 4294967264 }
  0xb5   :  { %4698 = dma.done.wait [#allocation11], 32  }
  0xb6   :  { %4699 = vsyncadd [#allocation11], 4294967264 }
  0xb7   :  { %4700 = dma.done.wait [#allocation14], 32  }
  0xb8   :  { %4701 = vsyncadd [#allocation14], 4294967264 }
  0xb9   :  { %4702 = dma.done.wait [#allocation17], 16  }
  0xba   :  { %4703 = vsyncadd [#allocation17], 4294967280  ;;  %vm290_vm0 = vcmask 1042432   ;;  %v280_v0 = vld [vmem:[%s4793_s29] sm:$0x7]  ;;  %vm354_vm1 = vcmask 1044480  }
  0xbb   :  { %v3354_v1 = vld [vmem:[%s4798_s3 + $0x10] sm:$0xf]  ;;  %v292_v2 = vsel %vm290_vm0, %v280_v0, 0  ;;  %v4055_v3 = vld [vmem:[%s4798_s3 + $0x10] sm:$0x10]  ;;  %v277_v4 = vld [vmem:[%s4768_s9] sm:$0xff] }
  0xbc   :  { %v278_v5 = vld [vmem:[%s4768_s9 + $0x8] sm:$0xff]  ;;  %301 = vmatpush.bf16.msra.mxu3 %v292_v2  ;;  %v3355_v6 = vor.u32 %v4055_v3, %v3354_v1  ;;  %vm283_vm2 = vcmask 48128   ;;  %v4070_v8 = vld [vmem:[%s4803_s8 + $0x74] sm:$0xf]  ;;  %v3419_v9 = vld [vmem:[%s4803_s8 + $0x78] sm:$0xf0] }
  0xbd   :  { %v4966_v7 = vpack.c.bf16 %v278_v5, %v277_v4  ;;  %v3422_v10 = vor.u32 %v4070_v8, %v3419_v9  ;;  %v4068_v11 = vld [vmem:[%s4803_s8 + $0x64] sm:$0xf]  ;;  %v3411_v12 = vld [vmem:[%s4803_s8 + $0x68] sm:$0xf0]  ;;  %v4066_v16 = vld [vmem:[%s4803_s8 + $0x54] sm:$0xf] }
  0xbe   :  { %v356_v13 = vsel %vm354_vm1, %v3355_v6, 0  ;;  %v4054_v14 = vld [vmem:[%s4798_s3 + $0x8] sm:$0xff]  ;;  %v3414_v15 = vor.u32 %v4068_v11, %v3411_v12  ;;  %v3403_v17 = vld [vmem:[%s4803_s8 + $0x58] sm:$0xf0]  ;;  %v4053_v18 = vld [vmem:[%s4798_s3] sm:$0xff]  ;;  %vm344_vm3 = vcmask 343040  }
  0xbf   :  { %363 = vmatpush.bf16.msra.mxu1 %v356_v13  ;;  %3342 = vmatmul.msk.bf16.vlgmr.msra.gmra.mxu3 %vm283_vm2, %v4966_v7  ;;  %v312_v19 = vld [vmem:[%s4773_s13] sm:$0xff]  ;;  %v313_v20 = vld [vmem:[%s4773_s13 + $0x8] sm:$0xff]  ;;  %v3406_v21 = vor.u32 %v4066_v16, %v3403_v17  ;;  %v279_v29 = vld [vmem:[%s4768_s9 + $0x10] sm:$0xff]  ;;  %s5608_s29 = sld [smem:[#allocation24_spill]]  ;;  %v4747_v51 = vmov 2   ;;  %v4748_v52 = vmov 1  }
  0xc0   :  { %504 = vmatpush.bf16.msrb.mxu3 %v3422_v10  ;;  %4220 = vmatpush.bf16.msra.mxu2 %v356_v13  ;;  %v316_v22 = vld [vmem:[%s4773_s13 + $0x20] sm:$0xff]  ;;  %v317_v23 = vld [vmem:[%s4773_s13 + $0x28] sm:$0xff]  ;;  %v324_v26 = vpack.c.bf16 %v313_v20, %v312_v19  ;;  %v4062_v30 = vld [vmem:[%s4803_s8 + $0x34] sm:$0xf]  ;;  %v4989_v32 = vpack.c.bf16 %v279_v29, %v279_v29  ;;  %v4749_v53 = vmov 0   ;;  %s5609_s9 = sld [smem:[#allocation28_spill]] }
  0xc1   :  { %v4064_v24 = vld [vmem:[%s4803_s8 + $0x44] sm:$0xf]  ;;  %v3395_v25 = vld [vmem:[%s4803_s8 + $0x48] sm:$0xf0]  ;;  %v326_v27 = vpack.c.bf16 %v317_v23, %v316_v22  ;;  %v3387_v31 = vld [vmem:[%s4803_s8 + $0x38] sm:$0xf0]  ;;  %4275 = vset.pattern.permute.xlu1 %v4747_v51  ;;  %4274 = vset.pattern.permute.xlu0 %v4748_v52 }
  0xc2   :  { %v3398_v28 = vor.u32 %v4064_v24, %v3395_v25  ;;  %v3390_v33 = vor.u32 %v4062_v30, %v3387_v31  ;;  %v4060_v34 = vld [vmem:[%s4803_s8 + $0x24] sm:$0xf]  ;;  %v3379_v35 = vld [vmem:[%s4803_s8 + $0x28] sm:$0xf0]  ;;  %v4058_v37 = vld [vmem:[%s4803_s8 + $0x14] sm:$0xf]  ;;  %4276 = vset.pattern.permute.xlu2 %v4749_v53 }
  0xc3   :  { %364 = vmatpush.bf16.msra.mxu1 %v4054_v14  ;;  %v3382_v36 = vor.u32 %v4060_v34, %v3379_v35  ;;  %v3371_v38 = vld [vmem:[%s4803_s8 + $0x18] sm:$0xf0]  ;;  %v314_v39 = vld [vmem:[%s4773_s13 + $0x10] sm:$0xff]  ;;  %v4056_v42 = vld [vmem:[%s4803_s8 + $0x4] sm:$0xf]  ;;  %v4750_v58 = vmov 3  }
  0xc4   :  { %505 = vmatpush.bf16.msrb.mxu3 %v3414_v15  ;;  %4221 = vmatpush.bf16.msra.mxu2 %v4054_v14  ;;  %v315_v40 = vld [vmem:[%s4773_s13 + $0x18] sm:$0xff]  ;;  %v3374_v41 = vor.u32 %v4058_v37, %v3371_v38  ;;  %v3363_v43 = vld [vmem:[%s4803_s8 + $0x8] sm:$0xf0]  ;;  %v4751_v20 = vmov 6   ;;  %v4752_v29 = vmov 5   ;;  %v4753_v30 = vmov 7  }
  0xc5   :  { %v325_v44 = vpack.c.bf16 %v315_v40, %v314_v39  ;;  %v3366_v45 = vor.u32 %v4056_v42, %v3363_v43  ;;  %v274_v46 = vld [vmem:[%s5608_s29] sm:$0xff]  ;;  %v275_v47 = vld [vmem:[%s5608_s29 + $0x8] sm:$0xff]  ;;  %v276_v49 = vld [vmem:[%s5608_s29 + $0x10] sm:$0xff]  ;;  %s5614_s13 = sld [smem:[#allocation25_spill]]  ;;  %vm678_vm1 = vcmask 1043456  }
  0xc6   :  { %v5004_v48 = vpack.c.bf16 %v275_v47, %v274_v46  ;;  %v5008_v50 = vpack.c.bf16 %v276_v49, %v276_v49  ;;  %v400_v62 = vld [vmem:[%s5609_s9] sm:$0x3]  ;;  %s5615_s3 = sld [smem:[#allocation29_spill]] }
  0xc7   :  { %365 = vmatpush.bf16.msra.mxu1 %v4053_v18  ;;  %v403_v63 = vperm.slane %v400_v62, 1  ;;  %v4754_v62 = vmov 4   ;;  %s5617_s14 = sld [smem:[#allocation26_spill]] }
  0xc8   :  { %506 = vmatpush.bf16.msrb.mxu3 %v3406_v21  ;;  %4222 = vmatpush.bf16.msra.mxu2 %v4053_v18  ;;  %s5618_s4 = sld [smem:[#allocation31_spill]] }
  0xc9   :  { %s5619_s18 = sld [smem:[#allocation32_spill]] }
  0xca   :  { %3356 = vmatmul.msk.bf16.vlgmr.msra.gmra.mxu1 %vm344_vm3, %v324_v26  ;;  %s5620_s22 = sld [smem:[#allocation33_spill]] }
  0xcb   :  { %3358 = vmatmul.msk.bf16.vlgmr.msra.gmra.mxu2 %vm344_vm3, %v326_v27  ;;  %s5621_s23 = sld [smem:[#allocation37_spill]] }
  0xcc   :  { %507 = vmatpush.bf16.msrb.mxu3 %v3398_v28  ;;  %s5622_s28 = sld [smem:[#allocation34_spill]] }
  0xcd   :  { %s5623_s27 = sld [smem:[#allocation35_spill]] }
  0xce   :  { %s5624_s21 = sld [smem:[#allocation36_spill]] }
  0xcf   :  { %3343 = vmatmul.msk.bf16.gmra.mxu3 %vm283_vm2, %v4989_v32  ;;  %s5625_s26 = sld [smem:[#allocation38_spill]] }
  0xd0   :  { %508 = vmatpush.bf16.msrb.mxu3 %v3390_v33  ;;  %s5626_s1 = sld [smem:[#allocation27_spill]] }
  0xd1   :  { %s5627_s2 = sld [smem:[#allocation39_spill]] }
  0xd4   :  { %509 = vmatpush.bf16.msrb.mxu3 %v3382_v36 }
  0xd8   :  { %510 = vmatpush.bf16.msrb.mxu3 %v3374_v41 }
  0xda   :  { %3357 = vmatmul.msk.bf16.gmra.mxu1 %vm344_vm3, %v325_v44  ;;  %vm668_vm3 = vcmask 195584  }
  0xdc   :  { %511 = vmatpush.bf16.msrb.mxu3 %v3366_v45 }
  0xdf   :  { %512 = vmatmul.bf16.vlgmr.msrb.gmra.mxu3 %v5004_v48 }
  0xef   :  { %517 = vmatmul.bf16.gmra.mxu3 %v5008_v50 }
 0x142   :  { %v5014_v54 = vpop.f32.mrf.mxu3 }
 0x147   :  { %v5016_v55 = vpop.f32.mrf.mxu1 }
 0x148   :  { %708 = vperm.xlu2 %4276, %v5016_v55   ;;  %785 = vperm.xlu1 %4275, %v5016_v55  }
 0x149   :  { %749 = vperm.xlu0 %4274, %v5016_v55  }
 0x14a   :  { %v5021_v56 = vpop.f32.mrf.mxu3 }
 0x14e   :  { %v5023_v57 = vpop.f32.mrf.mxu2 }
 0x14f   :  { %v5034_v60 = vpop.f32.mrf.mxu1 }
 0x150   :  { %4279 = vset.pattern.permute.xlu2 %v4747_v51  ;;  %4281 = vset.pattern.permute.xlu1 %v4750_v58 }
 0x151   :  { %4277 = vset.pattern.permute.xlu0 %v4750_v58  ;;  %801 = vperm.xlu2 %4279, %v5023_v57  }
 0x152   :  { %837 = vperm.xlu1 %4281, %v5023_v57   ;;  %821 = vperm.xlu0 %4277, %v5016_v55   ;;  %v5031_v59 = vpop.f32.mrf.mxu3 }
 0x156   :  { %v5051_v4 = vpop.f32.mrf.mxu2 }
 0x157   :  { %v5049_v3 = vpop.f32.mrf.mxu1 }
 0x159   :  { %4280 = vset.pattern.permute.xlu2 %v4749_v53 }
 0x15a   :  { %4282 = vset.pattern.permute.xlu1 %v4747_v51  ;;  %4278 = vset.pattern.permute.xlu0 %v4748_v52  ;;  %v310_v61 = vpop.f32.mrf.mxu3 }
 0x15b   :  { %728 = vperm.xlu2 %4280, %v5023_v57   ;;  %765 = vperm.xlu0 %4278, %v5023_v57  }
 0x15c   :  { %789 = vperm.xlu1 %4282, %v5034_v60  }
 0x15f   :  { %v5064_v11 = vpop.f32.mrf.mxu1 }
 0x162   :  { %v513_v0 = vpop.f32.mrf.mxu3 }
 0x163   :  { %713 = vperm.xlu2 %4280, %v5034_v60   ;;  %753 = vperm.xlu0 %4278, %v5034_v60   ;;  %v5044_v1 = vadd.f32 %v513_v0, %v403_v63 }
 0x164   :  { %4283 = vset.pattern.permute.xlu1 %v4750_v58 }
 0x165   :  { %825 = vperm.xlu1 %4283, %v5034_v60   ;;  %v3426_v2 = vmul.f32 -1.442695, %v5044_v1 }
 0x167   :  { %4328 = vpow2.f32 %v3426_v2 }
 0x16a   :  { %v515_v5 = vpop.f32.mrf.mxu3 }
 0x16b   :  { %4287 = vset.pattern.permute.xlu2 %v4750_v58  ;;  %4286 = vset.pattern.permute.xlu0 %v4749_v53  ;;  %v5055_v6 = vadd.f32 %v515_v5, %v403_v63 }
 0x16c   :  { %841 = vperm.xlu2 %4287, %v5051_v4   ;;  %733 = vperm.xlu0 %4286, %v5051_v4  }
 0x16d   :  { %4284 = vset.pattern.permute.xlu1 %v4748_v52  ;;  %v3427_v8 = vmul.f32 -1.442695, %v5055_v6  ;;  %v4329_v9 = vpop.eup %4328 }
 0x16e   :  { %769 = vperm.xlu1 %4284, %v5051_v4   ;;  %v5062_v10 = vadd.f32 1.0, %v4329_v9 }
 0x16f   :  { %4330 = vpow2.f32 %v3427_v8 }
 0x170   :  { %4332 = vrcp.f32 %v5062_v10  ;;  %v605_v42 = vand.u32 2147483648, %v5062_v10  ;;  %vm599_vm10 = vweird.f32 %v5062_v10  ;;  %v603_v45 = vand.u32 2147483647, %v5062_v10 }
 0x172   :  { %v518_v12 = vpop.f32.mrf.mxu3  ;;  %v606_v2 = vor.u32 1.1754944e-38, %v605_v42  ;;  %vm604_vm15 = vcmp.eq.f32.partialorder %v603_v45, 8.507059e+37  ;;  %v4098_v45 = vld [vmem:[%s5615_s3 + $0xb8] sm:$0xff] }
 0x173   :  { %v5066_v13 = vadd.f32 %v518_v12, %v403_v63  ;;  %1704 = vmatpush.bf16.msra.mxu3 %v4098_v45 }
 0x174   :  { %4288 = vset.pattern.permute.xlu2 %v4748_v52  ;;  %4295 = vset.pattern.permute.xlu0 %v4747_v51 }
 0x175   :  { %v4331_v14 = vpop.eup %4330  ;;  %v3428_v15 = vmul.f32 -1.442695, %v5066_v13  ;;  %757 = vperm.xlu2 %4288, %v5049_v3   ;;  %797 = vperm.xlu0 %4295, %v5064_v11  }
 0x176   :  { %v5074_v16 = vadd.f32 1.0, %v4331_v14  ;;  %4285 = vset.pattern.permute.xlu1 %v4747_v51  ;;  %v5079_v18 = vpop.eup %4332 }
 0x177   :  { %4334 = vpow2.f32 %v3428_v15  ;;  %805 = vperm.xlu1 %4285, %v5051_v4   ;;  %v595_v24 = vmul.f32 %v5079_v18, %v5062_v10  ;;  %vm600_vm6 = vweird.f32 %v5079_v18 }
 0x178   :  { %4336 = vrcp.f32 %v5074_v16  ;;  %v620_v37 = vand.u32 2147483648, %v5074_v16  ;;  %vm614_vm7 = vweird.f32 %v5074_v16  ;;  %v618_v41 = vand.u32 2147483647, %v5074_v16  ;;  %vm5111_vm12 = vmor %vm599_vm10, %vm600_vm6 }
 0x179   :  { %v596_v26 = vsub.f32 1.0, %v595_v24  ;;  %v3385_v24 = vld [vmem:[%s4803_s8 + $0x30] sm:$0xf] }
 0x17a   :  { %v520_v17 = vpop.f32.mrf.mxu3  ;;  %vm619_vm14 = vcmp.eq.f32.partialorder %v618_v41, 8.507059e+37 }
 0x17b   :  { %v597_v33 = vmul.f32 %v5079_v18, %v596_v26  ;;  %v4069_v17 = vld [vmem:[%s4803_s8 + $0x64] sm:$0xf0] }
 0x17d   :  { %v4335_v19 = vpop.eup %4334  ;;  %4289 = vset.pattern.permute.xlu2 %v4747_v51  ;;  %4296 = vset.pattern.permute.xlu0 %v4751_v20  ;;  %v598_v40 = vadd.f32 %v5079_v18, %v597_v33  ;;  %v621_v51 = vor.u32 1.1754944e-38, %v620_v37  ;;  %v4061_v33 = vld [vmem:[%s4803_s8 + $0x24] sm:$0xf0]  ;;  %v3361_v37 = vld [vmem:[%s4803_s8] sm:$0xf] }
 0x17e   :  { %v4337_v21 = vpop.eup %4336  ;;  %v593_v22 = vadd.f32 1.0, %v4335_v19  ;;  %793 = vperm.xlu2 %4289, %v5049_v3   ;;  %929 = vperm.xlu0 %4296, %v5016_v55   ;;  %v3401_v19 = vld [vmem:[%s4803_s8 + $0x50] sm:$0xf] }
 0x17f   :  { %v610_v23 = vmul.f32 %v4337_v21, %v5074_v16  ;;  %4290 = vset.pattern.permute.xlu1 %v4749_v53  ;;  %vm615_vm4 = vweird.f32 %v4337_v21  ;;  %v602_v63 = vsel %vm5111_vm12, %v5079_v18, %v598_v40  ;;  %v3409_v16 = vld [vmem:[%s4803_s8 + $0x60] sm:$0xf] }
 0x180   :  { %4338 = vrcp.f32 %v593_v22  ;;  %718 = vperm.xlu1 %4290, %v5049_v3   ;;  %v635_v36 = vand.u32 2147483648, %v593_v22  ;;  %v633_v39 = vand.u32 2147483647, %v593_v22  ;;  %vm5103_vm8 = vmor %vm614_vm7, %vm615_vm4  ;;  %vm629_vm9 = vweird.f32 %v593_v22 }
 0x181   :  { %v611_v25 = vsub.f32 1.0, %v610_v23  ;;  %v3410_v18 = vor.u32 %v4069_v17, %v3409_v16  ;;  %v4076_v16 = vld [vmem:[%s5615_s3 + $0x8] sm:$0xff]  ;;  %vm1862_vm4 = vcmask 392192  }
 0x182   :  { %v636_v47 = vor.u32 1.1754944e-38, %v635_v36  ;;  %vm634_vm13 = vcmp.eq.f32.partialorder %v633_v39, 8.507059e+37  ;;  %v4059_v36 = vld [vmem:[%s4803_s8 + $0x14] sm:$0xf0]  ;;  %v4057_v39 = vld [vmem:[%s4803_s8 + $0x4] sm:$0xf0] }
 0x183   :  { %v612_v28 = vmul.f32 %v4337_v21, %v611_v25  ;;  %v4063_v25 = vld [vmem:[%s4803_s8 + $0x34] sm:$0xf0]  ;;  %v3362_v40 = vor.u32 %v4057_v39, %v3361_v37  ;;  %v4084_v17 = vld [vmem:[%s5615_s3 + $0x48] sm:$0xff] }
 0x184   :  { %v3386_v26 = vor.u32 %v4063_v25, %v3385_v24  ;;  %v4130_v37 = vld [vmem:[%s5615_s3 + $0x1b8] sm:$0xff] }
 0x185   :  { %v613_v35 = vadd.f32 %v4337_v21, %v612_v28  ;;  %v4074_v28 = vld [vmem:[%s5614_s13 + $0x10] sm:$0xff] }
 0x186   :  { %v4339_v27 = vpop.eup %4338  ;;  %4294 = vset.pattern.permute.xlu2 %v4752_v29  ;;  %4303 = vset.pattern.permute.xlu0 %v4753_v30 }
 0x187   :  { %v625_v31 = vmul.f32 %v4339_v27, %v593_v22  ;;  %897 = vperm.xlu2 %4294, %v5034_v60   ;;  %969 = vperm.xlu0 %4303, %v5034_v60   ;;  %vm630_vm5 = vweird.f32 %v4339_v27  ;;  %v617_v46 = vsel %vm5103_vm8, %v4337_v21, %v613_v35  ;;  %v4067_v21 = vld [vmem:[%s4803_s8 + $0x54] sm:$0xf0]  ;;  %v3369_v35 = vld [vmem:[%s4803_s8 + $0x10] sm:$0xf] }
 0x188   :  { %4291 = vset.pattern.permute.xlu1 %v4750_v58  ;;  %vm631_vm11 = vmor %vm629_vm9, %vm630_vm5  ;;  %v622_v5 = vsel %vm619_vm14, %v621_v51, %v617_v46  ;;  %v3402_v22 = vor.u32 %v4067_v21, %v3401_v19  ;;  %v4106_v46 = vld [vmem:[%s5615_s3 + $0xf8] sm:$0xff]  ;;  %v4105_v51 = vld [vmem:[%s5615_s3 + $0xf0] sm:$0xff] }
 0x189   :  { %v626_v34 = vsub.f32 1.0, %v625_v31  ;;  %829 = vperm.xlu1 %4291, %v5049_v3   ;;  %v640_v10 = vmul.f32 %v622_v5, %v5055_v6  ;;  %v3377_v31 = vld [vmem:[%s4803_s8 + $0x20] sm:$0xf]  ;;  %v4100_v19 = vld [vmem:[%s5615_s3 + $0xc8] sm:$0xff] }
 0x18a   :  { %v4079_v5 = vld [vmem:[%s5615_s3 + $0x20] sm:$0xff] }
 0x18b   :  { %v627_v38 = vmul.f32 %v4339_v27, %v626_v34  ;;  %v3378_v34 = vor.u32 %v4061_v33, %v3377_v31  ;;  %v4075_v21 = vld [vmem:[%s5615_s3] sm:$0xff] }
 0x18d   :  { %v628_v44 = vadd.f32 %v4339_v27, %v627_v38  ;;  %v3370_v38 = vor.u32 %v4059_v36, %v3369_v35  ;;  %v4114_v35 = vld [vmem:[%s5615_s3 + $0x138] sm:$0xff] }
 0x18e   :  { %v4122_v36 = vld [vmem:[%s5615_s3 + $0x178] sm:$0xff] }
 0x18f   :  { %v632_v61 = vsel %vm631_vm11, %v4339_v27, %v628_v44  ;;  %4298 = vset.pattern.permute.xlu2 %v4749_v53  ;;  %4306 = vset.pattern.permute.xlu0 %v4754_v62  ;;  %v607_v53 = vsel %vm604_vm15, %v606_v2, %v602_v63  ;;  %v4096_v63 = vld [vmem:[%s5615_s3 + $0xa8] sm:$0xff] }
 0x190   :  { %v637_v0 = vsel %vm634_vm13, %v636_v47, %v632_v61  ;;  %723 = vperm.xlu2 %4298, %v5064_v11   ;;  %865 = vperm.xlu0 %4306, %v5049_v3   ;;  %v639_v14 = vmul.f32 %v607_v53, %v5044_v1  ;;  %v4089_v47 = vld [vmem:[%s5615_s3 + $0x70] sm:$0xff]  ;;  %v4080_v61 = vld [vmem:[%s5615_s3 + $0x28] sm:$0xff]  ;;  %v4095_v53 = vld [vmem:[%s5615_s3 + $0xa0] sm:$0xff] }
 0x191   :  { %v641_v8 = vmul.f32 %v637_v0, %v5066_v13  ;;  %4292 = vset.pattern.permute.xlu1 %v4748_v52  ;;  %v643_v52 = vmul.f32 %v640_v10, %v5021_v56  ;;  %v4071_v56 = vld [vmem:[%s4803_s8 + $0x74] sm:$0xf0]  ;;  %v4073_v13 = vld [vmem:[%s5614_s13 + $0x8] sm:$0xff] }
 0x192   :  { %761 = vperm.xlu1 %4292, %v5064_v11   ;;  %v4104_v0 = vld [vmem:[%s5615_s3 + $0xe8] sm:$0xff] }
 0x193   :  { %v644_v9 = vmul.f32 %v641_v8, %v5031_v59  ;;  %v642_v59 = vmul.f32 %v639_v14, %v5014_v54  ;;  %v3417_v54 = vld [vmem:[%s4803_s8 + $0x70] sm:$0xf]  ;;  %v4087_v8 = vld [vmem:[%s5615_s3 + $0x60] sm:$0xff]  ;;  %v4086_v14 = vld [vmem:[%s5615_s3 + $0x58] sm:$0xff] }
 0x194   :  { %v3418_v6 = vor.u32 %v4071_v56, %v3417_v54  ;;  %v4093_v54 = vld [vmem:[%s5615_s3 + $0x90] sm:$0xff] }
 0x195   :  { %v652_v12 = vpack.c.bf16 %v644_v9, %v644_v9  ;;  %v651_v1 = vpack.c.bf16 %v643_v52, %v642_v59  ;;  %v4103_v9 = vld [vmem:[%s5615_s3 + $0xe0] sm:$0xff]  ;;  %v4102_v52 = vld [vmem:[%s5615_s3 + $0xd8] sm:$0xff]  ;;  %v4077_v59 = vld [vmem:[%s5615_s3 + $0x10] sm:$0xff] }
 0x196   :  { %486 = vmatpush.bf16.msrb.mxu2 %v3418_v6  ;;  %v4101_v56 = vld [vmem:[%s5615_s3 + $0xd0] sm:$0xff] }
 0x197   :  { %v680_v15 = vsel %vm678_vm1, %v652_v12, 0  ;;  %v4078_v12 = vld [vmem:[%s5615_s3 + $0x18] sm:$0xff] }
 0x198   :  { %4299 = vset.pattern.permute.xlu2 %v4750_v58  ;;  %4310 = vset.pattern.permute.xlu0 %v4752_v29  ;;  %v4072_v58 = vld [vmem:[%s5614_s13] sm:$0xff] }
 0x199   :  { %833 = vperm.xlu2 %4299, %v5064_v11   ;;  %913 = vperm.xlu0 %4310, %v5051_v4  }
 0x19a   :  { %4293 = vset.pattern.permute.xlu1 %v4752_v29  ;;  %688 = vmatpush.bf16.msra.mxu0 %v680_v15  ;;  %v4094_v15 = vld [vmem:[%s5615_s3 + $0x98] sm:$0xff] }
 0x19b   :  { %893 = vperm.xlu1 %4293, %v5016_v55   ;;  %487 = vmatpush.bf16.msrb.mxu2 %v3410_v18  ;;  %v4092_v18 = vld [vmem:[%s5615_s3 + $0x88] sm:$0xff] }
 0x19e   :  { %689 = vmatpush.bf16.msra.mxu0 %v651_v1  ;;  %v4085_v1 = vld [vmem:[%s5615_s3 + $0x50] sm:$0xff] }
 0x19f   :  { %488 = vmatpush.bf16.msrb.mxu2 %v3402_v22  ;;  %v4083_v22 = vld [vmem:[%s5615_s3 + $0x40] sm:$0xff] }
 0x1a1   :  { %4300 = vset.pattern.permute.xlu2 %v4754_v62  ;;  %4316 = vset.pattern.permute.xlu0 %v4753_v30 }
 0x1a2   :  { %3441 = vmatmul.msk.bf16.vlgmr.msra.gmra.mxu0 %vm668_vm3, %v4072_v58  ;;  %857 = vperm.xlu2 %4300, %v5016_v55  }
 0x1a3   :  { %981 = vperm.xlu0 %4316, %v5023_v57   ;;  %4297 = vset.pattern.permute.xlu1 %v4751_v20 }
 0x1a4   :  { %933 = vperm.xlu1 %4297, %v5034_v60   ;;  %1728 = vmatpush.bf16.msrb.mxu0 %v4106_v46 }
 0x1a8   :  { %1729 = vmatpush.bf16.msrb.mxu0 %v4105_v51 }
 0x1aa   :  { %4302 = vset.pattern.permute.xlu2 %v4753_v30 }
 0x1ab   :  { %965 = vperm.xlu2 %4302, %v5016_v55   ;;  %v3393_v55 = vld [vmem:[%s4803_s8 + $0x40] sm:$0xf] }
 0x1ac   :  { %4301 = vset.pattern.permute.xlu1 %v4754_v62  ;;  %1730 = vmatpush.bf16.msrb.mxu0 %v4104_v0  ;;  %v4112_v0 = vld [vmem:[%s5615_s3 + $0x128] sm:$0xff] }
 0x1ad   :  { %861 = vperm.xlu1 %4301, %v5034_v60   ;;  %v4065_v60 = vld [vmem:[%s4803_s8 + $0x44] sm:$0xf0]  ;;  %s5616_s8 = sld [smem:[#allocation30_spill]] }
 0x1ae   :  { %v3394_v23 = vor.u32 %v4065_v60, %v3393_v55  ;;  %v4091_v55 = vld [vmem:[%s5615_s3 + $0x80] sm:$0xff] }
 0x1af   :  { %v4099_v60 = vld [vmem:[%s5615_s3 + $0xc0] sm:$0xff] }
 0x1b0   :  { %489 = vmatpush.bf16.msrb.mxu2 %v3394_v23  ;;  %1731 = vmatpush.bf16.msrb.mxu0 %v4103_v9 }
 0x1b2   :  { %3442 = vmatmul.msk.bf16.gmra.mxu0 %vm668_vm3, %v4073_v13 }
 0x1b3   :  { %973 = vperm.xlu2 %4302, %v5049_v3  }
 0x1b4   :  { %490 = vmatpush.bf16.msrb.mxu2 %v3386_v26  ;;  %1732 = vmatpush.bf16.msrb.mxu0 %v4102_v52 }
 0x1b5   :  { %4304 = vset.pattern.permute.xlu1 %v4752_v29 }
 0x1b6   :  { %901 = vperm.xlu1 %4304, %v5049_v3  }
 0x1b8   :  { %491 = vmatpush.bf16.msrb.mxu2 %v3378_v34  ;;  %1733 = vmatpush.bf16.msrb.mxu0 %v4101_v56 }
 0x1ba   :  { %v5167_v27 = vpop.permute.xlu1 %785 }
 0x1bb   :  { %4307 = vset.pattern.permute.xlu2 %v4752_v29  ;;  %v750_v6 = vpop.permute.xlu0 %749 }
 0x1bc   :  { %905 = vperm.xlu2 %4307, %v5064_v11   ;;  %492 = vmatpush.bf16.msrb.mxu2 %v3370_v38  ;;  %v4138_v38 = vld [vmem:[%s5615_s3 + $0x1f8] sm:$0xff] }
 0x1bd   :  { %1734 = vmatpush.bf16.msrb.mxu0 %v4100_v19 }
 0x1be   :  { %4305 = vset.pattern.permute.xlu1 %v4751_v20 }
 0x1bf   :  { %937 = vperm.xlu1 %4305, %v5049_v3   ;;  %v5183_v3 = vpop.permute.xlu2 %708 }
 0x1c0   :  { %493 = vmatpush.bf16.msrb.mxu2 %v3362_v40 }
 0x1c1   :  { %1735 = vmatpush.bf16.msrb.mxu0 %v4099_v60  ;;  %v4127_v60 = vld [vmem:[%s5615_s3 + $0x1a0] sm:$0xff] }
 0x1c2   :  { %3443 = vmatmul.msk.bf16.gmra.mxu0 %vm668_vm3, %v4074_v28 }
 0x1c3   :  { %494 = vmatmul.bf16.vlgmr.msrb.gmra.mxu2 %v5004_v48 }
 0x1c4   :  { %4308 = vset.pattern.permute.xlu2 %v4751_v20  ;;  %v5181_v41 = vpop.permute.xlu1 %837  ;;  %v822_v24 = vpop.permute.xlu0 %821 }
 0x1c5   :  { %941 = vperm.xlu2 %4308, %v5064_v11   ;;  %1824 = vmatpush.bf16.msra.mxu0 %v4138_v38 }
 0x1c7   :  { %945 = vperm.xlu1 %4305, %v5023_v57   ;;  %v5192_v43 = vpop.permute.xlu2 %801 }
 0x1cd   :  { %4309 = vset.pattern.permute.xlu2 %v4752_v29  ;;  %v5263_v28 = vpop.permute.xlu0 %765 }
 0x1ce   :  { %909 = vperm.xlu2 %4309, %v5023_v57   ;;  %v5190_v42 = vpop.permute.xlu1 %789 }
 0x1cf   :  { %4312 = vset.pattern.permute.xlu1 %v4754_v62  ;;  %v5201_v29 = vpop.permute.xlu2 %728 }
 0x1d0   :  { %869 = vperm.xlu1 %4312, %v5064_v11  }
 0x1d3   :  { %499 = vmatmul.bf16.gmra.mxu2 %v5008_v50  ;;  %v4082_v50 = vld [vmem:[%s5615_s3 + $0x38] sm:$0xff] }
 0x1d4   :  { %1656 = vmatpush.bf16.msrb.mxu1 %v4082_v50 }
 0x1d5   :  { %v754_v39 = vpop.permute.xlu0 %753 }
 0x1d6   :  { %4311 = vset.pattern.permute.xlu2 %v4751_v20 }
 0x1d7   :  { %949 = vperm.xlu2 %4311, %v5051_v4   ;;  %v5198_v48 = vpop.permute.xlu1 %825  ;;  %v5209_v44 = vpop.permute.xlu2 %713 }
 0x1d8   :  { %4313 = vset.pattern.permute.xlu1 %v4753_v30 }
 0x1d9   :  { %977 = vperm.xlu1 %4313, %v5064_v11   ;;  %v4090_v11 = vld [vmem:[%s5615_s3 + $0x78] sm:$0xff] }
 0x1da   :  { %1680 = vmatpush.bf16.msra.mxu2 %v4090_v11 }
 0x1de   :  { %1681 = vmatpush.bf16.msra.mxu2 %v4089_v47  ;;  %v4121_v47 = vld [vmem:[%s5615_s3 + $0x170] sm:$0xff] }
 0x1df   :  { %4315 = vset.pattern.permute.xlu2 %v4754_v62 }
 0x1e0   :  { %877 = vperm.xlu2 %4315, %v5051_v4   ;;  %v5207_v20 = vpop.permute.xlu1 %769 }
 0x1e1   :  { %4314 = vset.pattern.permute.xlu1 %v4754_v62  ;;  %v4088_v62 = vld [vmem:[%s5615_s3 + $0x68] sm:$0xff] }
 0x1e2   :  { %873 = vperm.xlu1 %4314, %v5023_v57   ;;  %v4081_v57 = vld [vmem:[%s5615_s3 + $0x30] sm:$0xff]  ;;  %1682 = vmatpush.bf16.msra.mxu2 %v4088_v62 }
 0x1e3   :  { %1657 = vmatpush.bf16.msrb.mxu1 %v4081_v57  ;;  %v4113_v57 = vld [vmem:[%s5615_s3 + $0x130] sm:$0xff] }
 0x1e6   :  { %1683 = vmatpush.bf16.msra.mxu2 %v4087_v8  ;;  %v4128_v8 = vld [vmem:[%s5615_s3 + $0x1a8] sm:$0xff] }
 0x1e7   :  { %1658 = vmatpush.bf16.msrb.mxu1 %v4080_v61 }
 0x1e9   :  { %v5219_v49 = vpop.permute.xlu1 %805 }
 0x1ea   :  { %4317 = vset.pattern.permute.xlu1 %v4753_v30  ;;  %v4097_v30 = vld [vmem:[%s5615_s3 + $0xb0] sm:$0xff]  ;;  %1684 = vmatpush.bf16.msra.mxu2 %v4086_v14 }
 0x1eb   :  { %985 = vperm.xlu1 %4317, %v5051_v4   ;;  %v5221_v4 = vpop.permute.xlu2 %841  ;;  %1705 = vmatpush.bf16.msra.mxu3 %v4097_v30  ;;  %v4129_v30 = vld [vmem:[%s5615_s3 + $0x1b0] sm:$0xff] }
 0x1ec   :  { %1659 = vmatpush.bf16.msrb.mxu1 %v4079_v5  ;;  %v4120_v5 = vld [vmem:[%s5615_s3 + $0x168] sm:$0xff] }
 0x1ee   :  { %1685 = vmatpush.bf16.msra.mxu2 %v4085_v1 }
 0x1ef   :  { %1706 = vmatpush.bf16.msra.mxu3 %v4096_v63 }
 0x1f0   :  { %1660 = vmatpush.bf16.msrb.mxu1 %v4078_v12 }
 0x1f2   :  { %v5229_v2 = vpop.permute.xlu1 %718  ;;  %1686 = vmatpush.bf16.msra.mxu2 %v4084_v17 }
 0x1f3   :  { %v5235_v10 = vpop.permute.xlu2 %757  ;;  %1707 = vmatpush.bf16.msra.mxu3 %v4095_v53 }
 0x1f4   :  { %1661 = vmatpush.bf16.msrb.mxu1 %v4077_v59 }
 0x1f6   :  { %1687 = vmatpush.bf16.msra.mxu2 %v4083_v22  ;;  %v4111_v22 = vld [vmem:[%s5615_s3 + $0x120] sm:$0xff] }
 0x1f7   :  { %1708 = vmatpush.bf16.msra.mxu3 %v4094_v15  ;;  %v4136_v15 = vld [vmem:[%s5615_s3 + $0x1e8] sm:$0xff] }
 0x1f8   :  { %1662 = vmatpush.bf16.msrb.mxu1 %v4076_v16 }
 0x1fa   :  { %1776 = vmatpush.bf16.msrb.mxu2 %v4122_v36 }
 0x1fb   :  { %v5243_v58 = vpop.permute.xlu1 %829  ;;  %1709 = vmatpush.bf16.msra.mxu3 %v4093_v54  ;;  %v5247_v13 = vpop.permute.xlu2 %793 }
 0x1fc   :  { %1663 = vmatpush.bf16.msrb.mxu1 %v4075_v21 }
 0x1fe   :  { %1777 = vmatpush.bf16.msrb.mxu2 %v4121_v47  ;;  %v4134_v47 = vld [vmem:[%s5615_s3 + $0x1d8] sm:$0xff] }
 0x1ff   :  { %1710 = vmatpush.bf16.msra.mxu3 %v4092_v18 }
 0x200   :  { %1752 = vmatpush.bf16.msra.mxu1 %v4114_v35 }
 0x202   :  { %1778 = vmatpush.bf16.msrb.mxu2 %v4120_v5 }
 0x203   :  { %1711 = vmatpush.bf16.msra.mxu3 %v4091_v55  ;;  %v5259_v25 = vpop.permute.xlu2 %897  ;;  %v4119_v55 = vld [vmem:[%s5615_s3 + $0x160] sm:$0xff] }
 0x204   :  { %v5257_v23 = vpop.permute.xlu1 %761  ;;  %1753 = vmatpush.bf16.msra.mxu1 %v4113_v57 }
 0x206   :  { %1779 = vmatpush.bf16.msrb.mxu2 %v4119_v55 }
 0x207   :  { %1800 = vmatpush.bf16.msrb.mxu3 %v4130_v37 }
 0x208   :  { %1754 = vmatpush.bf16.msra.mxu1 %v4112_v0 }
 0x20b   :  { %v5265_v31 = vpop.permute.xlu2 %723  ;;  %1801 = vmatpush.bf16.msrb.mxu3 %v4129_v30 }
 0x20c   :  { %1755 = vmatpush.bf16.msra.mxu1 %v4111_v22 }
 0x20d   :  { %v5261_v26 = vpop.permute.xlu1 %893 }
 0x20f   :  { %1802 = vmatpush.bf16.msrb.mxu3 %v4128_v8 }
 0x213   :  { %v5277_v50 = vpop.permute.xlu2 %833  ;;  %1803 = vmatpush.bf16.msrb.mxu3 %v4127_v60 }
 0x216   :  { %v5269_v34 = vpop.permute.xlu1 %933 }
 0x21f   :  { %v5267_v33 = vpop.f32.mrf.mxu0  ;;  %v5300_v52 = vpop.permute.xlu1 %861 }
 0x220   :  { %v736_v40 = vmul.f32 %v5183_v3, %v5267_v33  ;;  %v772_v11 = vmul.f32 %v750_v6, %v5267_v33  ;;  %v808_v45 = vmul.f32 %v5167_v27, %v5267_v33  ;;  %v844_v46 = vmul.f32 %v822_v24, %v5267_v33  ;;  %v4137_v3 = vld [vmem:[%s5615_s3 + $0x1f0] sm:$0xff]  ;;  %v5307_v24 = vpop.permute.xlu2 %857 }
 0x221   :  { %1825 = vmatpush.bf16.msra.mxu0 %v4137_v3 }
 0x222   :  { %v742_v51 = vpack.c.bf16 %v736_v40, %v736_v40  ;;  %v778_v62 = vpack.c.bf16 %v772_v11, %v772_v11  ;;  %v814_v63 = vpack.c.bf16 %v808_v45, %v808_v45  ;;  %v850_v27 = vpack.c.bf16 %v844_v46, %v844_v46  ;;  %v4110_v11 = vld [vmem:[%s5615_s3 + $0x118] sm:$0xff] }
 0x223   :  { %v4118_v45 = vld [vmem:[%s5615_s3 + $0x158] sm:$0xff]  ;;  %1756 = vmatpush.bf16.msra.mxu1 %v4110_v11 }
 0x224   :  { %v1024_v6 = vunpack.c.l.b16 %v778_v62  ;;  %v1042_v16 = vunpack.c.l.b16 %v814_v63  ;;  %v1060_v17 = vunpack.c.l.b16 %v850_v27  ;;  %v4126_v46 = vld [vmem:[%s5615_s3 + $0x198] sm:$0xff]  ;;  %1780 = vmatpush.bf16.msrb.mxu2 %v4118_v45  ;;  %v4109_v63 = vld [vmem:[%s5615_s3 + $0x110] sm:$0xff]  ;;  %v4123_v45 = vld [vmem:[%s5615_s3 + $0x180] sm:$0xff] }
 0x225   :  { %1826 = vmatpush.bf16.msra.mxu0 %v4136_v15  ;;  %1804 = vmatpush.bf16.msrb.mxu3 %v4126_v46  ;;  %v4117_v27 = vld [vmem:[%s5615_s3 + $0x150] sm:$0xff]  ;;  %v4131_v46 = vld [vmem:[%s5615_s3 + $0x1c0] sm:$0xff] }
 0x227   :  { %v5287_v61 = vpop.f32.mrf.mxu0  ;;  %1757 = vmatpush.bf16.msra.mxu1 %v4109_v63 }
 0x228   :  { %v737_v53 = vmul.f32 %v5209_v44, %v5287_v61  ;;  %v773_v9 = vmul.f32 %v754_v39, %v5287_v61  ;;  %v809_v12 = vmul.f32 %v5190_v42, %v5287_v61  ;;  %v845_v14 = vmul.f32 %v5198_v48, %v5287_v61  ;;  %v5302_v42 = vpop.permute.xlu0 %733  ;;  %v4135_v39 = vld [vmem:[%s5615_s3 + $0x1e0] sm:$0xff]  ;;  %v5324_v62 = vpop.permute.xlu1 %901  ;;  %1781 = vmatpush.bf16.msrb.mxu2 %v4117_v27 }
 0x229   :  { %v1006_v44 = vunpack.c.l.b16 %v742_v51  ;;  %1827 = vmatpush.bf16.msra.mxu0 %v4135_v39  ;;  %v5330_v8 = vpop.permute.xlu2 %965 }
 0x22a   :  { %v743_v59 = vpack.c.bf16 %v737_v53, %v737_v53  ;;  %v779_v1 = vpack.c.bf16 %v773_v9, %v773_v9  ;;  %v815_v54 = vpack.c.bf16 %v809_v12, %v809_v12  ;;  %v851_v56 = vpack.c.bf16 %v845_v14, %v845_v14 }
 0x22c   :  { %v1007_v48 = vunpack.c.l.b16 %v743_v59  ;;  %v1025_v18 = vunpack.c.l.b16 %v779_v1  ;;  %v1043_v19 = vunpack.c.l.b16 %v815_v54  ;;  %v1061_v21 = vunpack.c.l.b16 %v851_v56  ;;  %v4108_v1 = vld [vmem:[%s5615_s3 + $0x108] sm:$0xff] }
 0x22d   :  { %1828 = vmatpush.bf16.msra.mxu0 %v4134_v47  ;;  %v4116_v54 = vld [vmem:[%s5615_s3 + $0x148] sm:$0xff]  ;;  %1758 = vmatpush.bf16.msra.mxu1 %v4108_v1 }
 0x22e   :  { %v1012_v35 = vpack.c.b16 %v1007_v48, %v1006_v44  ;;  %v1030_v36 = vpack.c.b16 %v1025_v18, %v1024_v6  ;;  %v1048_v37 = vpack.c.b16 %v1043_v19, %v1042_v16  ;;  %v1066_v38 = vpack.c.b16 %v1061_v21, %v1060_v17  ;;  %v4124_v56 = vld [vmem:[%s5615_s3 + $0x188] sm:$0xff]  ;;  %1782 = vmatpush.bf16.msrb.mxu2 %v4116_v54 }
 0x22f   :  { %v5310_v40 = vpop.f32.mrf.mxu0 }
 0x230   :  { %1664 = vmatmul.bf16.vlgmr.msrb.gmra.mxu1 %v1012_v35  ;;  %1688 = vmatmul.bf16.vlgmr.msra.gmra.mxu2 %v1030_v36  ;;  %v738_v57 = vmul.f32 %v5229_v2, %v5310_v40  ;;  %v774_v30 = vmul.f32 %v5235_v10, %v5310_v40  ;;  %v810_v3 = vmul.f32 %v5247_v13, %v5310_v40  ;;  %v4125_v2 = vld [vmem:[%s5615_s3 + $0x190] sm:$0xff]  ;;  %v798_v0 = vpop.permute.xlu0 %797  ;;  %v4115_v35 = vld [vmem:[%s5615_s3 + $0x140] sm:$0xff] }
 0x231   :  { %1712 = vmatmul.bf16.vlgmr.msra.gmra.mxu3 %v1048_v37  ;;  %1736 = vmatmul.bf16.vlgmr.msrb.gmra.mxu0 %v1066_v38  ;;  %v846_v51 = vmul.f32 %v5243_v58, %v5310_v40  ;;  %v4133_v10 = vld [vmem:[%s5615_s3 + $0x1d0] sm:$0xff]  ;;  %v5347_v36 = vpop.permute.xlu1 %937  ;;  %v5353_v47 = vpop.permute.xlu2 %973 }
 0x232   :  { %v744_v5 = vpack.c.bf16 %v738_v57, %v738_v57  ;;  %v780_v58 = vpack.c.bf16 %v774_v30, %v774_v30  ;;  %v816_v53 = vpack.c.bf16 %v810_v3, %v810_v3  ;;  %1805 = vmatpush.bf16.msrb.mxu3 %v4125_v2  ;;  %1829 = vmatpush.bf16.msra.mxu0 %v4133_v10 }
 0x233   :  { %v852_v9 = vpack.c.bf16 %v846_v51, %v846_v51  ;;  %1783 = vmatpush.bf16.msrb.mxu2 %v4115_v35 }
 0x234   :  { %v1008_v48 = vunpack.c.l.b16 %v744_v5  ;;  %v1026_v18 = vunpack.c.l.b16 %v780_v58 }
 0x235   :  { %v1062_v19 = vunpack.c.l.b16 %v852_v9 }
 0x236   :  { %1806 = vmatpush.bf16.msrb.mxu3 %v4124_v56 }
 0x237   :  { %v5332_v13 = vpop.f32.mrf.mxu0 }
 0x238   :  { %v739_v12 = vmul.f32 %v5265_v31, %v5332_v13  ;;  %v775_v14 = vmul.f32 %v5257_v23, %v5332_v13  ;;  %v811_v15 = vmul.f32 %v798_v0, %v5332_v13  ;;  %v847_v59 = vmul.f32 %v5277_v50, %v5332_v13  ;;  %v4132_v31 = vld [vmem:[%s5615_s3 + $0x1c8] sm:$0xff]  ;;  %v4107_v50 = vld [vmem:[%s5615_s3 + $0x100] sm:$0xff]  ;;  %v930_v10 = vpop.permute.xlu0 %929 }
 0x239   :  { %v1044_v23 = vunpack.c.l.b16 %v816_v53  ;;  %1830 = vmatpush.bf16.msra.mxu0 %v4132_v31  ;;  %1759 = vmatpush.bf16.msra.mxu1 %v4107_v50  ;;  %v5365_v58 = vpop.permute.xlu1 %945  ;;  %v917_v50 = vmul.f32 %v5259_v25, %v5287_v61 }
 0x23a   :  { %v745_v44 = vpack.c.bf16 %v739_v12, %v739_v12  ;;  %v781_v6 = vpack.c.bf16 %v775_v14, %v775_v14  ;;  %v817_v16 = vpack.c.bf16 %v811_v15, %v811_v15  ;;  %v853_v17 = vpack.c.bf16 %v847_v59, %v847_v59  ;;  %1807 = vmatpush.bf16.msrb.mxu3 %v4123_v45  ;;  %v906_v59 = vpop.permute.xlu2 %905 }
 0x23c   :  { %v1009_v21 = vunpack.c.l.b16 %v745_v44  ;;  %v1027_v22 = vunpack.c.l.b16 %v781_v6  ;;  %v1045_v55 = vunpack.c.l.b16 %v817_v16  ;;  %v1063_v60 = vunpack.c.l.b16 %v853_v17 }
 0x23d   :  { %1831 = vmatpush.bf16.msra.mxu0 %v4131_v46 }
 0x23e   :  { %v1013_v37 = vpack.c.b16 %v1009_v21, %v1008_v48  ;;  %v1031_v38 = vpack.c.b16 %v1027_v22, %v1026_v18  ;;  %v1049_v39 = vpack.c.b16 %v1045_v55, %v1044_v23  ;;  %v1067_v11 = vpack.c.b16 %v1063_v60, %v1062_v19 }
 0x23f   :  { %v5351_v57 = vpop.f32.mrf.mxu0  ;;  %v881_v19 = vmul.f32 %v5300_v52, %v5287_v61  ;;  %v953_v21 = vmul.f32 %v5269_v34, %v5287_v61  ;;  %v880_v55 = vmul.f32 %v5307_v24, %v5267_v33  ;;  %v916_v60 = vmul.f32 %v5261_v26, %v5267_v33 }
 0x240   :  { %1669 = vmatmul.bf16.gmra.mxu1 %v1013_v37  ;;  %1693 = vmatmul.bf16.gmra.mxu2 %v1031_v38  ;;  %v740_v30 = vmul.f32 %v5201_v29, %v5351_v57  ;;  %v776_v3 = vmul.f32 %v5263_v28, %v5351_v57  ;;  %v812_v51 = vmul.f32 %v5192_v43, %v5351_v57 }
 0x241   :  { %1717 = vmatmul.bf16.gmra.mxu3 %v1049_v39  ;;  %1741 = vmatmul.bf16.gmra.mxu0 %v1067_v11  ;;  %v848_v63 = vmul.f32 %v5181_v41, %v5351_v57  ;;  %v952_v37 = vmul.f32 %v930_v10, %v5267_v33  ;;  %v988_v52 = vmul.f32 %v5330_v8, %v5267_v33 }
 0x242   :  { %v746_v2 = vpack.c.bf16 %v740_v30, %v740_v30  ;;  %v782_v0 = vpack.c.bf16 %v776_v3, %v776_v3  ;;  %v818_v5 = vpack.c.bf16 %v812_v51, %v812_v51  ;;  %v870_v23 = vpop.permute.xlu1 %869  ;;  %v942_v35 = vpop.permute.xlu2 %941  ;;  %v887_v38 = vpack.c.bf16 %v881_v19, %v881_v19 }
 0x243   :  { %v854_v53 = vpack.c.bf16 %v848_v63, %v848_v63  ;;  %v923_v39 = vpack.c.bf16 %v917_v50, %v917_v50  ;;  %v959_v25 = vpack.c.bf16 %v953_v21, %v953_v21  ;;  %v886_v45 = vpack.c.bf16 %v880_v55, %v880_v55 }
 0x244   :  { %v1010_v1 = vunpack.c.l.b16 %v746_v2  ;;  %v1028_v54 = vunpack.c.l.b16 %v782_v0  ;;  %v922_v34 = vpack.c.bf16 %v916_v60, %v916_v60  ;;  %v958_v46 = vpack.c.bf16 %v952_v37, %v952_v37 }
 0x245   :  { %v1064_v16 = vunpack.c.l.b16 %v854_v53  ;;  %v1079_v24 = vunpack.c.l.b16 %v887_v38  ;;  %v1097_v3 = vunpack.c.l.b16 %v923_v39  ;;  %v1115_v51 = vunpack.c.l.b16 %v959_v25 }
 0x246   :  { %v5375_v18 = vpop.f32.mrf.mxu2  ;;  %v1078_v2 = vunpack.c.l.b16 %v886_v45  ;;  %v1096_v0 = vunpack.c.l.b16 %v922_v34 }
 0x247   :  { %v5363_v27 = vpop.f32.mrf.mxu0 }
 0x248   :  { %v741_v29 = vmul.f32 %v5302_v42, %v5363_v27  ;;  %v777_v28 = vmul.f32 %v5207_v20, %v5363_v27  ;;  %v813_v43 = vmul.f32 %v5219_v49, %v5363_v27  ;;  %v849_v41 = vmul.f32 %v5221_v4, %v5363_v27  ;;  %v970_v4 = vpop.permute.xlu0 %969 }
 0x249   :  { %v1046_v42 = vunpack.c.l.b16 %v818_v5  ;;  %v989_v22 = vmul.f32 %v970_v4, %v5287_v61  ;;  %v994_v61 = vpack.c.bf16 %v988_v52, %v988_v52  ;;  %v1114_v5 = vunpack.c.l.b16 %v958_v46 }
 0x24a   :  { %v747_v9 = vpack.c.bf16 %v741_v29, %v741_v29  ;;  %v783_v12 = vpack.c.bf16 %v777_v28, %v777_v28  ;;  %v819_v14 = vpack.c.bf16 %v813_v43, %v813_v43  ;;  %v855_v15 = vpack.c.bf16 %v849_v41, %v849_v41  ;;  %v910_v29 = vpop.permute.xlu2 %909 }
 0x24b   :  { %v995_v11 = vpack.c.bf16 %v989_v22, %v989_v22  ;;  %v978_v63 = vpop.permute.xlu1 %977  ;;  %v1132_v10 = vunpack.c.l.b16 %v994_v61  ;;  %v1084_v33 = vpack.c.b16 %v1079_v24, %v1078_v2  ;;  %v1102_v8 = vpack.c.b16 %v1097_v3, %v1096_v0 }
 0x24c   :  { %v1011_v56 = vunpack.c.l.b16 %v747_v9  ;;  %v1029_v44 = vunpack.c.l.b16 %v783_v12  ;;  %v1047_v6 = vunpack.c.l.b16 %v819_v14  ;;  %v1065_v20 = vunpack.c.l.b16 %v855_v15 }
 0x24d   :  { %v1133_v26 = vunpack.c.l.b16 %v995_v11  ;;  %v1120_v28 = vpack.c.b16 %v1115_v51, %v1114_v5  ;;  %v883_v9 = vmul.f32 %v870_v23, %v5332_v13  ;;  %v919_v12 = vmul.f32 %v906_v59, %v5332_v13 }
 0x24e   :  { %v1014_v17 = vpack.c.b16 %v1011_v56, %v1010_v1  ;;  %v1032_v31 = vpack.c.b16 %v1029_v44, %v1028_v54  ;;  %v1050_v49 = vpack.c.b16 %v1047_v6, %v1046_v42  ;;  %v1068_v48 = vpack.c.b16 %v1065_v20, %v1064_v16  ;;  %v5391_v30 = vpop.f32.mrf.mxu2 }
 0x24f   :  { %v1138_v43 = vpack.c.b16 %v1133_v26, %v1132_v10  ;;  %v991_v14 = vmul.f32 %v978_v63, %v5332_v13  ;;  %v955_v15 = vmul.f32 %v942_v35, %v5332_v13  ;;  %v918_v54 = vmul.f32 %v5324_v62, %v5310_v40 }
 0x250   :  { %1674 = vmatmul.bf16.gmra.mxu1 %v1014_v17  ;;  %1698 = vmatmul.bf16.gmra.mxu2 %v1032_v31  ;;  %v866_v41 = vpop.permute.xlu0 %865  ;;  %v954_v56 = vmul.f32 %v5347_v36, %v5310_v40  ;;  %v990_v44 = vmul.f32 %v5353_v47, %v5310_v40  ;;  %v889_v42 = vpack.c.bf16 %v883_v9, %v883_v9 }
 0x251   :  { %1722 = vmatmul.bf16.gmra.mxu3 %v1050_v49  ;;  %1746 = vmatmul.bf16.gmra.mxu0 %v1068_v48  ;;  %v882_v1 = vmul.f32 %v866_v41, %v5310_v40  ;;  %v925_v16 = vpack.c.bf16 %v919_v12, %v919_v12  ;;  %v997_v20 = vpack.c.bf16 %v991_v14, %v991_v14 }
 0x252   :  { %v961_v59 = vpack.c.bf16 %v955_v15, %v955_v15  ;;  %v924_v31 = vpack.c.bf16 %v918_v54, %v918_v54  ;;  %v960_v49 = vpack.c.bf16 %v954_v56, %v954_v56  ;;  %v950_v13 = vpop.permute.xlu2 %949  ;;  %v996_v48 = vpack.c.bf16 %v990_v44, %v990_v44 }
 0x253   :  { %v888_v17 = vpack.c.bf16 %v882_v1, %v882_v1  ;;  %v1081_v19 = vunpack.c.l.b16 %v889_v42  ;;  %v1099_v62 = vunpack.c.l.b16 %v925_v16  ;;  %v1135_v50 = vunpack.c.l.b16 %v997_v20 }
 0x254   :  { %v874_v6 = vpop.permute.xlu1 %873  ;;  %v1117_v21 = vunpack.c.l.b16 %v961_v59  ;;  %v1098_v22 = vunpack.c.l.b16 %v924_v31  ;;  %v1116_v55 = vunpack.c.l.b16 %v960_v49  ;;  %v1134_v40 = vunpack.c.l.b16 %v996_v48 }
 0x255   :  { %v1080_v36 = vunpack.c.l.b16 %v888_v17  ;;  %v884_v38 = vmul.f32 %v874_v6, %v5351_v57  ;;  %v957_v45 = vmul.f32 %v950_v13, %v5363_v27  ;;  %v920_v61 = vmul.f32 %v910_v29, %v5351_v57 }
 0x256   :  { %v5393_v53 = vpop.f32.mrf.mxu2  ;;  %v1103_v60 = vpack.c.b16 %v1099_v62, %v1098_v22  ;;  %v1121_v35 = vpack.c.b16 %v1117_v21, %v1116_v55  ;;  %v1139_v37 = vpack.c.b16 %v1135_v50, %v1134_v40  ;;  %v956_v24 = vmul.f32 %v5365_v58, %v5351_v57 }
 0x257   :  { %v1085_v47 = vpack.c.b16 %v1081_v19, %v1080_v36  ;;  %v890_v51 = vpack.c.bf16 %v884_v38, %v884_v38  ;;  %v963_v2 = vpack.c.bf16 %v957_v45, %v957_v45  ;;  %v926_v5 = vpack.c.bf16 %v920_v61, %v920_v61 }
 0x258   :  { %v914_v23 = vpop.permute.xlu0 %913  ;;  %v962_v10 = vpack.c.bf16 %v956_v24, %v956_v24 }
 0x259   :  { %v921_v39 = vmul.f32 %v914_v23, %v5363_v27  ;;  %v1119_v41 = vunpack.c.l.b16 %v963_v2  ;;  %v1100_v9 = vunpack.c.l.b16 %v926_v5 }
 0x25a   :  { %v878_v25 = vpop.permute.xlu2 %877  ;;  %v1118_v29 = vunpack.c.l.b16 %v962_v10 }
 0x25b   :  { %v885_v46 = vmul.f32 %v878_v25, %v5363_v27  ;;  %v927_v26 = vpack.c.bf16 %v921_v39, %v921_v39 }
 0x25c   :  { %v1122_v15 = vpack.c.b16 %v1119_v41, %v1118_v29 }
 0x25d   :  { %v986_v52 = vpop.permute.xlu1 %985  ;;  %v891_v0 = vpack.c.bf16 %v885_v46, %v885_v46 }
 0x25e   :  { %v502_v4 = vpop.f32.mrf.mxu2  ;;  %v993_v11 = vmul.f32 %v986_v52, %v5363_v27 }
 0x25f   :  { %v1083_v27 = vunpack.c.l.b16 %v891_v0 }
 0x260   :  { %1760 = vmatmul.bf16.vlgmr.msra.gmra.mxu1 %v1084_v33  ;;  %1784 = vmatmul.bf16.vlgmr.msrb.gmra.mxu2 %v1102_v8  ;;  %v982_v34 = vpop.permute.xlu0 %981  ;;  %v999_v63 = vpack.c.bf16 %v993_v11, %v993_v11  ;;  %v1082_v8 = vunpack.c.l.b16 %v890_v51 }
 0x261   :  { %1808 = vmatmul.bf16.vlgmr.msrb.gmra.mxu3 %v1120_v28  ;;  %1832 = vmatmul.bf16.vlgmr.msra.gmra.mxu0 %v1138_v43  ;;  %v992_v3 = vmul.f32 %v982_v34, %v5351_v57  ;;  %v1101_v28 = vunpack.c.l.b16 %v927_v26 }
 0x262   :  { %v1137_v43 = vunpack.c.l.b16 %v999_v63  ;;  %v1086_v14 = vpack.c.b16 %v1083_v27, %v1082_v8 }
 0x263   :  { %v998_v33 = vpack.c.bf16 %v992_v3, %v992_v3  ;;  %v1104_v58 = vpack.c.b16 %v1101_v28, %v1100_v9 }
 0x265   :  { %v1136_v12 = vunpack.c.l.b16 %v998_v33 }
 0x267   :  { %v1140_v57 = vpack.c.b16 %v1137_v43, %v1136_v12 }
 0x270   :  { %1765 = vmatmul.bf16.gmra.mxu1 %v1085_v47  ;;  %1789 = vmatmul.bf16.gmra.mxu2 %v1103_v60 }
 0x271   :  { %1813 = vmatmul.bf16.gmra.mxu3 %v1121_v35  ;;  %1837 = vmatmul.bf16.gmra.mxu0 %v1139_v37 }
 0x280   :  { %1770 = vmatmul.bf16.gmra.mxu1 %v1086_v14  ;;  %1794 = vmatmul.bf16.gmra.mxu2 %v1104_v58 }
 0x281   :  { %1818 = vmatmul.bf16.gmra.mxu3 %v1122_v15  ;;  %1842 = vmatmul.bf16.gmra.mxu0 %v1140_v57 }
 0x2ad   :  { %v1665_v1 = vpop.f32.mrf.mxu1 }
 0x2ae   :  { %v1737_v54 = vpop.f32.mrf.mxu0 }
 0x2b3   :  { %v1689_v56 = vpop.f32.mrf.mxu2 }
 0x2b4   :  { %v1690_v44 = vadd.f32 %v1689_v56, %v1665_v1  ;;  %v1713_v42 = vpop.f32.mrf.mxu3 }
 0x2b5   :  { %v1667_v6 = vpop.f32.mrf.mxu1 }
 0x2b6   :  { %v1714_v16 = vadd.f32 %v1713_v42, %v1690_v44  ;;  %v1739_v20 = vpop.f32.mrf.mxu0 }
 0x2b8   :  { %v1738_v59 = vadd.f32 %v1737_v54, %v1714_v16 }
 0x2bb   :  { %v1691_v17 = vpop.f32.mrf.mxu2 }
 0x2bc   :  { %v1692_v31 = vadd.f32 %v1691_v17, %v1667_v6  ;;  %v1715_v49 = vpop.f32.mrf.mxu3 }
 0x2bd   :  { %v1670_v13 = vpop.f32.mrf.mxu1 }
 0x2be   :  { %v1716_v48 = vadd.f32 %v1715_v49, %v1692_v31  ;;  %v1742_v4 = vpop.f32.mrf.mxu0 }
 0x2c0   :  { %v1740_v23 = vadd.f32 %v1739_v20, %v1716_v48 }
 0x2c3   :  { %v1694_v19 = vpop.f32.mrf.mxu2 }
 0x2c4   :  { %v1695_v62 = vadd.f32 %v1694_v19, %v1670_v13  ;;  %v1718_v50 = vpop.f32.mrf.mxu3 }
 0x2c5   :  { %v1672_v21 = vpop.f32.mrf.mxu1 }
 0x2c6   :  { %v1719_v36 = vadd.f32 %v1718_v50, %v1695_v62  ;;  %v1744_v22 = vpop.f32.mrf.mxu0 }
 0x2c8   :  { %v1743_v55 = vadd.f32 %v1742_v4, %v1719_v36 }
 0x2cb   :  { %v1696_v40 = vpop.f32.mrf.mxu2 }
 0x2cc   :  { %v1720_v47 = vpop.f32.mrf.mxu3  ;;  %v1697_v54 = vadd.f32 %v1696_v40, %v1672_v21 }
 0x2cd   :  { %v1675_v60 = vpop.f32.mrf.mxu1 }
 0x2ce   :  { %v1747_v35 = vpop.f32.mrf.mxu0  ;;  %v1721_v42 = vadd.f32 %v1720_v47, %v1697_v54 }
 0x2d0   :  { %v1745_v31 = vadd.f32 %v1744_v22, %v1721_v42  ;;  %v4147_v22 = vld [vmem:[%s5616_s8 + $0x38] sm:$0xff] }
 0x2d1   :  { %1977 = vmatpush.bf16.msra.mxu2 %v4147_v22 }
 0x2d3   :  { %v1699_v37 = vpop.f32.mrf.mxu2 }
 0x2d4   :  { %v1723_v52 = vpop.f32.mrf.mxu3  ;;  %v1700_v15 = vadd.f32 %v1699_v37, %v1675_v60 }
 0x2d5   :  { %v1677_v38 = vpop.f32.mrf.mxu1 }
 0x2d6   :  { %v1749_v39 = vpop.f32.mrf.mxu0  ;;  %v1724_v56 = vadd.f32 %v1723_v52, %v1700_v15 }
 0x2d8   :  { %v1748_v20 = vadd.f32 %v1747_v35, %v1724_v56 }
 0x2db   :  { %v1701_v25 = vpop.f32.mrf.mxu2 }
 0x2dc   :  { %v1725_v11 = vpop.f32.mrf.mxu3  ;;  %v1702_v44 = vadd.f32 %v1701_v25, %v1677_v38 }
 0x2dd   :  { %v1761_v45 = vpop.f32.mrf.mxu1 }
 0x2de   :  { %v1833_v34 = vpop.f32.mrf.mxu0  ;;  %v1762_v3 = vadd.f32 %v1761_v45, %v1738_v59  ;;  %v1726_v16 = vadd.f32 %v1725_v11, %v1702_v44 }
 0x2e3   :  { %v1785_v46 = vpop.f32.mrf.mxu2 }
 0x2e4   :  { %v1809_v61 = vpop.f32.mrf.mxu3  ;;  %v1786_v26 = vadd.f32 %v1785_v46, %v1762_v3  ;;  %v4145_v46 = vld [vmem:[%s5616_s8 + $0x28] sm:$0xff]  ;;  %v4139_v3 = vld [vmem:[%s5617_s14] sm:$0xff] }
 0x2e5   :  { %v1763_v24 = vpop.f32.mrf.mxu1 }
 0x2e6   :  { %v1835_v51 = vpop.f32.mrf.mxu0  ;;  %v1764_v63 = vadd.f32 %v1763_v24, %v1740_v23  ;;  %v1810_v0 = vadd.f32 %v1809_v61, %v1786_v26  ;;  %v1750_v23 = vadd.f32 %v1749_v39, %v1726_v16  ;;  %v4144_v24 = vld [vmem:[%s5616_s8 + $0x20] sm:$0xff]  ;;  %v1850_v26 = vld [vmem:[%s5617_s14 + $0x8] sm:$0xf] }
 0x2e8   :  { %v1834_v28 = vadd.f32 %v1833_v34, %v1810_v0  ;;  %v4448_v0 = vld [vmem:[%s5609_s9] sm:$0x3] }
 0x2eb   :  { %v1787_v2 = vpop.f32.mrf.mxu2 }
 0x2ec   :  { %v1788_v5 = vadd.f32 %v1787_v2, %v1764_v63  ;;  %v1811_v10 = vpop.f32.mrf.mxu3  ;;  %v1859_v63 = vunpack.c.l.b16 %v1850_v26  ;;  %v4155_v26 = vld [vmem:[%s5618_s4 + $0x38] sm:$0xff] }
 0x2ed   :  { %v1766_v33 = vpop.f32.mrf.mxu1  ;;  %2108 = vmatpush.bf16.msra.mxu3 %v4155_v26 }
 0x2ee   :  { %v1812_v8 = vadd.f32 %v1811_v10, %v1788_v5  ;;  %v1838_v41 = vpop.f32.mrf.mxu0  ;;  %v1767_v19 = vadd.f32 %v1766_v33, %v1743_v55  ;;  %v4146_v55 = vld [vmem:[%s5616_s8 + $0x30] sm:$0xff]  ;;  %v1861_v2 = vpack.c.b16 %v1859_v63, %v1859_v63  ;;  %v402_v5 = vperm.slane %v4448_v0, 0  ;;  %v4318_v0 = vld [vmem:[#allocation2] ss:$0 sm:$0xff] }
 0x2ef   :  { %1978 = vmatpush.bf16.msra.mxu2 %v4146_v55  ;;  %v4154_v63 = vld [vmem:[%s5618_s4 + $0x30] sm:$0xff] }
 0x2f0   :  { %v1836_v43 = vadd.f32 %v1835_v51, %v1812_v8  ;;  %v4143_v51 = vld [vmem:[%s5616_s8 + $0x18] sm:$0xff]  ;;  %v496_v10 = vadd.f32 %v5375_v18, %v402_v5  ;;  %v498_v33 = vadd.f32 %v5391_v30, %v402_v5  ;;  %v4140_v18 = vld [vmem:[%s5616_s8] sm:$0xff] }
 0x2f1   :  { %2109 = vmatpush.bf16.msra.mxu3 %v4154_v63  ;;  %v4163_v63 = vld [vmem:[%s5619_s18 + $0x38] sm:$0xff] }
 0x2f2   :  { %v1851_v27 = vpack.c.bf16 %v1836_v43, %v1834_v28  ;;  %v3423_v8 = vmul.f32 -1.442695, %v496_v10  ;;  %v3424_v28 = vmul.f32 -1.442695, %v498_v33  ;;  %2259 = vmatpush.bf16.msrb.mxu0 %v4163_v63 }
 0x2f3   :  { %v1790_v9 = vpop.f32.mrf.mxu2  ;;  %1979 = vmatpush.bf16.msra.mxu2 %v4145_v46 }
 0x2f4   :  { %v1814_v29 = vpop.f32.mrf.mxu3  ;;  %v1791_v36 = vadd.f32 %v1790_v9, %v1767_v19  ;;  %4340 = vpow2.f32 %v3423_v8  ;;  %v4142_v9 = vld [vmem:[%s5616_s8 + $0x10] sm:$0xff]  ;;  %v4151_v8 = vld [vmem:[%s5618_s4 + $0x18] sm:$0xff] }
 0x2f5   :  { %v1768_v12 = vpop.f32.mrf.mxu1  ;;  %4342 = vpow2.f32 %v3424_v28 }
 0x2f6   :  { %v1840_v14 = vpop.f32.mrf.mxu0  ;;  %v1769_v48 = vadd.f32 %v1768_v12, %v1745_v31  ;;  %v1815_v38 = vadd.f32 %v1814_v29, %v1791_v36  ;;  %v4141_v12 = vld [vmem:[%s5616_s8 + $0x8] sm:$0xff] }
 0x2f7   :  { %1980 = vmatpush.bf16.msra.mxu2 %v4144_v24 }
 0x2f8   :  { %v1839_v34 = vadd.f32 %v1838_v41, %v1815_v38 }
 0x2fa   :  { %v4341_v43 = vpop.eup %4340 }
 0x2fb   :  { %v1792_v58 = vpop.f32.mrf.mxu2  ;;  %1981 = vmatpush.bf16.msra.mxu2 %v4143_v51  ;;  %v4343_v41 = vpop.eup %4342  ;;  %v531_v29 = vadd.f32 1.0, %v4341_v43  ;;  %v4150_v43 = vld [vmem:[%s5618_s4 + $0x10] sm:$0xff] }
 0x2fc   :  { %v1816_v57 = vpop.f32.mrf.mxu3  ;;  %v1793_v62 = vadd.f32 %v1792_v58, %v1769_v48 }
 0x2fd   :  { %v1771_v1 = vpop.f32.mrf.mxu1  ;;  %4344 = vrcp.f32 %v531_v29  ;;  %vm539_vm5 = vweird.f32 %v531_v29  ;;  %v543_v31 = vand.u32 2147483647, %v531_v29 }
 0x2fe   :  { %v1843_v17 = vpop.f32.mrf.mxu0  ;;  %v1772_v49 = vadd.f32 %v1771_v1, %v1748_v20  ;;  %v1817_v35 = vadd.f32 %v1816_v57, %v1793_v62  ;;  %v545_v20 = vand.u32 2147483648, %v531_v29 }
 0x2ff   :  { %1982 = vmatpush.bf16.msra.mxu2 %v4142_v9  ;;  %vm544_vm11 = vcmp.eq.f32.partialorder %v543_v31, 8.507059e+37  ;;  %v4149_v9 = vld [vmem:[%s5618_s4 + $0x8] sm:$0xff] }
 0x300   :  { %v1841_v39 = vadd.f32 %v1840_v14, %v1817_v35  ;;  %v532_v14 = vadd.f32 1.0, %v4343_v41 }
 0x302   :  { %v1852_v61 = vpack.c.bf16 %v1841_v39, %v1839_v34  ;;  %4346 = vrcp.f32 %v532_v14  ;;  %vm554_vm7 = vweird.f32 %v532_v14 }
 0x303   :  { %v1795_v6 = vpop.f32.mrf.mxu2  ;;  %1983 = vmatpush.bf16.msra.mxu2 %v4141_v12  ;;  %v4345_v30 = vpop.eup %4344 }
 0x304   :  { %v1819_v59 = vpop.f32.mrf.mxu3  ;;  %v1796_v4 = vadd.f32 %v1795_v6, %v1772_v49  ;;  %v535_v1 = vmul.f32 %v4345_v30, %v531_v29  ;;  %vm540_vm6 = vweird.f32 %v4345_v30 }
 0x305   :  { %v1773_v13 = vpop.f32.mrf.mxu1  ;;  %vm541_vm9 = vmor %vm539_vm5, %vm540_vm6 }
 0x306   :  { %v1774_v50 = vadd.f32 %v1773_v13, %v1750_v23  ;;  %v1820_v40 = vadd.f32 %v1819_v59, %v1796_v4  ;;  %v1845_v52 = vpop.f32.mrf.mxu0  ;;  %v536_v56 = vsub.f32 1.0, %v535_v1  ;;  %v560_v59 = vand.u32 2147483648, %v532_v14 }
 0x307   :  { %1984 = vmatpush.bf16.msra.mxu2 %v4140_v18  ;;  %v558_v13 = vand.u32 2147483647, %v532_v14  ;;  %v546_v4 = vor.u32 1.1754944e-38, %v545_v20 }
 0x308   :  { %v1844_v25 = vadd.f32 %v1843_v17, %v1820_v40  ;;  %v4347_v15 = vpop.eup %4346  ;;  %v537_v42 = vmul.f32 %v4345_v30, %v536_v56  ;;  %v561_v19 = vor.u32 1.1754944e-38, %v560_v59 }
 0x309   :  { %v550_v54 = vmul.f32 %v4347_v15, %v532_v14  ;;  %vm555_vm8 = vweird.f32 %v4347_v15  ;;  %vm559_vm12 = vcmp.eq.f32.partialorder %v558_v13, 8.507059e+37  ;;  %v4148_v14 = vld [vmem:[%s5618_s4] sm:$0xff] }
 0x30a   :  { %v538_v17 = vadd.f32 %v4345_v30, %v537_v42  ;;  %vm556_vm10 = vmor %vm554_vm7, %vm555_vm8 }
 0x30b   :  { %v1797_v21 = vpop.f32.mrf.mxu2  ;;  %v551_v44 = vsub.f32 1.0, %v550_v54 }
 0x30c   :  { %v1798_v47 = vadd.f32 %v1797_v21, %v1774_v50  ;;  %v1821_v60 = vpop.f32.mrf.mxu3  ;;  %v542_v62 = vsel %vm541_vm9, %v4345_v30, %v538_v17 }
 0x30d   :  { %v552_v6 = vmul.f32 %v4347_v15, %v551_v44  ;;  %v547_v36 = vsel %vm544_vm11, %v546_v4, %v542_v62 }
 0x30e   :  { %v1822_v37 = vadd.f32 %v1821_v60, %v1798_v47  ;;  %v579_v47 = vmul.f32 %v547_v36, %v496_v10 }
 0x30f   :  { %v553_v49 = vadd.f32 %v4347_v15, %v552_v6 }
 0x310   :  { %v1846_v11 = vadd.f32 %v1845_v52, %v1822_v37 }
 0x311   :  { %v557_v50 = vsel %vm556_vm10, %v4347_v15, %v553_v49 }
 0x312   :  { %v1853_v45 = vpack.c.bf16 %v1846_v11, %v1844_v25  ;;  %v562_v40 = vsel %vm559_vm12, %v561_v19, %v557_v50 }
 0x313   :  { %v580_v60 = vmul.f32 %v562_v40, %v498_v33 }
 0x314   :  { %1874 = vmatpush.bf16.msrb.mxu1 %v1853_v45 }
 0x318   :  { %1875 = vmatpush.bf16.msrb.mxu1 %v1852_v61 }
 0x31c   :  { %1876 = vmatpush.bf16.msrb.mxu1 %v1851_v27  ;;  %v5426_v27 = vadd.f32 %v5393_v53, %v402_v5  ;;  %v4152_v5 = vld [vmem:[%s5618_s4 + $0x20] sm:$0xff] }
 0x31e   :  { %v3425_v58 = vmul.f32 -1.442695, %v5426_v27 }
 0x31f   :  { %3704 = vmatmul.msk.bf16.vlgmr.msrb.gmra.mxu1 %vm1862_vm4, %v4139_v3 }
 0x320   :  { %4348 = vpow2.f32 %v3425_v58 }
 0x326   :  { %v4349_v57 = vpop.eup %4348 }
 0x327   :  { %v533_v53 = vadd.f32 1.0, %v4349_v57 }
 0x329   :  { %4350 = vrcp.f32 %v533_v53  ;;  %vm569_vm13 = vweird.f32 %v533_v53  ;;  %v575_v38 = vand.u32 2147483648, %v533_v53  ;;  %v573_v55 = vand.u32 2147483647, %v533_v53 }
 0x32b   :  { %v576_v39 = vor.u32 1.1754944e-38, %v575_v38 }
 0x32f   :  { %3705 = vmatmul.msk.bf16.gmra.mxu1 %vm1862_vm4, %v1861_v2  ;;  %v4351_v16 = vpop.eup %4350  ;;  %vm574_vm4 = vcmp.eq.f32.partialorder %v573_v55, 8.507059e+37  ;;  %v4153_v2 = vld [vmem:[%s5618_s4 + $0x28] sm:$0xff] }
 0x330   :  { %v565_v48 = vmul.f32 %v4351_v16, %v533_v53  ;;  %vm570_vm14 = vweird.f32 %v4351_v16  ;;  %2110 = vmatpush.bf16.msra.mxu3 %v4153_v2  ;;  %v4162_v2 = vld [vmem:[%s5619_s18 + $0x30] sm:$0xff] }
 0x331   :  { %vm571_vm15 = vmor %vm569_vm13, %vm570_vm14  ;;  %2260 = vmatpush.bf16.msrb.mxu0 %v4162_v2 }
 0x332   :  { %v566_v21 = vsub.f32 1.0, %v565_v48 }
 0x334   :  { %v567_v35 = vmul.f32 %v4351_v16, %v566_v21  ;;  %2111 = vmatpush.bf16.msra.mxu3 %v4152_v5  ;;  %v4319_v5 = vld [vmem:[#allocation4] ss:$0 sm:$0xff] }
 0x336   :  { %v568_v11 = vadd.f32 %v4351_v16, %v567_v35 }
 0x338   :  { %v572_v45 = vsel %vm571_vm15, %v4351_v16, %v568_v11  ;;  %2112 = vmatpush.bf16.msra.mxu3 %v4151_v8 }
 0x339   :  { %v577_v46 = vsel %vm574_vm4, %v576_v39, %v572_v45 }
 0x33a   :  { %v581_v61 = vmul.f32 %v577_v46, %v5426_v27 }
 0x33c   :  { %2113 = vmatpush.bf16.msra.mxu3 %v4150_v43  ;;  %v4159_v43 = vld [vmem:[%s5619_s18 + $0x18] sm:$0xff] }
 0x340   :  { %2114 = vmatpush.bf16.msra.mxu3 %v4149_v9 }
 0x344   :  { %2115 = vmatpush.bf16.msra.mxu3 %v4148_v14  ;;  %v4157_v14 = vld [vmem:[%s5619_s18 + $0x8] sm:$0xff] }
 0x39c   :  { %v1878_v23 = vpop.f32.mrf.mxu1 }
 0x39d   :  { %v5432_v52 = vadd.f32 %v1878_v23, %v579_v47 }
 0x3a4   :  { %v1880_v37 = vpop.f32.mrf.mxu1 }
 0x3a5   :  { %v5434_v22 = vadd.f32 %v1880_v37, %v580_v60 }
 0x3a7   :  { %v1924_v25 = vpack.c.bf16 %v5434_v22, %v5432_v52 }
 0x3a9   :  { %1985 = vmatmul.bf16.vlgmr.msra.gmra.mxu2 %v1924_v25 }
 0x3ac   :  { %v1883_v34 = vpop.f32.mrf.mxu1 }
 0x3ad   :  { %v5439_v24 = vadd.f32 %v1883_v34, %v581_v61 }
 0x3af   :  { %v1925_v51 = vpack.c.bf16 %v5439_v24, %v5439_v24 }
 0x3b4   :  { %v1885_v3 = vpop.f32.mrf.mxu1 }
 0x3b9   :  { %1990 = vmatmul.bf16.gmra.mxu2 %v1925_v51 }
 0x42c   :  { %v1986_v10 = vpop.f32.mrf.mxu2 }
 0x42d   :  { %v1987_v33 = vadd.f32 %v4318_v0, %v1986_v10  ;;  %v4160_v10 = vld [vmem:[%s5619_s18 + $0x20] sm:$0xff] }
 0x42f   :  { %v3738_v28 = vmul.f32 -1.442695, %v1987_v33 }
 0x431   :  { %4352 = vpow2.f32 %v3738_v28 }
 0x434   :  { %v1988_v41 = vpop.f32.mrf.mxu2 }
 0x435   :  { %v1989_v27 = vadd.f32 %v4318_v0, %v1988_v41  ;;  %v4158_v41 = vld [vmem:[%s5619_s18 + $0x10] sm:$0xff] }
 0x437   :  { %v4353_v29 = vpop.eup %4352  ;;  %v3739_v12 = vmul.f32 -1.442695, %v1989_v27 }
 0x438   :  { %v2004_v58 = vadd.f32 1.0, %v4353_v29 }
 0x439   :  { %4354 = vpow2.f32 %v3739_v12 }
 0x43a   :  { %4356 = vrcp.f32 %v2004_v58  ;;  %v2018_v31 = vand.u32 2147483648, %v2004_v58  ;;  %vm2012_vm6 = vweird.f32 %v2004_v58  ;;  %v2016_v49 = vand.u32 2147483647, %v2004_v58 }
 0x43c   :  { %v1991_v18 = vpop.f32.mrf.mxu2  ;;  %v2019_v62 = vor.u32 1.1754944e-38, %v2018_v31  ;;  %vm2017_vm9 = vcmp.eq.f32.partialorder %v2016_v49, 8.507059e+37 }
 0x43d   :  { %v1992_v30 = vadd.f32 %v4318_v0, %v1991_v18  ;;  %v4161_v0 = vld [vmem:[%s5619_s18 + $0x28] sm:$0xff]  ;;  %v4156_v18 = vld [vmem:[%s5619_s18] sm:$0xff] }
 0x43e   :  { %2261 = vmatpush.bf16.msrb.mxu0 %v4161_v0  ;;  %v4171_v0 = vld [vmem:[%s5620_s22 + $0x38] sm:$0xff] }
 0x43f   :  { %v4355_v15 = vpop.eup %4354  ;;  %v3740_v57 = vmul.f32 -1.442695, %v1992_v30  ;;  %2427 = vmatpush.bf16.msra.mxu1 %v4171_v0 }
 0x440   :  { %v4357_v1 = vpop.eup %4356  ;;  %v2005_v54 = vadd.f32 1.0, %v4355_v15 }
 0x441   :  { %v2008_v53 = vmul.f32 %v4357_v1, %v2004_v58  ;;  %4358 = vpow2.f32 %v3740_v57  ;;  %vm2013_vm5 = vweird.f32 %v4357_v1 }
 0x442   :  { %4360 = vrcp.f32 %v2005_v54  ;;  %vm2014_vm7 = vmor %vm2012_vm6, %vm2013_vm5  ;;  %v2033_v48 = vand.u32 2147483648, %v2005_v54  ;;  %v2031_v19 = vand.u32 2147483647, %v2005_v54  ;;  %vm2027_vm10 = vweird.f32 %v2005_v54  ;;  %2262 = vmatpush.bf16.msrb.mxu0 %v4160_v10  ;;  %v4169_v10 = vld [vmem:[%s5620_s22 + $0x28] sm:$0xff] }
 0x443   :  { %v2009_v56 = vsub.f32 1.0, %v2008_v53 }
 0x444   :  { %v1993_v44 = vpop.f32.mrf.mxu2  ;;  %v2034_v40 = vor.u32 1.1754944e-38, %v2033_v48  ;;  %vm2032_vm12 = vcmp.eq.f32.partialorder %v2031_v19, 8.507059e+37 }
 0x445   :  { %v2010_v42 = vmul.f32 %v4357_v1, %v2009_v56 }
 0x446   :  { %2263 = vmatpush.bf16.msrb.mxu0 %v4159_v43 }
 0x447   :  { %v4359_v6 = vpop.eup %4358  ;;  %v2011_v59 = vadd.f32 %v4357_v1, %v2010_v42 }
 0x448   :  { %v4361_v16 = vpop.eup %4360  ;;  %v2006_v20 = vadd.f32 1.0, %v4359_v6 }
 0x449   :  { %v2023_v17 = vmul.f32 %v4361_v16, %v2005_v54  ;;  %v2015_v4 = vsel %vm2014_vm7, %v4357_v1, %v2011_v59  ;;  %vm2028_vm8 = vweird.f32 %v4361_v16 }
 0x44a   :  { %4362 = vrcp.f32 %v2006_v20  ;;  %v2020_v36 = vsel %vm2017_vm9, %v2019_v62, %v2015_v4  ;;  %vm2029_vm11 = vmor %vm2027_vm10, %vm2028_vm8  ;;  %v2048_v45 = vand.u32 2147483648, %v2006_v20  ;;  %vm2042_vm14 = vweird.f32 %v2006_v20  ;;  %2264 = vmatpush.bf16.msrb.mxu0 %v4158_v41 }
 0x44b   :  { %v2024_v13 = vsub.f32 1.0, %v2023_v17  ;;  %v2052_v37 = vmul.f32 %v2020_v36, %v1987_v33  ;;  %v2046_v34 = vand.u32 2147483647, %v2006_v20 }
 0x44c   :  { %v2049_v61 = vor.u32 1.1754944e-38, %v2048_v45 }
 0x44d   :  { %v2025_v23 = vmul.f32 %v4361_v16, %v2024_v13  ;;  %vm2047_vm4 = vcmp.eq.f32.partialorder %v2046_v34, 8.507059e+37 }
 0x44e   :  { %2265 = vmatpush.bf16.msrb.mxu0 %v4157_v14 }
 0x44f   :  { %v2026_v50 = vadd.f32 %v4361_v16, %v2025_v23 }
 0x450   :  { %v4363_v21 = vpop.eup %4362 }
 0x451   :  { %v2030_v47 = vsel %vm2029_vm11, %v4361_v16, %v2026_v50  ;;  %v2038_v60 = vmul.f32 %v4363_v21, %v2006_v20  ;;  %vm2043_vm13 = vweird.f32 %v4363_v21 }
 0x452   :  { %v2035_v35 = vsel %vm2032_vm12, %v2034_v40, %v2030_v47  ;;  %vm2044_vm15 = vmor %vm2042_vm14, %vm2043_vm13  ;;  %2266 = vmatpush.bf16.msrb.mxu0 %v4156_v18  ;;  %v2942_v18 = vld [vmem:[%s5621_s23] sm:$0x7] }
 0x453   :  { %v2053_v38 = vmul.f32 %v2035_v35, %v1989_v27  ;;  %v2039_v25 = vsub.f32 1.0, %v2038_v60 }
 0x455   :  { %v2055_v11 = vpack.c.bf16 %v2053_v38, %v2052_v37  ;;  %v2040_v55 = vmul.f32 %v4363_v21, %v2039_v25 }
 0x457   :  { %2116 = vmatmul.bf16.vlgmr.msra.gmra.mxu3 %v2055_v11  ;;  %v2041_v39 = vadd.f32 %v4363_v21, %v2040_v55 }
 0x459   :  { %v2045_v46 = vsel %vm2044_vm15, %v4363_v21, %v2041_v39 }
 0x45a   :  { %v2050_v3 = vsel %vm2047_vm4, %v2049_v61, %v2045_v46 }
 0x45b   :  { %v2054_v51 = vmul.f32 %v2050_v3, %v1992_v30 }
 0x45d   :  { %v2056_v26 = vpack.c.bf16 %v2054_v51, %v2054_v51 }
 0x467   :  { %2121 = vmatmul.bf16.gmra.mxu3 %v2056_v26 }
 0x4da   :  { %v2117_v33 = vpop.f32.mrf.mxu3 }
 0x4db   :  { %v2118_v8 = vadd.f32 %v4319_v5, %v2117_v33  ;;  %v4320_v33 = vld [vmem:[#allocation6] ss:$0 sm:$0xff] }
 0x4dd   :  { %v3773_v28 = vmul.f32 -1.442695, %v2118_v8 }
 0x4df   :  { %4364 = vpow2.f32 %v3773_v28 }
 0x4e2   :  { %v2119_v27 = vpop.f32.mrf.mxu3 }
 0x4e3   :  { %v2120_v9 = vadd.f32 %v4319_v5, %v2119_v27  ;;  %v4167_v27 = vld [vmem:[%s5620_s22 + $0x18] sm:$0xff] }
 0x4e5   :  { %v4365_v29 = vpop.eup %4364  ;;  %v3774_v12 = vmul.f32 -1.442695, %v2120_v9 }
 0x4e6   :  { %v2135_v58 = vadd.f32 1.0, %v4365_v29 }
 0x4e7   :  { %4366 = vpow2.f32 %v3774_v12 }
 0x4e8   :  { %4368 = vrcp.f32 %v2135_v58  ;;  %v2149_v17 = vand.u32 2147483648, %v2135_v58  ;;  %vm2143_vm6 = vweird.f32 %v2135_v58  ;;  %v2147_v49 = vand.u32 2147483647, %v2135_v58 }
 0x4ea   :  { %v2122_v30 = vpop.f32.mrf.mxu3  ;;  %v2150_v23 = vor.u32 1.1754944e-38, %v2149_v17  ;;  %vm2148_vm8 = vcmp.eq.f32.partialorder %v2147_v49, 8.507059e+37 }
 0x4eb   :  { %v2123_v15 = vadd.f32 %v4319_v5, %v2122_v30  ;;  %v4170_v5 = vld [vmem:[%s5620_s22 + $0x30] sm:$0xff] }
 0x4ec   :  { %2428 = vmatpush.bf16.msra.mxu1 %v4170_v5 }
 0x4ed   :  { %v4367_v57 = vpop.eup %4366  ;;  %v3775_v1 = vmul.f32 -1.442695, %v2123_v15 }
 0x4ee   :  { %v4369_v54 = vpop.eup %4368  ;;  %v2136_v53 = vadd.f32 1.0, %v4367_v57  ;;  %v4164_v57 = vld [vmem:[%s5620_s22] sm:$0xff] }
 0x4ef   :  { %v2139_v56 = vmul.f32 %v4369_v54, %v2135_v58  ;;  %4370 = vpow2.f32 %v3775_v1  ;;  %vm2144_vm5 = vweird.f32 %v4369_v54  ;;  %v4165_v58 = vld [vmem:[%s5620_s22 + $0x8] sm:$0xff] }
 0x4f0   :  { %4372 = vrcp.f32 %v2136_v53  ;;  %vm2145_vm7 = vmor %vm2143_vm6, %vm2144_vm5  ;;  %v2164_v19 = vand.u32 2147483648, %v2136_v53  ;;  %v2162_v50 = vand.u32 2147483647, %v2136_v53  ;;  %vm2158_vm10 = vweird.f32 %v2136_v53  ;;  %2429 = vmatpush.bf16.msra.mxu1 %v4169_v10 }
 0x4f1   :  { %v2140_v44 = vsub.f32 1.0, %v2139_v56 }
 0x4f2   :  { %v2124_v42 = vpop.f32.mrf.mxu3  ;;  %v2165_v47 = vor.u32 1.1754944e-38, %v2164_v19  ;;  %vm2163_vm12 = vcmp.eq.f32.partialorder %v2162_v50, 8.507059e+37 }
 0x4f3   :  { %v2141_v6 = vmul.f32 %v4369_v54, %v2140_v44 }
 0x4f5   :  { %v4371_v16 = vpop.eup %4370  ;;  %v2142_v20 = vadd.f32 %v4369_v54, %v2141_v6 }
 0x4f6   :  { %v4373_v59 = vpop.eup %4372  ;;  %v2137_v31 = vadd.f32 1.0, %v4371_v16 }
 0x4f7   :  { %v2154_v13 = vmul.f32 %v4373_v59, %v2136_v53  ;;  %v2146_v48 = vsel %vm2145_vm7, %v4369_v54, %v2142_v20  ;;  %vm2159_vm9 = vweird.f32 %v4373_v59 }
 0x4f8   :  { %4374 = vrcp.f32 %v2137_v31  ;;  %v2151_v21 = vsel %vm2148_vm8, %v2150_v23, %v2146_v48  ;;  %vm2160_vm11 = vmor %vm2158_vm10, %vm2159_vm9  ;;  %v2179_v34 = vand.u32 2147483648, %v2137_v31  ;;  %vm2173_vm14 = vweird.f32 %v2137_v31 }
 0x4f9   :  { %v2155_v4 = vsub.f32 1.0, %v2154_v13  ;;  %v2183_v60 = vmul.f32 %v2151_v21, %v2118_v8  ;;  %v2177_v3 = vand.u32 2147483647, %v2137_v31  ;;  %v4168_v8 = vld [vmem:[%s5620_s22 + $0x20] sm:$0xff] }
 0x4fa   :  { %v2180_v26 = vor.u32 1.1754944e-38, %v2179_v34  ;;  %2430 = vmatpush.bf16.msra.mxu1 %v4168_v8  ;;  %v4449_v34 = vld [vmem:[%s5608_s29] sm:$0xff] }
 0x4fb   :  { %v2156_v62 = vmul.f32 %v4373_v59, %v2155_v4  ;;  %v2186_v55 = vadd.f32 %v2183_v60, %v5432_v52  ;;  %vm2178_vm4 = vcmp.eq.f32.partialorder %v2177_v3, 8.507059e+37 }
 0x4fd   :  { %v2157_v36 = vadd.f32 %v4373_v59, %v2156_v62 }
 0x4fe   :  { %v4375_v40 = vpop.eup %4374  ;;  %2431 = vmatpush.bf16.msra.mxu1 %v4167_v27  ;;  %v4177_v27 = vld [vmem:[%s5622_s28 + $0x28] sm:$0xff] }
 0x4ff   :  { %v2161_v35 = vsel %vm2160_vm11, %v4373_v59, %v2157_v36  ;;  %v2169_v37 = vmul.f32 %v4375_v40, %v2137_v31  ;;  %vm2174_vm13 = vweird.f32 %v4375_v40 }
 0x500   :  { %v2166_v38 = vsel %vm2163_vm12, %v2165_v47, %v2161_v35  ;;  %vm2175_vm15 = vmor %vm2173_vm14, %vm2174_vm13 }
 0x501   :  { %v2184_v25 = vmul.f32 %v2166_v38, %v2120_v9  ;;  %v2170_v11 = vsub.f32 1.0, %v2169_v37 }
 0x503   :  { %v2187_v39 = vadd.f32 %v2184_v25, %v5434_v22  ;;  %v2171_v45 = vmul.f32 %v4375_v40, %v2170_v11 }
 0x505   :  { %v2205_v46 = vpack.c.bf16 %v2187_v39, %v2186_v55  ;;  %v2172_v61 = vadd.f32 %v4375_v40, %v2171_v45 }
 0x507   :  { %v2176_v51 = vsel %vm2175_vm15, %v4375_v40, %v2172_v61  ;;  %2267 = vmatmul.bf16.vlgmr.msrb.gmra.mxu0 %v2205_v46  ;;  %v4450_v61 = vld [vmem:[%s5608_s29 + $0x8] sm:$0xff] }
 0x508   :  { %v2181_v63 = vsel %vm2178_vm4, %v2180_v26, %v2176_v51 }
 0x509   :  { %v2185_v52 = vmul.f32 %v2181_v63, %v2123_v15  ;;  %v2995_v15 = vsel %vm290_vm0, %v2942_v18, 0 }
 0x50b   :  { %v2188_v22 = vadd.f32 %v2185_v52, %v5439_v24  ;;  %v4166_v24 = vld [vmem:[%s5620_s22 + $0x10] sm:$0xff] }
 0x50c   :  { %2432 = vmatpush.bf16.msra.mxu1 %v4166_v24  ;;  %v4321_v24 = vld [vmem:[#allocation7] ss:$0 sm:$0xff] }
 0x50d   :  { %v2206_v2 = vpack.c.bf16 %v2188_v22, %v2188_v22 }
 0x510   :  { %2433 = vmatpush.bf16.msra.mxu1 %v4165_v58 }
 0x514   :  { %2434 = vmatpush.bf16.msra.mxu1 %v4164_v57 }
 0x517   :  { %2272 = vmatmul.bf16.gmra.mxu0 %v2206_v2 }
 0x518   :  { %3004 = vmatpush.bf16.msrb.mxu1 %v2995_v15 }
 0x584   :  { %v2268_v28 = vpop.f32.mrf.mxu0 }
 0x585   :  { %v2269_v43 = vadd.f32 %v4320_v33, %v2268_v28 }
 0x587   :  { %v3808_v41 = vmul.f32 -1.442695, %v2269_v43 }
 0x589   :  { %4376 = vpow2.f32 %v3808_v41  ;;  %v4178_v41 = vld [vmem:[%s5622_s28 + $0x30] sm:$0xff] }
 0x58c   :  { %v2270_v9 = vpop.f32.mrf.mxu0 }
 0x58d   :  { %v2271_v29 = vadd.f32 %v4320_v33, %v2270_v9  ;;  %v4176_v9 = vld [vmem:[%s5622_s28 + $0x20] sm:$0xff] }
 0x58f   :  { %v4377_v12 = vpop.eup %4376  ;;  %v3809_v14 = vmul.f32 -1.442695, %v2271_v29 }
 0x590   :  { %v2286_v30 = vadd.f32 1.0, %v4377_v12 }
 0x591   :  { %4378 = vpow2.f32 %v3809_v14  ;;  %v4175_v14 = vld [vmem:[%s5622_s28 + $0x18] sm:$0xff] }
 0x592   :  { %4380 = vrcp.f32 %v2286_v30  ;;  %v2300_v13 = vand.u32 2147483648, %v2286_v30  ;;  %vm2294_vm5 = vweird.f32 %v2286_v30  ;;  %v2298_v4 = vand.u32 2147483647, %v2286_v30 }
 0x594   :  { %v2273_v1 = vpop.f32.mrf.mxu0  ;;  %v2301_v50 = vor.u32 1.1754944e-38, %v2300_v13  ;;  %vm2299_vm7 = vcmp.eq.f32.partialorder %v2298_v4, 8.507059e+37 }
 0x595   :  { %v5472_v54 = vadd.f32 %v4320_v33, %v2273_v1  ;;  %v4451_v33 = vld [vmem:[%s5608_s29 + $0x10] sm:$0xff] }
 0x597   :  { %v4379_v53 = vpop.eup %4378  ;;  %v3810_v56 = vmul.f32 -1.442695, %v5472_v54 }
 0x598   :  { %v4381_v44 = vpop.eup %4380  ;;  %v2287_v42 = vadd.f32 1.0, %v4379_v53 }
 0x599   :  { %v2290_v6 = vmul.f32 %v4381_v44, %v2286_v30  ;;  %4382 = vpow2.f32 %v3810_v56  ;;  %vm2295_vm0 = vweird.f32 %v4381_v44  ;;  %v4173_v30 = vld [vmem:[%s5622_s28 + $0x8] sm:$0xff] }
 0x59a   :  { %4384 = vrcp.f32 %v2287_v42  ;;  %vm2296_vm6 = vmor %vm2294_vm5, %vm2295_vm0  ;;  %v2315_v21 = vand.u32 2147483648, %v2287_v42  ;;  %v2313_v40 = vand.u32 2147483647, %v2287_v42  ;;  %vm2309_vm9 = vweird.f32 %v2287_v42 }
 0x59b   :  { %v2291_v16 = vsub.f32 1.0, %v2290_v6 }
 0x59c   :  { %v2275_v20 = vpop.f32.mrf.mxu0  ;;  %v2316_v37 = vor.u32 1.1754944e-38, %v2315_v21  ;;  %vm2314_vm11 = vcmp.eq.f32.partialorder %v2313_v40, 8.507059e+37 }
 0x59d   :  { %v2292_v59 = vmul.f32 %v4381_v44, %v2291_v16 }
 0x59f   :  { %v4383_v17 = vpop.eup %4382  ;;  %v2293_v31 = vadd.f32 %v4381_v44, %v2292_v59 }
 0x5a0   :  { %v4385_v49 = vpop.eup %4384  ;;  %v2288_v48 = vadd.f32 1.0, %v4383_v17 }
 0x5a1   :  { %v2305_v23 = vmul.f32 %v4385_v49, %v2287_v42  ;;  %v2297_v19 = vsel %vm2296_vm6, %v4381_v44, %v2293_v31  ;;  %vm2310_vm8 = vweird.f32 %v4385_v49 }
 0x5a2   :  { %4386 = vrcp.f32 %v2288_v48  ;;  %v2302_v47 = vsel %vm2299_vm7, %v2301_v50, %v2297_v19  ;;  %vm2311_vm10 = vmor %vm2309_vm9, %vm2310_vm8  ;;  %v2330_v26 = vand.u32 2147483648, %v2288_v48  ;;  %vm2324_vm13 = vweird.f32 %v2288_v48 }
 0x5a3   :  { %v2306_v62 = vsub.f32 1.0, %v2305_v23  ;;  %v2334_v38 = vmul.f32 %v2302_v47, %v2269_v43  ;;  %v2328_v22 = vand.u32 2147483647, %v2288_v48  ;;  %v4179_v43 = vld [vmem:[%s5622_s28 + $0x38] sm:$0xff] }
 0x5a4   :  { %v2331_v0 = vor.u32 1.1754944e-38, %v2330_v26  ;;  %2558 = vmatpush.bf16.msrb.mxu2 %v4179_v43  ;;  %v4186_v43 = vld [vmem:[%s5623_s27 + $0x30] sm:$0xff] }
 0x5a5   :  { %v2307_v36 = vmul.f32 %v4385_v49, %v2306_v62  ;;  %v5476_v46 = vadd.f32 %v4449_v34, %v2334_v38  ;;  %vm2329_vm15 = vcmp.eq.f32.partialorder %v2328_v22, 8.507059e+37 }
 0x5a7   :  { %v2308_v60 = vadd.f32 %v4385_v49, %v2307_v36 }
 0x5a8   :  { %v4387_v35 = vpop.eup %4386  ;;  %2559 = vmatpush.bf16.msrb.mxu2 %v4178_v41  ;;  %v4185_v41 = vld [vmem:[%s5623_s27 + $0x28] sm:$0xff] }
 0x5a9   :  { %v2312_v25 = vsel %vm2311_vm10, %v4385_v49, %v2308_v60  ;;  %v2320_v11 = vmul.f32 %v4387_v35, %v2288_v48  ;;  %vm2325_vm12 = vweird.f32 %v4387_v35 }
 0x5aa   :  { %v2317_v55 = vsel %vm2314_vm11, %v2316_v37, %v2312_v25  ;;  %vm2326_vm14 = vmor %vm2324_vm13, %vm2325_vm12 }
 0x5ab   :  { %v2335_v39 = vmul.f32 %v2317_v55, %v2271_v29  ;;  %v2321_v45 = vsub.f32 1.0, %v2320_v11 }
 0x5ac   :  { %2560 = vmatpush.bf16.msrb.mxu2 %v4177_v27  ;;  %v4322_v27 = vld [vmem:[#allocation9] ss:$0 sm:$0xff] }
 0x5ad   :  { %v5479_v3 = vadd.f32 %v4450_v61, %v2335_v39  ;;  %v2322_v51 = vmul.f32 %v4387_v35, %v2321_v45 }
 0x5af   :  { %v2374_v63 = vpack.c.bf16 %v5479_v3, %v5476_v46  ;;  %v2323_v52 = vadd.f32 %v4387_v35, %v2322_v51 }
 0x5b0   :  { %2561 = vmatpush.bf16.msrb.mxu2 %v4176_v9 }
 0x5b1   :  { %v2327_v2 = vsel %vm2326_vm14, %v4387_v35, %v2323_v52  ;;  %2435 = vmatmul.bf16.vlgmr.msra.gmra.mxu1 %v2374_v63 }
 0x5b2   :  { %v2332_v5 = vsel %vm2329_vm15, %v2331_v0, %v2327_v2 }
 0x5b3   :  { %v2336_v10 = vmul.f32 %v2332_v5, %v5472_v54  ;;  %v4172_v54 = vld [vmem:[%s5622_s28] sm:$0xff] }
 0x5b4   :  { %2562 = vmatpush.bf16.msrb.mxu2 %v4175_v14  ;;  %v4183_v14 = vld [vmem:[%s5623_s27 + $0x18] sm:$0xff] }
 0x5b5   :  { %v5485_v8 = vadd.f32 %v4451_v33, %v2336_v10 }
 0x5b7   :  { %v2375_v28 = vpack.c.bf16 %v5485_v8, %v5485_v8 }
 0x5c1   :  { %2440 = vmatmul.bf16.gmra.mxu1 %v2375_v28  ;;  %v4187_v28 = vld [vmem:[%s5623_s27 + $0x38] sm:$0xff] }
 0x5c2   :  { %2726 = vmatpush.bf16.msrb.mxu3 %v4187_v28  ;;  %v4195_v28 = vld [vmem:[%s5624_s21 + $0x38] sm:$0xff] }
 0x5c3   :  { %2857 = vmatpush.bf16.msra.mxu0 %v4195_v28 }
 0x5c6   :  { %2727 = vmatpush.bf16.msrb.mxu3 %v4186_v43  ;;  %v4194_v43 = vld [vmem:[%s5624_s21 + $0x30] sm:$0xff] }
 0x5c7   :  { %2858 = vmatpush.bf16.msra.mxu0 %v4194_v43 }
 0x5ca   :  { %2728 = vmatpush.bf16.msrb.mxu3 %v4185_v41  ;;  %v4193_v41 = vld [vmem:[%s5624_s21 + $0x28] sm:$0xff] }
 0x5cb   :  { %2859 = vmatpush.bf16.msra.mxu0 %v4193_v41 }
 0x5d1   :  { %3951 = vmatmul.msk.bf16.vlgmr.msrb.gmra.mxu1 %vm283_vm2, %v4966_v7  ;;  %v4174_v7 = vld [vmem:[%s5622_s28 + $0x10] sm:$0xff] }
 0x5d2   :  { %2563 = vmatpush.bf16.msrb.mxu2 %v4174_v7 }
 0x5d6   :  { %2564 = vmatpush.bf16.msrb.mxu2 %v4173_v30 }
 0x5da   :  { %2565 = vmatpush.bf16.msrb.mxu2 %v4172_v54 }
 0x5e1   :  { %3952 = vmatmul.msk.bf16.gmra.mxu1 %vm283_vm2, %v4989_v32 }
 0x62e   :  { %v2436_v29 = vpop.f32.mrf.mxu1 }
 0x62f   :  { %v2437_v12 = vadd.f32 %v4321_v24, %v2436_v29 }
 0x631   :  { %v3843_v58 = vmul.f32 -1.442695, %v2437_v12 }
 0x633   :  { %4388 = vpow2.f32 %v3843_v58  ;;  %v4182_v58 = vld [vmem:[%s5623_s27 + $0x10] sm:$0xff] }
 0x636   :  { %v2438_v32 = vpop.f32.mrf.mxu1 }
 0x637   :  { %v2439_v18 = vadd.f32 %v4321_v24, %v2438_v32 }
 0x639   :  { %v4389_v15 = vpop.eup %4388  ;;  %v3844_v57 = vmul.f32 -1.442695, %v2439_v18 }
 0x63a   :  { %v2454_v1 = vadd.f32 1.0, %v4389_v15  ;;  %v4181_v15 = vld [vmem:[%s5623_s27 + $0x8] sm:$0xff] }
 0x63b   :  { %4390 = vpow2.f32 %v3844_v57 }
 0x63c   :  { %4392 = vrcp.f32 %v2454_v1  ;;  %v2468_v19 = vand.u32 2147483648, %v2454_v1  ;;  %vm2462_vm4 = vweird.f32 %v2454_v1  ;;  %v2466_v62 = vand.u32 2147483647, %v2454_v1 }
 0x63e   :  { %v2441_v53 = vpop.f32.mrf.mxu1  ;;  %v2469_v60 = vor.u32 1.1754944e-38, %v2468_v19  ;;  %vm2467_vm6 = vcmp.eq.f32.partialorder %v2466_v62, 8.507059e+37 }
 0x63f   :  { %v2442_v56 = vadd.f32 %v4321_v24, %v2441_v53  ;;  %v4184_v24 = vld [vmem:[%s5623_s27 + $0x20] sm:$0xff] }
 0x640   :  { %2729 = vmatpush.bf16.msrb.mxu3 %v4184_v24  ;;  %v4192_v24 = vld [vmem:[%s5624_s21 + $0x20] sm:$0xff] }
 0x641   :  { %v4391_v44 = vpop.eup %4390  ;;  %v3845_v42 = vmul.f32 -1.442695, %v2442_v56  ;;  %2860 = vmatpush.bf16.msra.mxu0 %v4192_v24 }
 0x642   :  { %v4393_v6 = vpop.eup %4392  ;;  %v2455_v16 = vadd.f32 1.0, %v4391_v44 }
 0x643   :  { %v2458_v20 = vmul.f32 %v4393_v6, %v2454_v1  ;;  %4394 = vpow2.f32 %v3845_v42  ;;  %vm2463_vm2 = vweird.f32 %v4393_v6  ;;  %v4180_v1 = vld [vmem:[%s5623_s27] sm:$0xff] }
 0x644   :  { %4396 = vrcp.f32 %v2455_v16  ;;  %vm2464_vm0 = vmor %vm2462_vm4, %vm2463_vm2  ;;  %v2483_v21 = vand.u32 2147483648, %v2455_v16  ;;  %v2481_v47 = vand.u32 2147483647, %v2455_v16  ;;  %vm2477_vm7 = vweird.f32 %v2455_v16  ;;  %2730 = vmatpush.bf16.msrb.mxu3 %v4183_v14  ;;  %v4190_v14 = vld [vmem:[%s5624_s21 + $0x10] sm:$0xff] }
 0x645   :  { %v2459_v59 = vsub.f32 1.0, %v2458_v20 }
 0x646   :  { %v2443_v17 = vpop.f32.mrf.mxu1  ;;  %v2484_v25 = vor.u32 1.1754944e-38, %v2483_v21  ;;  %vm2482_vm9 = vcmp.eq.f32.partialorder %v2481_v47, 8.507059e+37 }
 0x647   :  { %v2460_v31 = vmul.f32 %v4393_v6, %v2459_v59 }
 0x648   :  { %2731 = vmatpush.bf16.msrb.mxu3 %v4182_v58 }
 0x649   :  { %v4395_v49 = vpop.eup %4394  ;;  %v2461_v4 = vadd.f32 %v4393_v6, %v2460_v31 }
 0x64a   :  { %v4397_v13 = vpop.eup %4396  ;;  %v2456_v48 = vadd.f32 1.0, %v4395_v49 }
 0x64b   :  { %v2473_v23 = vmul.f32 %v4397_v13, %v2455_v16  ;;  %v2465_v36 = vsel %vm2464_vm0, %v4393_v6, %v2461_v4  ;;  %vm2478_vm5 = vweird.f32 %v4397_v13 }
 0x64c   :  { %4398 = vrcp.f32 %v2456_v48  ;;  %v2470_v38 = vsel %vm2467_vm6, %v2469_v60, %v2465_v36  ;;  %vm2479_vm8 = vmor %vm2477_vm7, %vm2478_vm5  ;;  %v2498_v52 = vand.u32 2147483648, %v2456_v48  ;;  %vm2492_vm11 = vweird.f32 %v2456_v48  ;;  %2732 = vmatpush.bf16.msrb.mxu3 %v4181_v15 }
 0x64d   :  { %v2474_v50 = vsub.f32 1.0, %v2473_v23  ;;  %v2502_v45 = vmul.f32 %v2470_v38, %v2437_v12  ;;  %v2496_v22 = vand.u32 2147483647, %v2456_v48 }
 0x64e   :  { %v2499_v0 = vor.u32 1.1754944e-38, %v2498_v52  ;;  %v5530_v41 = vpop.f32.mrf.mxu1 }
 0x64f   :  { %v2475_v40 = vmul.f32 %v4397_v13, %v2474_v50  ;;  %vm2497_vm13 = vcmp.eq.f32.partialorder %v2496_v22, 8.507059e+37 }
 0x650   :  { %2733 = vmatpush.bf16.msrb.mxu3 %v4180_v1 }
 0x651   :  { %v2476_v35 = vadd.f32 %v4397_v13, %v2475_v40 }
 0x652   :  { %v4399_v37 = vpop.eup %4398 }
 0x653   :  { %v2480_v11 = vsel %vm2479_vm8, %v4397_v13, %v2476_v35  ;;  %v2488_v55 = vmul.f32 %v4399_v37, %v2456_v48  ;;  %vm2493_vm10 = vweird.f32 %v4399_v37 }
 0x654   :  { %v2485_v39 = vsel %vm2482_vm9, %v2484_v25, %v2480_v11  ;;  %vm2494_vm12 = vmor %vm2492_vm11, %vm2493_vm10 }
 0x655   :  { %v2503_v34 = vmul.f32 %v2485_v39, %v2439_v18  ;;  %v2489_v61 = vsub.f32 1.0, %v2488_v55 }
 0x657   :  { %v2505_v51 = vpack.c.bf16 %v2503_v34, %v2502_v45  ;;  %v2490_v26 = vmul.f32 %v4399_v37, %v2489_v61 }
 0x659   :  { %v2491_v63 = vadd.f32 %v4399_v37, %v2490_v26  ;;  %2566 = vmatmul.bf16.vlgmr.msrb.gmra.mxu2 %v2505_v51 }
 0x65b   :  { %v2495_v2 = vsel %vm2494_vm12, %v4399_v37, %v2491_v63 }
 0x65c   :  { %v2500_v5 = vsel %vm2497_vm13, %v2499_v0, %v2495_v2 }
 0x65d   :  { %v2504_v10 = vmul.f32 %v2500_v5, %v2442_v56 }
 0x65f   :  { %v2506_v33 = vpack.c.bf16 %v2504_v10, %v2504_v10 }
 0x669   :  { %2571 = vmatmul.bf16.gmra.mxu2 %v2506_v33 }
 0x6dc   :  { %v2567_v9 = vpop.f32.mrf.mxu2 }
 0x6dd   :  { %v2568_v29 = vadd.f32 %v4322_v27, %v2567_v9 }
 0x6df   :  { %v3878_v12 = vmul.f32 -1.442695, %v2568_v29 }
 0x6e1   :  { %4400 = vpow2.f32 %v3878_v12 }
 0x6e4   :  { %v2569_v7 = vpop.f32.mrf.mxu2 }
 0x6e5   :  { %v2570_v32 = vadd.f32 %v4322_v27, %v2569_v7 }
 0x6e7   :  { %v4401_v18 = vpop.eup %4400  ;;  %v3879_v30 = vmul.f32 -1.442695, %v2570_v32 }
 0x6e8   :  { %v2585_v57 = vadd.f32 1.0, %v4401_v18 }
 0x6e9   :  { %4402 = vpow2.f32 %v3879_v30 }
 0x6ea   :  { %4404 = vrcp.f32 %v2585_v57  ;;  %v2599_v48 = vand.u32 2147483648, %v2585_v57  ;;  %vm2593_vm15 = vweird.f32 %v2585_v57  ;;  %v2597_v23 = vand.u32 2147483647, %v2585_v57 }
 0x6ec   :  { %v2572_v54 = vpop.f32.mrf.mxu2  ;;  %v2600_v21 = vor.u32 1.1754944e-38, %v2599_v48  ;;  %vm2598_vm4 = vcmp.eq.f32.partialorder %v2597_v23, 8.507059e+37 }
 0x6ed   :  { %v2573_v53 = vadd.f32 %v4322_v27, %v2572_v54  ;;  %v4323_v27 = vld [vmem:[#allocation10] ss:$0 sm:$0xff] }
 0x6ef   :  { %v4403_v56 = vpop.eup %4402  ;;  %v3880_v44 = vmul.f32 -1.442695, %v2573_v53 }
 0x6f0   :  { %v4405_v42 = vpop.eup %4404  ;;  %v2586_v6 = vadd.f32 1.0, %v4403_v56 }
 0x6f1   :  { %v2589_v16 = vmul.f32 %v4405_v42, %v2585_v57  ;;  %4406 = vpow2.f32 %v3880_v44  ;;  %vm2594_vm14 = vweird.f32 %v4405_v42  ;;  %v4188_v57 = vld [vmem:[%s5624_s21] sm:$0xff] }
 0x6f2   :  { %4408 = vrcp.f32 %v2586_v6  ;;  %vm2595_vm2 = vmor %vm2593_vm15, %vm2594_vm14  ;;  %v2614_v36 = vand.u32 2147483648, %v2586_v6  ;;  %v2612_v47 = vand.u32 2147483647, %v2586_v6  ;;  %vm2608_vm5 = vweird.f32 %v2586_v6 }
 0x6f3   :  { %v2590_v20 = vsub.f32 1.0, %v2589_v16 }
 0x6f4   :  { %v2574_v59 = vpop.f32.mrf.mxu2  ;;  %v2615_v38 = vor.u32 1.1754944e-38, %v2614_v36  ;;  %vm2613_vm7 = vcmp.eq.f32.partialorder %v2612_v47, 8.507059e+37 }
 0x6f5   :  { %v2591_v17 = vmul.f32 %v4405_v42, %v2590_v20 }
 0x6f7   :  { %v4407_v31 = vpop.eup %4406  ;;  %v2592_v49 = vadd.f32 %v4405_v42, %v2591_v17 }
 0x6f8   :  { %v4409_v13 = vpop.eup %4408  ;;  %v2587_v4 = vadd.f32 1.0, %v4407_v31 }
 0x6f9   :  { %v2604_v19 = vmul.f32 %v4409_v13, %v2586_v6  ;;  %v2596_v62 = vsel %vm2595_vm2, %v4405_v42, %v2592_v49  ;;  %vm2609_vm0 = vweird.f32 %v4409_v13 }
 0x6fa   :  { %4410 = vrcp.f32 %v2587_v4  ;;  %v2601_v60 = vsel %vm2598_vm4, %v2600_v21, %v2596_v62  ;;  %vm2610_vm6 = vmor %vm2608_vm5, %vm2609_vm0  ;;  %v2629_v63 = vand.u32 2147483648, %v2587_v4  ;;  %vm2623_vm9 = vweird.f32 %v2587_v4 }
 0x6fb   :  { %v2605_v50 = vsub.f32 1.0, %v2604_v19  ;;  %v2633_v25 = vmul.f32 %v2601_v60, %v2568_v29  ;;  %v2627_v2 = vand.u32 2147483647, %v2587_v4 }
 0x6fd   :  { %v2606_v40 = vmul.f32 %v4409_v13, %v2605_v50  ;;  %v5510_v61 = vadd.f32 %v2633_v25, %v5476_v46  ;;  %v2630_v46 = vor.u32 1.1754944e-38, %v2629_v63  ;;  %vm2628_vm11 = vcmp.eq.f32.partialorder %v2627_v2, 8.507059e+37 }
 0x6ff   :  { %v2607_v35 = vadd.f32 %v4409_v13, %v2606_v40 }
 0x700   :  { %v4411_v37 = vpop.eup %4410 }
 0x701   :  { %v2611_v11 = vsel %vm2610_vm6, %v4409_v13, %v2607_v35  ;;  %v2619_v55 = vmul.f32 %v4411_v37, %v2587_v4  ;;  %vm2624_vm8 = vweird.f32 %v4411_v37 }
 0x702   :  { %v2616_v39 = vsel %vm2613_vm7, %v2615_v38, %v2611_v11  ;;  %vm2625_vm10 = vmor %vm2623_vm9, %vm2624_vm8 }
 0x703   :  { %v2634_v45 = vmul.f32 %v2616_v39, %v2570_v32  ;;  %v2620_v34 = vsub.f32 1.0, %v2619_v55  ;;  %v4189_v32 = vld [vmem:[%s5624_s21 + $0x8] sm:$0xff] }
 0x705   :  { %v5513_v51 = vadd.f32 %v2634_v45, %v5479_v3  ;;  %v2621_v26 = vmul.f32 %v4411_v37, %v2620_v34 }
 0x707   :  { %v2673_v52 = vpack.c.bf16 %v5513_v51, %v5510_v61  ;;  %v2622_v22 = vadd.f32 %v4411_v37, %v2621_v26 }
 0x709   :  { %v2626_v0 = vsel %vm2625_vm10, %v4411_v37, %v2622_v22  ;;  %2734 = vmatmul.bf16.vlgmr.msrb.gmra.mxu3 %v2673_v52 }
 0x70a   :  { %v2631_v3 = vsel %vm2628_vm11, %v2630_v46, %v2626_v0 }
 0x70b   :  { %v2635_v5 = vmul.f32 %v2631_v3, %v2573_v53 }
 0x70d   :  { %v5518_v10 = vadd.f32 %v2635_v5, %v5485_v8  ;;  %v4191_v8 = vld [vmem:[%s5624_s21 + $0x18] sm:$0xff] }
 0x70e   :  { %2861 = vmatpush.bf16.msra.mxu0 %v4191_v8 }
 0x70f   :  { %v2674_v33 = vpack.c.bf16 %v5518_v10, %v5518_v10 }
 0x712   :  { %2862 = vmatpush.bf16.msra.mxu0 %v4190_v14 }
 0x716   :  { %2863 = vmatpush.bf16.msra.mxu0 %v4189_v32 }
 0x719   :  { %2739 = vmatmul.bf16.gmra.mxu3 %v2674_v33  ;;  %v4324_v33 = vld [vmem:[#allocation12] ss:$0 sm:$0xff] }
 0x71a   :  { %2864 = vmatpush.bf16.msra.mxu0 %v4188_v57 }
 0x78c   :  { %v2735_v9 = vpop.f32.mrf.mxu3 }
 0x78d   :  { %v2736_v29 = vadd.f32 %v4323_v27, %v2735_v9 }
 0x78f   :  { %v3913_v12 = vmul.f32 -1.442695, %v2736_v29 }
 0x791   :  { %4412 = vpow2.f32 %v3913_v12 }
 0x794   :  { %v2737_v58 = vpop.f32.mrf.mxu3 }
 0x795   :  { %v2738_v7 = vadd.f32 %v4323_v27, %v2737_v58 }
 0x797   :  { %v4413_v18 = vpop.eup %4412  ;;  %v3914_v30 = vmul.f32 -1.442695, %v2738_v7 }
 0x798   :  { %v2753_v15 = vadd.f32 1.0, %v4413_v18 }
 0x799   :  { %4414 = vpow2.f32 %v3914_v30 }
 0x79a   :  { %4416 = vrcp.f32 %v2753_v15  ;;  %v2767_v4 = vand.u32 2147483648, %v2753_v15  ;;  %vm2761_vm13 = vweird.f32 %v2753_v15  ;;  %v2765_v23 = vand.u32 2147483647, %v2753_v15 }
 0x79c   :  { %v2740_v1 = vpop.f32.mrf.mxu3  ;;  %v2768_v40 = vor.u32 1.1754944e-38, %v2767_v4  ;;  %vm2766_vm2 = vcmp.eq.f32.partialorder %v2765_v23, 8.507059e+37 }
 0x79d   :  { %v2741_v54 = vadd.f32 %v4323_v27, %v2740_v1 }
 0x79f   :  { %v4415_v53 = vpop.eup %4414  ;;  %v3915_v56 = vmul.f32 -1.442695, %v2741_v54 }
 0x7a0   :  { %v4417_v44 = vpop.eup %4416  ;;  %v2754_v42 = vadd.f32 1.0, %v4415_v53 }
 0x7a1   :  { %v2757_v6 = vmul.f32 %v4417_v44, %v2753_v15  ;;  %4418 = vpow2.f32 %v3915_v56  ;;  %vm2762_vm12 = vweird.f32 %v4417_v44 }
 0x7a2   :  { %4420 = vrcp.f32 %v2754_v42  ;;  %vm2763_vm14 = vmor %vm2761_vm13, %vm2762_vm12  ;;  %v2782_v62 = vand.u32 2147483648, %v2754_v42  ;;  %v2780_v36 = vand.u32 2147483647, %v2754_v42  ;;  %vm2776_vm4 = vweird.f32 %v2754_v42 }
 0x7a3   :  { %v2758_v16 = vsub.f32 1.0, %v2757_v6 }
 0x7a4   :  { %v2742_v20 = vpop.f32.mrf.mxu3  ;;  %v2783_v37 = vor.u32 1.1754944e-38, %v2782_v62  ;;  %vm2781_vm5 = vcmp.eq.f32.partialorder %v2780_v36, 8.507059e+37 }
 0x7a5   :  { %v2759_v59 = vmul.f32 %v4417_v44, %v2758_v16 }
 0x7a7   :  { %v4419_v17 = vpop.eup %4418  ;;  %v2760_v13 = vadd.f32 %v4417_v44, %v2759_v59 }
 0x7a8   :  { %v4421_v31 = vpop.eup %4420  ;;  %v2755_v49 = vadd.f32 1.0, %v4419_v17 }
 0x7a9   :  { %v2772_v48 = vmul.f32 %v4421_v31, %v2754_v42  ;;  %v2764_v50 = vsel %vm2763_vm14, %v4417_v44, %v2760_v13  ;;  %vm2777_vm15 = vweird.f32 %v4421_v31 }
 0x7aa   :  { %4422 = vrcp.f32 %v2755_v49  ;;  %v2769_v35 = vsel %vm2766_vm2, %v2768_v40, %v2764_v50  ;;  %vm2778_vm0 = vmor %vm2776_vm4, %vm2777_vm15  ;;  %v2797_v52 = vand.u32 2147483648, %v2755_v49  ;;  %vm2791_vm7 = vweird.f32 %v2755_v49  ;;  %v4202_v40 = vld [vmem:[%s5625_s26 + $0x30] sm:$0xff] }
 0x7ab   :  { %v2773_v19 = vsub.f32 1.0, %v2772_v48  ;;  %v2801_v55 = vmul.f32 %v2769_v35, %v2736_v29  ;;  %v2795_v22 = vand.u32 2147483647, %v2755_v49  ;;  %v5532_v29 = vpop.f32.mrf.mxu1 }
 0x7ac   :  { %v2798_v0 = vor.u32 1.1754944e-38, %v2797_v52 }
 0x7ad   :  { %v2774_v21 = vmul.f32 %v4421_v31, %v2773_v19  ;;  %vm2796_vm9 = vcmp.eq.f32.partialorder %v2795_v22, 8.507059e+37  ;;  %v4203_v19 = vld [vmem:[%s5625_s26 + $0x38] sm:$0xff] }
 0x7ae   :  { %3091 = vmatpush.bf16.msra.mxu3 %v4203_v19 }
 0x7af   :  { %v2775_v47 = vadd.f32 %v4421_v31, %v2774_v21 }
 0x7b0   :  { %v4423_v60 = vpop.eup %4422 }
 0x7b1   :  { %v2779_v38 = vsel %vm2778_vm0, %v4421_v31, %v2775_v47  ;;  %v2787_v25 = vmul.f32 %v4423_v60, %v2755_v49  ;;  %vm2792_vm6 = vweird.f32 %v4423_v60 }
 0x7b2   :  { %v2784_v11 = vsel %vm2781_vm5, %v2783_v37, %v2779_v38  ;;  %vm2793_vm8 = vmor %vm2791_vm7, %vm2792_vm6  ;;  %3092 = vmatpush.bf16.msra.mxu3 %v4202_v40  ;;  %v4217_v40 = vld [vmem:[%s4913_s19 + $0x28] sm:$0xff] }
 0x7b3   :  { %v2802_v39 = vmul.f32 %v2784_v11, %v2738_v7  ;;  %v2788_v45 = vsub.f32 1.0, %v2787_v25  ;;  %v5536_v32 = vpop.f32.mrf.mxu1  ;;  %v4201_v25 = vld [vmem:[%s5625_s26 + $0x28] sm:$0xff] }
 0x7b5   :  { %v2804_v34 = vpack.c.bf16 %v2802_v39, %v2801_v55  ;;  %v2789_v26 = vmul.f32 %v4423_v60, %v2788_v45 }
 0x7b6   :  { %3093 = vmatpush.bf16.msra.mxu3 %v4201_v25 }
 0x7b7   :  { %v2790_v63 = vadd.f32 %v4423_v60, %v2789_v26  ;;  %2865 = vmatmul.bf16.vlgmr.msra.gmra.mxu0 %v2804_v34 }
 0x7b9   :  { %v2794_v2 = vsel %vm2793_vm8, %v4423_v60, %v2790_v63  ;;  %v4200_v63 = vld [vmem:[%s5625_s26 + $0x20] sm:$0xff] }
 0x7ba   :  { %v2799_v46 = vsel %vm2796_vm9, %v2798_v0, %v2794_v2  ;;  %3094 = vmatpush.bf16.msra.mxu3 %v4200_v63  ;;  %v4199_v0 = vld [vmem:[%s5625_s26 + $0x18] sm:$0xff] }
 0x7bb   :  { %v2803_v3 = vmul.f32 %v2799_v46, %v2741_v54  ;;  %v3013_v6 = vpop.f32.mrf.mxu1 }
 0x7bd   :  { %v2805_v5 = vpack.c.bf16 %v2803_v3, %v2803_v3 }
 0x7be   :  { %3095 = vmatpush.bf16.msra.mxu3 %v4199_v0 }
 0x7c7   :  { %2870 = vmatmul.bf16.gmra.mxu0 %v2805_v5  ;;  %v4198_v5 = vld [vmem:[%s5625_s26 + $0x10] sm:$0xff] }
 0x7c8   :  { %3096 = vmatpush.bf16.msra.mxu3 %v4198_v5 }
 0x834   :  { %v2866_v28 = vpop.f32.mrf.mxu0 }
 0x835   :  { %v2867_v43 = vadd.f32 %v4324_v33, %v2866_v28 }
 0x837   :  { %v3948_v27 = vmul.f32 -1.442695, %v2867_v43 }
 0x839   :  { %4424 = vpow2.f32 %v3948_v27 }
 0x83c   :  { %v2868_v24 = vpop.f32.mrf.mxu0 }
 0x83d   :  { %v2869_v9 = vadd.f32 %v4324_v33, %v2868_v24 }
 0x83f   :  { %v4425_v8 = vpop.eup %4424  ;;  %v3949_v12 = vmul.f32 -1.442695, %v2869_v9 }
 0x840   :  { %v2884_v14 = vadd.f32 1.0, %v4425_v8  ;;  %v2941_v8 = vld [vmem:[%s5626_s1] sm:$0xf] }
 0x841   :  { %4426 = vpow2.f32 %v3949_v12  ;;  %v4196_v12 = vld [vmem:[%s5625_s26] sm:$0xff] }
 0x842   :  { %4428 = vrcp.f32 %v2884_v14  ;;  %v2898_v53 = vand.u32 2147483648, %v2884_v14  ;;  %v2896_v42 = vand.u32 2147483647, %v2884_v14  ;;  %vm2892_vm11 = vweird.f32 %v2884_v14 }
 0x844   :  { %v2871_v58 = vpop.f32.mrf.mxu0  ;;  %v2899_v17 = vor.u32 1.1754944e-38, %v2898_v53  ;;  %vm2897_vm13 = vcmp.eq.f32.partialorder %v2896_v42, 8.507059e+37  ;;  %v4205_v53 = vld [vmem:[%s5627_s2 + $0x8] sm:$0xff] }
 0x845   :  { %v5534_v7 = vadd.f32 %v4324_v33, %v2871_v58 }
 0x847   :  { %v4427_v18 = vpop.eup %4426  ;;  %v3950_v30 = vmul.f32 -1.442695, %v5534_v7 }
 0x848   :  { %v4429_v15 = vpop.eup %4428  ;;  %v2885_v57 = vadd.f32 1.0, %v4427_v18  ;;  %v4208_v18 = vld [vmem:[%s5627_s2 + $0x20] sm:$0xff] }
 0x849   :  { %v2888_v1 = vmul.f32 %v4429_v15, %v2884_v14  ;;  %4430 = vpow2.f32 %v3950_v30  ;;  %vm2893_vm10 = vweird.f32 %v4429_v15  ;;  %v4207_v30 = vld [vmem:[%s5627_s2 + $0x18] sm:$0xff] }
 0x84a   :  { %4432 = vrcp.f32 %v2885_v57  ;;  %vm2894_vm12 = vmor %vm2892_vm11, %vm2893_vm10  ;;  %v2913_v62 = vand.u32 2147483648, %v2885_v57  ;;  %v2911_v21 = vand.u32 2147483647, %v2885_v57  ;;  %vm2907_vm15 = vweird.f32 %v2885_v57 }
 0x84b   :  { %v2889_v54 = vsub.f32 1.0, %v2888_v1 }
 0x84c   :  { %v2873_v56 = vpop.f32.mrf.mxu0  ;;  %v2914_v35 = vor.u32 1.1754944e-38, %v2913_v62  ;;  %vm2912_vm4 = vcmp.eq.f32.partialorder %v2911_v21, 8.507059e+37  ;;  %v4219_v21 = vld [vmem:[%s4913_s19 + $0x38] sm:$0xff] }
 0x84d   :  { %v2890_v44 = vmul.f32 %v4429_v15, %v2889_v54  ;;  %3261 = vmatpush.bf16.msra.mxu1 %v4219_v21 }
 0x84f   :  { %v4431_v16 = vpop.eup %4430  ;;  %v2891_v20 = vadd.f32 %v4429_v15, %v2890_v44  ;;  %v4204_v44 = vld [vmem:[%s5627_s2] sm:$0xff] }
 0x850   :  { %v4433_v59 = vpop.eup %4432  ;;  %v2886_v31 = vadd.f32 1.0, %v4431_v16 }
 0x851   :  { %v2895_v49 = vsel %vm2894_vm12, %v4429_v15, %v2891_v20  ;;  %v2903_v13 = vmul.f32 %v4433_v59, %v2885_v57  ;;  %vm2908_vm14 = vweird.f32 %v4433_v59  ;;  %v4325_v15 = vld [vmem:[#allocation13] ss:$0 sm:$0xff]  ;;  %v4206_v57 = vld [vmem:[%s5627_s2 + $0x10] sm:$0xff] }
 0x852   :  { %v2900_v48 = vsel %vm2897_vm13, %v2899_v17, %v2895_v49  ;;  %4434 = vrcp.f32 %v2886_v31  ;;  %vm2909_vm2 = vmor %vm2907_vm15, %vm2908_vm14  ;;  %v2926_v34 = vand.u32 2147483647, %v2886_v31  ;;  %vm2922_vm5 = vweird.f32 %v2886_v31 }
 0x853   :  { %v2932_v4 = vmul.f32 %v2900_v48, %v2867_v43  ;;  %v2904_v23 = vsub.f32 1.0, %v2903_v13  ;;  %v4197_v43 = vld [vmem:[%s5625_s26 + $0x8] sm:$0xff] }
 0x854   :  { %vm2927_vm7 = vcmp.eq.f32.partialorder %v2926_v34, 8.507059e+37  ;;  %3097 = vmatpush.bf16.msra.mxu3 %v4197_v43  ;;  %v4327_v43 = vld [vmem:[#allocation16] ss:$0 sm:$0xff] }
 0x855   :  { %v2905_v50 = vmul.f32 %v4433_v59, %v2904_v23  ;;  %v2935_v36 = vadd.f32 %v2932_v4, %v5510_v61  ;;  %v2928_v61 = vand.u32 2147483648, %v2886_v31 }
 0x857   :  { %v2906_v47 = vadd.f32 %v4433_v59, %v2905_v50  ;;  %2938 = vst [vmem:[%s4923_s17] sm:$0xff] %v2935_v36  ;;  %v2929_v22 = vor.u32 1.1754944e-38, %v2928_v61 }
 0x858   :  { %v4435_v60 = vpop.eup %4434  ;;  %3098 = vmatpush.bf16.msra.mxu3 %v4196_v12 }
 0x859   :  { %v2910_v37 = vsel %vm2909_vm2, %v4433_v59, %v2906_v47  ;;  %v2918_v38 = vmul.f32 %v4435_v60, %v2886_v31  ;;  %vm2923_vm0 = vweird.f32 %v4435_v60  ;;  %v4216_v47 = vld [vmem:[%s4913_s19 + $0x20] sm:$0xff] }
 0x85a   :  { %v2915_v11 = vsel %vm2912_vm4, %v2914_v35, %v2910_v37  ;;  %vm2924_vm6 = vmor %vm2922_vm5, %vm2923_vm0  ;;  %v4326_v35 = vld [vmem:[#allocation15] ss:$0 sm:$0xff] }
 0x85b   :  { %v2933_v55 = vmul.f32 %v2915_v11, %v2869_v9  ;;  %v2919_v39 = vsub.f32 1.0, %v2918_v38  ;;  %v3015_v9 = vmul.f32 %v5530_v41, %v2935_v36  ;;  %v4210_v41 = vld [vmem:[%s5627_s2 + $0x30] sm:$0xff]  ;;  %v4213_v11 = vld [vmem:[%s4913_s19 + $0x8] sm:$0xff] }
 0x85c   :  { %v4218_v36 = vld [vmem:[%s4913_s19 + $0x30] sm:$0xff] }
 0x85d   :  { %v2920_v45 = vmul.f32 %v4435_v60, %v2919_v39  ;;  %v2936_v26 = vadd.f32 %v2933_v55, %v5513_v51  ;;  %3262 = vmatpush.bf16.msra.mxu1 %v4218_v36  ;;  %v4214_v37 = vld [vmem:[%s4913_s19 + $0x10] sm:$0xff]  ;;  %v4212_v39 = vld [vmem:[%s4913_s19] sm:$0xff] }
 0x85f   :  { %v2921_v52 = vadd.f32 %v4435_v60, %v2920_v45  ;;  %2939 = vst [vmem:[%s4923_s17 + $0x8] sm:$0xff] %v2936_v26  ;;  %v3016_v27 = vmul.f32 %v5532_v29, %v2936_v26 }
 0x861   :  { %v2925_v2 = vsel %vm2924_vm6, %v4435_v60, %v2921_v52  ;;  %3263 = vmatpush.bf16.msra.mxu1 %v4217_v40  ;;  %v4215_v60 = vld [vmem:[%s4913_s19 + $0x18] sm:$0xff] }
 0x862   :  { %v2930_v46 = vsel %vm2927_vm7, %v2929_v22, %v2925_v2 }
 0x863   :  { %v2934_v3 = vmul.f32 %v2930_v46, %v5534_v7  ;;  %v4211_v7 = vld [vmem:[%s5627_s2 + $0x38] sm:$0xff] }
 0x864   :  { %3176 = vmatpush.bf16.msrb.mxu0 %v4211_v7 }
 0x865   :  { %v2937_v51 = vadd.f32 %v2934_v3, %v5518_v10  ;;  %v3018_v10 = vpack.c.bf16 %v3016_v27, %v3015_v9  ;;  %3264 = vmatpush.bf16.msra.mxu1 %v4216_v47 }
 0x867   :  { %2940 = vst [vmem:[%s4923_s17 + $0x10] sm:$0xff] %v2937_v51  ;;  %v3017_v33 = vmul.f32 %v5536_v32, %v2937_v51  ;;  %v4209_v32 = vld [vmem:[%s5627_s2 + $0x28] sm:$0xff] }
 0x868   :  { %3177 = vmatpush.bf16.msrb.mxu0 %v4210_v41 }
 0x869   :  { %v3019_v28 = vpack.c.bf16 %v3017_v33, %v3017_v33  ;;  %3265 = vmatpush.bf16.msra.mxu1 %v4215_v60 }
 0x86b   :  { %v3024_v24 = vsel %vm678_vm1, %v3019_v28, 0 }
 0x86c   :  { %3032 = vmatpush.bf16.msra.mxu2 %v3024_v24  ;;  %3178 = vmatpush.bf16.msrb.mxu0 %v4209_v32 }
 0x86d   :  { %3266 = vmatpush.bf16.msra.mxu1 %v4214_v37 }
 0x870   :  { %3033 = vmatpush.bf16.msra.mxu2 %v3018_v10  ;;  %3179 = vmatpush.bf16.msrb.mxu0 %v4208_v18 }
 0x871   :  { %3267 = vmatpush.bf16.msra.mxu1 %v4213_v11 }
 0x873   :  { %3953 = vmatmul.msk.bf16.vlgmr.msra.gmra.mxu2 %vm668_vm3, %v2941_v8 }
 0x874   :  { %3180 = vmatpush.bf16.msrb.mxu0 %v4207_v30 }
 0x875   :  { %3268 = vmatpush.bf16.msra.mxu1 %v4212_v39 }
 0x878   :  { %3181 = vmatpush.bf16.msrb.mxu0 %v4206_v57 }
 0x87c   :  { %3182 = vmatpush.bf16.msrb.mxu0 %v4205_v53 }
 0x880   :  { %3183 = vmatpush.bf16.msrb.mxu0 %v4204_v44 }
 0x8f6   :  { %v3035_v14 = vpop.f32.mrf.mxu2 }
 0x8f7   :  { %v3039_v29 = vpack.c.bf16 %v3035_v14, %v3035_v14 }
 0x8f9   :  { %3099 = vmatmul.bf16.vlgmr.msra.gmra.mxu3 %v3039_v29 }
 0x8fe   :  { %v3037_v58 = vpop.f32.mrf.mxu2 }
 0x97c   :  { %v3100_v1 = vpop.f32.mrf.mxu3 }
 0x97d   :  { %v3101_v54 = vadd.f32 %v4325_v15, %v3100_v1 }
 0x97f   :  { %v3986_v56 = vmul.f32 -1.442695, %v3101_v54 }
 0x981   :  { %4436 = vpow2.f32 %v3986_v56 }
 0x984   :  { %v3102_v42 = vpop.f32.mrf.mxu3 }
 0x987   :  { %v4437_v6 = vpop.eup %4436 }
 0x988   :  { %v3107_v16 = vadd.f32 1.0, %v4437_v6 }
 0x98a   :  { %4438 = vrcp.f32 %v3107_v16  ;;  %v3119_v31 = vand.u32 2147483648, %v3107_v16  ;;  %v3117_v13 = vand.u32 2147483647, %v3107_v16  ;;  %vm3113_vm3 = vweird.f32 %v3107_v16 }
 0x98c   :  { %v3120_v4 = vor.u32 1.1754944e-38, %v3119_v31  ;;  %vm3118_vm9 = vcmp.eq.f32.partialorder %v3117_v13, 8.507059e+37 }
 0x990   :  { %v4439_v20 = vpop.eup %4438 }
 0x991   :  { %v3109_v59 = vmul.f32 %v4439_v20, %v3107_v16  ;;  %vm3114_vm1 = vweird.f32 %v4439_v20 }
 0x992   :  { %vm3115_vm8 = vmor %vm3113_vm3, %vm3114_vm1 }
 0x993   :  { %v3110_v17 = vsub.f32 1.0, %v3109_v59 }
 0x995   :  { %v3111_v49 = vmul.f32 %v4439_v20, %v3110_v17 }
 0x997   :  { %v3112_v48 = vadd.f32 %v4439_v20, %v3111_v49 }
 0x999   :  { %v3116_v23 = vsel %vm3115_vm8, %v4439_v20, %v3112_v48 }
 0x99a   :  { %v3121_v19 = vsel %vm3118_vm9, %v3120_v4, %v3116_v23 }
 0x99b   :  { %v3123_v62 = vmul.f32 %v3121_v19, %v3101_v54 }
 0x99d   :  { %v3124_v50 = vpack.c.bf16 %v3123_v62, %v3123_v62 }
 0x99f   :  { %3184 = vmatmul.bf16.vlgmr.msrb.gmra.mxu0 %v3124_v50 }
 0xa1c   :  { %v3185_v38 = vpop.f32.mrf.mxu0 }
 0xa1d   :  { %v3186_v25 = vadd.f32 %v4326_v35, %v3185_v38 }
 0xa1f   :  { %v4019_v55 = vmul.f32 -1.442695, %v3186_v25 }
 0xa21   :  { %4440 = vpow2.f32 %v4019_v55 }
 0xa24   :  { %v3187_v61 = vpop.f32.mrf.mxu0 }
 0xa27   :  { %v4441_v45 = vpop.eup %4440 }
 0xa28   :  { %v3192_v34 = vadd.f32 1.0, %v4441_v45 }
 0xa2a   :  { %4442 = vrcp.f32 %v3192_v34  ;;  %v3204_v22 = vand.u32 2147483648, %v3192_v34  ;;  %v3202_v0 = vand.u32 2147483647, %v3192_v34  ;;  %vm3198_vm11 = vweird.f32 %v3192_v34 }
 0xa2c   :  { %v3205_v3 = vor.u32 1.1754944e-38, %v3204_v22  ;;  %vm3203_vm13 = vcmp.eq.f32.partialorder %v3202_v0, 8.507059e+37 }
 0xa30   :  { %v4443_v26 = vpop.eup %4442 }
 0xa31   :  { %v3194_v63 = vmul.f32 %v4443_v26, %v3192_v34  ;;  %vm3199_vm10 = vweird.f32 %v4443_v26 }
 0xa32   :  { %vm3200_vm12 = vmor %vm3198_vm11, %vm3199_vm10 }
 0xa33   :  { %v3195_v52 = vsub.f32 1.0, %v3194_v63 }
 0xa35   :  { %v3196_v2 = vmul.f32 %v4443_v26, %v3195_v52 }
 0xa37   :  { %v3197_v46 = vadd.f32 %v4443_v26, %v3196_v2 }
 0xa39   :  { %v3201_v51 = vsel %vm3200_vm12, %v4443_v26, %v3197_v46 }
 0xa3a   :  { %v3206_v5 = vsel %vm3203_vm13, %v3205_v3, %v3201_v51 }
 0xa3b   :  { %v3208_v33 = vmul.f32 %v3206_v5, %v3186_v25 }
 0xa3d   :  { %v3209_v28 = vpack.c.bf16 %v3208_v33, %v3208_v33 }
 0xa3f   :  { %3269 = vmatmul.bf16.vlgmr.msra.gmra.mxu1 %v3209_v28 }
 0xabc   :  { %v3270_v27 = vpop.f32.mrf.mxu1 }
 0xabd   :  { %v3271_v24 = vadd.f32 %v4327_v43, %v3270_v27 }
 0xabf   :  { %v4052_v9 = vmul.f32 -1.442695, %v3271_v24 }
 0xac1   :  { %4444 = vpow2.f32 %v4052_v9 }
 0xac4   :  { %v3272_v10 = vpop.f32.mrf.mxu1 }
 0xac7   :  { %v4445_v8 = vpop.eup %4444 }
 0xac8   :  { %v3277_v12 = vadd.f32 1.0, %v4445_v8 }
 0xaca   :  { %4446 = vrcp.f32 %v3277_v12  ;;  %v3289_v7 = vand.u32 2147483648, %v3277_v12  ;;  %v3287_v32 = vand.u32 2147483647, %v3277_v12  ;;  %vm3283_vm15 = vweird.f32 %v3277_v12 }
 0xacc   :  { %v3290_v30 = vor.u32 1.1754944e-38, %v3289_v7  ;;  %vm3288_vm4 = vcmp.eq.f32.partialorder %v3287_v32, 8.507059e+37 }
 0xad0   :  { %v4447_v14 = vpop.eup %4446 }
 0xad1   :  { %v3279_v29 = vmul.f32 %v4447_v14, %v3277_v12  ;;  %vm3284_vm14 = vweird.f32 %v4447_v14 }
 0xad2   :  { %vm3285_vm2 = vmor %vm3283_vm15, %vm3284_vm14 }
 0xad3   :  { %v3280_v58 = vsub.f32 1.0, %v3279_v29 }
 0xad5   :  { %v3281_v41 = vmul.f32 %v4447_v14, %v3280_v58 }
 0xad7   :  { %v3282_v18 = vadd.f32 %v4447_v14, %v3281_v41 }
 0xad9   :  { %v3286_v15 = vsel %vm3285_vm2, %v4447_v14, %v3282_v18 }
 0xada   :  { %v3291_v57 = vsel %vm3288_vm4, %v3290_v30, %v3286_v15 }
 0xadb   :  { %v3293_v1 = vmul.f32 %v3291_v57, %v3271_v24 }
 0xadd   :  { %3294 = vst [vmem:[%s4928_s5] sm:$0xff] %v3293_v1 }
 0xade   :  { %3303 = vsyncpa [#allocation3], 1 }
 0xadf   :  { %3304 = vsyncpa [#allocation5], 1 }
 0xae0   :  { %3305 = vsyncpa [#allocation8], 1 }
 0xae1   :  { %3306 = vsyncpa [#allocation11], 1 }
 0xae2   :  { %3307 = vsyncpa [#allocation14], 1 }
 0xae3   :  { %3308 = vsyncpa [#allocation17], 1 }

// kernel: _lambda_.14
= control target key start
LH: loop header
LB: loop body
LE: loop exit
PB: predicated region body
PF: predicated region fallthrough
CT: control target
= control target key end

     0   :  { %s4344_s6 = smov 1   ;;  %s4345_s10 = smov 2   ;;  %s5190_s0 = inlined_call_operand.smem [shape: u32[34], index: -1, kind: input, shape index: {}] }
   0x1   :  { %s4396_s5 = sld [smem:[%s5190_s0]]   ;;  %s4346_s14 = smov 3  }
   0x2   :  { %s4401_s9 = sld [smem:[%s5190_s0 + %s4344_s6]]   ;;  %s4347_s18 = smov 4  }
   0x3   :  { %s4406_s13 = sld [smem:[%s5190_s0 + %s4345_s10]]   ;;  %s4348_s22 = smov 5  }
   0x4   :  { %s4411_s17 = sld [smem:[%s5190_s0 + %s4346_s14]]   ;;  %s4349_s26 = smov 6  }
   0x5   :  { %s4416_s21 = sld [smem:[%s5190_s0 + %s4347_s18]]   ;;  %s4350_s30 = smov 7  }
   0x6   :  { %s4421_s25 = sld [smem:[%s5190_s0 + %s4348_s22]]   ;;  %s4351_s4 = smov 8  }
   0x7   :  { %s4426_s29 = sld [smem:[%s5190_s0 + %s4349_s26]]   ;;  %s4352_s10 = smov 9  }
   0x8   :  { %s4431_s3 = sld [smem:[%s5190_s0 + %s4350_s30]]   ;;  %s4353_s15 = smov 10  }
   0x9   :  { %s4436_s8 = sld [smem:[%s5190_s0 + %s4351_s4]]   ;;  %s4354_s20 = smov 11  }
   0xa   :  { %s4441_s14 = sld [smem:[%s5190_s0 + %s4352_s10]]   ;;  %s4355_s26 = smov 12  }
   0xb   :  { %s4446_s19 = sld [smem:[%s5190_s0 + %s4353_s15]]   ;;  %s4356_s1 = smov 13  }
   0xc   :  { %5197 = sst [smem:[#allocation5_spill]] %s4421_s25  ;;  %s4357_s7 = smov 14  }
   0xd   :  { %s4451_s24 = sld [smem:[%s5190_s0 + %s4354_s20]]   ;;  %s4358_s15 = smov 15  }
   0xe   :  { %s4456_s30 = sld [smem:[%s5190_s0 + %s4355_s26]]   ;;  %s4359_s22 = smov 16  }
   0xf   :  { %s4461_s6 = sld [smem:[%s5190_s0 + %s4356_s1]]   ;;  %s4360_s28 = smov 17  }
  0x10   :  { %s4466_s12 = sld [smem:[%s5190_s0 + %s4357_s7]]   ;;  %s4361_s7 = smov 18  }
  0x11   :  { %s4471_s20 = sld [smem:[%s5190_s0 + %s4358_s15]]   ;;  %s4362_s15 = smov 19  }
  0x12   :  { %s4476_s27 = sld [smem:[%s5190_s0 + %s4359_s22]]   ;;  %s4363_s22 = smov 20  }
  0x13   :  { %s4481_s4 = sld [smem:[%s5190_s0 + %s4360_s28]]   ;;  %s4364_s28 = smov 21  }
  0x14   :  { %s4486_s25 = sld [smem:[%s5190_s0 + %s4361_s7]]   ;;  %s4365_s7 = smov 22  }
  0x16   :  { %5198 = sst [smem:[#allocation6_spill]] %s4466_s12 }
  0x17   :  { %s4491_s12 = sld [smem:[%s5190_s0 + %s4362_s15]]   ;;  %s4366_s15 = smov 23  }
  0x18   :  { %5199 = sst [smem:[#allocation7_spill]] %s4476_s27 }
  0x19   :  { %5200 = sst [smem:[#allocation8_spill]] %s4481_s4 }
  0x1a   :  { %5201 = sst [smem:[#allocation9_spill]] %s4486_s25 }
  0x1b   :  { %s4496_s27 = sld [smem:[%s5190_s0 + %s4363_s22]]   ;;  %s4367_s22 = smov 24  }
  0x1c   :  { %s4501_s4 = sld [smem:[%s5190_s0 + %s4364_s28]]   ;;  %s4368_s28 = smov 25  }
  0x1d   :  { %5202 = sst [smem:[#allocation10_spill]] %s4491_s12 }
  0x1e   :  { %s4506_s25 = sld [smem:[%s5190_s0 + %s4365_s7]]   ;;  %s4369_s7 = smov 26  }
  0x1f   :  { %s4511_s12 = sld [smem:[%s5190_s0 + %s4366_s15]]   ;;  %s4370_s15 = smov 27  }
  0x21   :  { %5203 = sst [smem:[#allocation11_spill]] %s4496_s27 }
  0x22   :  { %5204 = sst [smem:[#allocation12_spill]] %s4501_s4 }
  0x23   :  { %s4516_s27 = sld [smem:[%s5190_s0 + %s4367_s22]]   ;;  %s4371_s22 = smov 28  }
  0x24   :  { %5205 = sst [smem:[#allocation13_spill]] %s4506_s25 }
  0x25   :  { %5206 = sst [smem:[#allocation14_spill]] %s4511_s12 }
  0x26   :  { %s4521_s4 = sld [smem:[%s5190_s0 + %s4368_s28]]   ;;  %s4372_s28 = smov 29  }
  0x27   :  { %s4526_s25 = sld [smem:[%s5190_s0 + %s4369_s7]]   ;;  %s4373_s7 = smov 30  }
  0x28   :  { %s4531_s12 = sld [smem:[%s5190_s0 + %s4370_s15]]   ;;  %s4374_s15 = smov 31  }
  0x29   :  { %5207 = sst [smem:[#allocation15_spill]] %s4516_s27 }
  0x2a   :  { %s4536_s27 = sld [smem:[%s5190_s0 + %s4371_s22]]   ;;  %s4375_s22 = smov 32  }
  0x2c   :  { %5208 = sst [smem:[#allocation16_spill]] %s4521_s4 }
  0x2d   :  { %5209 = sst [smem:[#allocation17_spill]] %s4526_s25 }
  0x2e   :  { %5210 = sst [smem:[#allocation18_spill]] %s4531_s12 }
  0x2f   :  { %s4541_s4 = sld [smem:[%s5190_s0 + %s4372_s28]]   ;;  %s4376_s28 = smov 33  }
  0x30   :  { %5211 = sst [smem:[#allocation19_spill]] %s4536_s27 }
  0x31   :  { %s4546_s25 = sld [smem:[%s5190_s0 + %s4373_s7]]  }
  0x32   :  { %s4551_s12 = sld [smem:[%s5190_s0 + %s4374_s15]]  }
  0x33   :  { %s4556_s27 = sld [smem:[%s5190_s0 + %s4375_s22]]  }
  0x35   :  { %5212 = sst [smem:[#allocation20_spill]] %s4541_s4 }
  0x36   :  { %s4561_s4 = sld [smem:[%s5190_s0 + %s4376_s28]]  }
  0x37   :  { %v145_v0 = vld [vmem:[%s4426_s29] sm:$0x7]  ;;  %vm155_vm0 = vcmask 1042432   ;;  %v3227_v2 = vld [vmem:[%s4431_s3 + $0x10] sm:$0xf]  ;;  %vm219_vm1 = vcmask 1044480  }
  0x38   :  { %v157_v1 = vsel %vm155_vm0, %v145_v0, 0  ;;  %v3928_v3 = vld [vmem:[%s4431_s3 + $0x10] sm:$0x10]  ;;  %v142_v5 = vld [vmem:[%s4401_s9] sm:$0xff]  ;;  %v143_v6 = vld [vmem:[%s4401_s9 + $0x8] sm:$0xff]  ;;  %vm148_vm2 = vcmask 48128  }
  0x39   :  { %166 = vmatpush.bf16.msra.mxu3 %v157_v1  ;;  %v3228_v4 = vor.u32 %v3928_v3, %v3227_v2  ;;  %v3943_v7 = vld [vmem:[%s4436_s8 + $0x74] sm:$0xf]  ;;  %v4570_v8 = vpack.c.bf16 %v143_v6, %v142_v5  ;;  %v3292_v9 = vld [vmem:[%s4436_s8 + $0x78] sm:$0xf0]  ;;  %v3941_v10 = vld [vmem:[%s4436_s8 + $0x64] sm:$0xf] }
  0x3a   :  { %v3295_v12 = vor.u32 %v3943_v7, %v3292_v9  ;;  %v3284_v13 = vld [vmem:[%s4436_s8 + $0x68] sm:$0xf0]  ;;  %v3939_v16 = vld [vmem:[%s4436_s8 + $0x54] sm:$0xf]  ;;  %v3276_v17 = vld [vmem:[%s4436_s8 + $0x58] sm:$0xf0] }
  0x3b   :  { %v221_v11 = vsel %vm219_vm1, %v3228_v4, 0  ;;  %v3927_v14 = vld [vmem:[%s4431_s3 + $0x8] sm:$0xff]  ;;  %v3287_v15 = vor.u32 %v3941_v10, %v3284_v13  ;;  %v3926_v18 = vld [vmem:[%s4431_s3] sm:$0xff]  ;;  %v3279_v21 = vor.u32 %v3939_v16, %v3276_v17  ;;  %vm209_vm3 = vcmask 343040   ;;  %v144_v27 = vld [vmem:[%s4401_s9 + $0x10] sm:$0xff] }
  0x3c   :  { %228 = vmatpush.bf16.msra.mxu1 %v221_v11  ;;  %3215 = vmatmul.msk.bf16.vlgmr.msra.gmra.mxu3 %vm148_vm2, %v4570_v8  ;;  %v177_v19 = vld [vmem:[%s4406_s13] sm:$0xff]  ;;  %v178_v20 = vld [vmem:[%s4406_s13 + $0x8] sm:$0xff]  ;;  %v3935_v29 = vld [vmem:[%s4436_s8 + $0x34] sm:$0xf] }
  0x3d   :  { %369 = vmatpush.bf16.msrb.mxu3 %v3295_v12  ;;  %4093 = vmatpush.bf16.msra.mxu2 %v221_v11  ;;  %v181_v22 = vld [vmem:[%s4406_s13 + $0x20] sm:$0xff]  ;;  %v182_v23 = vld [vmem:[%s4406_s13 + $0x28] sm:$0xff]  ;;  %v189_v26 = vpack.c.bf16 %v178_v20, %v177_v19  ;;  %v3260_v31 = vld [vmem:[%s4436_s8 + $0x38] sm:$0xf0] }
  0x3e   :  { %v3937_v24 = vld [vmem:[%s4436_s8 + $0x44] sm:$0xf]  ;;  %v3268_v25 = vld [vmem:[%s4436_s8 + $0x48] sm:$0xf0]  ;;  %v191_v28 = vpack.c.bf16 %v182_v23, %v181_v22 }
  0x3f   :  { %v3271_v30 = vor.u32 %v3937_v24, %v3268_v25 }
  0x40   :  { %229 = vmatpush.bf16.msra.mxu1 %v3927_v14 }
  0x41   :  { %370 = vmatpush.bf16.msrb.mxu3 %v3287_v15  ;;  %4094 = vmatpush.bf16.msra.mxu2 %v3927_v14 }
  0x44   :  { %230 = vmatpush.bf16.msra.mxu1 %v3926_v18 }
  0x45   :  { %371 = vmatpush.bf16.msrb.mxu3 %v3279_v21  ;;  %4095 = vmatpush.bf16.msra.mxu2 %v3926_v18 }
  0x46   :  { %73 = vsyncpa [#allocation3], 0  ;;  %v4592_v32 = vpack.c.bf16 %v144_v27, %v144_v27  ;;  %v3263_v33 = vor.u32 %v3935_v29, %v3260_v31  ;;  %v3933_v34 = vld [vmem:[%s4436_s8 + $0x24] sm:$0xf]  ;;  %v3252_v35 = vld [vmem:[%s4436_s8 + $0x28] sm:$0xf0] }
  0x47   :  { %3229 = vmatmul.msk.bf16.vlgmr.msra.gmra.mxu1 %vm209_vm3, %v189_v26  ;;  %v3255_v36 = vor.u32 %v3933_v34, %v3252_v35  ;;  %v3931_v37 = vld [vmem:[%s4436_s8 + $0x14] sm:$0xf]  ;;  %v3244_v38 = vld [vmem:[%s4436_s8 + $0x18] sm:$0xf0]  ;;  %v3929_v42 = vld [vmem:[%s4436_s8 + $0x4] sm:$0xf] }
  0x48   :  { %3231 = vmatmul.msk.bf16.vlgmr.msra.gmra.mxu2 %vm209_vm3, %v191_v28  ;;  %v179_v39 = vld [vmem:[%s4406_s13 + $0x10] sm:$0xff]  ;;  %v180_v40 = vld [vmem:[%s4406_s13 + $0x18] sm:$0xff]  ;;  %v3247_v41 = vor.u32 %v3931_v37, %v3244_v38  ;;  %v3236_v43 = vld [vmem:[%s4436_s8 + $0x8] sm:$0xf0]  ;;  %v4377_v51 = vmov 2   ;;  %v4378_v52 = vmov 1  }
  0x49   :  { %372 = vmatpush.bf16.msrb.mxu3 %v3271_v30  ;;  %v190_v44 = vpack.c.bf16 %v180_v40, %v179_v39  ;;  %v3239_v45 = vor.u32 %v3929_v42, %v3236_v43  ;;  %v139_v46 = vld [vmem:[%s4396_s5] sm:$0xff]  ;;  %v140_v47 = vld [vmem:[%s4396_s5 + $0x8] sm:$0xff]  ;;  %v141_v49 = vld [vmem:[%s4396_s5 + $0x10] sm:$0xff]  ;;  %4141 = vset.pattern.permute.xlu1 %v4377_v51  ;;  %v4379_v53 = vmov 0   ;;  %v4380_v58 = vmov 3   ;;  %s5217_s0 = sld [smem:[#allocation6_spill]] }
  0x4a   :  { %v4607_v48 = vpack.c.bf16 %v140_v47, %v139_v46  ;;  %v4611_v50 = vpack.c.bf16 %v141_v49, %v141_v49  ;;  %4140 = vset.pattern.permute.xlu0 %v4378_v52  ;;  %4142 = vset.pattern.permute.xlu2 %v4379_v53  ;;  %v265_v62 = vld [vmem:[%s4441_s14] sm:$0x3]  ;;  %v4381_v20 = vmov 6   ;;  %v4382_v29 = vmov 5   ;;  %s5218_s9 = sld [smem:[#allocation8_spill]]  ;;  %s4385_s10 = smov [#allocation2]  }
  0x4b   :  { %v268_v63 = vperm.slane %v265_v62, 1  ;;  %v4383_v30 = vmov 7   ;;  %v4384_v62 = vmov 4   ;;  %vm543_vm1 = vcmask 1043456   ;;  %s5219_s13 = sld [smem:[#allocation7_spill]]  ;;  %s3164_s11 = sshll.u32 %s4385_s10, 4  ;;  %s3165_s11 = int_to_ptr.vmem [resolvable:$true] %s3164_s11 }
  0x4c   :  { %3216 = vmatmul.msk.bf16.gmra.mxu3 %vm148_vm2, %v4592_v32  ;;  %s5222_s29 = sld [smem:[#allocation9_spill]]  ;;  %s4334_s18 = scalar_lea.hbm %s4556_s27, 24 }
  0x4d   :  { %373 = vmatpush.bf16.msrb.mxu3 %v3263_v33  ;;  %s5224_s3 = sld [smem:[#allocation11_spill]] }
  0x4e   :  { %s5232_s7 = sld [smem:[#allocation20_spill]] }
  0x51   :  { %374 = vmatpush.bf16.msrb.mxu3 %v3255_v36 }
  0x55   :  { %375 = vmatpush.bf16.msrb.mxu3 %v3247_v41 }
  0x57   :  { %3230 = vmatmul.msk.bf16.gmra.mxu1 %vm209_vm3, %v190_v44  ;;  %vm533_vm3 = vcmask 195584  }
  0x59   :  { %376 = vmatpush.bf16.msrb.mxu3 %v3239_v45 }
  0x5c   :  { %377 = vmatmul.bf16.vlgmr.msrb.gmra.mxu3 %v4607_v48 }
  0x6c   :  { %382 = vmatmul.bf16.gmra.mxu3 %v4611_v50 }
  0xbf   :  { %v4617_v54 = vpop.f32.mrf.mxu3 }
  0xc4   :  { %v4619_v55 = vpop.f32.mrf.mxu1 }
  0xc5   :  { %573 = vperm.xlu2 %4142, %v4619_v55   ;;  %650 = vperm.xlu1 %4141, %v4619_v55  }
  0xc6   :  { %614 = vperm.xlu0 %4140, %v4619_v55  }
  0xc7   :  { %v4624_v56 = vpop.f32.mrf.mxu3 }
  0xcb   :  { %v4626_v57 = vpop.f32.mrf.mxu2 }
  0xcc   :  { %v4637_v60 = vpop.f32.mrf.mxu1 }
  0xcd   :  { %4145 = vset.pattern.permute.xlu2 %v4377_v51  ;;  %4147 = vset.pattern.permute.xlu1 %v4380_v58 }
  0xce   :  { %4143 = vset.pattern.permute.xlu0 %v4380_v58  ;;  %666 = vperm.xlu2 %4145, %v4626_v57  }
  0xcf   :  { %702 = vperm.xlu1 %4147, %v4626_v57   ;;  %686 = vperm.xlu0 %4143, %v4619_v55   ;;  %v4634_v59 = vpop.f32.mrf.mxu3 }
  0xd3   :  { %v4654_v4 = vpop.f32.mrf.mxu2 }
  0xd4   :  { %v4652_v3 = vpop.f32.mrf.mxu1 }
  0xd6   :  { %4146 = vset.pattern.permute.xlu2 %v4379_v53 }
  0xd7   :  { %4148 = vset.pattern.permute.xlu1 %v4377_v51  ;;  %4144 = vset.pattern.permute.xlu0 %v4378_v52  ;;  %v175_v61 = vpop.f32.mrf.mxu3 }
  0xd8   :  { %593 = vperm.xlu2 %4146, %v4626_v57   ;;  %630 = vperm.xlu0 %4144, %v4626_v57  }
  0xd9   :  { %654 = vperm.xlu1 %4148, %v4637_v60  }
  0xdc   :  { %v4667_v11 = vpop.f32.mrf.mxu1 }
  0xdf   :  { %v378_v0 = vpop.f32.mrf.mxu3 }
  0xe0   :  { %578 = vperm.xlu2 %4146, %v4637_v60   ;;  %618 = vperm.xlu0 %4144, %v4637_v60   ;;  %v4647_v1 = vadd.f32 %v378_v0, %v268_v63 }
  0xe1   :  { %4149 = vset.pattern.permute.xlu1 %v4380_v58 }
  0xe2   :  { %690 = vperm.xlu1 %4149, %v4637_v60   ;;  %v3299_v2 = vmul.f32 -1.442695, %v4647_v1 }
  0xe4   :  { %4194 = vpow2.f32 %v3299_v2 }
  0xe7   :  { %v380_v5 = vpop.f32.mrf.mxu3 }
  0xe8   :  { %4153 = vset.pattern.permute.xlu2 %v4380_v58  ;;  %4152 = vset.pattern.permute.xlu0 %v4379_v53  ;;  %v4658_v6 = vadd.f32 %v380_v5, %v268_v63 }
  0xe9   :  { %706 = vperm.xlu2 %4153, %v4654_v4   ;;  %598 = vperm.xlu0 %4152, %v4654_v4  }
  0xea   :  { %4150 = vset.pattern.permute.xlu1 %v4378_v52  ;;  %v3300_v7 = vmul.f32 -1.442695, %v4658_v6  ;;  %v4195_v9 = vpop.eup %4194 }
  0xeb   :  { %634 = vperm.xlu1 %4150, %v4654_v4   ;;  %v4665_v10 = vadd.f32 1.0, %v4195_v9 }
  0xec   :  { %4196 = vpow2.f32 %v3300_v7 }
  0xed   :  { %4198 = vrcp.f32 %v4665_v10  ;;  %v470_v42 = vand.u32 2147483648, %v4665_v10  ;;  %vm464_vm10 = vweird.f32 %v4665_v10  ;;  %v468_v45 = vand.u32 2147483647, %v4665_v10 }
  0xef   :  { %v383_v12 = vpop.f32.mrf.mxu3  ;;  %v471_v2 = vor.u32 1.1754944e-38, %v470_v42  ;;  %vm469_vm15 = vcmp.eq.f32.partialorder %v468_v45, 8.507059e+37  ;;  %v3971_v45 = vld [vmem:[%s4446_s19 + $0xb8] sm:$0xff] }
  0xf0   :  { %v4669_v13 = vadd.f32 %v383_v12, %v268_v63  ;;  %1569 = vmatpush.bf16.msra.mxu3 %v3971_v45 }
  0xf1   :  { %4154 = vset.pattern.permute.xlu2 %v4378_v52  ;;  %4161 = vset.pattern.permute.xlu0 %v4377_v51 }
  0xf2   :  { %v4197_v14 = vpop.eup %4196  ;;  %v3301_v15 = vmul.f32 -1.442695, %v4669_v13  ;;  %622 = vperm.xlu2 %4154, %v4652_v3   ;;  %662 = vperm.xlu0 %4161, %v4667_v11  }
  0xf3   :  { %v4677_v16 = vadd.f32 1.0, %v4197_v14  ;;  %4151 = vset.pattern.permute.xlu1 %v4377_v51  ;;  %v4682_v18 = vpop.eup %4198 }
  0xf4   :  { %4200 = vpow2.f32 %v3301_v15  ;;  %670 = vperm.xlu1 %4151, %v4654_v4   ;;  %v460_v24 = vmul.f32 %v4682_v18, %v4665_v10  ;;  %vm465_vm6 = vweird.f32 %v4682_v18 }
  0xf5   :  { %4202 = vrcp.f32 %v4677_v16  ;;  %v485_v37 = vand.u32 2147483648, %v4677_v16  ;;  %vm479_vm7 = vweird.f32 %v4677_v16  ;;  %v483_v41 = vand.u32 2147483647, %v4677_v16  ;;  %vm4714_vm12 = vmor %vm464_vm10, %vm465_vm6 }
  0xf6   :  { %v461_v26 = vsub.f32 1.0, %v460_v24  ;;  %v3258_v24 = vld [vmem:[%s4436_s8 + $0x30] sm:$0xf] }
  0xf7   :  { %v385_v17 = vpop.f32.mrf.mxu3  ;;  %vm484_vm14 = vcmp.eq.f32.partialorder %v483_v41, 8.507059e+37 }
  0xf8   :  { %v462_v33 = vmul.f32 %v4682_v18, %v461_v26  ;;  %v3942_v17 = vld [vmem:[%s4436_s8 + $0x64] sm:$0xf0] }
  0xfa   :  { %v4201_v19 = vpop.eup %4200  ;;  %4155 = vset.pattern.permute.xlu2 %v4377_v51  ;;  %4162 = vset.pattern.permute.xlu0 %v4381_v20  ;;  %v463_v40 = vadd.f32 %v4682_v18, %v462_v33  ;;  %v486_v51 = vor.u32 1.1754944e-38, %v485_v37  ;;  %v3934_v33 = vld [vmem:[%s4436_s8 + $0x24] sm:$0xf0]  ;;  %v3234_v37 = vld [vmem:[%s4436_s8] sm:$0xf] }
  0xfb   :  { %v4203_v21 = vpop.eup %4202  ;;  %v458_v22 = vadd.f32 1.0, %v4201_v19  ;;  %658 = vperm.xlu2 %4155, %v4652_v3   ;;  %794 = vperm.xlu0 %4162, %v4619_v55   ;;  %v3274_v19 = vld [vmem:[%s4436_s8 + $0x50] sm:$0xf] }
  0xfc   :  { %v475_v23 = vmul.f32 %v4203_v21, %v4677_v16  ;;  %4156 = vset.pattern.permute.xlu1 %v4379_v53  ;;  %vm480_vm4 = vweird.f32 %v4203_v21  ;;  %v467_v63 = vsel %vm4714_vm12, %v4682_v18, %v463_v40  ;;  %v3282_v16 = vld [vmem:[%s4436_s8 + $0x60] sm:$0xf] }
  0xfd   :  { %4204 = vrcp.f32 %v458_v22  ;;  %583 = vperm.xlu1 %4156, %v4652_v3   ;;  %v500_v36 = vand.u32 2147483648, %v458_v22  ;;  %v498_v39 = vand.u32 2147483647, %v458_v22  ;;  %vm4706_vm8 = vmor %vm479_vm7, %vm480_vm4  ;;  %vm494_vm9 = vweird.f32 %v458_v22 }
  0xfe   :  { %v476_v25 = vsub.f32 1.0, %v475_v23  ;;  %v3283_v18 = vor.u32 %v3942_v17, %v3282_v16  ;;  %v3949_v16 = vld [vmem:[%s4446_s19 + $0x8] sm:$0xff]  ;;  %vm1727_vm4 = vcmask 392192  }
  0xff   :  { %v501_v47 = vor.u32 1.1754944e-38, %v500_v36  ;;  %vm499_vm13 = vcmp.eq.f32.partialorder %v498_v39, 8.507059e+37  ;;  %v3932_v36 = vld [vmem:[%s4436_s8 + $0x14] sm:$0xf0]  ;;  %v3930_v39 = vld [vmem:[%s4436_s8 + $0x4] sm:$0xf0] }
 0x100   :  { %v477_v28 = vmul.f32 %v4203_v21, %v476_v25  ;;  %v3936_v25 = vld [vmem:[%s4436_s8 + $0x34] sm:$0xf0]  ;;  %v3235_v40 = vor.u32 %v3930_v39, %v3234_v37  ;;  %v3957_v17 = vld [vmem:[%s4446_s19 + $0x48] sm:$0xff] }
 0x101   :  { %v3259_v26 = vor.u32 %v3936_v25, %v3258_v24  ;;  %v4003_v37 = vld [vmem:[%s4446_s19 + $0x1b8] sm:$0xff] }
 0x102   :  { %v478_v35 = vadd.f32 %v4203_v21, %v477_v28  ;;  %v3947_v28 = vld [vmem:[%s4411_s17 + $0x10] sm:$0xff] }
 0x103   :  { %v4205_v27 = vpop.eup %4204  ;;  %4160 = vset.pattern.permute.xlu2 %v4382_v29  ;;  %4169 = vset.pattern.permute.xlu0 %v4383_v30 }
 0x104   :  { %v490_v31 = vmul.f32 %v4205_v27, %v458_v22  ;;  %762 = vperm.xlu2 %4160, %v4637_v60   ;;  %834 = vperm.xlu0 %4169, %v4637_v60   ;;  %vm495_vm5 = vweird.f32 %v4205_v27  ;;  %v482_v46 = vsel %vm4706_vm8, %v4203_v21, %v478_v35  ;;  %v3940_v21 = vld [vmem:[%s4436_s8 + $0x54] sm:$0xf0]  ;;  %v3242_v35 = vld [vmem:[%s4436_s8 + $0x10] sm:$0xf] }
 0x105   :  { %4157 = vset.pattern.permute.xlu1 %v4380_v58  ;;  %vm496_vm11 = vmor %vm494_vm9, %vm495_vm5  ;;  %v487_v5 = vsel %vm484_vm14, %v486_v51, %v482_v46  ;;  %v3275_v22 = vor.u32 %v3940_v21, %v3274_v19  ;;  %v3979_v46 = vld [vmem:[%s4446_s19 + $0xf8] sm:$0xff]  ;;  %v3978_v51 = vld [vmem:[%s4446_s19 + $0xf0] sm:$0xff] }
 0x106   :  { %v491_v34 = vsub.f32 1.0, %v490_v31  ;;  %694 = vperm.xlu1 %4157, %v4652_v3   ;;  %v505_v10 = vmul.f32 %v487_v5, %v4658_v6  ;;  %v3250_v31 = vld [vmem:[%s4436_s8 + $0x20] sm:$0xf]  ;;  %v3973_v19 = vld [vmem:[%s4446_s19 + $0xc8] sm:$0xff] }
 0x107   :  { %v3952_v5 = vld [vmem:[%s4446_s19 + $0x20] sm:$0xff] }
 0x108   :  { %v492_v38 = vmul.f32 %v4205_v27, %v491_v34  ;;  %v3251_v34 = vor.u32 %v3934_v33, %v3250_v31  ;;  %v3948_v21 = vld [vmem:[%s4446_s19] sm:$0xff] }
 0x10a   :  { %v493_v44 = vadd.f32 %v4205_v27, %v492_v38  ;;  %v3243_v38 = vor.u32 %v3932_v36, %v3242_v35  ;;  %v3987_v35 = vld [vmem:[%s4446_s19 + $0x138] sm:$0xff] }
 0x10b   :  { %v3995_v36 = vld [vmem:[%s4446_s19 + $0x178] sm:$0xff] }
 0x10c   :  { %v497_v61 = vsel %vm496_vm11, %v4205_v27, %v493_v44  ;;  %4164 = vset.pattern.permute.xlu2 %v4379_v53  ;;  %4172 = vset.pattern.permute.xlu0 %v4384_v62  ;;  %v472_v53 = vsel %vm469_vm15, %v471_v2, %v467_v63  ;;  %v3969_v63 = vld [vmem:[%s4446_s19 + $0xa8] sm:$0xff] }
 0x10d   :  { %v502_v0 = vsel %vm499_vm13, %v501_v47, %v497_v61  ;;  %588 = vperm.xlu2 %4164, %v4667_v11   ;;  %730 = vperm.xlu0 %4172, %v4652_v3   ;;  %v504_v14 = vmul.f32 %v472_v53, %v4647_v1  ;;  %v3962_v47 = vld [vmem:[%s4446_s19 + $0x70] sm:$0xff]  ;;  %v3953_v61 = vld [vmem:[%s4446_s19 + $0x28] sm:$0xff]  ;;  %v3968_v53 = vld [vmem:[%s4446_s19 + $0xa0] sm:$0xff] }
 0x10e   :  { %v506_v7 = vmul.f32 %v502_v0, %v4669_v13  ;;  %4158 = vset.pattern.permute.xlu1 %v4378_v52  ;;  %v508_v52 = vmul.f32 %v505_v10, %v4624_v56  ;;  %v3944_v56 = vld [vmem:[%s4436_s8 + $0x74] sm:$0xf0]  ;;  %v3946_v13 = vld [vmem:[%s4411_s17 + $0x8] sm:$0xff] }
 0x10f   :  { %626 = vperm.xlu1 %4158, %v4667_v11   ;;  %v3977_v0 = vld [vmem:[%s4446_s19 + $0xe8] sm:$0xff] }
 0x110   :  { %v509_v9 = vmul.f32 %v506_v7, %v4634_v59  ;;  %v507_v59 = vmul.f32 %v504_v14, %v4617_v54  ;;  %v3290_v54 = vld [vmem:[%s4436_s8 + $0x70] sm:$0xf]  ;;  %v3960_v7 = vld [vmem:[%s4446_s19 + $0x60] sm:$0xff]  ;;  %v3959_v14 = vld [vmem:[%s4446_s19 + $0x58] sm:$0xff] }
 0x111   :  { %v3291_v6 = vor.u32 %v3944_v56, %v3290_v54  ;;  %v3966_v54 = vld [vmem:[%s4446_s19 + $0x90] sm:$0xff] }
 0x112   :  { %v517_v12 = vpack.c.bf16 %v509_v9, %v509_v9  ;;  %v516_v1 = vpack.c.bf16 %v508_v52, %v507_v59  ;;  %v3976_v9 = vld [vmem:[%s4446_s19 + $0xe0] sm:$0xff]  ;;  %v3975_v52 = vld [vmem:[%s4446_s19 + $0xd8] sm:$0xff]  ;;  %v3950_v59 = vld [vmem:[%s4446_s19 + $0x10] sm:$0xff] }
 0x113   :  { %351 = vmatpush.bf16.msrb.mxu2 %v3291_v6  ;;  %v3974_v56 = vld [vmem:[%s4446_s19 + $0xd0] sm:$0xff] }
 0x114   :  { %v545_v15 = vsel %vm543_vm1, %v517_v12, 0  ;;  %v3951_v12 = vld [vmem:[%s4446_s19 + $0x18] sm:$0xff] }
 0x115   :  { %4165 = vset.pattern.permute.xlu2 %v4380_v58  ;;  %4176 = vset.pattern.permute.xlu0 %v4382_v29  ;;  %v3945_v58 = vld [vmem:[%s4411_s17] sm:$0xff]  ;;  %s5220_s17 = sld [smem:[#allocation16_spill]] }
 0x116   :  { %698 = vperm.xlu2 %4165, %v4667_v11   ;;  %778 = vperm.xlu0 %4176, %v4654_v4  }
 0x117   :  { %4159 = vset.pattern.permute.xlu1 %v4382_v29  ;;  %553 = vmatpush.bf16.msra.mxu0 %v545_v15  ;;  %v3967_v15 = vld [vmem:[%s4446_s19 + $0x98] sm:$0xff] }
 0x118   :  { %758 = vperm.xlu1 %4159, %v4619_v55   ;;  %352 = vmatpush.bf16.msrb.mxu2 %v3283_v18  ;;  %v3965_v18 = vld [vmem:[%s4446_s19 + $0x88] sm:$0xff] }
 0x11b   :  { %554 = vmatpush.bf16.msra.mxu0 %v516_v1  ;;  %v3958_v1 = vld [vmem:[%s4446_s19 + $0x50] sm:$0xff] }
 0x11c   :  { %353 = vmatpush.bf16.msrb.mxu2 %v3275_v22  ;;  %v3956_v22 = vld [vmem:[%s4446_s19 + $0x40] sm:$0xff] }
 0x11e   :  { %4166 = vset.pattern.permute.xlu2 %v4384_v62  ;;  %4182 = vset.pattern.permute.xlu0 %v4383_v30 }
 0x11f   :  { %3314 = vmatmul.msk.bf16.vlgmr.msra.gmra.mxu0 %vm533_vm3, %v3945_v58  ;;  %722 = vperm.xlu2 %4166, %v4619_v55  }
 0x120   :  { %846 = vperm.xlu0 %4182, %v4626_v57   ;;  %4163 = vset.pattern.permute.xlu1 %v4381_v20 }
 0x121   :  { %798 = vperm.xlu1 %4163, %v4637_v60   ;;  %1593 = vmatpush.bf16.msrb.mxu0 %v3979_v46 }
 0x125   :  { %1594 = vmatpush.bf16.msrb.mxu0 %v3978_v51 }
 0x127   :  { %4168 = vset.pattern.permute.xlu2 %v4383_v30 }
 0x128   :  { %830 = vperm.xlu2 %4168, %v4619_v55   ;;  %v3266_v55 = vld [vmem:[%s4436_s8 + $0x40] sm:$0xf] }
 0x129   :  { %4167 = vset.pattern.permute.xlu1 %v4384_v62  ;;  %1595 = vmatpush.bf16.msrb.mxu0 %v3977_v0  ;;  %v3985_v0 = vld [vmem:[%s4446_s19 + $0x128] sm:$0xff] }
 0x12a   :  { %726 = vperm.xlu1 %4167, %v4637_v60   ;;  %v3938_v60 = vld [vmem:[%s4436_s8 + $0x44] sm:$0xf0]  ;;  %s5225_s8 = sld [smem:[#allocation14_spill]] }
 0x12b   :  { %v3267_v23 = vor.u32 %v3938_v60, %v3266_v55  ;;  %v3964_v55 = vld [vmem:[%s4446_s19 + $0x80] sm:$0xff] }
 0x12c   :  { %v3972_v60 = vld [vmem:[%s4446_s19 + $0xc0] sm:$0xff] }
 0x12d   :  { %354 = vmatpush.bf16.msrb.mxu2 %v3267_v23  ;;  %1596 = vmatpush.bf16.msrb.mxu0 %v3976_v9 }
 0x12f   :  { %3315 = vmatmul.msk.bf16.gmra.mxu0 %vm533_vm3, %v3946_v13 }
 0x130   :  { %838 = vperm.xlu2 %4168, %v4652_v3  }
 0x131   :  { %355 = vmatpush.bf16.msrb.mxu2 %v3259_v26  ;;  %1597 = vmatpush.bf16.msrb.mxu0 %v3975_v52 }
 0x132   :  { %4170 = vset.pattern.permute.xlu1 %v4382_v29 }
 0x133   :  { %766 = vperm.xlu1 %4170, %v4652_v3  }
 0x135   :  { %356 = vmatpush.bf16.msrb.mxu2 %v3251_v34  ;;  %1598 = vmatpush.bf16.msrb.mxu0 %v3974_v56 }
 0x137   :  { %v4770_v27 = vpop.permute.xlu1 %650 }
 0x138   :  { %4173 = vset.pattern.permute.xlu2 %v4382_v29  ;;  %v615_v6 = vpop.permute.xlu0 %614 }
 0x139   :  { %770 = vperm.xlu2 %4173, %v4667_v11   ;;  %357 = vmatpush.bf16.msrb.mxu2 %v3243_v38  ;;  %v4011_v38 = vld [vmem:[%s4446_s19 + $0x1f8] sm:$0xff] }
 0x13a   :  { %1599 = vmatpush.bf16.msrb.mxu0 %v3973_v19 }
 0x13b   :  { %4171 = vset.pattern.permute.xlu1 %v4381_v20 }
 0x13c   :  { %802 = vperm.xlu1 %4171, %v4652_v3   ;;  %v4786_v3 = vpop.permute.xlu2 %573 }
 0x13d   :  { %358 = vmatpush.bf16.msrb.mxu2 %v3235_v40 }
 0x13e   :  { %1600 = vmatpush.bf16.msrb.mxu0 %v3972_v60  ;;  %v4000_v60 = vld [vmem:[%s4446_s19 + $0x1a0] sm:$0xff] }
 0x13f   :  { %3316 = vmatmul.msk.bf16.gmra.mxu0 %vm533_vm3, %v3947_v28 }
 0x140   :  { %359 = vmatmul.bf16.vlgmr.msrb.gmra.mxu2 %v4607_v48 }
 0x141   :  { %4174 = vset.pattern.permute.xlu2 %v4381_v20  ;;  %v4784_v41 = vpop.permute.xlu1 %702  ;;  %v687_v24 = vpop.permute.xlu0 %686 }
 0x142   :  { %806 = vperm.xlu2 %4174, %v4667_v11   ;;  %1689 = vmatpush.bf16.msra.mxu0 %v4011_v38 }
 0x144   :  { %810 = vperm.xlu1 %4171, %v4626_v57   ;;  %v4795_v43 = vpop.permute.xlu2 %666 }
 0x14a   :  { %4175 = vset.pattern.permute.xlu2 %v4382_v29  ;;  %v4866_v28 = vpop.permute.xlu0 %630 }
 0x14b   :  { %774 = vperm.xlu2 %4175, %v4626_v57   ;;  %v4793_v42 = vpop.permute.xlu1 %654 }
 0x14c   :  { %4178 = vset.pattern.permute.xlu1 %v4384_v62  ;;  %v4804_v29 = vpop.permute.xlu2 %593 }
 0x14d   :  { %734 = vperm.xlu1 %4178, %v4667_v11  }
 0x150   :  { %364 = vmatmul.bf16.gmra.mxu2 %v4611_v50  ;;  %v3955_v50 = vld [vmem:[%s4446_s19 + $0x38] sm:$0xff] }
 0x151   :  { %1521 = vmatpush.bf16.msrb.mxu1 %v3955_v50 }
 0x152   :  { %v619_v39 = vpop.permute.xlu0 %618 }
 0x153   :  { %4177 = vset.pattern.permute.xlu2 %v4381_v20 }
 0x154   :  { %814 = vperm.xlu2 %4177, %v4654_v4   ;;  %v4801_v48 = vpop.permute.xlu1 %690  ;;  %v4812_v44 = vpop.permute.xlu2 %578 }
 0x155   :  { %4179 = vset.pattern.permute.xlu1 %v4383_v30 }
 0x156   :  { %842 = vperm.xlu1 %4179, %v4667_v11   ;;  %v3963_v11 = vld [vmem:[%s4446_s19 + $0x78] sm:$0xff] }
 0x157   :  { %1545 = vmatpush.bf16.msra.mxu2 %v3963_v11 }
 0x15b   :  { %1546 = vmatpush.bf16.msra.mxu2 %v3962_v47  ;;  %v3994_v47 = vld [vmem:[%s4446_s19 + $0x170] sm:$0xff] }
 0x15c   :  { %4181 = vset.pattern.permute.xlu2 %v4384_v62 }
 0x15d   :  { %742 = vperm.xlu2 %4181, %v4654_v4   ;;  %v4810_v20 = vpop.permute.xlu1 %634 }
 0x15e   :  { %4180 = vset.pattern.permute.xlu1 %v4384_v62  ;;  %v3961_v62 = vld [vmem:[%s4446_s19 + $0x68] sm:$0xff] }
 0x15f   :  { %738 = vperm.xlu1 %4180, %v4626_v57   ;;  %v3954_v57 = vld [vmem:[%s4446_s19 + $0x30] sm:$0xff]  ;;  %1547 = vmatpush.bf16.msra.mxu2 %v3961_v62 }
 0x160   :  { %1522 = vmatpush.bf16.msrb.mxu1 %v3954_v57  ;;  %v3986_v57 = vld [vmem:[%s4446_s19 + $0x130] sm:$0xff] }
 0x163   :  { %1548 = vmatpush.bf16.msra.mxu2 %v3960_v7  ;;  %v4001_v7 = vld [vmem:[%s4446_s19 + $0x1a8] sm:$0xff] }
 0x164   :  { %1523 = vmatpush.bf16.msrb.mxu1 %v3953_v61 }
 0x166   :  { %v4822_v49 = vpop.permute.xlu1 %670 }
 0x167   :  { %4183 = vset.pattern.permute.xlu1 %v4383_v30  ;;  %v3970_v30 = vld [vmem:[%s4446_s19 + $0xb0] sm:$0xff]  ;;  %1549 = vmatpush.bf16.msra.mxu2 %v3959_v14 }
 0x168   :  { %850 = vperm.xlu1 %4183, %v4654_v4   ;;  %v4824_v4 = vpop.permute.xlu2 %706  ;;  %1570 = vmatpush.bf16.msra.mxu3 %v3970_v30  ;;  %v4002_v30 = vld [vmem:[%s4446_s19 + $0x1b0] sm:$0xff] }
 0x169   :  { %1524 = vmatpush.bf16.msrb.mxu1 %v3952_v5  ;;  %v3993_v5 = vld [vmem:[%s4446_s19 + $0x168] sm:$0xff] }
 0x16b   :  { %1550 = vmatpush.bf16.msra.mxu2 %v3958_v1 }
 0x16c   :  { %1571 = vmatpush.bf16.msra.mxu3 %v3969_v63 }
 0x16d   :  { %1525 = vmatpush.bf16.msrb.mxu1 %v3951_v12 }
 0x16f   :  { %v4832_v2 = vpop.permute.xlu1 %583  ;;  %1551 = vmatpush.bf16.msra.mxu2 %v3957_v17 }
 0x170   :  { %v4838_v10 = vpop.permute.xlu2 %622  ;;  %1572 = vmatpush.bf16.msra.mxu3 %v3968_v53 }
 0x171   :  { %1526 = vmatpush.bf16.msrb.mxu1 %v3950_v59 }
 0x173   :  { %1552 = vmatpush.bf16.msra.mxu2 %v3956_v22  ;;  %v3984_v22 = vld [vmem:[%s4446_s19 + $0x120] sm:$0xff] }
 0x174   :  { %1573 = vmatpush.bf16.msra.mxu3 %v3967_v15  ;;  %v4009_v15 = vld [vmem:[%s4446_s19 + $0x1e8] sm:$0xff] }
 0x175   :  { %1527 = vmatpush.bf16.msrb.mxu1 %v3949_v16 }
 0x177   :  { %1641 = vmatpush.bf16.msrb.mxu2 %v3995_v36 }
 0x178   :  { %v4846_v58 = vpop.permute.xlu1 %694  ;;  %1574 = vmatpush.bf16.msra.mxu3 %v3966_v54  ;;  %v4850_v13 = vpop.permute.xlu2 %658 }
 0x179   :  { %1528 = vmatpush.bf16.msrb.mxu1 %v3948_v21 }
 0x17b   :  { %1642 = vmatpush.bf16.msrb.mxu2 %v3994_v47  ;;  %v4007_v47 = vld [vmem:[%s4446_s19 + $0x1d8] sm:$0xff] }
 0x17c   :  { %1575 = vmatpush.bf16.msra.mxu3 %v3965_v18 }
 0x17d   :  { %1617 = vmatpush.bf16.msra.mxu1 %v3987_v35 }
 0x17f   :  { %1643 = vmatpush.bf16.msrb.mxu2 %v3993_v5 }
 0x180   :  { %1576 = vmatpush.bf16.msra.mxu3 %v3964_v55  ;;  %v4862_v25 = vpop.permute.xlu2 %762  ;;  %v3992_v55 = vld [vmem:[%s4446_s19 + $0x160] sm:$0xff] }
 0x181   :  { %v4860_v23 = vpop.permute.xlu1 %626  ;;  %1618 = vmatpush.bf16.msra.mxu1 %v3986_v57 }
 0x183   :  { %1644 = vmatpush.bf16.msrb.mxu2 %v3992_v55 }
 0x184   :  { %1665 = vmatpush.bf16.msrb.mxu3 %v4003_v37 }
 0x185   :  { %1619 = vmatpush.bf16.msra.mxu1 %v3985_v0 }
 0x188   :  { %v4868_v31 = vpop.permute.xlu2 %588  ;;  %1666 = vmatpush.bf16.msrb.mxu3 %v4002_v30 }
 0x189   :  { %1620 = vmatpush.bf16.msra.mxu1 %v3984_v22 }
 0x18a   :  { %v4864_v26 = vpop.permute.xlu1 %758 }
 0x18c   :  { %1667 = vmatpush.bf16.msrb.mxu3 %v4001_v7 }
 0x190   :  { %v4880_v50 = vpop.permute.xlu2 %698  ;;  %1668 = vmatpush.bf16.msrb.mxu3 %v4000_v60 }
 0x193   :  { %v4872_v34 = vpop.permute.xlu1 %798 }
 0x19c   :  { %v4870_v33 = vpop.f32.mrf.mxu0  ;;  %v4903_v52 = vpop.permute.xlu1 %726 }
 0x19d   :  { %v601_v40 = vmul.f32 %v4786_v3, %v4870_v33  ;;  %v637_v11 = vmul.f32 %v615_v6, %v4870_v33  ;;  %v673_v45 = vmul.f32 %v4770_v27, %v4870_v33  ;;  %v709_v46 = vmul.f32 %v687_v24, %v4870_v33  ;;  %v4010_v3 = vld [vmem:[%s4446_s19 + $0x1f0] sm:$0xff]  ;;  %v4910_v24 = vpop.permute.xlu2 %722 }
 0x19e   :  { %1690 = vmatpush.bf16.msra.mxu0 %v4010_v3 }
 0x19f   :  { %v607_v51 = vpack.c.bf16 %v601_v40, %v601_v40  ;;  %v643_v62 = vpack.c.bf16 %v637_v11, %v637_v11  ;;  %v679_v63 = vpack.c.bf16 %v673_v45, %v673_v45  ;;  %v715_v27 = vpack.c.bf16 %v709_v46, %v709_v46  ;;  %v3983_v11 = vld [vmem:[%s4446_s19 + $0x118] sm:$0xff] }
 0x1a0   :  { %v3991_v45 = vld [vmem:[%s4446_s19 + $0x158] sm:$0xff]  ;;  %1621 = vmatpush.bf16.msra.mxu1 %v3983_v11 }
 0x1a1   :  { %v889_v6 = vunpack.c.l.b16 %v643_v62  ;;  %v907_v16 = vunpack.c.l.b16 %v679_v63  ;;  %v925_v17 = vunpack.c.l.b16 %v715_v27  ;;  %v3999_v46 = vld [vmem:[%s4446_s19 + $0x198] sm:$0xff]  ;;  %1645 = vmatpush.bf16.msrb.mxu2 %v3991_v45  ;;  %v3982_v63 = vld [vmem:[%s4446_s19 + $0x110] sm:$0xff]  ;;  %v3996_v45 = vld [vmem:[%s4446_s19 + $0x180] sm:$0xff] }
 0x1a2   :  { %1691 = vmatpush.bf16.msra.mxu0 %v4009_v15  ;;  %1669 = vmatpush.bf16.msrb.mxu3 %v3999_v46  ;;  %v3990_v27 = vld [vmem:[%s4446_s19 + $0x150] sm:$0xff]  ;;  %v4004_v46 = vld [vmem:[%s4446_s19 + $0x1c0] sm:$0xff] }
 0x1a4   :  { %v4890_v61 = vpop.f32.mrf.mxu0  ;;  %1622 = vmatpush.bf16.msra.mxu1 %v3982_v63 }
 0x1a5   :  { %v602_v53 = vmul.f32 %v4812_v44, %v4890_v61  ;;  %v638_v9 = vmul.f32 %v619_v39, %v4890_v61  ;;  %v674_v12 = vmul.f32 %v4793_v42, %v4890_v61  ;;  %v710_v14 = vmul.f32 %v4801_v48, %v4890_v61  ;;  %v4905_v42 = vpop.permute.xlu0 %598  ;;  %v4008_v39 = vld [vmem:[%s4446_s19 + $0x1e0] sm:$0xff]  ;;  %v4927_v62 = vpop.permute.xlu1 %766  ;;  %1646 = vmatpush.bf16.msrb.mxu2 %v3990_v27 }
 0x1a6   :  { %v871_v44 = vunpack.c.l.b16 %v607_v51  ;;  %1692 = vmatpush.bf16.msra.mxu0 %v4008_v39  ;;  %v4933_v7 = vpop.permute.xlu2 %830 }
 0x1a7   :  { %v608_v59 = vpack.c.bf16 %v602_v53, %v602_v53  ;;  %v644_v1 = vpack.c.bf16 %v638_v9, %v638_v9  ;;  %v680_v54 = vpack.c.bf16 %v674_v12, %v674_v12  ;;  %v716_v56 = vpack.c.bf16 %v710_v14, %v710_v14 }
 0x1a9   :  { %v872_v48 = vunpack.c.l.b16 %v608_v59  ;;  %v890_v18 = vunpack.c.l.b16 %v644_v1  ;;  %v908_v19 = vunpack.c.l.b16 %v680_v54  ;;  %v926_v21 = vunpack.c.l.b16 %v716_v56  ;;  %v3981_v1 = vld [vmem:[%s4446_s19 + $0x108] sm:$0xff] }
 0x1aa   :  { %1693 = vmatpush.bf16.msra.mxu0 %v4007_v47  ;;  %v3989_v54 = vld [vmem:[%s4446_s19 + $0x148] sm:$0xff]  ;;  %1623 = vmatpush.bf16.msra.mxu1 %v3981_v1 }
 0x1ab   :  { %v877_v35 = vpack.c.b16 %v872_v48, %v871_v44  ;;  %v895_v36 = vpack.c.b16 %v890_v18, %v889_v6  ;;  %v913_v37 = vpack.c.b16 %v908_v19, %v907_v16  ;;  %v931_v38 = vpack.c.b16 %v926_v21, %v925_v17  ;;  %v3997_v56 = vld [vmem:[%s4446_s19 + $0x188] sm:$0xff]  ;;  %1647 = vmatpush.bf16.msrb.mxu2 %v3989_v54 }
 0x1ac   :  { %v4913_v40 = vpop.f32.mrf.mxu0 }
 0x1ad   :  { %1529 = vmatmul.bf16.vlgmr.msrb.gmra.mxu1 %v877_v35  ;;  %1553 = vmatmul.bf16.vlgmr.msra.gmra.mxu2 %v895_v36  ;;  %v603_v57 = vmul.f32 %v4832_v2, %v4913_v40  ;;  %v639_v30 = vmul.f32 %v4838_v10, %v4913_v40  ;;  %v675_v3 = vmul.f32 %v4850_v13, %v4913_v40  ;;  %v3998_v2 = vld [vmem:[%s4446_s19 + $0x190] sm:$0xff]  ;;  %v663_v0 = vpop.permute.xlu0 %662  ;;  %v3988_v35 = vld [vmem:[%s4446_s19 + $0x140] sm:$0xff] }
 0x1ae   :  { %1577 = vmatmul.bf16.vlgmr.msra.gmra.mxu3 %v913_v37  ;;  %1601 = vmatmul.bf16.vlgmr.msrb.gmra.mxu0 %v931_v38  ;;  %v711_v51 = vmul.f32 %v4846_v58, %v4913_v40  ;;  %v4006_v10 = vld [vmem:[%s4446_s19 + $0x1d0] sm:$0xff]  ;;  %v4950_v36 = vpop.permute.xlu1 %802  ;;  %v4956_v47 = vpop.permute.xlu2 %838 }
 0x1af   :  { %v609_v5 = vpack.c.bf16 %v603_v57, %v603_v57  ;;  %v645_v58 = vpack.c.bf16 %v639_v30, %v639_v30  ;;  %v681_v53 = vpack.c.bf16 %v675_v3, %v675_v3  ;;  %1670 = vmatpush.bf16.msrb.mxu3 %v3998_v2  ;;  %1694 = vmatpush.bf16.msra.mxu0 %v4006_v10 }
 0x1b0   :  { %v717_v9 = vpack.c.bf16 %v711_v51, %v711_v51  ;;  %1648 = vmatpush.bf16.msrb.mxu2 %v3988_v35 }
 0x1b1   :  { %v873_v48 = vunpack.c.l.b16 %v609_v5  ;;  %v891_v18 = vunpack.c.l.b16 %v645_v58 }
 0x1b2   :  { %v927_v19 = vunpack.c.l.b16 %v717_v9 }
 0x1b3   :  { %1671 = vmatpush.bf16.msrb.mxu3 %v3997_v56 }
 0x1b4   :  { %v4935_v13 = vpop.f32.mrf.mxu0 }
 0x1b5   :  { %v604_v12 = vmul.f32 %v4868_v31, %v4935_v13  ;;  %v640_v14 = vmul.f32 %v4860_v23, %v4935_v13  ;;  %v676_v15 = vmul.f32 %v663_v0, %v4935_v13  ;;  %v712_v59 = vmul.f32 %v4880_v50, %v4935_v13  ;;  %v4005_v31 = vld [vmem:[%s4446_s19 + $0x1c8] sm:$0xff]  ;;  %v3980_v50 = vld [vmem:[%s4446_s19 + $0x100] sm:$0xff]  ;;  %v795_v10 = vpop.permute.xlu0 %794  ;;  %s5227_s19 = sld [smem:[#allocation15_spill]] }
 0x1b6   :  { %v909_v23 = vunpack.c.l.b16 %v681_v53  ;;  %1695 = vmatpush.bf16.msra.mxu0 %v4005_v31  ;;  %1624 = vmatpush.bf16.msra.mxu1 %v3980_v50  ;;  %v4968_v58 = vpop.permute.xlu1 %810  ;;  %v782_v50 = vmul.f32 %v4862_v25, %v4890_v61 }
 0x1b7   :  { %v610_v44 = vpack.c.bf16 %v604_v12, %v604_v12  ;;  %v646_v6 = vpack.c.bf16 %v640_v14, %v640_v14  ;;  %v682_v16 = vpack.c.bf16 %v676_v15, %v676_v15  ;;  %v718_v17 = vpack.c.bf16 %v712_v59, %v712_v59  ;;  %1672 = vmatpush.bf16.msrb.mxu3 %v3996_v45  ;;  %v771_v59 = vpop.permute.xlu2 %770 }
 0x1b9   :  { %v874_v21 = vunpack.c.l.b16 %v610_v44  ;;  %v892_v22 = vunpack.c.l.b16 %v646_v6  ;;  %v910_v55 = vunpack.c.l.b16 %v682_v16  ;;  %v928_v60 = vunpack.c.l.b16 %v718_v17 }
 0x1ba   :  { %1696 = vmatpush.bf16.msra.mxu0 %v4004_v46 }
 0x1bb   :  { %v878_v37 = vpack.c.b16 %v874_v21, %v873_v48  ;;  %v896_v38 = vpack.c.b16 %v892_v22, %v891_v18  ;;  %v914_v39 = vpack.c.b16 %v910_v55, %v909_v23  ;;  %v932_v11 = vpack.c.b16 %v928_v60, %v927_v19 }
 0x1bc   :  { %v4954_v57 = vpop.f32.mrf.mxu0  ;;  %v746_v19 = vmul.f32 %v4903_v52, %v4890_v61  ;;  %v818_v21 = vmul.f32 %v4872_v34, %v4890_v61  ;;  %v745_v55 = vmul.f32 %v4910_v24, %v4870_v33  ;;  %v781_v60 = vmul.f32 %v4864_v26, %v4870_v33 }
 0x1bd   :  { %1534 = vmatmul.bf16.gmra.mxu1 %v878_v37  ;;  %1558 = vmatmul.bf16.gmra.mxu2 %v896_v38  ;;  %v605_v30 = vmul.f32 %v4804_v29, %v4954_v57  ;;  %v641_v3 = vmul.f32 %v4866_v28, %v4954_v57  ;;  %v677_v51 = vmul.f32 %v4795_v43, %v4954_v57 }
 0x1be   :  { %1582 = vmatmul.bf16.gmra.mxu3 %v914_v39  ;;  %1606 = vmatmul.bf16.gmra.mxu0 %v932_v11  ;;  %v713_v63 = vmul.f32 %v4784_v41, %v4954_v57  ;;  %v817_v37 = vmul.f32 %v795_v10, %v4870_v33  ;;  %v853_v52 = vmul.f32 %v4933_v7, %v4870_v33 }
 0x1bf   :  { %v611_v2 = vpack.c.bf16 %v605_v30, %v605_v30  ;;  %v647_v0 = vpack.c.bf16 %v641_v3, %v641_v3  ;;  %v683_v5 = vpack.c.bf16 %v677_v51, %v677_v51  ;;  %v735_v23 = vpop.permute.xlu1 %734  ;;  %v807_v35 = vpop.permute.xlu2 %806  ;;  %v752_v38 = vpack.c.bf16 %v746_v19, %v746_v19 }
 0x1c0   :  { %v719_v53 = vpack.c.bf16 %v713_v63, %v713_v63  ;;  %v788_v39 = vpack.c.bf16 %v782_v50, %v782_v50  ;;  %v824_v25 = vpack.c.bf16 %v818_v21, %v818_v21  ;;  %v751_v45 = vpack.c.bf16 %v745_v55, %v745_v55 }
 0x1c1   :  { %v875_v1 = vunpack.c.l.b16 %v611_v2  ;;  %v893_v54 = vunpack.c.l.b16 %v647_v0  ;;  %v787_v34 = vpack.c.bf16 %v781_v60, %v781_v60  ;;  %v823_v46 = vpack.c.bf16 %v817_v37, %v817_v37 }
 0x1c2   :  { %v929_v16 = vunpack.c.l.b16 %v719_v53  ;;  %v944_v24 = vunpack.c.l.b16 %v752_v38  ;;  %v962_v3 = vunpack.c.l.b16 %v788_v39  ;;  %v980_v51 = vunpack.c.l.b16 %v824_v25 }
 0x1c3   :  { %v4978_v18 = vpop.f32.mrf.mxu2  ;;  %v943_v2 = vunpack.c.l.b16 %v751_v45  ;;  %v961_v0 = vunpack.c.l.b16 %v787_v34 }
 0x1c4   :  { %v4966_v27 = vpop.f32.mrf.mxu0 }
 0x1c5   :  { %v606_v29 = vmul.f32 %v4905_v42, %v4966_v27  ;;  %v642_v28 = vmul.f32 %v4810_v20, %v4966_v27  ;;  %v678_v43 = vmul.f32 %v4822_v49, %v4966_v27  ;;  %v714_v41 = vmul.f32 %v4824_v4, %v4966_v27  ;;  %v835_v4 = vpop.permute.xlu0 %834 }
 0x1c6   :  { %v911_v42 = vunpack.c.l.b16 %v683_v5  ;;  %v854_v22 = vmul.f32 %v835_v4, %v4890_v61  ;;  %v859_v61 = vpack.c.bf16 %v853_v52, %v853_v52  ;;  %v979_v5 = vunpack.c.l.b16 %v823_v46 }
 0x1c7   :  { %v612_v9 = vpack.c.bf16 %v606_v29, %v606_v29  ;;  %v648_v12 = vpack.c.bf16 %v642_v28, %v642_v28  ;;  %v684_v14 = vpack.c.bf16 %v678_v43, %v678_v43  ;;  %v720_v15 = vpack.c.bf16 %v714_v41, %v714_v41  ;;  %v775_v29 = vpop.permute.xlu2 %774 }
 0x1c8   :  { %v860_v11 = vpack.c.bf16 %v854_v22, %v854_v22  ;;  %v843_v63 = vpop.permute.xlu1 %842  ;;  %v997_v10 = vunpack.c.l.b16 %v859_v61  ;;  %v949_v33 = vpack.c.b16 %v944_v24, %v943_v2  ;;  %v967_v7 = vpack.c.b16 %v962_v3, %v961_v0 }
 0x1c9   :  { %v876_v56 = vunpack.c.l.b16 %v612_v9  ;;  %v894_v44 = vunpack.c.l.b16 %v648_v12  ;;  %v912_v6 = vunpack.c.l.b16 %v684_v14  ;;  %v930_v20 = vunpack.c.l.b16 %v720_v15 }
 0x1ca   :  { %v998_v26 = vunpack.c.l.b16 %v860_v11  ;;  %v985_v28 = vpack.c.b16 %v980_v51, %v979_v5  ;;  %v748_v9 = vmul.f32 %v735_v23, %v4935_v13  ;;  %v784_v12 = vmul.f32 %v771_v59, %v4935_v13 }
 0x1cb   :  { %v879_v17 = vpack.c.b16 %v876_v56, %v875_v1  ;;  %v897_v31 = vpack.c.b16 %v894_v44, %v893_v54  ;;  %v915_v49 = vpack.c.b16 %v912_v6, %v911_v42  ;;  %v933_v48 = vpack.c.b16 %v930_v20, %v929_v16  ;;  %v4994_v30 = vpop.f32.mrf.mxu2 }
 0x1cc   :  { %v1003_v43 = vpack.c.b16 %v998_v26, %v997_v10  ;;  %v856_v14 = vmul.f32 %v843_v63, %v4935_v13  ;;  %v820_v15 = vmul.f32 %v807_v35, %v4935_v13  ;;  %v783_v54 = vmul.f32 %v4927_v62, %v4913_v40 }
 0x1cd   :  { %1539 = vmatmul.bf16.gmra.mxu1 %v879_v17  ;;  %1563 = vmatmul.bf16.gmra.mxu2 %v897_v31  ;;  %v731_v41 = vpop.permute.xlu0 %730  ;;  %v819_v56 = vmul.f32 %v4950_v36, %v4913_v40  ;;  %v855_v44 = vmul.f32 %v4956_v47, %v4913_v40  ;;  %v754_v42 = vpack.c.bf16 %v748_v9, %v748_v9 }
 0x1ce   :  { %1587 = vmatmul.bf16.gmra.mxu3 %v915_v49  ;;  %1611 = vmatmul.bf16.gmra.mxu0 %v933_v48  ;;  %v747_v1 = vmul.f32 %v731_v41, %v4913_v40  ;;  %v790_v16 = vpack.c.bf16 %v784_v12, %v784_v12  ;;  %v862_v20 = vpack.c.bf16 %v856_v14, %v856_v14 }
 0x1cf   :  { %v826_v59 = vpack.c.bf16 %v820_v15, %v820_v15  ;;  %v789_v31 = vpack.c.bf16 %v783_v54, %v783_v54  ;;  %v825_v49 = vpack.c.bf16 %v819_v56, %v819_v56  ;;  %v815_v13 = vpop.permute.xlu2 %814  ;;  %v861_v48 = vpack.c.bf16 %v855_v44, %v855_v44 }
 0x1d0   :  { %v753_v17 = vpack.c.bf16 %v747_v1, %v747_v1  ;;  %v946_v19 = vunpack.c.l.b16 %v754_v42  ;;  %v964_v62 = vunpack.c.l.b16 %v790_v16  ;;  %v1000_v50 = vunpack.c.l.b16 %v862_v20 }
 0x1d1   :  { %v739_v6 = vpop.permute.xlu1 %738  ;;  %v982_v21 = vunpack.c.l.b16 %v826_v59  ;;  %v963_v22 = vunpack.c.l.b16 %v789_v31  ;;  %v981_v55 = vunpack.c.l.b16 %v825_v49  ;;  %v999_v40 = vunpack.c.l.b16 %v861_v48 }
 0x1d2   :  { %v945_v36 = vunpack.c.l.b16 %v753_v17  ;;  %v749_v38 = vmul.f32 %v739_v6, %v4954_v57  ;;  %v822_v45 = vmul.f32 %v815_v13, %v4966_v27  ;;  %v785_v61 = vmul.f32 %v775_v29, %v4954_v57 }
 0x1d3   :  { %v4996_v53 = vpop.f32.mrf.mxu2  ;;  %v968_v60 = vpack.c.b16 %v964_v62, %v963_v22  ;;  %v986_v35 = vpack.c.b16 %v982_v21, %v981_v55  ;;  %v1004_v37 = vpack.c.b16 %v1000_v50, %v999_v40  ;;  %v821_v24 = vmul.f32 %v4968_v58, %v4954_v57 }
 0x1d4   :  { %v950_v47 = vpack.c.b16 %v946_v19, %v945_v36  ;;  %v755_v51 = vpack.c.bf16 %v749_v38, %v749_v38  ;;  %v828_v2 = vpack.c.bf16 %v822_v45, %v822_v45  ;;  %v791_v5 = vpack.c.bf16 %v785_v61, %v785_v61 }
 0x1d5   :  { %v779_v23 = vpop.permute.xlu0 %778  ;;  %v827_v10 = vpack.c.bf16 %v821_v24, %v821_v24 }
 0x1d6   :  { %v786_v39 = vmul.f32 %v779_v23, %v4966_v27  ;;  %v984_v41 = vunpack.c.l.b16 %v828_v2  ;;  %v965_v9 = vunpack.c.l.b16 %v791_v5 }
 0x1d7   :  { %v743_v25 = vpop.permute.xlu2 %742  ;;  %v983_v29 = vunpack.c.l.b16 %v827_v10 }
 0x1d8   :  { %v750_v46 = vmul.f32 %v743_v25, %v4966_v27  ;;  %v792_v26 = vpack.c.bf16 %v786_v39, %v786_v39 }
 0x1d9   :  { %v987_v15 = vpack.c.b16 %v984_v41, %v983_v29 }
 0x1da   :  { %v851_v52 = vpop.permute.xlu1 %850  ;;  %v756_v0 = vpack.c.bf16 %v750_v46, %v750_v46 }
 0x1db   :  { %v367_v4 = vpop.f32.mrf.mxu2  ;;  %v858_v11 = vmul.f32 %v851_v52, %v4966_v27 }
 0x1dc   :  { %v948_v27 = vunpack.c.l.b16 %v756_v0 }
 0x1dd   :  { %1625 = vmatmul.bf16.vlgmr.msra.gmra.mxu1 %v949_v33  ;;  %1649 = vmatmul.bf16.vlgmr.msrb.gmra.mxu2 %v967_v7  ;;  %v847_v34 = vpop.permute.xlu0 %846  ;;  %v864_v63 = vpack.c.bf16 %v858_v11, %v858_v11  ;;  %v947_v7 = vunpack.c.l.b16 %v755_v51 }
 0x1de   :  { %1673 = vmatmul.bf16.vlgmr.msrb.gmra.mxu3 %v985_v28  ;;  %1697 = vmatmul.bf16.vlgmr.msra.gmra.mxu0 %v1003_v43  ;;  %v857_v3 = vmul.f32 %v847_v34, %v4954_v57  ;;  %v966_v28 = vunpack.c.l.b16 %v792_v26 }
 0x1df   :  { %v1002_v43 = vunpack.c.l.b16 %v864_v63  ;;  %v951_v14 = vpack.c.b16 %v948_v27, %v947_v7 }
 0x1e0   :  { %v863_v33 = vpack.c.bf16 %v857_v3, %v857_v3  ;;  %v969_v58 = vpack.c.b16 %v966_v28, %v965_v9 }
 0x1e2   :  { %v1001_v12 = vunpack.c.l.b16 %v863_v33 }
 0x1e4   :  { %v1005_v57 = vpack.c.b16 %v1002_v43, %v1001_v12 }
 0x1ed   :  { %1630 = vmatmul.bf16.gmra.mxu1 %v950_v47  ;;  %1654 = vmatmul.bf16.gmra.mxu2 %v968_v60 }
 0x1ee   :  { %1678 = vmatmul.bf16.gmra.mxu3 %v986_v35  ;;  %1702 = vmatmul.bf16.gmra.mxu0 %v1004_v37 }
 0x1fd   :  { %1635 = vmatmul.bf16.gmra.mxu1 %v951_v14  ;;  %1659 = vmatmul.bf16.gmra.mxu2 %v969_v58 }
 0x1fe   :  { %1683 = vmatmul.bf16.gmra.mxu3 %v987_v15  ;;  %1707 = vmatmul.bf16.gmra.mxu0 %v1005_v57 }
 0x22a   :  { %v1530_v1 = vpop.f32.mrf.mxu1 }
 0x22b   :  { %v1602_v54 = vpop.f32.mrf.mxu0 }
 0x230   :  { %v1554_v56 = vpop.f32.mrf.mxu2 }
 0x231   :  { %v1555_v44 = vadd.f32 %v1554_v56, %v1530_v1  ;;  %v1578_v42 = vpop.f32.mrf.mxu3 }
 0x232   :  { %v1532_v6 = vpop.f32.mrf.mxu1 }
 0x233   :  { %v1579_v16 = vadd.f32 %v1578_v42, %v1555_v44  ;;  %v1604_v20 = vpop.f32.mrf.mxu0 }
 0x235   :  { %v1603_v59 = vadd.f32 %v1602_v54, %v1579_v16 }
 0x238   :  { %v1556_v17 = vpop.f32.mrf.mxu2 }
 0x239   :  { %v1557_v31 = vadd.f32 %v1556_v17, %v1532_v6  ;;  %v1580_v49 = vpop.f32.mrf.mxu3 }
 0x23a   :  { %v1535_v13 = vpop.f32.mrf.mxu1 }
 0x23b   :  { %v1581_v48 = vadd.f32 %v1580_v49, %v1557_v31  ;;  %v1607_v4 = vpop.f32.mrf.mxu0 }
 0x23d   :  { %v1605_v23 = vadd.f32 %v1604_v20, %v1581_v48 }
 0x240   :  { %v1559_v19 = vpop.f32.mrf.mxu2 }
 0x241   :  { %v1560_v62 = vadd.f32 %v1559_v19, %v1535_v13  ;;  %v1583_v50 = vpop.f32.mrf.mxu3 }
 0x242   :  { %v1537_v21 = vpop.f32.mrf.mxu1 }
 0x243   :  { %v1584_v36 = vadd.f32 %v1583_v50, %v1560_v62  ;;  %v1609_v22 = vpop.f32.mrf.mxu0 }
 0x245   :  { %v1608_v55 = vadd.f32 %v1607_v4, %v1584_v36 }
 0x248   :  { %v1561_v40 = vpop.f32.mrf.mxu2 }
 0x249   :  { %v1585_v47 = vpop.f32.mrf.mxu3  ;;  %v1562_v54 = vadd.f32 %v1561_v40, %v1537_v21 }
 0x24a   :  { %v1540_v60 = vpop.f32.mrf.mxu1 }
 0x24b   :  { %v1612_v35 = vpop.f32.mrf.mxu0  ;;  %v1586_v42 = vadd.f32 %v1585_v47, %v1562_v54 }
 0x24d   :  { %v1610_v31 = vadd.f32 %v1609_v22, %v1586_v42  ;;  %v4020_v22 = vld [vmem:[%s4451_s24 + $0x38] sm:$0xff] }
 0x24e   :  { %1842 = vmatpush.bf16.msra.mxu2 %v4020_v22 }
 0x250   :  { %v1564_v37 = vpop.f32.mrf.mxu2 }
 0x251   :  { %v1588_v52 = vpop.f32.mrf.mxu3  ;;  %v1565_v15 = vadd.f32 %v1564_v37, %v1540_v60 }
 0x252   :  { %v1542_v38 = vpop.f32.mrf.mxu1 }
 0x253   :  { %v1614_v39 = vpop.f32.mrf.mxu0  ;;  %v1589_v56 = vadd.f32 %v1588_v52, %v1565_v15 }
 0x255   :  { %v1613_v20 = vadd.f32 %v1612_v35, %v1589_v56 }
 0x258   :  { %v1566_v25 = vpop.f32.mrf.mxu2 }
 0x259   :  { %v1590_v11 = vpop.f32.mrf.mxu3  ;;  %v1567_v44 = vadd.f32 %v1566_v25, %v1542_v38 }
 0x25a   :  { %v1626_v45 = vpop.f32.mrf.mxu1 }
 0x25b   :  { %v1698_v34 = vpop.f32.mrf.mxu0  ;;  %v1627_v3 = vadd.f32 %v1626_v45, %v1603_v59  ;;  %v1591_v16 = vadd.f32 %v1590_v11, %v1567_v44 }
 0x260   :  { %v1650_v46 = vpop.f32.mrf.mxu2 }
 0x261   :  { %v1674_v61 = vpop.f32.mrf.mxu3  ;;  %v1651_v26 = vadd.f32 %v1650_v46, %v1627_v3  ;;  %v4018_v46 = vld [vmem:[%s4451_s24 + $0x28] sm:$0xff]  ;;  %v4012_v3 = vld [vmem:[%s4416_s21] sm:$0xff] }
 0x262   :  { %v1628_v24 = vpop.f32.mrf.mxu1 }
 0x263   :  { %v1700_v51 = vpop.f32.mrf.mxu0  ;;  %v1629_v63 = vadd.f32 %v1628_v24, %v1605_v23  ;;  %v1675_v0 = vadd.f32 %v1674_v61, %v1651_v26  ;;  %v1615_v23 = vadd.f32 %v1614_v39, %v1591_v16  ;;  %v4017_v24 = vld [vmem:[%s4451_s24 + $0x20] sm:$0xff]  ;;  %v1715_v26 = vld [vmem:[%s4416_s21 + $0x8] sm:$0xf]  ;;  %s5221_s21 = sld [smem:[#allocation10_spill]] }
 0x265   :  { %v1699_v28 = vadd.f32 %v1698_v34, %v1675_v0  ;;  %v4314_v0 = vld [vmem:[%s4441_s14] sm:$0x3]  ;;  %s5226_s14 = sld [smem:[#allocation13_spill]] }
 0x268   :  { %v1652_v2 = vpop.f32.mrf.mxu2 }
 0x269   :  { %v1653_v5 = vadd.f32 %v1652_v2, %v1629_v63  ;;  %v1676_v10 = vpop.f32.mrf.mxu3  ;;  %v1724_v63 = vunpack.c.l.b16 %v1715_v26  ;;  %v4028_v26 = vld [vmem:[%s4461_s6 + $0x38] sm:$0xff] }
 0x26a   :  { %v1631_v33 = vpop.f32.mrf.mxu1  ;;  %1973 = vmatpush.bf16.msra.mxu3 %v4028_v26 }
 0x26b   :  { %v1677_v7 = vadd.f32 %v1676_v10, %v1653_v5  ;;  %v1703_v41 = vpop.f32.mrf.mxu0  ;;  %v1632_v19 = vadd.f32 %v1631_v33, %v1608_v55  ;;  %v4019_v55 = vld [vmem:[%s4451_s24 + $0x30] sm:$0xff]  ;;  %v1726_v2 = vpack.c.b16 %v1724_v63, %v1724_v63  ;;  %v267_v5 = vperm.slane %v4314_v0, 0  ;;  %v4184_v0 = vld [vmem:[%s4456_s30] ss:$0 sm:$0xff]  ;;  %s5229_s30 = sld [smem:[#allocation5_spill]] }
 0x26c   :  { %1843 = vmatpush.bf16.msra.mxu2 %v4019_v55  ;;  %v4027_v63 = vld [vmem:[%s4461_s6 + $0x30] sm:$0xff] }
 0x26d   :  { %v1701_v43 = vadd.f32 %v1700_v51, %v1677_v7  ;;  %v4016_v51 = vld [vmem:[%s4451_s24 + $0x18] sm:$0xff]  ;;  %v361_v10 = vadd.f32 %v4978_v18, %v267_v5  ;;  %v363_v33 = vadd.f32 %v4994_v30, %v267_v5  ;;  %v4013_v18 = vld [vmem:[%s4451_s24] sm:$0xff] }
 0x26e   :  { %1974 = vmatpush.bf16.msra.mxu3 %v4027_v63  ;;  %v4036_v63 = vld [vmem:[%s4471_s20 + $0x38] sm:$0xff] }
 0x26f   :  { %v1716_v27 = vpack.c.bf16 %v1701_v43, %v1699_v28  ;;  %v3296_v7 = vmul.f32 -1.442695, %v361_v10  ;;  %v3297_v28 = vmul.f32 -1.442695, %v363_v33  ;;  %2124 = vmatpush.bf16.msrb.mxu0 %v4036_v63 }
 0x270   :  { %v1655_v9 = vpop.f32.mrf.mxu2  ;;  %1844 = vmatpush.bf16.msra.mxu2 %v4018_v46 }
 0x271   :  { %v1679_v29 = vpop.f32.mrf.mxu3  ;;  %v1656_v36 = vadd.f32 %v1655_v9, %v1632_v19  ;;  %4206 = vpow2.f32 %v3296_v7  ;;  %v4015_v9 = vld [vmem:[%s4451_s24 + $0x10] sm:$0xff]  ;;  %v4024_v7 = vld [vmem:[%s4461_s6 + $0x18] sm:$0xff] }
 0x272   :  { %v1633_v12 = vpop.f32.mrf.mxu1  ;;  %4208 = vpow2.f32 %v3297_v28 }
 0x273   :  { %v1705_v14 = vpop.f32.mrf.mxu0  ;;  %v1634_v48 = vadd.f32 %v1633_v12, %v1610_v31  ;;  %v1680_v38 = vadd.f32 %v1679_v29, %v1656_v36  ;;  %v4014_v12 = vld [vmem:[%s4451_s24 + $0x8] sm:$0xff]  ;;  %s5228_s24 = sld [smem:[#allocation17_spill]] }
 0x274   :  { %1845 = vmatpush.bf16.msra.mxu2 %v4017_v24 }
 0x275   :  { %v1704_v34 = vadd.f32 %v1703_v41, %v1680_v38 }
 0x277   :  { %v4207_v43 = vpop.eup %4206 }
 0x278   :  { %v1657_v58 = vpop.f32.mrf.mxu2  ;;  %1846 = vmatpush.bf16.msra.mxu2 %v4016_v51  ;;  %v4209_v41 = vpop.eup %4208  ;;  %v396_v29 = vadd.f32 1.0, %v4207_v43  ;;  %v4023_v43 = vld [vmem:[%s4461_s6 + $0x10] sm:$0xff] }
 0x279   :  { %v1681_v57 = vpop.f32.mrf.mxu3  ;;  %v1658_v62 = vadd.f32 %v1657_v58, %v1634_v48 }
 0x27a   :  { %v1636_v1 = vpop.f32.mrf.mxu1  ;;  %4210 = vrcp.f32 %v396_v29  ;;  %vm404_vm5 = vweird.f32 %v396_v29  ;;  %v408_v31 = vand.u32 2147483647, %v396_v29 }
 0x27b   :  { %v1708_v17 = vpop.f32.mrf.mxu0  ;;  %v1637_v49 = vadd.f32 %v1636_v1, %v1613_v20  ;;  %v1682_v35 = vadd.f32 %v1681_v57, %v1658_v62  ;;  %v410_v20 = vand.u32 2147483648, %v396_v29 }
 0x27c   :  { %1847 = vmatpush.bf16.msra.mxu2 %v4015_v9  ;;  %vm409_vm11 = vcmp.eq.f32.partialorder %v408_v31, 8.507059e+37  ;;  %v4022_v9 = vld [vmem:[%s4461_s6 + $0x8] sm:$0xff] }
 0x27d   :  { %v1706_v39 = vadd.f32 %v1705_v14, %v1682_v35  ;;  %v397_v14 = vadd.f32 1.0, %v4209_v41 }
 0x27f   :  { %v1717_v61 = vpack.c.bf16 %v1706_v39, %v1704_v34  ;;  %4212 = vrcp.f32 %v397_v14  ;;  %vm419_vm7 = vweird.f32 %v397_v14 }
 0x280   :  { %v1660_v6 = vpop.f32.mrf.mxu2  ;;  %1848 = vmatpush.bf16.msra.mxu2 %v4014_v12  ;;  %v4211_v30 = vpop.eup %4210 }
 0x281   :  { %v1684_v59 = vpop.f32.mrf.mxu3  ;;  %v1661_v4 = vadd.f32 %v1660_v6, %v1637_v49  ;;  %v400_v1 = vmul.f32 %v4211_v30, %v396_v29  ;;  %vm405_vm6 = vweird.f32 %v4211_v30 }
 0x282   :  { %v1638_v13 = vpop.f32.mrf.mxu1  ;;  %vm406_vm9 = vmor %vm404_vm5, %vm405_vm6 }
 0x283   :  { %v1639_v50 = vadd.f32 %v1638_v13, %v1615_v23  ;;  %v1685_v40 = vadd.f32 %v1684_v59, %v1661_v4  ;;  %v1710_v52 = vpop.f32.mrf.mxu0  ;;  %v401_v56 = vsub.f32 1.0, %v400_v1  ;;  %v425_v59 = vand.u32 2147483648, %v397_v14 }
 0x284   :  { %1849 = vmatpush.bf16.msra.mxu2 %v4013_v18  ;;  %v423_v13 = vand.u32 2147483647, %v397_v14  ;;  %v411_v4 = vor.u32 1.1754944e-38, %v410_v20 }
 0x285   :  { %v1709_v25 = vadd.f32 %v1708_v17, %v1685_v40  ;;  %v4213_v15 = vpop.eup %4212  ;;  %v402_v42 = vmul.f32 %v4211_v30, %v401_v56  ;;  %v426_v19 = vor.u32 1.1754944e-38, %v425_v59 }
 0x286   :  { %v415_v54 = vmul.f32 %v4213_v15, %v397_v14  ;;  %vm420_vm8 = vweird.f32 %v4213_v15  ;;  %vm424_vm12 = vcmp.eq.f32.partialorder %v423_v13, 8.507059e+37  ;;  %v4021_v14 = vld [vmem:[%s4461_s6] sm:$0xff] }
 0x287   :  { %v403_v17 = vadd.f32 %v4211_v30, %v402_v42  ;;  %vm421_vm10 = vmor %vm419_vm7, %vm420_vm8 }
 0x288   :  { %v1662_v21 = vpop.f32.mrf.mxu2  ;;  %v416_v44 = vsub.f32 1.0, %v415_v54 }
 0x289   :  { %v1663_v47 = vadd.f32 %v1662_v21, %v1639_v50  ;;  %v1686_v60 = vpop.f32.mrf.mxu3  ;;  %v407_v62 = vsel %vm406_vm9, %v4211_v30, %v403_v17 }
 0x28a   :  { %v417_v6 = vmul.f32 %v4213_v15, %v416_v44  ;;  %v412_v36 = vsel %vm409_vm11, %v411_v4, %v407_v62 }
 0x28b   :  { %v1687_v37 = vadd.f32 %v1686_v60, %v1663_v47  ;;  %v444_v47 = vmul.f32 %v412_v36, %v361_v10 }
 0x28c   :  { %v418_v49 = vadd.f32 %v4213_v15, %v417_v6 }
 0x28d   :  { %v1711_v11 = vadd.f32 %v1710_v52, %v1687_v37 }
 0x28e   :  { %v422_v50 = vsel %vm421_vm10, %v4213_v15, %v418_v49 }
 0x28f   :  { %v1718_v45 = vpack.c.bf16 %v1711_v11, %v1709_v25  ;;  %v427_v40 = vsel %vm424_vm12, %v426_v19, %v422_v50 }
 0x290   :  { %v445_v60 = vmul.f32 %v427_v40, %v363_v33 }
 0x291   :  { %1739 = vmatpush.bf16.msrb.mxu1 %v1718_v45 }
 0x295   :  { %1740 = vmatpush.bf16.msrb.mxu1 %v1717_v61 }
 0x299   :  { %1741 = vmatpush.bf16.msrb.mxu1 %v1716_v27  ;;  %v5029_v27 = vadd.f32 %v4996_v53, %v267_v5  ;;  %v4025_v5 = vld [vmem:[%s4461_s6 + $0x20] sm:$0xff] }
 0x29b   :  { %v3298_v58 = vmul.f32 -1.442695, %v5029_v27 }
 0x29c   :  { %3577 = vmatmul.msk.bf16.vlgmr.msrb.gmra.mxu1 %vm1727_vm4, %v4012_v3 }
 0x29d   :  { %4214 = vpow2.f32 %v3298_v58 }
 0x2a3   :  { %v4215_v57 = vpop.eup %4214 }
 0x2a4   :  { %v398_v53 = vadd.f32 1.0, %v4215_v57 }
 0x2a6   :  { %4216 = vrcp.f32 %v398_v53  ;;  %vm434_vm13 = vweird.f32 %v398_v53  ;;  %v440_v38 = vand.u32 2147483648, %v398_v53  ;;  %v438_v55 = vand.u32 2147483647, %v398_v53 }
 0x2a8   :  { %v441_v39 = vor.u32 1.1754944e-38, %v440_v38 }
 0x2ac   :  { %3578 = vmatmul.msk.bf16.gmra.mxu1 %vm1727_vm4, %v1726_v2  ;;  %v4217_v16 = vpop.eup %4216  ;;  %vm439_vm4 = vcmp.eq.f32.partialorder %v438_v55, 8.507059e+37  ;;  %v4026_v2 = vld [vmem:[%s4461_s6 + $0x28] sm:$0xff]  ;;  %s5230_s6 = sld [smem:[#allocation19_spill]] }
 0x2ad   :  { %v430_v48 = vmul.f32 %v4217_v16, %v398_v53  ;;  %vm435_vm14 = vweird.f32 %v4217_v16  ;;  %1975 = vmatpush.bf16.msra.mxu3 %v4026_v2  ;;  %v4035_v2 = vld [vmem:[%s4471_s20 + $0x30] sm:$0xff] }
 0x2ae   :  { %vm436_vm15 = vmor %vm434_vm13, %vm435_vm14  ;;  %2125 = vmatpush.bf16.msrb.mxu0 %v4035_v2 }
 0x2af   :  { %v431_v21 = vsub.f32 1.0, %v430_v48 }
 0x2b1   :  { %v432_v35 = vmul.f32 %v4217_v16, %v431_v21  ;;  %1976 = vmatpush.bf16.msra.mxu3 %v4025_v5  ;;  %v4185_v5 = vld [vmem:[%s5217_s0] ss:$0 sm:$0xff] }
 0x2b3   :  { %v433_v11 = vadd.f32 %v4217_v16, %v432_v35 }
 0x2b5   :  { %v437_v45 = vsel %vm436_vm15, %v4217_v16, %v433_v11  ;;  %1977 = vmatpush.bf16.msra.mxu3 %v4024_v7 }
 0x2b6   :  { %v442_v46 = vsel %vm439_vm4, %v441_v39, %v437_v45 }
 0x2b7   :  { %v446_v61 = vmul.f32 %v442_v46, %v5029_v27 }
 0x2b9   :  { %1978 = vmatpush.bf16.msra.mxu3 %v4023_v43  ;;  %v4032_v43 = vld [vmem:[%s4471_s20 + $0x18] sm:$0xff] }
 0x2bd   :  { %1979 = vmatpush.bf16.msra.mxu3 %v4022_v9 }
 0x2c1   :  { %1980 = vmatpush.bf16.msra.mxu3 %v4021_v14  ;;  %v4030_v14 = vld [vmem:[%s4471_s20 + $0x8] sm:$0xff] }
 0x319   :  { %v1743_v23 = vpop.f32.mrf.mxu1 }
 0x31a   :  { %v5035_v52 = vadd.f32 %v1743_v23, %v444_v47 }
 0x321   :  { %v1745_v37 = vpop.f32.mrf.mxu1 }
 0x322   :  { %v5037_v22 = vadd.f32 %v1745_v37, %v445_v60 }
 0x324   :  { %v1789_v25 = vpack.c.bf16 %v5037_v22, %v5035_v52 }
 0x326   :  { %1850 = vmatmul.bf16.vlgmr.msra.gmra.mxu2 %v1789_v25 }
 0x329   :  { %v1748_v34 = vpop.f32.mrf.mxu1 }
 0x32a   :  { %v5042_v24 = vadd.f32 %v1748_v34, %v446_v61 }
 0x32c   :  { %v1790_v51 = vpack.c.bf16 %v5042_v24, %v5042_v24 }
 0x331   :  { %v1750_v3 = vpop.f32.mrf.mxu1 }
 0x336   :  { %1855 = vmatmul.bf16.gmra.mxu2 %v1790_v51 }
 0x3a9   :  { %v1851_v10 = vpop.f32.mrf.mxu2 }
 0x3aa   :  { %v1852_v33 = vadd.f32 %v4184_v0, %v1851_v10  ;;  %v4033_v10 = vld [vmem:[%s4471_s20 + $0x20] sm:$0xff] }
 0x3ac   :  { %v3611_v28 = vmul.f32 -1.442695, %v1852_v33 }
 0x3ae   :  { %4218 = vpow2.f32 %v3611_v28 }
 0x3b1   :  { %v1853_v41 = vpop.f32.mrf.mxu2 }
 0x3b2   :  { %v1854_v27 = vadd.f32 %v4184_v0, %v1853_v41  ;;  %v4031_v41 = vld [vmem:[%s4471_s20 + $0x10] sm:$0xff] }
 0x3b4   :  { %v4219_v29 = vpop.eup %4218  ;;  %v3612_v12 = vmul.f32 -1.442695, %v1854_v27 }
 0x3b5   :  { %v1869_v58 = vadd.f32 1.0, %v4219_v29 }
 0x3b6   :  { %4220 = vpow2.f32 %v3612_v12 }
 0x3b7   :  { %4222 = vrcp.f32 %v1869_v58  ;;  %v1883_v31 = vand.u32 2147483648, %v1869_v58  ;;  %vm1877_vm6 = vweird.f32 %v1869_v58  ;;  %v1881_v49 = vand.u32 2147483647, %v1869_v58 }
 0x3b9   :  { %v1856_v18 = vpop.f32.mrf.mxu2  ;;  %v1884_v62 = vor.u32 1.1754944e-38, %v1883_v31  ;;  %vm1882_vm9 = vcmp.eq.f32.partialorder %v1881_v49, 8.507059e+37 }
 0x3ba   :  { %v1857_v30 = vadd.f32 %v4184_v0, %v1856_v18  ;;  %v4034_v0 = vld [vmem:[%s4471_s20 + $0x28] sm:$0xff]  ;;  %v4029_v18 = vld [vmem:[%s4471_s20] sm:$0xff]  ;;  %s5231_s20 = sld [smem:[#allocation18_spill]] }
 0x3bb   :  { %2126 = vmatpush.bf16.msrb.mxu0 %v4034_v0  ;;  %v4044_v0 = vld [vmem:[%s5218_s9 + $0x38] sm:$0xff] }
 0x3bc   :  { %v4221_v15 = vpop.eup %4220  ;;  %v3613_v57 = vmul.f32 -1.442695, %v1857_v30  ;;  %2292 = vmatpush.bf16.msra.mxu1 %v4044_v0 }
 0x3bd   :  { %v4223_v1 = vpop.eup %4222  ;;  %v1870_v54 = vadd.f32 1.0, %v4221_v15 }
 0x3be   :  { %v1873_v53 = vmul.f32 %v4223_v1, %v1869_v58  ;;  %4224 = vpow2.f32 %v3613_v57  ;;  %vm1878_vm5 = vweird.f32 %v4223_v1 }
 0x3bf   :  { %4226 = vrcp.f32 %v1870_v54  ;;  %vm1879_vm7 = vmor %vm1877_vm6, %vm1878_vm5  ;;  %v1898_v48 = vand.u32 2147483648, %v1870_v54  ;;  %v1896_v19 = vand.u32 2147483647, %v1870_v54  ;;  %vm1892_vm10 = vweird.f32 %v1870_v54  ;;  %2127 = vmatpush.bf16.msrb.mxu0 %v4033_v10  ;;  %v4042_v10 = vld [vmem:[%s5218_s9 + $0x28] sm:$0xff] }
 0x3c0   :  { %v1874_v56 = vsub.f32 1.0, %v1873_v53 }
 0x3c1   :  { %v1858_v44 = vpop.f32.mrf.mxu2  ;;  %v1899_v40 = vor.u32 1.1754944e-38, %v1898_v48  ;;  %vm1897_vm12 = vcmp.eq.f32.partialorder %v1896_v19, 8.507059e+37 }
 0x3c2   :  { %v1875_v42 = vmul.f32 %v4223_v1, %v1874_v56 }
 0x3c3   :  { %2128 = vmatpush.bf16.msrb.mxu0 %v4032_v43 }
 0x3c4   :  { %v4225_v6 = vpop.eup %4224  ;;  %v1876_v59 = vadd.f32 %v4223_v1, %v1875_v42 }
 0x3c5   :  { %v4227_v16 = vpop.eup %4226  ;;  %v1871_v20 = vadd.f32 1.0, %v4225_v6 }
 0x3c6   :  { %v1888_v17 = vmul.f32 %v4227_v16, %v1870_v54  ;;  %v1880_v4 = vsel %vm1879_vm7, %v4223_v1, %v1876_v59  ;;  %vm1893_vm8 = vweird.f32 %v4227_v16 }
 0x3c7   :  { %4228 = vrcp.f32 %v1871_v20  ;;  %v1885_v36 = vsel %vm1882_vm9, %v1884_v62, %v1880_v4  ;;  %vm1894_vm11 = vmor %vm1892_vm10, %vm1893_vm8  ;;  %v1913_v45 = vand.u32 2147483648, %v1871_v20  ;;  %vm1907_vm14 = vweird.f32 %v1871_v20  ;;  %2129 = vmatpush.bf16.msrb.mxu0 %v4031_v41 }
 0x3c8   :  { %v1889_v13 = vsub.f32 1.0, %v1888_v17  ;;  %v1917_v37 = vmul.f32 %v1885_v36, %v1852_v33  ;;  %v1911_v34 = vand.u32 2147483647, %v1871_v20 }
 0x3c9   :  { %v1914_v61 = vor.u32 1.1754944e-38, %v1913_v45 }
 0x3ca   :  { %v1890_v23 = vmul.f32 %v4227_v16, %v1889_v13  ;;  %vm1912_vm4 = vcmp.eq.f32.partialorder %v1911_v34, 8.507059e+37 }
 0x3cb   :  { %2130 = vmatpush.bf16.msrb.mxu0 %v4030_v14 }
 0x3cc   :  { %v1891_v50 = vadd.f32 %v4227_v16, %v1890_v23 }
 0x3cd   :  { %v4229_v21 = vpop.eup %4228 }
 0x3ce   :  { %v1895_v47 = vsel %vm1894_vm11, %v4227_v16, %v1891_v50  ;;  %v1903_v60 = vmul.f32 %v4229_v21, %v1871_v20  ;;  %vm1908_vm13 = vweird.f32 %v4229_v21 }
 0x3cf   :  { %v1900_v35 = vsel %vm1897_vm12, %v1899_v40, %v1895_v47  ;;  %vm1909_vm15 = vmor %vm1907_vm14, %vm1908_vm13  ;;  %2131 = vmatpush.bf16.msrb.mxu0 %v4029_v18  ;;  %v2807_v18 = vld [vmem:[%s5220_s17] sm:$0x7] }
 0x3d0   :  { %v1918_v38 = vmul.f32 %v1900_v35, %v1854_v27  ;;  %v1904_v25 = vsub.f32 1.0, %v1903_v60 }
 0x3d2   :  { %v1920_v11 = vpack.c.bf16 %v1918_v38, %v1917_v37  ;;  %v1905_v55 = vmul.f32 %v4229_v21, %v1904_v25 }
 0x3d4   :  { %1981 = vmatmul.bf16.vlgmr.msra.gmra.mxu3 %v1920_v11  ;;  %v1906_v39 = vadd.f32 %v4229_v21, %v1905_v55 }
 0x3d6   :  { %v1910_v46 = vsel %vm1909_vm15, %v4229_v21, %v1906_v39 }
 0x3d7   :  { %v1915_v3 = vsel %vm1912_vm4, %v1914_v61, %v1910_v46 }
 0x3d8   :  { %v1919_v51 = vmul.f32 %v1915_v3, %v1857_v30 }
 0x3da   :  { %v1921_v26 = vpack.c.bf16 %v1919_v51, %v1919_v51 }
 0x3e4   :  { %1986 = vmatmul.bf16.gmra.mxu3 %v1921_v26 }
 0x457   :  { %v1982_v33 = vpop.f32.mrf.mxu3 }
 0x458   :  { %v1983_v7 = vadd.f32 %v4185_v5, %v1982_v33  ;;  %v4186_v33 = vld [vmem:[%s5219_s13] ss:$0 sm:$0xff] }
 0x45a   :  { %v3646_v28 = vmul.f32 -1.442695, %v1983_v7 }
 0x45c   :  { %4230 = vpow2.f32 %v3646_v28 }
 0x45f   :  { %v1984_v27 = vpop.f32.mrf.mxu3 }
 0x460   :  { %v1985_v9 = vadd.f32 %v4185_v5, %v1984_v27  ;;  %v4040_v27 = vld [vmem:[%s5218_s9 + $0x18] sm:$0xff] }
 0x462   :  { %v4231_v29 = vpop.eup %4230  ;;  %v3647_v12 = vmul.f32 -1.442695, %v1985_v9 }
 0x463   :  { %v2000_v58 = vadd.f32 1.0, %v4231_v29 }
 0x464   :  { %4232 = vpow2.f32 %v3647_v12 }
 0x465   :  { %4234 = vrcp.f32 %v2000_v58  ;;  %v2014_v17 = vand.u32 2147483648, %v2000_v58  ;;  %vm2008_vm6 = vweird.f32 %v2000_v58  ;;  %v2012_v49 = vand.u32 2147483647, %v2000_v58 }
 0x467   :  { %v1987_v30 = vpop.f32.mrf.mxu3  ;;  %v2015_v23 = vor.u32 1.1754944e-38, %v2014_v17  ;;  %vm2013_vm8 = vcmp.eq.f32.partialorder %v2012_v49, 8.507059e+37 }
 0x468   :  { %v1988_v15 = vadd.f32 %v4185_v5, %v1987_v30  ;;  %v4043_v5 = vld [vmem:[%s5218_s9 + $0x30] sm:$0xff] }
 0x469   :  { %2293 = vmatpush.bf16.msra.mxu1 %v4043_v5 }
 0x46a   :  { %v4233_v57 = vpop.eup %4232  ;;  %v3648_v1 = vmul.f32 -1.442695, %v1988_v15 }
 0x46b   :  { %v4235_v54 = vpop.eup %4234  ;;  %v2001_v53 = vadd.f32 1.0, %v4233_v57  ;;  %v4037_v57 = vld [vmem:[%s5218_s9] sm:$0xff] }
 0x46c   :  { %v2004_v56 = vmul.f32 %v4235_v54, %v2000_v58  ;;  %4236 = vpow2.f32 %v3648_v1  ;;  %vm2009_vm5 = vweird.f32 %v4235_v54  ;;  %v4038_v58 = vld [vmem:[%s5218_s9 + $0x8] sm:$0xff] }
 0x46d   :  { %4238 = vrcp.f32 %v2001_v53  ;;  %vm2010_vm7 = vmor %vm2008_vm6, %vm2009_vm5  ;;  %v2029_v19 = vand.u32 2147483648, %v2001_v53  ;;  %v2027_v50 = vand.u32 2147483647, %v2001_v53  ;;  %vm2023_vm10 = vweird.f32 %v2001_v53  ;;  %2294 = vmatpush.bf16.msra.mxu1 %v4042_v10 }
 0x46e   :  { %v2005_v44 = vsub.f32 1.0, %v2004_v56 }
 0x46f   :  { %v1989_v42 = vpop.f32.mrf.mxu3  ;;  %v2030_v47 = vor.u32 1.1754944e-38, %v2029_v19  ;;  %vm2028_vm12 = vcmp.eq.f32.partialorder %v2027_v50, 8.507059e+37 }
 0x470   :  { %v2006_v6 = vmul.f32 %v4235_v54, %v2005_v44 }
 0x472   :  { %v4237_v16 = vpop.eup %4236  ;;  %v2007_v20 = vadd.f32 %v4235_v54, %v2006_v6 }
 0x473   :  { %v4239_v59 = vpop.eup %4238  ;;  %v2002_v31 = vadd.f32 1.0, %v4237_v16 }
 0x474   :  { %v2019_v13 = vmul.f32 %v4239_v59, %v2001_v53  ;;  %v2011_v48 = vsel %vm2010_vm7, %v4235_v54, %v2007_v20  ;;  %vm2024_vm9 = vweird.f32 %v4239_v59 }
 0x475   :  { %4240 = vrcp.f32 %v2002_v31  ;;  %v2016_v21 = vsel %vm2013_vm8, %v2015_v23, %v2011_v48  ;;  %vm2025_vm11 = vmor %vm2023_vm10, %vm2024_vm9  ;;  %v2044_v34 = vand.u32 2147483648, %v2002_v31  ;;  %vm2038_vm14 = vweird.f32 %v2002_v31 }
 0x476   :  { %v2020_v4 = vsub.f32 1.0, %v2019_v13  ;;  %v2048_v60 = vmul.f32 %v2016_v21, %v1983_v7  ;;  %v2042_v3 = vand.u32 2147483647, %v2002_v31  ;;  %v4041_v7 = vld [vmem:[%s5218_s9 + $0x20] sm:$0xff] }
 0x477   :  { %v2045_v26 = vor.u32 1.1754944e-38, %v2044_v34  ;;  %2295 = vmatpush.bf16.msra.mxu1 %v4041_v7  ;;  %v4315_v34 = vld [vmem:[%s4396_s5] sm:$0xff] }
 0x478   :  { %v2021_v62 = vmul.f32 %v4239_v59, %v2020_v4  ;;  %v2051_v55 = vadd.f32 %v2048_v60, %v5035_v52  ;;  %vm2043_vm4 = vcmp.eq.f32.partialorder %v2042_v3, 8.507059e+37 }
 0x47a   :  { %v2022_v36 = vadd.f32 %v4239_v59, %v2021_v62 }
 0x47b   :  { %v4241_v40 = vpop.eup %4240  ;;  %2296 = vmatpush.bf16.msra.mxu1 %v4040_v27  ;;  %v4050_v27 = vld [vmem:[%s5221_s21 + $0x28] sm:$0xff] }
 0x47c   :  { %v2026_v35 = vsel %vm2025_vm11, %v4239_v59, %v2022_v36  ;;  %v2034_v37 = vmul.f32 %v4241_v40, %v2002_v31  ;;  %vm2039_vm13 = vweird.f32 %v4241_v40 }
 0x47d   :  { %v2031_v38 = vsel %vm2028_vm12, %v2030_v47, %v2026_v35  ;;  %vm2040_vm15 = vmor %vm2038_vm14, %vm2039_vm13 }
 0x47e   :  { %v2049_v25 = vmul.f32 %v2031_v38, %v1985_v9  ;;  %v2035_v11 = vsub.f32 1.0, %v2034_v37 }
 0x480   :  { %v2052_v39 = vadd.f32 %v2049_v25, %v5037_v22  ;;  %v2036_v45 = vmul.f32 %v4241_v40, %v2035_v11 }
 0x482   :  { %v2070_v46 = vpack.c.bf16 %v2052_v39, %v2051_v55  ;;  %v2037_v61 = vadd.f32 %v4241_v40, %v2036_v45 }
 0x484   :  { %v2041_v51 = vsel %vm2040_vm15, %v4241_v40, %v2037_v61  ;;  %2132 = vmatmul.bf16.vlgmr.msrb.gmra.mxu0 %v2070_v46  ;;  %v4316_v61 = vld [vmem:[%s4396_s5 + $0x8] sm:$0xff] }
 0x485   :  { %v2046_v52 = vsel %vm2043_vm4, %v2045_v26, %v2041_v51 }
 0x486   :  { %v2050_v63 = vmul.f32 %v2046_v52, %v1988_v15  ;;  %v2860_v15 = vsel %vm155_vm0, %v2807_v18, 0 }
 0x488   :  { %v2053_v22 = vadd.f32 %v2050_v63, %v5042_v24  ;;  %v4039_v24 = vld [vmem:[%s5218_s9 + $0x10] sm:$0xff] }
 0x489   :  { %2297 = vmatpush.bf16.msra.mxu1 %v4039_v24  ;;  %v4187_v24 = vld [vmem:[%s5222_s29] ss:$0 sm:$0xff] }
 0x48a   :  { %v2071_v2 = vpack.c.bf16 %v2053_v22, %v2053_v22 }
 0x48d   :  { %2298 = vmatpush.bf16.msra.mxu1 %v4038_v58 }
 0x491   :  { %2299 = vmatpush.bf16.msra.mxu1 %v4037_v57 }
 0x494   :  { %2137 = vmatmul.bf16.gmra.mxu0 %v2071_v2 }
 0x495   :  { %2869 = vmatpush.bf16.msrb.mxu1 %v2860_v15 }
 0x501   :  { %v2133_v28 = vpop.f32.mrf.mxu0 }
 0x502   :  { %v2134_v43 = vadd.f32 %v4186_v33, %v2133_v28 }
 0x504   :  { %v3681_v41 = vmul.f32 -1.442695, %v2134_v43 }
 0x506   :  { %4242 = vpow2.f32 %v3681_v41  ;;  %v4051_v41 = vld [vmem:[%s5221_s21 + $0x30] sm:$0xff] }
 0x509   :  { %v2135_v9 = vpop.f32.mrf.mxu0 }
 0x50a   :  { %v2136_v29 = vadd.f32 %v4186_v33, %v2135_v9  ;;  %v4049_v9 = vld [vmem:[%s5221_s21 + $0x20] sm:$0xff] }
 0x50c   :  { %v4243_v12 = vpop.eup %4242  ;;  %v3682_v14 = vmul.f32 -1.442695, %v2136_v29 }
 0x50d   :  { %v2151_v30 = vadd.f32 1.0, %v4243_v12 }
 0x50e   :  { %4244 = vpow2.f32 %v3682_v14  ;;  %v4048_v14 = vld [vmem:[%s5221_s21 + $0x18] sm:$0xff] }
 0x50f   :  { %4246 = vrcp.f32 %v2151_v30  ;;  %v2165_v13 = vand.u32 2147483648, %v2151_v30  ;;  %vm2159_vm5 = vweird.f32 %v2151_v30  ;;  %v2163_v4 = vand.u32 2147483647, %v2151_v30 }
 0x511   :  { %v2138_v1 = vpop.f32.mrf.mxu0  ;;  %v2166_v50 = vor.u32 1.1754944e-38, %v2165_v13  ;;  %vm2164_vm7 = vcmp.eq.f32.partialorder %v2163_v4, 8.507059e+37 }
 0x512   :  { %v5078_v54 = vadd.f32 %v4186_v33, %v2138_v1  ;;  %v4317_v33 = vld [vmem:[%s4396_s5 + $0x10] sm:$0xff]  ;;  %s5223_s5 = sld [smem:[#allocation12_spill]] }
 0x514   :  { %v4245_v53 = vpop.eup %4244  ;;  %v3683_v56 = vmul.f32 -1.442695, %v5078_v54 }
 0x515   :  { %v4247_v44 = vpop.eup %4246  ;;  %v2152_v42 = vadd.f32 1.0, %v4245_v53 }
 0x516   :  { %v2155_v6 = vmul.f32 %v4247_v44, %v2151_v30  ;;  %4248 = vpow2.f32 %v3683_v56  ;;  %vm2160_vm0 = vweird.f32 %v4247_v44  ;;  %v4046_v30 = vld [vmem:[%s5221_s21 + $0x8] sm:$0xff] }
 0x517   :  { %4250 = vrcp.f32 %v2152_v42  ;;  %vm2161_vm6 = vmor %vm2159_vm5, %vm2160_vm0  ;;  %v2180_v21 = vand.u32 2147483648, %v2152_v42  ;;  %v2178_v40 = vand.u32 2147483647, %v2152_v42  ;;  %vm2174_vm9 = vweird.f32 %v2152_v42 }
 0x518   :  { %v2156_v16 = vsub.f32 1.0, %v2155_v6 }
 0x519   :  { %v2140_v20 = vpop.f32.mrf.mxu0  ;;  %v2181_v37 = vor.u32 1.1754944e-38, %v2180_v21  ;;  %vm2179_vm11 = vcmp.eq.f32.partialorder %v2178_v40, 8.507059e+37 }
 0x51a   :  { %v2157_v59 = vmul.f32 %v4247_v44, %v2156_v16 }
 0x51c   :  { %v4249_v17 = vpop.eup %4248  ;;  %v2158_v31 = vadd.f32 %v4247_v44, %v2157_v59 }
 0x51d   :  { %v4251_v49 = vpop.eup %4250  ;;  %v2153_v48 = vadd.f32 1.0, %v4249_v17 }
 0x51e   :  { %v2170_v23 = vmul.f32 %v4251_v49, %v2152_v42  ;;  %v2162_v19 = vsel %vm2161_vm6, %v4247_v44, %v2158_v31  ;;  %vm2175_vm8 = vweird.f32 %v4251_v49 }
 0x51f   :  { %4252 = vrcp.f32 %v2153_v48  ;;  %v2167_v47 = vsel %vm2164_vm7, %v2166_v50, %v2162_v19  ;;  %vm2176_vm10 = vmor %vm2174_vm9, %vm2175_vm8  ;;  %v2195_v26 = vand.u32 2147483648, %v2153_v48  ;;  %vm2189_vm13 = vweird.f32 %v2153_v48 }
 0x520   :  { %v2171_v62 = vsub.f32 1.0, %v2170_v23  ;;  %v2199_v38 = vmul.f32 %v2167_v47, %v2134_v43  ;;  %v2193_v22 = vand.u32 2147483647, %v2153_v48  ;;  %v4052_v43 = vld [vmem:[%s5221_s21 + $0x38] sm:$0xff] }
 0x521   :  { %v2196_v0 = vor.u32 1.1754944e-38, %v2195_v26  ;;  %2423 = vmatpush.bf16.msrb.mxu2 %v4052_v43  ;;  %v4059_v43 = vld [vmem:[%s5223_s5 + $0x30] sm:$0xff] }
 0x522   :  { %v2172_v36 = vmul.f32 %v4251_v49, %v2171_v62  ;;  %v5082_v46 = vadd.f32 %v4315_v34, %v2199_v38  ;;  %vm2194_vm15 = vcmp.eq.f32.partialorder %v2193_v22, 8.507059e+37 }
 0x524   :  { %v2173_v60 = vadd.f32 %v4251_v49, %v2172_v36 }
 0x525   :  { %v4253_v35 = vpop.eup %4252  ;;  %2424 = vmatpush.bf16.msrb.mxu2 %v4051_v41  ;;  %v4058_v41 = vld [vmem:[%s5223_s5 + $0x28] sm:$0xff] }
 0x526   :  { %v2177_v25 = vsel %vm2176_vm10, %v4251_v49, %v2173_v60  ;;  %v2185_v11 = vmul.f32 %v4253_v35, %v2153_v48  ;;  %vm2190_vm12 = vweird.f32 %v4253_v35 }
 0x527   :  { %v2182_v55 = vsel %vm2179_vm11, %v2181_v37, %v2177_v25  ;;  %vm2191_vm14 = vmor %vm2189_vm13, %vm2190_vm12 }
 0x528   :  { %v2200_v39 = vmul.f32 %v2182_v55, %v2136_v29  ;;  %v2186_v45 = vsub.f32 1.0, %v2185_v11 }
 0x529   :  { %2425 = vmatpush.bf16.msrb.mxu2 %v4050_v27  ;;  %v4188_v27 = vld [vmem:[%s5224_s3] ss:$0 sm:$0xff] }
 0x52a   :  { %v5085_v3 = vadd.f32 %v4316_v61, %v2200_v39  ;;  %v2187_v51 = vmul.f32 %v4253_v35, %v2186_v45 }
 0x52c   :  { %v2239_v52 = vpack.c.bf16 %v5085_v3, %v5082_v46  ;;  %v2188_v63 = vadd.f32 %v4253_v35, %v2187_v51 }
 0x52d   :  { %2426 = vmatpush.bf16.msrb.mxu2 %v4049_v9 }
 0x52e   :  { %v2192_v2 = vsel %vm2191_vm14, %v4253_v35, %v2188_v63  ;;  %2300 = vmatmul.bf16.vlgmr.msra.gmra.mxu1 %v2239_v52 }
 0x52f   :  { %v2197_v5 = vsel %vm2194_vm15, %v2196_v0, %v2192_v2 }
 0x530   :  { %v2201_v10 = vmul.f32 %v2197_v5, %v5078_v54  ;;  %v4045_v54 = vld [vmem:[%s5221_s21] sm:$0xff] }
 0x531   :  { %2427 = vmatpush.bf16.msrb.mxu2 %v4048_v14  ;;  %v4056_v14 = vld [vmem:[%s5223_s5 + $0x18] sm:$0xff] }
 0x532   :  { %v5091_v7 = vadd.f32 %v4317_v33, %v2201_v10 }
 0x534   :  { %v2240_v28 = vpack.c.bf16 %v5091_v7, %v5091_v7 }
 0x53e   :  { %2305 = vmatmul.bf16.gmra.mxu1 %v2240_v28  ;;  %v4060_v28 = vld [vmem:[%s5223_s5 + $0x38] sm:$0xff] }
 0x53f   :  { %2591 = vmatpush.bf16.msrb.mxu3 %v4060_v28  ;;  %v4068_v28 = vld [vmem:[%s5225_s8 + $0x38] sm:$0xff] }
 0x540   :  { %2722 = vmatpush.bf16.msra.mxu0 %v4068_v28 }
 0x543   :  { %2592 = vmatpush.bf16.msrb.mxu3 %v4059_v43  ;;  %v4067_v43 = vld [vmem:[%s5225_s8 + $0x30] sm:$0xff] }
 0x544   :  { %2723 = vmatpush.bf16.msra.mxu0 %v4067_v43 }
 0x547   :  { %2593 = vmatpush.bf16.msrb.mxu3 %v4058_v41  ;;  %v4066_v41 = vld [vmem:[%s5225_s8 + $0x28] sm:$0xff] }
 0x548   :  { %2724 = vmatpush.bf16.msra.mxu0 %v4066_v41 }
 0x54e   :  { %3824 = vmatmul.msk.bf16.vlgmr.msrb.gmra.mxu1 %vm148_vm2, %v4570_v8  ;;  %v4047_v8 = vld [vmem:[%s5221_s21 + $0x10] sm:$0xff] }
 0x54f   :  { %2428 = vmatpush.bf16.msrb.mxu2 %v4047_v8 }
 0x553   :  { %2429 = vmatpush.bf16.msrb.mxu2 %v4046_v30 }
 0x557   :  { %2430 = vmatpush.bf16.msrb.mxu2 %v4045_v54 }
 0x55e   :  { %3825 = vmatmul.msk.bf16.gmra.mxu1 %vm148_vm2, %v4592_v32 }
 0x5ab   :  { %v2301_v29 = vpop.f32.mrf.mxu1 }
 0x5ac   :  { %v2302_v12 = vadd.f32 %v4187_v24, %v2301_v29 }
 0x5ae   :  { %v3716_v58 = vmul.f32 -1.442695, %v2302_v12 }
 0x5b0   :  { %4254 = vpow2.f32 %v3716_v58  ;;  %v4055_v58 = vld [vmem:[%s5223_s5 + $0x10] sm:$0xff] }
 0x5b3   :  { %v2303_v32 = vpop.f32.mrf.mxu1 }
 0x5b4   :  { %v2304_v18 = vadd.f32 %v4187_v24, %v2303_v32 }
 0x5b6   :  { %v4255_v15 = vpop.eup %4254  ;;  %v3717_v57 = vmul.f32 -1.442695, %v2304_v18 }
 0x5b7   :  { %v2319_v1 = vadd.f32 1.0, %v4255_v15  ;;  %v4054_v15 = vld [vmem:[%s5223_s5 + $0x8] sm:$0xff] }
 0x5b8   :  { %4256 = vpow2.f32 %v3717_v57 }
 0x5b9   :  { %4258 = vrcp.f32 %v2319_v1  ;;  %v2333_v19 = vand.u32 2147483648, %v2319_v1  ;;  %vm2327_vm4 = vweird.f32 %v2319_v1  ;;  %v2331_v62 = vand.u32 2147483647, %v2319_v1 }
 0x5bb   :  { %v2306_v53 = vpop.f32.mrf.mxu1  ;;  %v2334_v60 = vor.u32 1.1754944e-38, %v2333_v19  ;;  %vm2332_vm6 = vcmp.eq.f32.partialorder %v2331_v62, 8.507059e+37 }
 0x5bc   :  { %v2307_v56 = vadd.f32 %v4187_v24, %v2306_v53  ;;  %v4057_v24 = vld [vmem:[%s5223_s5 + $0x20] sm:$0xff] }
 0x5bd   :  { %2594 = vmatpush.bf16.msrb.mxu3 %v4057_v24  ;;  %v4065_v24 = vld [vmem:[%s5225_s8 + $0x20] sm:$0xff] }
 0x5be   :  { %v4257_v44 = vpop.eup %4256  ;;  %v3718_v42 = vmul.f32 -1.442695, %v2307_v56  ;;  %2725 = vmatpush.bf16.msra.mxu0 %v4065_v24 }
 0x5bf   :  { %v4259_v6 = vpop.eup %4258  ;;  %v2320_v16 = vadd.f32 1.0, %v4257_v44 }
 0x5c0   :  { %v2323_v20 = vmul.f32 %v4259_v6, %v2319_v1  ;;  %4260 = vpow2.f32 %v3718_v42  ;;  %vm2328_vm2 = vweird.f32 %v4259_v6  ;;  %v4053_v1 = vld [vmem:[%s5223_s5] sm:$0xff] }
 0x5c1   :  { %4262 = vrcp.f32 %v2320_v16  ;;  %vm2329_vm0 = vmor %vm2327_vm4, %vm2328_vm2  ;;  %v2348_v21 = vand.u32 2147483648, %v2320_v16  ;;  %v2346_v47 = vand.u32 2147483647, %v2320_v16  ;;  %vm2342_vm7 = vweird.f32 %v2320_v16  ;;  %2595 = vmatpush.bf16.msrb.mxu3 %v4056_v14  ;;  %v4063_v14 = vld [vmem:[%s5225_s8 + $0x10] sm:$0xff] }
 0x5c2   :  { %v2324_v59 = vsub.f32 1.0, %v2323_v20 }
 0x5c3   :  { %v2308_v17 = vpop.f32.mrf.mxu1  ;;  %v2349_v25 = vor.u32 1.1754944e-38, %v2348_v21  ;;  %vm2347_vm9 = vcmp.eq.f32.partialorder %v2346_v47, 8.507059e+37 }
 0x5c4   :  { %v2325_v31 = vmul.f32 %v4259_v6, %v2324_v59 }
 0x5c5   :  { %2596 = vmatpush.bf16.msrb.mxu3 %v4055_v58 }
 0x5c6   :  { %v4261_v49 = vpop.eup %4260  ;;  %v2326_v4 = vadd.f32 %v4259_v6, %v2325_v31 }
 0x5c7   :  { %v4263_v13 = vpop.eup %4262  ;;  %v2321_v48 = vadd.f32 1.0, %v4261_v49 }
 0x5c8   :  { %v2338_v23 = vmul.f32 %v4263_v13, %v2320_v16  ;;  %v2330_v36 = vsel %vm2329_vm0, %v4259_v6, %v2326_v4  ;;  %vm2343_vm5 = vweird.f32 %v4263_v13 }
 0x5c9   :  { %4264 = vrcp.f32 %v2321_v48  ;;  %v2335_v38 = vsel %vm2332_vm6, %v2334_v60, %v2330_v36  ;;  %vm2344_vm8 = vmor %vm2342_vm7, %vm2343_vm5  ;;  %v2363_v63 = vand.u32 2147483648, %v2321_v48  ;;  %vm2357_vm11 = vweird.f32 %v2321_v48  ;;  %2597 = vmatpush.bf16.msrb.mxu3 %v4054_v15 }
 0x5ca   :  { %v2339_v50 = vsub.f32 1.0, %v2338_v23  ;;  %v2367_v45 = vmul.f32 %v2335_v38, %v2302_v12  ;;  %v2361_v22 = vand.u32 2147483647, %v2321_v48 }
 0x5cb   :  { %v2364_v0 = vor.u32 1.1754944e-38, %v2363_v63  ;;  %v5140_v41 = vpop.f32.mrf.mxu1 }
 0x5cc   :  { %v2340_v40 = vmul.f32 %v4263_v13, %v2339_v50  ;;  %vm2362_vm13 = vcmp.eq.f32.partialorder %v2361_v22, 8.507059e+37 }
 0x5cd   :  { %2598 = vmatpush.bf16.msrb.mxu3 %v4053_v1 }
 0x5ce   :  { %v2341_v35 = vadd.f32 %v4263_v13, %v2340_v40 }
 0x5cf   :  { %v4265_v37 = vpop.eup %4264 }
 0x5d0   :  { %v2345_v11 = vsel %vm2344_vm8, %v4263_v13, %v2341_v35  ;;  %v2353_v55 = vmul.f32 %v4265_v37, %v2321_v48  ;;  %vm2358_vm10 = vweird.f32 %v4265_v37 }
 0x5d1   :  { %v2350_v39 = vsel %vm2347_vm9, %v2349_v25, %v2345_v11  ;;  %vm2359_vm12 = vmor %vm2357_vm11, %vm2358_vm10 }
 0x5d2   :  { %v2368_v34 = vmul.f32 %v2350_v39, %v2304_v18  ;;  %v2354_v61 = vsub.f32 1.0, %v2353_v55 }
 0x5d4   :  { %v2370_v51 = vpack.c.bf16 %v2368_v34, %v2367_v45  ;;  %v2355_v26 = vmul.f32 %v4265_v37, %v2354_v61 }
 0x5d6   :  { %v2356_v52 = vadd.f32 %v4265_v37, %v2355_v26  ;;  %2431 = vmatmul.bf16.vlgmr.msrb.gmra.mxu2 %v2370_v51 }
 0x5d8   :  { %v2360_v2 = vsel %vm2359_vm12, %v4265_v37, %v2356_v52 }
 0x5d9   :  { %v2365_v5 = vsel %vm2362_vm13, %v2364_v0, %v2360_v2 }
 0x5da   :  { %v2369_v10 = vmul.f32 %v2365_v5, %v2307_v56 }
 0x5dc   :  { %v2371_v33 = vpack.c.bf16 %v2369_v10, %v2369_v10 }
 0x5e6   :  { %2436 = vmatmul.bf16.gmra.mxu2 %v2371_v33 }
 0x659   :  { %v2432_v9 = vpop.f32.mrf.mxu2 }
 0x65a   :  { %v2433_v29 = vadd.f32 %v4188_v27, %v2432_v9 }
 0x65c   :  { %v3751_v12 = vmul.f32 -1.442695, %v2433_v29 }
 0x65e   :  { %4266 = vpow2.f32 %v3751_v12 }
 0x661   :  { %v2434_v8 = vpop.f32.mrf.mxu2 }
 0x662   :  { %v2435_v32 = vadd.f32 %v4188_v27, %v2434_v8 }
 0x664   :  { %v4267_v18 = vpop.eup %4266  ;;  %v3752_v30 = vmul.f32 -1.442695, %v2435_v32 }
 0x665   :  { %v2450_v57 = vadd.f32 1.0, %v4267_v18 }
 0x666   :  { %4268 = vpow2.f32 %v3752_v30 }
 0x667   :  { %4270 = vrcp.f32 %v2450_v57  ;;  %v2464_v48 = vand.u32 2147483648, %v2450_v57  ;;  %vm2458_vm15 = vweird.f32 %v2450_v57  ;;  %v2462_v23 = vand.u32 2147483647, %v2450_v57 }
 0x669   :  { %v2437_v54 = vpop.f32.mrf.mxu2  ;;  %v2465_v21 = vor.u32 1.1754944e-38, %v2464_v48  ;;  %vm2463_vm4 = vcmp.eq.f32.partialorder %v2462_v23, 8.507059e+37 }
 0x66a   :  { %v2438_v53 = vadd.f32 %v4188_v27, %v2437_v54  ;;  %v4189_v27 = vld [vmem:[%s5226_s14] ss:$0 sm:$0xff] }
 0x66c   :  { %v4269_v56 = vpop.eup %4268  ;;  %v3753_v44 = vmul.f32 -1.442695, %v2438_v53 }
 0x66d   :  { %v4271_v42 = vpop.eup %4270  ;;  %v2451_v6 = vadd.f32 1.0, %v4269_v56 }
 0x66e   :  { %v2454_v16 = vmul.f32 %v4271_v42, %v2450_v57  ;;  %4272 = vpow2.f32 %v3753_v44  ;;  %vm2459_vm14 = vweird.f32 %v4271_v42  ;;  %v4061_v57 = vld [vmem:[%s5225_s8] sm:$0xff] }
 0x66f   :  { %4274 = vrcp.f32 %v2451_v6  ;;  %vm2460_vm2 = vmor %vm2458_vm15, %vm2459_vm14  ;;  %v2479_v36 = vand.u32 2147483648, %v2451_v6  ;;  %v2477_v47 = vand.u32 2147483647, %v2451_v6  ;;  %vm2473_vm5 = vweird.f32 %v2451_v6 }
 0x670   :  { %v2455_v20 = vsub.f32 1.0, %v2454_v16 }
 0x671   :  { %v2439_v59 = vpop.f32.mrf.mxu2  ;;  %v2480_v38 = vor.u32 1.1754944e-38, %v2479_v36  ;;  %vm2478_vm7 = vcmp.eq.f32.partialorder %v2477_v47, 8.507059e+37 }
 0x672   :  { %v2456_v17 = vmul.f32 %v4271_v42, %v2455_v20 }
 0x674   :  { %v4273_v31 = vpop.eup %4272  ;;  %v2457_v49 = vadd.f32 %v4271_v42, %v2456_v17 }
 0x675   :  { %v4275_v13 = vpop.eup %4274  ;;  %v2452_v4 = vadd.f32 1.0, %v4273_v31 }
 0x676   :  { %v2469_v19 = vmul.f32 %v4275_v13, %v2451_v6  ;;  %v2461_v62 = vsel %vm2460_vm2, %v4271_v42, %v2457_v49  ;;  %vm2474_vm0 = vweird.f32 %v4275_v13 }
 0x677   :  { %4276 = vrcp.f32 %v2452_v4  ;;  %v2466_v60 = vsel %vm2463_vm4, %v2465_v21, %v2461_v62  ;;  %vm2475_vm6 = vmor %vm2473_vm5, %vm2474_vm0  ;;  %v2494_v52 = vand.u32 2147483648, %v2452_v4  ;;  %vm2488_vm9 = vweird.f32 %v2452_v4 }
 0x678   :  { %v2470_v50 = vsub.f32 1.0, %v2469_v19  ;;  %v2498_v25 = vmul.f32 %v2466_v60, %v2433_v29  ;;  %v2492_v2 = vand.u32 2147483647, %v2452_v4 }
 0x67a   :  { %v2471_v40 = vmul.f32 %v4275_v13, %v2470_v50  ;;  %v5118_v61 = vadd.f32 %v2498_v25, %v5082_v46  ;;  %v2495_v46 = vor.u32 1.1754944e-38, %v2494_v52  ;;  %vm2493_vm11 = vcmp.eq.f32.partialorder %v2492_v2, 8.507059e+37 }
 0x67c   :  { %v2472_v35 = vadd.f32 %v4275_v13, %v2471_v40 }
 0x67d   :  { %v4277_v37 = vpop.eup %4276 }
 0x67e   :  { %v2476_v11 = vsel %vm2475_vm6, %v4275_v13, %v2472_v35  ;;  %v2484_v55 = vmul.f32 %v4277_v37, %v2452_v4  ;;  %vm2489_vm8 = vweird.f32 %v4277_v37 }
 0x67f   :  { %v2481_v39 = vsel %vm2478_vm7, %v2480_v38, %v2476_v11  ;;  %vm2490_vm10 = vmor %vm2488_vm9, %vm2489_vm8 }
 0x680   :  { %v2499_v45 = vmul.f32 %v2481_v39, %v2435_v32  ;;  %v2485_v34 = vsub.f32 1.0, %v2484_v55  ;;  %v4062_v32 = vld [vmem:[%s5225_s8 + $0x8] sm:$0xff] }
 0x682   :  { %v5121_v51 = vadd.f32 %v2499_v45, %v5085_v3  ;;  %v2486_v26 = vmul.f32 %v4277_v37, %v2485_v34 }
 0x684   :  { %v2538_v63 = vpack.c.bf16 %v5121_v51, %v5118_v61  ;;  %v2487_v22 = vadd.f32 %v4277_v37, %v2486_v26 }
 0x686   :  { %v2491_v0 = vsel %vm2490_vm10, %v4277_v37, %v2487_v22  ;;  %2599 = vmatmul.bf16.vlgmr.msrb.gmra.mxu3 %v2538_v63 }
 0x687   :  { %v2496_v3 = vsel %vm2493_vm11, %v2495_v46, %v2491_v0 }
 0x688   :  { %v2500_v5 = vmul.f32 %v2496_v3, %v2438_v53 }
 0x68a   :  { %v5126_v10 = vadd.f32 %v2500_v5, %v5091_v7  ;;  %v4064_v7 = vld [vmem:[%s5225_s8 + $0x18] sm:$0xff] }
 0x68b   :  { %2726 = vmatpush.bf16.msra.mxu0 %v4064_v7 }
 0x68c   :  { %v2539_v33 = vpack.c.bf16 %v5126_v10, %v5126_v10 }
 0x68f   :  { %2727 = vmatpush.bf16.msra.mxu0 %v4063_v14 }
 0x693   :  { %2728 = vmatpush.bf16.msra.mxu0 %v4062_v32 }
 0x696   :  { %2604 = vmatmul.bf16.gmra.mxu3 %v2539_v33  ;;  %v4190_v33 = vld [vmem:[%s5227_s19] ss:$0 sm:$0xff] }
 0x697   :  { %2729 = vmatpush.bf16.msra.mxu0 %v4061_v57 }
 0x709   :  { %v2600_v9 = vpop.f32.mrf.mxu3 }
 0x70a   :  { %v2601_v29 = vadd.f32 %v4189_v27, %v2600_v9 }
 0x70c   :  { %v3786_v12 = vmul.f32 -1.442695, %v2601_v29 }
 0x70e   :  { %4278 = vpow2.f32 %v3786_v12 }
 0x711   :  { %v2602_v58 = vpop.f32.mrf.mxu3 }
 0x712   :  { %v2603_v8 = vadd.f32 %v4189_v27, %v2602_v58 }
 0x714   :  { %v4279_v18 = vpop.eup %4278  ;;  %v3787_v30 = vmul.f32 -1.442695, %v2603_v8 }
 0x715   :  { %v2618_v15 = vadd.f32 1.0, %v4279_v18 }
 0x716   :  { %4280 = vpow2.f32 %v3787_v30 }
 0x717   :  { %4282 = vrcp.f32 %v2618_v15  ;;  %v2632_v4 = vand.u32 2147483648, %v2618_v15  ;;  %vm2626_vm13 = vweird.f32 %v2618_v15  ;;  %v2630_v23 = vand.u32 2147483647, %v2618_v15 }
 0x719   :  { %v2605_v1 = vpop.f32.mrf.mxu3  ;;  %v2633_v40 = vor.u32 1.1754944e-38, %v2632_v4  ;;  %vm2631_vm2 = vcmp.eq.f32.partialorder %v2630_v23, 8.507059e+37 }
 0x71a   :  { %v2606_v54 = vadd.f32 %v4189_v27, %v2605_v1 }
 0x71c   :  { %v4281_v53 = vpop.eup %4280  ;;  %v3788_v56 = vmul.f32 -1.442695, %v2606_v54 }
 0x71d   :  { %v4283_v44 = vpop.eup %4282  ;;  %v2619_v42 = vadd.f32 1.0, %v4281_v53 }
 0x71e   :  { %v2622_v6 = vmul.f32 %v4283_v44, %v2618_v15  ;;  %4284 = vpow2.f32 %v3788_v56  ;;  %vm2627_vm12 = vweird.f32 %v4283_v44 }
 0x71f   :  { %4286 = vrcp.f32 %v2619_v42  ;;  %vm2628_vm14 = vmor %vm2626_vm13, %vm2627_vm12  ;;  %v2647_v62 = vand.u32 2147483648, %v2619_v42  ;;  %v2645_v36 = vand.u32 2147483647, %v2619_v42  ;;  %vm2641_vm4 = vweird.f32 %v2619_v42 }
 0x720   :  { %v2623_v16 = vsub.f32 1.0, %v2622_v6 }
 0x721   :  { %v2607_v20 = vpop.f32.mrf.mxu3  ;;  %v2648_v37 = vor.u32 1.1754944e-38, %v2647_v62  ;;  %vm2646_vm5 = vcmp.eq.f32.partialorder %v2645_v36, 8.507059e+37 }
 0x722   :  { %v2624_v59 = vmul.f32 %v4283_v44, %v2623_v16 }
 0x724   :  { %v4285_v17 = vpop.eup %4284  ;;  %v2625_v13 = vadd.f32 %v4283_v44, %v2624_v59 }
 0x725   :  { %v4287_v31 = vpop.eup %4286  ;;  %v2620_v49 = vadd.f32 1.0, %v4285_v17 }
 0x726   :  { %v2637_v48 = vmul.f32 %v4287_v31, %v2619_v42  ;;  %v2629_v50 = vsel %vm2628_vm14, %v4283_v44, %v2625_v13  ;;  %vm2642_vm15 = vweird.f32 %v4287_v31 }
 0x727   :  { %4288 = vrcp.f32 %v2620_v49  ;;  %v2634_v35 = vsel %vm2631_vm2, %v2633_v40, %v2629_v50  ;;  %vm2643_vm0 = vmor %vm2641_vm4, %vm2642_vm15  ;;  %v2662_v63 = vand.u32 2147483648, %v2620_v49  ;;  %vm2656_vm7 = vweird.f32 %v2620_v49  ;;  %v4075_v40 = vld [vmem:[%s5228_s24 + $0x30] sm:$0xff] }
 0x728   :  { %v2638_v19 = vsub.f32 1.0, %v2637_v48  ;;  %v2666_v55 = vmul.f32 %v2634_v35, %v2601_v29  ;;  %v2660_v22 = vand.u32 2147483647, %v2620_v49  ;;  %v5142_v29 = vpop.f32.mrf.mxu1 }
 0x729   :  { %v2663_v0 = vor.u32 1.1754944e-38, %v2662_v63 }
 0x72a   :  { %v2639_v21 = vmul.f32 %v4287_v31, %v2638_v19  ;;  %vm2661_vm9 = vcmp.eq.f32.partialorder %v2660_v22, 8.507059e+37  ;;  %v4076_v19 = vld [vmem:[%s5228_s24 + $0x38] sm:$0xff] }
 0x72b   :  { %2956 = vmatpush.bf16.msra.mxu3 %v4076_v19 }
 0x72c   :  { %v2640_v47 = vadd.f32 %v4287_v31, %v2639_v21 }
 0x72d   :  { %v4289_v60 = vpop.eup %4288 }
 0x72e   :  { %v2644_v38 = vsel %vm2643_vm0, %v4287_v31, %v2640_v47  ;;  %v2652_v25 = vmul.f32 %v4289_v60, %v2620_v49  ;;  %vm2657_vm6 = vweird.f32 %v4289_v60 }
 0x72f   :  { %v2649_v11 = vsel %vm2646_vm5, %v2648_v37, %v2644_v38  ;;  %vm2658_vm8 = vmor %vm2656_vm7, %vm2657_vm6  ;;  %2957 = vmatpush.bf16.msra.mxu3 %v4075_v40  ;;  %v4090_v40 = vld [vmem:[%s4546_s25 + $0x28] sm:$0xff] }
 0x730   :  { %v2667_v39 = vmul.f32 %v2649_v11, %v2603_v8  ;;  %v2653_v45 = vsub.f32 1.0, %v2652_v25  ;;  %v5146_v32 = vpop.f32.mrf.mxu1  ;;  %v4074_v25 = vld [vmem:[%s5228_s24 + $0x28] sm:$0xff] }
 0x732   :  { %v2669_v34 = vpack.c.bf16 %v2667_v39, %v2666_v55  ;;  %v2654_v26 = vmul.f32 %v4289_v60, %v2653_v45 }
 0x733   :  { %2958 = vmatpush.bf16.msra.mxu3 %v4074_v25 }
 0x734   :  { %v2655_v52 = vadd.f32 %v4289_v60, %v2654_v26  ;;  %2730 = vmatmul.bf16.vlgmr.msra.gmra.mxu0 %v2669_v34 }
 0x736   :  { %v2659_v2 = vsel %vm2658_vm8, %v4289_v60, %v2655_v52  ;;  %v4073_v52 = vld [vmem:[%s5228_s24 + $0x20] sm:$0xff] }
 0x737   :  { %v2664_v46 = vsel %vm2661_vm9, %v2663_v0, %v2659_v2  ;;  %2959 = vmatpush.bf16.msra.mxu3 %v4073_v52  ;;  %v4072_v0 = vld [vmem:[%s5228_s24 + $0x18] sm:$0xff] }
 0x738   :  { %v2668_v3 = vmul.f32 %v2664_v46, %v2606_v54  ;;  %v2878_v6 = vpop.f32.mrf.mxu1 }
 0x73a   :  { %v2670_v5 = vpack.c.bf16 %v2668_v3, %v2668_v3 }
 0x73b   :  { %2960 = vmatpush.bf16.msra.mxu3 %v4072_v0 }
 0x744   :  { %2735 = vmatmul.bf16.gmra.mxu0 %v2670_v5 }
 0x7b1   :  { %v2731_v28 = vpop.f32.mrf.mxu0 }
 0x7b2   :  { %v2732_v43 = vadd.f32 %v4190_v33, %v2731_v28 }
 0x7b4   :  { %v3821_v27 = vmul.f32 -1.442695, %v2732_v43 }
 0x7b6   :  { %4290 = vpow2.f32 %v3821_v27 }
 0x7b9   :  { %v2733_v24 = vpop.f32.mrf.mxu0 }
 0x7ba   :  { %v2734_v9 = vadd.f32 %v4190_v33, %v2733_v24 }
 0x7bc   :  { %v4291_v7 = vpop.eup %4290  ;;  %v3822_v12 = vmul.f32 -1.442695, %v2734_v9 }
 0x7bd   :  { %v2749_v14 = vadd.f32 1.0, %v4291_v7  ;;  %v2806_v7 = vld [vmem:[%s5229_s30] sm:$0xf] }
 0x7be   :  { %4292 = vpow2.f32 %v3822_v12  ;;  %v4069_v12 = vld [vmem:[%s5228_s24] sm:$0xff] }
 0x7bf   :  { %4294 = vrcp.f32 %v2749_v14  ;;  %v2763_v53 = vand.u32 2147483648, %v2749_v14  ;;  %v2761_v42 = vand.u32 2147483647, %v2749_v14  ;;  %vm2757_vm11 = vweird.f32 %v2749_v14 }
 0x7c1   :  { %v2736_v58 = vpop.f32.mrf.mxu0  ;;  %v2764_v17 = vor.u32 1.1754944e-38, %v2763_v53  ;;  %vm2762_vm13 = vcmp.eq.f32.partialorder %v2761_v42, 8.507059e+37  ;;  %v4078_v53 = vld [vmem:[%s5230_s6 + $0x8] sm:$0xff] }
 0x7c2   :  { %v5144_v8 = vadd.f32 %v4190_v33, %v2736_v58 }
 0x7c4   :  { %v4293_v18 = vpop.eup %4292  ;;  %v3823_v30 = vmul.f32 -1.442695, %v5144_v8 }
 0x7c5   :  { %v4295_v15 = vpop.eup %4294  ;;  %v2750_v57 = vadd.f32 1.0, %v4293_v18  ;;  %v4081_v18 = vld [vmem:[%s5230_s6 + $0x20] sm:$0xff] }
 0x7c6   :  { %v2753_v1 = vmul.f32 %v4295_v15, %v2749_v14  ;;  %4296 = vpow2.f32 %v3823_v30  ;;  %vm2758_vm10 = vweird.f32 %v4295_v15  ;;  %v4080_v30 = vld [vmem:[%s5230_s6 + $0x18] sm:$0xff] }
 0x7c7   :  { %4298 = vrcp.f32 %v2750_v57  ;;  %vm2759_vm12 = vmor %vm2757_vm11, %vm2758_vm10  ;;  %v2778_v62 = vand.u32 2147483648, %v2750_v57  ;;  %v2776_v21 = vand.u32 2147483647, %v2750_v57  ;;  %vm2772_vm15 = vweird.f32 %v2750_v57 }
 0x7c8   :  { %v2754_v54 = vsub.f32 1.0, %v2753_v1 }
 0x7c9   :  { %v2738_v56 = vpop.f32.mrf.mxu0  ;;  %v2779_v35 = vor.u32 1.1754944e-38, %v2778_v62  ;;  %vm2777_vm4 = vcmp.eq.f32.partialorder %v2776_v21, 8.507059e+37  ;;  %v4092_v21 = vld [vmem:[%s4546_s25 + $0x38] sm:$0xff] }
 0x7ca   :  { %v2755_v44 = vmul.f32 %v4295_v15, %v2754_v54  ;;  %3126 = vmatpush.bf16.msra.mxu1 %v4092_v21 }
 0x7cc   :  { %v4297_v16 = vpop.eup %4296  ;;  %v2756_v20 = vadd.f32 %v4295_v15, %v2755_v44  ;;  %v4077_v44 = vld [vmem:[%s5230_s6] sm:$0xff] }
 0x7cd   :  { %v4299_v59 = vpop.eup %4298  ;;  %v2751_v31 = vadd.f32 1.0, %v4297_v16 }
 0x7ce   :  { %v2760_v49 = vsel %vm2759_vm12, %v4295_v15, %v2756_v20  ;;  %v2768_v13 = vmul.f32 %v4299_v59, %v2750_v57  ;;  %vm2773_vm14 = vweird.f32 %v4299_v59  ;;  %v4191_v15 = vld [vmem:[%s5231_s20] ss:$0 sm:$0xff]  ;;  %v4079_v57 = vld [vmem:[%s5230_s6 + $0x10] sm:$0xff] }
 0x7cf   :  { %v2765_v48 = vsel %vm2762_vm13, %v2764_v17, %v2760_v49  ;;  %4300 = vrcp.f32 %v2751_v31  ;;  %vm2774_vm2 = vmor %vm2772_vm15, %vm2773_vm14  ;;  %v2793_v45 = vand.u32 2147483648, %v2751_v31  ;;  %v2791_v34 = vand.u32 2147483647, %v2751_v31 }
 0x7d0   :  { %v2797_v4 = vmul.f32 %v2765_v48, %v2732_v43  ;;  %v2769_v23 = vsub.f32 1.0, %v2768_v13  ;;  %vm2787_vm5 = vweird.f32 %v2751_v31  ;;  %v4070_v43 = vld [vmem:[%s5228_s24 + $0x8] sm:$0xff] }
 0x7d1   :  { %v2794_v22 = vor.u32 1.1754944e-38, %v2793_v45  ;;  %vm2792_vm7 = vcmp.eq.f32.partialorder %v2791_v34, 8.507059e+37 }
 0x7d2   :  { %v2770_v50 = vmul.f32 %v4299_v59, %v2769_v23  ;;  %v2800_v36 = vadd.f32 %v2797_v4, %v5118_v61 }
 0x7d4   :  { %v2771_v47 = vadd.f32 %v4299_v59, %v2770_v50  ;;  %2803 = vst [vmem:[#allocation2] sm:$0xff] %v2800_v36 }
 0x7d5   :  { %v4301_v60 = vpop.eup %4300 }
 0x7d6   :  { %v2775_v37 = vsel %vm2774_vm2, %v4299_v59, %v2771_v47  ;;  %v2783_v38 = vmul.f32 %v4301_v60, %v2751_v31  ;;  %vm2788_vm0 = vweird.f32 %v4301_v60  ;;  %v4089_v47 = vld [vmem:[%s4546_s25 + $0x20] sm:$0xff] }
 0x7d7   :  { %v2780_v11 = vsel %vm2777_vm4, %v2779_v35, %v2775_v37  ;;  %vm2789_vm6 = vmor %vm2787_vm5, %vm2788_vm0  ;;  %v4192_v35 = vld [vmem:[%s5232_s7] ss:$0 sm:$0xff]  ;;  %v4087_v37 = vld [vmem:[%s4546_s25 + $0x10] sm:$0xff] }
 0x7d8   :  { %v2798_v55 = vmul.f32 %v2780_v11, %v2734_v9  ;;  %v2784_v39 = vsub.f32 1.0, %v2783_v38  ;;  %v2880_v9 = vmul.f32 %v5140_v41, %v2800_v36  ;;  %v4084_v41 = vld [vmem:[%s5230_s6 + $0x38] sm:$0xff]  ;;  %v4091_v36 = vld [vmem:[%s4546_s25 + $0x30] sm:$0xff]  ;;  %v4086_v11 = vld [vmem:[%s4546_s25 + $0x8] sm:$0xff] }
 0x7d9   :  { %3041 = vmatpush.bf16.msrb.mxu0 %v4084_v41  ;;  %3127 = vmatpush.bf16.msra.mxu1 %v4091_v36 }
 0x7da   :  { %v2785_v61 = vmul.f32 %v4301_v60, %v2784_v39  ;;  %v2801_v26 = vadd.f32 %v2798_v55, %v5121_v51  ;;  %v4071_v51 = vld [vmem:[%s5228_s24 + $0x10] sm:$0xff]  ;;  %v4085_v39 = vld [vmem:[%s4546_s25] sm:$0xff] }
 0x7db   :  { %2961 = vmatpush.bf16.msra.mxu3 %v4071_v51 }
 0x7dc   :  { %v2786_v63 = vadd.f32 %v4301_v60, %v2785_v61  ;;  %2804 = vst [vmem:[#allocation2 + $0x8] sm:$0xff] %v2801_v26  ;;  %v2881_v27 = vmul.f32 %v5142_v29, %v2801_v26 }
 0x7dd   :  { %3128 = vmatpush.bf16.msra.mxu1 %v4090_v40 }
 0x7de   :  { %v2790_v2 = vsel %vm2789_vm6, %v4301_v60, %v2786_v63  ;;  %v4088_v60 = vld [vmem:[%s4546_s25 + $0x18] sm:$0xff]  ;;  %s3166_s25 = sshll.u32 %s4556_s27, 4  ;;  %s3167_s25 = int_to_ptr.hbm [resolvable:$true] %s3166_s25 }
 0x7df   :  { %v2795_v46 = vsel %vm2792_vm7, %v2794_v22, %v2790_v2  ;;  %2962 = vmatpush.bf16.msra.mxu3 %v4070_v43  ;;  %s4330_s15 = sshra.s32 %s3167_s25, 4  ;;  %s4331_s15 = int_to_ptr.hbm [resolvable:$true] %s4330_s15 }
 0x7e0   :  { %v2799_v3 = vmul.f32 %v2795_v46, %v5144_v8  ;;  %v4083_v8 = vld [vmem:[%s5230_s6 + $0x30] sm:$0xff]  ;;  %s4332_s16 = scalar_lea.hbm %s4331_s15, 24  ;;  %p4335_p1 = scmp.lt.s32.totalorder %s4331_s15, %s4556_s27 }
 0x7e1   :  { %3042 = vmatpush.bf16.msrb.mxu0 %v4083_v8  ;;  %3129 = vmatpush.bf16.msra.mxu1 %v4089_v47  ;;  %p4333_p0 = scmp.ne.s32.totalorder %s4331_s15, %s4332_s16  ;;  %p4336_p2 = scmp.lt.s32.totalorder %s4334_s18, %s4332_s16 }
 0x7e2   :  { %v2802_v5 = vadd.f32 %v2799_v3, %v5126_v10  ;;  %v2883_v10 = vpack.c.bf16 %v2881_v27, %v2880_v9 }
 0x7e3   :  { %2963 = vmatpush.bf16.msra.mxu3 %v4069_v12  ;;  %p4337_p3 = por %p4336_p2, %p4335_p1 }
 0x7e4   :  { %2805 = vst [vmem:[#allocation2 + $0x10] sm:$0xff] %v2802_v5  ;;  %v2882_v33 = vmul.f32 %v5146_v32, %v2802_v5  ;;  %v4082_v32 = vld [vmem:[%s5230_s6 + $0x28] sm:$0xff] }
 0x7e5   :  { %3043 = vmatpush.bf16.msrb.mxu0 %v4082_v32  ;;  %3130 = vmatpush.bf16.msra.mxu1 %v4088_v60  ;;  %p4338_p4 = pnand %p4337_p3, %p4333_p0 }
 0x7e6   :  { %v2884_v28 = vpack.c.bf16 %v2882_v33, %v2882_v33 }
 0x7e8   :  { %v2889_v24 = vsel %vm543_vm1, %v2884_v28, 0 }
 0x7e9   :  { %2897 = vmatpush.bf16.msra.mxu2 %v2889_v24  ;;  %3044 = vmatpush.bf16.msrb.mxu0 %v4081_v18 }
 0x7ea   :  { %3131 = vmatpush.bf16.msra.mxu1 %v4087_v37 }
 0x7ed   :  { %2898 = vmatpush.bf16.msra.mxu2 %v2883_v10  ;;  %3045 = vmatpush.bf16.msrb.mxu0 %v4080_v30 }
 0x7ee   :  { %3132 = vmatpush.bf16.msra.mxu1 %v4086_v11 }
 0x7f0   :  { %3826 = vmatmul.msk.bf16.vlgmr.msra.gmra.mxu2 %vm533_vm3, %v2806_v7 }
 0x7f1   :  { %3046 = vmatpush.bf16.msrb.mxu0 %v4079_v57 }
 0x7f2   :  { %3133 = vmatpush.bf16.msra.mxu1 %v4085_v39 }
 0x7f5   :  { %3047 = vmatpush.bf16.msrb.mxu0 %v4078_v53 }
 0x7f9   :  { %3048 = vmatpush.bf16.msrb.mxu0 %v4077_v44 }
 0x873   :  { %v2900_v29 = vpop.f32.mrf.mxu2 }
 0x874   :  { %v2904_v14 = vpack.c.bf16 %v2900_v29, %v2900_v29 }
 0x876   :  { %2964 = vmatmul.bf16.vlgmr.msra.gmra.mxu3 %v2904_v14 }
 0x87b   :  { %v2902_v58 = vpop.f32.mrf.mxu2 }
 0x8f9   :  { %v2965_v1 = vpop.f32.mrf.mxu3 }
 0x8fa   :  { %v2966_v54 = vadd.f32 %v4191_v15, %v2965_v1 }
 0x8fc   :  { %v3859_v56 = vmul.f32 -1.442695, %v2966_v54 }
 0x8fe   :  { %4302 = vpow2.f32 %v3859_v56 }
 0x901   :  { %v2967_v42 = vpop.f32.mrf.mxu3 }
 0x904   :  { %v4303_v6 = vpop.eup %4302 }
 0x905   :  { %v2972_v16 = vadd.f32 1.0, %v4303_v6 }
 0x907   :  { %4304 = vrcp.f32 %v2972_v16  ;;  %v2984_v31 = vand.u32 2147483648, %v2972_v16  ;;  %v2982_v13 = vand.u32 2147483647, %v2972_v16  ;;  %vm2978_vm3 = vweird.f32 %v2972_v16 }
 0x909   :  { %v2985_v4 = vor.u32 1.1754944e-38, %v2984_v31  ;;  %vm2983_vm9 = vcmp.eq.f32.partialorder %v2982_v13, 8.507059e+37 }
 0x90d   :  { %v4305_v20 = vpop.eup %4304 }
 0x90e   :  { %v2974_v59 = vmul.f32 %v4305_v20, %v2972_v16  ;;  %vm2979_vm1 = vweird.f32 %v4305_v20 }
 0x90f   :  { %vm2980_vm8 = vmor %vm2978_vm3, %vm2979_vm1 }
 0x910   :  { %v2975_v17 = vsub.f32 1.0, %v2974_v59 }
 0x912   :  { %v2976_v49 = vmul.f32 %v4305_v20, %v2975_v17 }
 0x914   :  { %v2977_v48 = vadd.f32 %v4305_v20, %v2976_v49 }
 0x916   :  { %v2981_v23 = vsel %vm2980_vm8, %v4305_v20, %v2977_v48 }
 0x917   :  { %v2986_v19 = vsel %vm2983_vm9, %v2985_v4, %v2981_v23 }
 0x918   :  { %v2988_v62 = vmul.f32 %v2986_v19, %v2966_v54 }
 0x91a   :  { %v2989_v50 = vpack.c.bf16 %v2988_v62, %v2988_v62 }
 0x91c   :  { %3049 = vmatmul.bf16.vlgmr.msrb.gmra.mxu0 %v2989_v50 }
 0x999   :  { %v3050_v38 = vpop.f32.mrf.mxu0 }
 0x99a   :  { %v3051_v25 = vadd.f32 %v4192_v35, %v3050_v38 }
 0x99c   :  { %v3892_v55 = vmul.f32 -1.442695, %v3051_v25 }
 0x99e   :  { %4306 = vpow2.f32 %v3892_v55 }
 0x9a1   :  { %v3052_v45 = vpop.f32.mrf.mxu0 }
 0x9a4   :  { %v4307_v61 = vpop.eup %4306 }
 0x9a5   :  { %v3057_v34 = vadd.f32 1.0, %v4307_v61 }
 0x9a7   :  { %4308 = vrcp.f32 %v3057_v34  ;;  %v3069_v22 = vand.u32 2147483648, %v3057_v34  ;;  %v3067_v0 = vand.u32 2147483647, %v3057_v34  ;;  %vm3063_vm11 = vweird.f32 %v3057_v34 }
 0x9a9   :  { %v3070_v3 = vor.u32 1.1754944e-38, %v3069_v22  ;;  %vm3068_vm13 = vcmp.eq.f32.partialorder %v3067_v0, 8.507059e+37 }
 0x9ad   :  { %v4309_v26 = vpop.eup %4308 }
 0x9ae   :  { %v3059_v52 = vmul.f32 %v4309_v26, %v3057_v34  ;;  %vm3064_vm10 = vweird.f32 %v4309_v26 }
 0x9af   :  { %vm3065_vm12 = vmor %vm3063_vm11, %vm3064_vm10 }
 0x9b0   :  { %v3060_v63 = vsub.f32 1.0, %v3059_v52 }
 0x9b2   :  { %v3061_v2 = vmul.f32 %v4309_v26, %v3060_v63 }
 0x9b4   :  { %v3062_v46 = vadd.f32 %v4309_v26, %v3061_v2 }
 0x9b6   :  { %v3066_v5 = vsel %vm3065_vm12, %v4309_v26, %v3062_v46 }
 0x9b7   :  { %v3071_v51 = vsel %vm3068_vm13, %v3070_v3, %v3066_v5 }
 0x9b8   :  { %v3073_v33 = vmul.f32 %v3071_v51, %v3051_v25 }
 0x9ba   :  { %v3074_v28 = vpack.c.bf16 %v3073_v33, %v3073_v33 }
 0x9bc   :  { %3134 = vmatmul.bf16.vlgmr.msra.gmra.mxu1 %v3074_v28 }
 0x9bd   :  { %4341 = shalt.err (!%p4338_p4)
}
 0x9be   :  { %s4386_s22 = smov 128   ;;  %s4387_s23 = smov 8   ;;  %v4193_v43 = vld [vmem:[%s4551_s12] ss:$0 sm:$0xff] }
 0x9bf   :  { %3172 = dma.vmem_to_hbm [thread:$0]  %s3165_s11, 384, %s3167_s25, [#allocation3], %s4386_s22, %s4386_s22, %s4387_s23  }
 0xa39   :  { %v3135_v27 = vpop.f32.mrf.mxu1 }
 0xa3a   :  { %v3136_v24 = vadd.f32 %v4193_v43, %v3135_v27 }
 0xa3c   :  { %v3925_v9 = vmul.f32 -1.442695, %v3136_v24 }
 0xa3e   :  { %4310 = vpow2.f32 %v3925_v9 }
 0xa41   :  { %v3137_v10 = vpop.f32.mrf.mxu1 }
 0xa44   :  { %v4311_v7 = vpop.eup %4310 }
 0xa45   :  { %v3142_v12 = vadd.f32 1.0, %v4311_v7 }
 0xa47   :  { %4312 = vrcp.f32 %v3142_v12  ;;  %v3154_v41 = vand.u32 2147483648, %v3142_v12  ;;  %v3152_v32 = vand.u32 2147483647, %v3142_v12  ;;  %vm3148_vm15 = vweird.f32 %v3142_v12 }
 0xa49   :  { %v3155_v30 = vor.u32 1.1754944e-38, %v3154_v41  ;;  %vm3153_vm4 = vcmp.eq.f32.partialorder %v3152_v32, 8.507059e+37 }
 0xa4d   :  { %v4313_v29 = vpop.eup %4312 }
 0xa4e   :  { %v3144_v14 = vmul.f32 %v4313_v29, %v3142_v12  ;;  %vm3149_vm14 = vweird.f32 %v4313_v29 }
 0xa4f   :  { %vm3150_vm2 = vmor %vm3148_vm15, %vm3149_vm14 }
 0xa50   :  { %v3145_v58 = vsub.f32 1.0, %v3144_v14 }
 0xa52   :  { %v3146_v8 = vmul.f32 %v4313_v29, %v3145_v58 }
 0xa54   :  { %v3147_v18 = vadd.f32 %v4313_v29, %v3146_v8 }
 0xa56   :  { %v3151_v15 = vsel %vm3150_vm2, %v4313_v29, %v3147_v18 }
 0xa57   :  { %v3156_v57 = vsel %vm3153_vm4, %v3155_v30, %v3151_v15 }
 0xa58   :  { %v3158_v1 = vmul.f32 %v3156_v57, %v3136_v24 }
 0xa5a   :  { %3159 = vst [vmem:[%s4561_s4] sm:$0xff] %v3158_v1 }
 0xa5b   :  { %4342 = dma.done.wait [#allocation3], 384  }
 0xa5c   :  { %4343 = vsyncadd [#allocation3], 4294966912 }
 0xa5d   :  { %3181 = vsyncpa [#allocation3], 1 }

// kernel: _lambda_.15
= control target key start
LH: loop header
LB: loop body
LE: loop exit
PB: predicated region body
PF: predicated region fallthrough
CT: control target
= control target key end

     0   :  { %vm574_vm0 = vcmask 1043456   ;;  %vm570_vm1 = vcmask 64512   ;;  %vm591_vm2 = vcmask 1024   ;;  %s1093_s1 = inlined_call_operand.vmem [shape: bf16[896,1], index: 1, kind: input, shape index: {}]   ;;  %s1094_s0 = inlined_call_operand.vmem [shape: f32[8,896], index: 0, kind: input, shape index: {}]   ;;  %s1095_s2 = inlined_call_operand.vmem [shape: bf16[2,8], index: 2, kind: input, shape index: {}]   ;;  %s1096_s3 = inlined_call_operand.vmem [shape: f32[2,1], index: 3, kind: output, shape index: {}]  }
   0x1   :  { %v829_v0 = vld [vmem:[%s1093_s1 + $0x38] sm:$0xff]  ;;  %v828_v3 = vld [vmem:[%s1093_s1 + $0x30] sm:$0xff]  ;;  %v827_v7 = vld [vmem:[%s1093_s1 + $0x28] sm:$0xff] }
   0x2   :  { %v837_v1 = vld [vmem:[%s1093_s1 + $0x78] sm:$0xff]  ;;  %477 = vmatpush.bf16.msra.mxu0 %v829_v0  ;;  %v836_v4 = vld [vmem:[%s1093_s1 + $0x70] sm:$0xff]  ;;  %v835_v8 = vld [vmem:[%s1093_s1 + $0x68] sm:$0xff] }
   0x3   :  { %v845_v2 = vld [vmem:[%s1093_s1 + $0xb8] sm:$0xff]  ;;  %490 = vmatpush.bf16.msra.mxu1 %v837_v1  ;;  %v844_v5 = vld [vmem:[%s1093_s1 + $0xb0] sm:$0xff]  ;;  %v843_v9 = vld [vmem:[%s1093_s1 + $0xa8] sm:$0xff] }
   0x4   :  { %503 = vmatpush.bf16.msra.mxu2 %v845_v2  ;;  %v853_v6 = vld [vmem:[%s1093_s1 + $0xf8] sm:$0xff]  ;;  %v852_v10 = vld [vmem:[%s1093_s1 + $0xf0] sm:$0xff]  ;;  %v826_v11 = vld [vmem:[%s1093_s1 + $0x20] sm:$0xff] }
   0x5   :  { %516 = vmatpush.bf16.msra.mxu3 %v853_v6  ;;  %v834_v12 = vld [vmem:[%s1093_s1 + $0x60] sm:$0xff]  ;;  %v851_v14 = vld [vmem:[%s1093_s1 + $0xe8] sm:$0xff]  ;;  %v825_v15 = vld [vmem:[%s1093_s1 + $0x18] sm:$0xff] }
   0x6   :  { %478 = vmatpush.bf16.msra.mxu0 %v828_v3  ;;  %v842_v13 = vld [vmem:[%s1093_s1 + $0xa0] sm:$0xff]  ;;  %v833_v16 = vld [vmem:[%s1093_s1 + $0x58] sm:$0xff]  ;;  %v824_v19 = vld [vmem:[%s1093_s1 + $0x10] sm:$0xff] }
   0x7   :  { %491 = vmatpush.bf16.msra.mxu1 %v836_v4  ;;  %v841_v17 = vld [vmem:[%s1093_s1 + $0x98] sm:$0xff]  ;;  %v850_v18 = vld [vmem:[%s1093_s1 + $0xe0] sm:$0xff]  ;;  %v832_v20 = vld [vmem:[%s1093_s1 + $0x50] sm:$0xff] }
   0x8   :  { %504 = vmatpush.bf16.msra.mxu2 %v844_v5  ;;  %v840_v21 = vld [vmem:[%s1093_s1 + $0x90] sm:$0xff]  ;;  %v849_v22 = vld [vmem:[%s1093_s1 + $0xd8] sm:$0xff]  ;;  %v823_v23 = vld [vmem:[%s1093_s1 + $0x8] sm:$0xff] }
   0x9   :  { %517 = vmatpush.bf16.msra.mxu3 %v852_v10  ;;  %v831_v24 = vld [vmem:[%s1093_s1 + $0x48] sm:$0xff]  ;;  %v848_v26 = vld [vmem:[%s1093_s1 + $0xd0] sm:$0xff]  ;;  %v822_v27 = vld [vmem:[%s1093_s1] sm:$0xff] }
   0xa   :  { %479 = vmatpush.bf16.msra.mxu0 %v827_v7  ;;  %v839_v25 = vld [vmem:[%s1093_s1 + $0x88] sm:$0xff]  ;;  %v830_v28 = vld [vmem:[%s1093_s1 + $0x40] sm:$0xff]  ;;  %v861_v31 = vld [vmem:[%s1093_s1 + $0x138] sm:$0xff] }
   0xb   :  { %492 = vmatpush.bf16.msra.mxu1 %v835_v8  ;;  %v838_v29 = vld [vmem:[%s1093_s1 + $0x80] sm:$0xff]  ;;  %v17_v32 = vld [vmem:[%s1094_s0 + $0x10] sm:$0xff]  ;;  %v16_v33 = vld [vmem:[%s1094_s0 + $0x8] sm:$0xff] }
   0xc   :  { %505 = vmatpush.bf16.msra.mxu2 %v843_v9  ;;  %v15_v30 = vld [vmem:[%s1094_s0] sm:$0xff]  ;;  %v869_v34 = vld [vmem:[%s1093_s1 + $0x178] sm:$0xff]  ;;  %v847_v36 = vld [vmem:[%s1093_s1 + $0xc8] sm:$0xff]  ;;  %v136_v38 = vpack.c.bf16 %v17_v32, %v17_v32  ;;  %v135_v39 = vpack.c.bf16 %v16_v33, %v16_v33 }
   0xd   :  { %518 = vmatpush.bf16.msra.mxu3 %v851_v14  ;;  %v877_v35 = vld [vmem:[%s1093_s1 + $0x1b8] sm:$0xff]  ;;  %v134_v37 = vpack.c.bf16 %v15_v30, %v15_v30  ;;  %v860_v40 = vld [vmem:[%s1093_s1 + $0x130] sm:$0xff]  ;;  %v846_v43 = vld [vmem:[%s1093_s1 + $0xc0] sm:$0xff] }
   0xe   :  { %480 = vmatpush.bf16.msra.mxu0 %v826_v11  ;;  %v868_v41 = vld [vmem:[%s1093_s1 + $0x170] sm:$0xff]  ;;  %v18_v44 = vld [vmem:[%s1094_s0 + $0x18] sm:$0xff]  ;;  %v859_v45 = vld [vmem:[%s1093_s1 + $0x128] sm:$0xff] }
   0xf   :  { %493 = vmatpush.bf16.msra.mxu1 %v834_v12  ;;  %v876_v42 = vld [vmem:[%s1093_s1 + $0x1b0] sm:$0xff]  ;;  %v867_v46 = vld [vmem:[%s1093_s1 + $0x168] sm:$0xff]  ;;  %v137_v48 = vpack.c.bf16 %v18_v44, %v18_v44  ;;  %v858_v49 = vld [vmem:[%s1093_s1 + $0x120] sm:$0xff] }
  0x10   :  { %506 = vmatpush.bf16.msra.mxu2 %v842_v13  ;;  %v875_v47 = vld [vmem:[%s1093_s1 + $0x1a8] sm:$0xff]  ;;  %v866_v50 = vld [vmem:[%s1093_s1 + $0x160] sm:$0xff]  ;;  %v857_v52 = vld [vmem:[%s1093_s1 + $0x118] sm:$0xff] }
  0x11   :  { %519 = vmatpush.bf16.msra.mxu3 %v850_v18  ;;  %v874_v51 = vld [vmem:[%s1093_s1 + $0x1a0] sm:$0xff]  ;;  %v865_v53 = vld [vmem:[%s1093_s1 + $0x158] sm:$0xff]  ;;  %v856_v55 = vld [vmem:[%s1093_s1 + $0x110] sm:$0xff] }
  0x12   :  { %481 = vmatpush.bf16.msra.mxu0 %v825_v15  ;;  %v873_v54 = vld [vmem:[%s1093_s1 + $0x198] sm:$0xff]  ;;  %v864_v56 = vld [vmem:[%s1093_s1 + $0x150] sm:$0xff]  ;;  %v855_v58 = vld [vmem:[%s1093_s1 + $0x108] sm:$0xff] }
  0x13   :  { %494 = vmatpush.bf16.msra.mxu1 %v833_v16  ;;  %v872_v57 = vld [vmem:[%s1093_s1 + $0x190] sm:$0xff]  ;;  %v863_v59 = vld [vmem:[%s1093_s1 + $0x148] sm:$0xff]  ;;  %v854_v61 = vld [vmem:[%s1093_s1 + $0x100] sm:$0xff] }
  0x14   :  { %507 = vmatpush.bf16.msra.mxu2 %v841_v17  ;;  %v871_v60 = vld [vmem:[%s1093_s1 + $0x188] sm:$0xff]  ;;  %v862_v62 = vld [vmem:[%s1093_s1 + $0x140] sm:$0xff]  ;;  %v21_v2 = vld [vmem:[%s1094_s0 + $0x30] sm:$0xff] }
  0x15   :  { %520 = vmatpush.bf16.msra.mxu3 %v849_v22  ;;  %v19_v63 = vld [vmem:[%s1094_s0 + $0x20] sm:$0xff]  ;;  %v20_v1 = vld [vmem:[%s1094_s0 + $0x28] sm:$0xff]  ;;  %v140_v5 = vpack.c.bf16 %v21_v2, %v21_v2 }
  0x16   :  { %482 = vmatpush.bf16.msra.mxu0 %v824_v19  ;;  %v870_v0 = vld [vmem:[%s1093_s1 + $0x180] sm:$0xff]  ;;  %v138_v3 = vpack.c.bf16 %v19_v63, %v19_v63  ;;  %v139_v4 = vpack.c.bf16 %v20_v1, %v20_v1 }
  0x17   :  { %495 = vmatpush.bf16.msra.mxu1 %v832_v20 }
  0x18   :  { %508 = vmatpush.bf16.msra.mxu2 %v840_v21 }
  0x19   :  { %521 = vmatpush.bf16.msra.mxu3 %v848_v26 }
  0x1a   :  { %483 = vmatpush.bf16.msra.mxu0 %v823_v23 }
  0x1b   :  { %496 = vmatpush.bf16.msra.mxu1 %v831_v24 }
  0x1c   :  { %509 = vmatpush.bf16.msra.mxu2 %v839_v25 }
  0x1d   :  { %522 = vmatpush.bf16.msra.mxu3 %v847_v36 }
  0x1e   :  { %484 = vmatpush.bf16.msra.mxu0 %v822_v27  ;;  %v568_v27 = vld [vmem:[%s1095_s2] sm:$0x1] }
  0x1f   :  { %497 = vmatpush.bf16.msra.mxu1 %v830_v28 }
  0x20   :  { %510 = vmatpush.bf16.msra.mxu2 %v838_v29 }
  0x21   :  { %485 = vmatmul.bf16.vlgmr.msra.gmra.mxu0 %v134_v37  ;;  %523 = vmatpush.bf16.msra.mxu3 %v846_v43 }
  0x22   :  { %529 = vmatpush.bf16.msrb.mxu0 %v861_v31  ;;  %498 = vmatmul.bf16.vlgmr.msra.gmra.mxu1 %v135_v39 }
  0x23   :  { %542 = vmatpush.bf16.msrb.mxu1 %v869_v34  ;;  %511 = vmatmul.bf16.vlgmr.msra.gmra.mxu2 %v136_v38 }
  0x24   :  { %555 = vmatpush.bf16.msrb.mxu2 %v877_v35  ;;  %524 = vmatmul.bf16.vlgmr.msra.gmra.mxu3 %v137_v48 }
  0x26   :  { %530 = vmatpush.bf16.msrb.mxu0 %v860_v40 }
  0x27   :  { %543 = vmatpush.bf16.msrb.mxu1 %v868_v41 }
  0x28   :  { %556 = vmatpush.bf16.msrb.mxu2 %v876_v42 }
  0x2a   :  { %531 = vmatpush.bf16.msrb.mxu0 %v859_v45 }
  0x2b   :  { %544 = vmatpush.bf16.msrb.mxu1 %v867_v46 }
  0x2c   :  { %557 = vmatpush.bf16.msrb.mxu2 %v875_v47 }
  0x2e   :  { %532 = vmatpush.bf16.msrb.mxu0 %v858_v49 }
  0x2f   :  { %545 = vmatpush.bf16.msrb.mxu1 %v866_v50 }
  0x30   :  { %558 = vmatpush.bf16.msrb.mxu2 %v874_v51 }
  0x32   :  { %533 = vmatpush.bf16.msrb.mxu0 %v857_v52 }
  0x33   :  { %546 = vmatpush.bf16.msrb.mxu1 %v865_v53 }
  0x34   :  { %559 = vmatpush.bf16.msrb.mxu2 %v873_v54 }
  0x36   :  { %534 = vmatpush.bf16.msrb.mxu0 %v856_v55 }
  0x37   :  { %547 = vmatpush.bf16.msrb.mxu1 %v864_v56 }
  0x38   :  { %560 = vmatpush.bf16.msrb.mxu2 %v872_v57 }
  0x3a   :  { %535 = vmatpush.bf16.msrb.mxu0 %v855_v58 }
  0x3b   :  { %548 = vmatpush.bf16.msrb.mxu1 %v863_v59 }
  0x3c   :  { %561 = vmatpush.bf16.msrb.mxu2 %v871_v60 }
  0x3e   :  { %536 = vmatpush.bf16.msrb.mxu0 %v854_v61 }
  0x3f   :  { %549 = vmatpush.bf16.msrb.mxu1 %v862_v62 }
  0x40   :  { %562 = vmatpush.bf16.msrb.mxu2 %v870_v0 }
  0x41   :  { %537 = vmatmul.bf16.vlgmr.msrb.gmra.mxu0 %v138_v3 }
  0x42   :  { %550 = vmatmul.bf16.vlgmr.msrb.gmra.mxu1 %v139_v4 }
  0x43   :  { %563 = vmatmul.bf16.vlgmr.msrb.gmra.mxu2 %v140_v5 }
  0x9e   :  { %v486_v6 = vpop.f32.mrf.mxu0 }
  0x9f   :  { %v499_v7 = vpop.f32.mrf.mxu1 }
  0xa0   :  { %v500_v13 = vadd.f32 %v499_v7, %v486_v6 }
  0xa6   :  { %v512_v8 = vpop.f32.mrf.mxu2  ;;  %v488_v9 = vpop.f32.mrf.mxu0 }
  0xa7   :  { %v501_v10 = vpop.f32.mrf.mxu1  ;;  %v525_v11 = vpop.f32.mrf.mxu3  ;;  %v513_v15 = vadd.f32 %v512_v8, %v500_v13 }
  0xa9   :  { %v526_v16 = vadd.f32 %v525_v11, %v513_v15 }
  0xae   :  { %v514_v12 = vpop.f32.mrf.mxu2 }
  0xaf   :  { %v527_v14 = vpop.f32.mrf.mxu3 }
  0xbe   :  { %v538_v17 = vpop.f32.mrf.mxu0 }
  0xbf   :  { %v551_v18 = vpop.f32.mrf.mxu1  ;;  %v539_v19 = vadd.f32 %v538_v17, %v526_v16 }
  0xc1   :  { %v552_v20 = vadd.f32 %v551_v18, %v539_v19 }
  0xc6   :  { %v564_v21 = vpop.f32.mrf.mxu2  ;;  %v540_v23 = vpop.f32.mrf.mxu0 }
  0xc7   :  { %v565_v22 = vadd.f32 %v564_v21, %v552_v20  ;;  %v553_v24 = vpop.f32.mrf.mxu1 }
  0xc9   :  { %v569_v25 = vpack.c.bf16 %v565_v22, %v565_v22 }
  0xcb   :  { %v576_v26 = vsel %vm574_vm0, %v569_v25, 0 }
  0xcc   :  { %585 = vmatpush.bf16.msrb.mxu3 %v576_v26 }
  0xce   :  { %v566_v28 = vpop.f32.mrf.mxu2 }
  0xcf   :  { %821 = vmatmul.msk.bf16.vlgmr.msrb.gmra.mxu3 %vm570_vm1, %v568_v27 }
 0x152   :  { %v587_v29 = vpop.f32.mrf.mxu3 }
 0x153   :  { %592 = vst.msk [vmem:[%s1096_s3] sm:$0x3] %vm591_vm2, %v587_v29 }
 0x15a   :  { %v589_v30 = vpop.f32.mrf.mxu3 }

</bundles_post_ra>
